<compile_context>
chip_gen: v7x
topology: tpu7x:2x2x1
jax: 0.10.0
libtpu: 0.0.40
codegen_flags: <defaults>
</compile_context>

<pallas_src>
import math
import functools

import jax
import jax.numpy as jnp
from jax import lax
from jax.experimental import pallas as pl
from jax.experimental.pallas import tpu as pltpu

NEG_INF = -1e30  # stands in for float('-inf') in the additive attention masks


# ----------------------------------------------------------------------------
# In-kernel helpers (traced inside the Pallas kernels)
# ----------------------------------------------------------------------------
def _mm(x, w):
    """MXU matmul: cast the activation to the (bf16) weight dtype, f32 accumulate."""
    return jnp.dot(x.astype(w.dtype), w, preferred_element_type=jnp.float32)


def _layernorm(x, g, b, eps=1e-5):
    # x: (N, D), g/b: (1, D) -- PyTorch LayerNorm (biased variance, eps=1e-5)
    mu = jnp.mean(x, axis=-1, keepdims=True)
    var = jnp.mean(jnp.square(x - mu), axis=-1, keepdims=True)
    return (x - mu) * lax.rsqrt(var + eps) * g + b


def _softmax(s):
    # exp -> row-sum -> EUP reciprocal multiply (divide stays off the VALU).
    s = s - jnp.max(s, axis=-1, keepdims=True)
    p = jnp.exp(s)
    return p * pl.reciprocal(jnp.sum(p, axis=-1, keepdims=True), approx=True)


def _mha(xq, xkv, wq, bq, wk, bk, wv, bv, wo, bo, mask):
    """Multi-head attention on ONE batch element (2-D activations).

    xq: (Tq, D)      xkv: (Tk, D)
    wq/wk/wv: (H, D, hd)  bq/bk/bv: (H, 1, hd)
    wo: (H, hd, D)        bo: (1, D)
    mask: optional (Tq, Tk) additive float mask.

    Heads are unrolled at compile time as plain 2-D MXU matmuls over per-head
    weight slabs (pre-split outside the kernel): no runtime lane-slicing of a
    packed qkv output and no concatenate over heads -- each head's context is
    folded straight into its slice of the output projection and accumulated.
    """
    nheads, _, hd = wq.shape
    scale = 1.0 / math.sqrt(hd)
    out = None
    for h in range(nheads):                 # nheads is a compile-time constant
        q = _mm(xq, wq[h]) + bq[h]          # (Tq, hd)
        k = _mm(xkv, wk[h]) + bk[h]         # (Tk, hd)
        v = _mm(xkv, wv[h]) + bv[h]         # (Tk, hd)
        # scores: "NT" 2-D dot_general, contraction over the head dim
        s = lax.dot_general(q, k, (((1,), (1,)), ((), ())),
                            preferred_element_type=jnp.float32) * scale
        if mask is not None:
            s = s + mask
        p = _softmax(s)                     # (Tq, Tk) f32
        ctx = jnp.dot(p, v, preferred_element_type=jnp.float32)   # (Tq, hd)
        o_h = _mm(ctx, wo[h])               # (Tq, D)
        out = o_h if out is None else out + o_h
    return out + bo


# ----------------------------------------------------------------------------
# Encoder stack kernel: grid = (batch, encoder_layer)
# ----------------------------------------------------------------------------
def encoder_layer_kernel(src_ref,
                         wq, bq, wk, bk, wv, bv, wo, bo,
                         w1, b1, w2, b2,
                         ln1g, ln1b, ln2g, ln2b,
                         ng, nb,
                         mem_ref,
                         x_scr):
    l = pl.program_id(1)

    @pl.when(l == 0)
    def _():
        x_scr[...] = src_ref[0]

    x = x_scr[...]                                           # (S, D)
    attn = _mha(x, x, wq[0], bq[0], wk[0], bk[0], wv[0], bv[0], wo[0], bo[0], None)
    z = _layernorm(x + attn, ln1g[0], ln1b[0])
    ff = jnp.maximum(_mm(z, w1[0]) + b1[0], 0.0)             # (S, dim_ff), relu
    ff = _mm(ff, w2[0]) + b2[0]                              # (S, D)
    z = _layernorm(z + ff, ln2g[0], ln2b[0])
    x_scr[...] = z

    @pl.when(l == pl.num_programs(1) - 1)
    def _():
        # final TransformerEncoder LayerNorm
        mem_ref[0] = _layernorm(z, ng[...], nb[...])


# ----------------------------------------------------------------------------
# Decoder stack kernel: grid = (batch, decoder_layer)
# ----------------------------------------------------------------------------
def decoder_layer_kernel(tgt_ref, mem_ref, pad_ref,
                         sa_wq, sa_bq, sa_wk, sa_bk, sa_wv, sa_bv, sa_wo, sa_bo,
                         ln1g, ln1b,
                         ca_wq, ca_bq, ca_wk, ca_bk, ca_wv, ca_bv, ca_wo, ca_bo,
                         ln2g, ln2b,
                         w1, b1, w2, b2,
                         ln3g, ln3b,
                         ng, nb,
                         out_ref,
                         y_scr):
    l = pl.program_id(1)

    @pl.when(l == 0)
    def _():
        y_scr[...] = tgt_ref[0]

    y = y_scr[...]                                           # (T, D)
    T = y.shape[0]

    # causal + key-padding mask built in-kernel; only a (1, T) pad row was DMA'd
    rows = lax.broadcasted_iota(jnp.int32, (T, T), 0)
    cols = lax.broadcasted_iota(jnp.int32, (T, T), 1)
    mask = jnp.where(cols > rows, NEG_INF, 0.0) + pad_ref[0]     # (T, T)

    sa = _mha(y, y, sa_wq[0], sa_bq[0], sa_wk[0], sa_bk[0],
              sa_wv[0], sa_bv[0], sa_wo[0], sa_bo[0], mask)
    z = _layernorm(y + sa, ln1g[0], ln1b[0])

    mem = mem_ref[0]                                         # (S, D)
    ca = _mha(z, mem, ca_wq[0], ca_bq[0], ca_wk[0], ca_bk[0],
              ca_wv[0], ca_bv[0], ca_wo[0], ca_bo[0], None)
    z = _layernorm(z + ca, ln2g[0], ln2b[0])

    ff = jnp.maximum(_mm(z, w1[0]) + b1[0], 0.0)
    ff = _mm(ff, w2[0]) + b2[0]
    z = _layernorm(z + ff, ln3g[0], ln3b[0])
    y_scr[...] = z

    @pl.when(l == pl.num_programs(1) - 1)
    def _():
        # final TransformerDecoder LayerNorm
        out_ref[0] = _layernorm(z, ng[...], nb[...])


# ----------------------------------------------------------------------------
# BlockSpec helpers for grid = (batch, layer)
# ----------------------------------------------------------------------------
def _layer_spec(shape):
    """Per-layer weight slab, stacked on axis 0: block index follows the layer axis."""
    tail = (0,) * (len(shape) - 1)
    return pl.BlockSpec((1,) + tuple(shape[1:]), lambda b, l: (l,) + tail)


def _batch_spec(shape):
    """Per-batch activation block: block index follows the batch axis."""
    tail = (0,) * (len(shape) - 1)
    return pl.BlockSpec((1,) + tuple(shape[1:]), lambda b, l: (b,) + tail)


def _const_spec(shape):
    """Whole-array block, constant across the grid (final LayerNorm params)."""
    zeros = (0,) * len(shape)
    return pl.BlockSpec(tuple(shape), lambda b, l: zeros)


def _bytes_of(args):
    return int(sum(math.prod(a.shape) * a.dtype.itemsize for a in args))


def _vmem_limit_bytes(batch_args, layer_args, const_args, out_block_bytes,
                      scratch_bytes):
    blk = lambda a: math.prod(a.shape[1:]) * a.dtype.itemsize
    full = lambda a: math.prod(a.shape) * a.dtype.itemsize
    need = (2 * sum(blk(a) for a in batch_args)      # double-buffered batch blocks
            + 2 * sum(blk(a) for a in layer_args)    # double-buffered layer slabs
            + sum(full(a) for a in const_args)
            + 2 * out_block_bytes + scratch_bytes)
    # generous headroom for compiler temporaries (FFN intermediates, casts, ...)
    return int(min(max(4 * need, 16 * 1024 * 1024), 96 * 1024 * 1024))


# ----------------------------------------------------------------------------
# Parameter init (deterministic, synthetic). Per-layer weights stacked on axis 0;
# attention projections already split per head (no runtime slicing in-kernel);
# matmul weights stored in bfloat16.
# ----------------------------------------------------------------------------
def positional_encoding_table(max_len, d_model):
    position = jnp.arange(max_len, dtype=jnp.float32)[:, None]
    div_term = jnp.exp(jnp.arange(0, d_model, 2, dtype=jnp.float32)
                       * (-math.log(10000.0) / d_model))
    pe = jnp.zeros((max_len, d_model), jnp.float32)
    pe = pe.at[:, 0::2].set(jnp.sin(position * div_term))
    pe = pe.at[:, 1::2].set(jnp.cos(position * div_term))
    return pe  # (max_len, d_model)


def init_params(key, vocab_len, hidden_dim, nheads, num_enc, num_dec,
                encoder_op_dim, dim_ff=2048, max_len=128, w_dtype=jnp.bfloat16):
    d = hidden_dim
    hd = d // nheads
    keys = iter(jax.random.split(key, 64))

    def nrm(shape, scale=0.05, dtype=w_dtype):
        return (scale * jax.random.normal(next(keys), shape, jnp.float32)).astype(dtype)

    def zeros(shape):
        return jnp.zeros(shape, jnp.float32)

    def ones(shape):
        return jnp.ones(shape, jnp.float32)

    def attn_params(L):
        return dict(
            wq=nrm((L, nheads, d, hd)), bq=zeros((L, nheads, 1, hd)),
            wk=nrm((L, nheads, d, hd)), bk=zeros((L, nheads, 1, hd)),
            wv=nrm((L, nheads, d, hd)), bv=zeros((L, nheads, 1, hd)),
            wo=nrm((L, nheads, hd, d)), bo=zeros((L, 1, d)),
        )

    enc = dict(
        **attn_params(num_enc),
        w1=nrm((num_enc, d, dim_ff)), b1=zeros((num_enc, 1, dim_ff)),
        w2=nrm((num_enc, dim_ff, d)), b2=zeros((num_enc, 1, d)),
        ln1g=ones((num_enc, 1, d)), ln1b=zeros((num_enc, 1, d)),
        ln2g=ones((num_enc, 1, d)), ln2b=zeros((num_enc, 1, d)),
    )
    dec = dict(
        **{"sa_" + k: v for k, v in attn_params(num_dec).items()},
        **{"ca_" + k: v for k, v in attn_params(num_dec).items()},
        ln1g=ones((num_dec, 1, d)), ln1b=zeros((num_dec, 1, d)),
        ln2g=ones((num_dec, 1, d)), ln2b=zeros((num_dec, 1, d)),
        w1=nrm((num_dec, d, dim_ff)), b1=zeros((num_dec, 1, dim_ff)),
        w2=nrm((num_dec, dim_ff, d)), b2=zeros((num_dec, 1, d)),
        ln3g=ones((num_dec, 1, d)), ln3b=zeros((num_dec, 1, d)),
    )

    return dict(
        embedding=jax.random.normal(next(keys), (vocab_len, d), dtype=jnp.float32),
        pe=positional_encoding_table(max_len, d),
        col_embed=jax.random.uniform(next(keys), (encoder_op_dim, d // 2),
                                     dtype=jnp.float32),
        row_embed=jax.random.uniform(next(keys), (encoder_op_dim, d // 2),
                                     dtype=jnp.float32),
        enc=enc, dec=dec,
        enc_norm_g=ones((1, d)), enc_norm_b=zeros((1, d)),
        dec_norm_g=ones((1, d)), dec_norm_b=zeros((1, d)),
    )


# ----------------------------------------------------------------------------
# Forward pass: tiny prep in plain jnp, two layer-pipelined pallas_calls
# ----------------------------------------------------------------------------
@jax.jit
def decoder_forward(params, h, trg):
    """Mirror of Decoder.forward. h: (B, D, H, W) float32, trg: (B, T) int32."""
    bs, D, H, W = h.shape
    T = trg.shape[1]
    S = H * W

    # --- learned 2-D positional embedding for the encoder (requires H == W == E) ---
    col = params["col_embed"]   # (E, D/2)
    row = params["row_embed"]   # (E, D/2)
    E = col.shape[0]
    pos = jnp.concatenate(
        [jnp.broadcast_to(col[None, :, :], (H, E, D // 2)),
         jnp.broadcast_to(row[:, None, :], (E, W, D // 2))],
        axis=-1).reshape(S, D)                                       # (S, D)
    src = h.reshape(bs, D, S).transpose(0, 2, 1) + pos[None, :, :]   # (B, S, D)

    # --- target embedding + (quirky) positional encoding pe[:bs] over batch dim ---
    tgt = jnp.take(params["embedding"], trg, axis=0) \
        + params["pe"][:bs][:, None, :]                              # (B, T, D)

    # only the (B,1,T) key-padding row crosses HBM; causal mask is built in-kernel
    pad_neg = jnp.where(trg == 0, NEG_INF, 0.0).astype(jnp.float32)[:, None, :]

    enc, dec = params["enc"], params["dec"]
    L_e = enc["wq"].shape[0]
    L_d = dec["sa_wq"].shape[0]
    dff = int(enc["w1"].shape[-1])
    Hh = int(enc["wq"].shape[1])

    def attn_flops(tq, tk):
        return 2 * tq * D * D + 4 * tk * D * D + 2 * tq * D * D + 4 * tq * tk * D

    # ------------------------- encoder stack -------------------------
    enc_args = (src,
                enc["wq"], enc["bq"], enc["wk"], enc["bk"],
                enc["wv"], enc["bv"], enc["wo"], enc["bo"],
                enc["w1"], enc["b1"], enc["w2"], enc["b2"],
                enc["ln1g"], enc["ln1b"], enc["ln2g"], enc["ln2b"],
                params["enc_norm_g"], params["enc_norm_b"])
    enc_specs = ([_batch_spec(src.shape)]
                 + [_layer_spec(a.shape) for a in enc_args[1:17]]
                 + [_const_spec(a.shape) for a in enc_args[17:]])
    enc_cost = pl.CostEstimate(
        flops=int(bs * L_e * (attn_flops(S, S) + 4 * S * D * dff)),
        transcendentals=int(bs * L_e * (Hh * S * S + 2 * S)),
        bytes_accessed=_bytes_of(enc_args) + bs * S * D * 4)
    enc_vmem = _vmem_limit_bytes([src], list(enc_args[1:17]), list(enc_args[17:]),
                                 S * D * 4, S * D * 4)

    mem = pl.pallas_call(
        encoder_layer_kernel,
        out_shape=jax.ShapeDtypeStruct((bs, S, D), jnp.float32),
        grid_spec=pltpu.PrefetchScalarGridSpec(
            num_scalar_prefetch=0,
            grid=(bs, L_e),
            in_specs=enc_specs,
            out_specs=_batch_spec((bs, S, D)),
            scratch_shapes=[pltpu.VMEM((S, D), jnp.float32)]),
        compiler_params=pltpu.CompilerParams(
            dimension_semantics=("parallel", "arbitrary"),
            vmem_limit_bytes=enc_vmem),
        cost_estimate=enc_cost,
    )(*enc_args)

    # ------------------------- decoder stack -------------------------
    dec_args = (tgt, mem, pad_neg,
                dec["sa_wq"], dec["sa_bq"], dec["sa_wk"], dec["sa_bk"],
                dec["sa_wv"], dec["sa_bv"], dec["sa_wo"], dec["sa_bo"],
                dec["ln1g"], dec["ln1b"],
                dec["ca_wq"], dec["ca_bq"], dec["ca_wk"], dec["ca_bk"],
                dec["ca_wv"], dec["ca_bv"], dec["ca_wo"], dec["ca_bo"],
                dec["ln2g"], dec["ln2b"],
                dec["w1"], dec["b1"], dec["w2"], dec["b2"],
                dec["ln3g"], dec["ln3b"],
                params["dec_norm_g"], params["dec_norm_b"])
    dec_specs = ([_batch_spec(tgt.shape), _batch_spec(mem.shape),
                  _batch_spec(pad_neg.shape)]
                 + [_layer_spec(a.shape) for a in dec_args[3:29]]
                 + [_const_spec(a.shape) for a in dec_args[29:]])
    dec_cost = pl.CostEstimate(
        flops=int(bs * L_d * (attn_flops(T, T) + attn_flops(T, S)
                              + 4 * T * D * dff)),
        transcendentals=int(bs * L_d * (Hh * (T * T + T * S) + 3 * T)),
        bytes_accessed=_bytes_of(dec_args) + bs * T * D * 4)
    dec_vmem = _vmem_limit_bytes([tgt, mem, pad_neg], list(dec_args[3:29]),
                                 list(dec_args[29:]), T * D * 4, T * D * 4)

    out = pl.pallas_call(
        decoder_layer_kernel,
        out_shape=jax.ShapeDtypeStruct((bs, T, D), jnp.float32),
        grid_spec=pltpu.PrefetchScalarGridSpec(
            num_scalar_prefetch=0,
            grid=(bs, L_d),
            in_specs=dec_specs,
            out_specs=_batch_spec((bs, T, D)),
            scratch_shapes=[pltpu.VMEM((T, D), jnp.float32)]),
        compiler_params=pltpu.CompilerParams(
            dimension_semantics=("parallel", "arbitrary"),
            vmem_limit_bytes=dec_vmem),
        cost_estimate=dec_cost,
    )(*dec_args)

    # torch: output.transpose(0, 1) -> (B, T, D); kernel already batch-major.
    return out


if __name__ == "__main__":
    vocab_len = 50
    hidden_dim = 32
    nheads = 4
    num_encoder_layers = 2
    num_decoder_layers = 2
    ENCODER_OP_DIM = 4          # torch cat in pos-embed forces H == W == ENCODER_OP_DIM
    bs, T = 2, 8

    key = jax.random.PRNGKey(0)
    k_params, k_h, k_trg = jax.random.split(key, 3)

    params = init_params(k_params, vocab_len, hidden_dim, nheads,
                         num_encoder_layers, num_decoder_layers, ENCODER_OP_DIM)

    h = jax.random.normal(k_h, (bs, hidden_dim, ENCODER_OP_DIM, ENCODER_OP_DIM),
                          dtype=jnp.float32)
    trg = jax.random.randint(k_trg, (bs, T), 1, vocab_len, dtype=jnp.int32)
    trg = trg.at[1, -1].set(0)  # one pad token to exercise tgt_key_padding_mask

    out = decoder_forward(params, h, trg)
    out = jax.block_until_ready(out)

    assert out.shape == (bs, T, hidden_dim), out.shape
    assert bool(jnp.all(jnp.isfinite(out)))
    print("KERNEL_OK")
</pallas_src>

<mosaic_0001>
module attributes {stable_mosaic.version = 11 : i64} {
  func.func @encoder_layer_kernel(%arg0: i32, %arg1: i32, %arg2: memref<1x16x32xf32, #tpu.memory_space<vmem>>, %arg3: memref<1x4x32x8xbf16, #tpu.memory_space<vmem>>, %arg4: memref<1x4x1x8xf32, #tpu.memory_space<vmem>>, %arg5: memref<1x4x32x8xbf16, #tpu.memory_space<vmem>>, %arg6: memref<1x4x1x8xf32, #tpu.memory_space<vmem>>, %arg7: memref<1x4x32x8xbf16, #tpu.memory_space<vmem>>, %arg8: memref<1x4x1x8xf32, #tpu.memory_space<vmem>>, %arg9: memref<1x4x8x32xbf16, #tpu.memory_space<vmem>>, %arg10: memref<1x1x32xf32, #tpu.memory_space<vmem>>, %arg11: memref<1x32x2048xbf16, #tpu.memory_space<vmem>>, %arg12: memref<1x1x2048xf32, #tpu.memory_space<vmem>>, %arg13: memref<1x2048x32xbf16, #tpu.memory_space<vmem>>, %arg14: memref<1x1x32xf32, #tpu.memory_space<vmem>>, %arg15: memref<1x1x32xf32, #tpu.memory_space<vmem>>, %arg16: memref<1x1x32xf32, #tpu.memory_space<vmem>>, %arg17: memref<1x1x32xf32, #tpu.memory_space<vmem>>, %arg18: memref<1x1x32xf32, #tpu.memory_space<vmem>>, %arg19: memref<1x32xf32, #tpu.memory_space<vmem>>, %arg20: memref<1x32xf32, #tpu.memory_space<vmem>>, %arg21: memref<1x16x32xf32, #tpu.memory_space<vmem>>, %arg22: memref<16x32xf32, #tpu.memory_space<vmem>>) attributes {dimension_semantics = [#tpu.dimension_semantics<parallel>, #tpu.dimension_semantics<arbitrary>], iteration_bounds = array<i64: 2, 2>, scalar_prefetch = 0 : i64, scratch_operands = 1 : i64, tpu.core_type = #tpu.core_type<tc>, window_params = [{transform_indices = @transform_0, window_bounds = array<i64: 1, 16, 32>}, {transform_indices = @transform_1, window_bounds = array<i64: 1, 4, 32, 8>}, {transform_indices = @transform_2, window_bounds = array<i64: 1, 4, 1, 8>}, {transform_indices = @transform_3, window_bounds = array<i64: 1, 4, 32, 8>}, {transform_indices = @transform_4, window_bounds = array<i64: 1, 4, 1, 8>}, {transform_indices = @transform_5, window_bounds = array<i64: 1, 4, 32, 8>}, {transform_indices = @transform_6, window_bounds = array<i64: 1, 4, 1, 8>}, {transform_indices = @transform_7, window_bounds = array<i64: 1, 4, 8, 32>}, {transform_indices = @transform_8, window_bounds = array<i64: 1, 1, 32>}, {transform_indices = @transform_9, window_bounds = array<i64: 1, 32, 2048>}, {transform_indices = @transform_10, window_bounds = array<i64: 1, 1, 2048>}, {transform_indices = @transform_11, window_bounds = array<i64: 1, 2048, 32>}, {transform_indices = @transform_12, window_bounds = array<i64: 1, 1, 32>}, {transform_indices = @transform_13, window_bounds = array<i64: 1, 1, 32>}, {transform_indices = @transform_14, window_bounds = array<i64: 1, 1, 32>}, {transform_indices = @transform_15, window_bounds = array<i64: 1, 1, 32>}, {transform_indices = @transform_16, window_bounds = array<i64: 1, 1, 32>}, {pipeline_mode = #tpu.pipeline_mode<synchronous>, transform_indices = @transform_17, window_bounds = array<i64: 1, 32>}, {pipeline_mode = #tpu.pipeline_mode<synchronous>, transform_indices = @transform_18, window_bounds = array<i64: 1, 32>}, {transform_indices = @transform_19, window_bounds = array<i64: 1, 16, 32>}]} {
    %c0_i32 = arith.constant 0 : i32
    %0 = arith.cmpi eq, %arg1, %c0_i32 : i32
    %1 = arith.extui %0 : i1 to i32
    %c0_i32_0 = arith.constant 0 : i32
    %2 = arith.cmpi ne, %1, %c0_i32_0 : i32
    scf.if %2 {
      %c0_108 = arith.constant 0 : index
      %c0_109 = arith.constant 0 : index
      %c0_110 = arith.constant 0 : index
      %269 = vector.load %arg2[%c0_108, %c0_109, %c0_110] : memref<1x16x32xf32, #tpu.memory_space<vmem>>, vector<1x16x32xf32>
      %270 = vector.shape_cast %269 : vector<1x16x32xf32> to vector<16x32xf32>
      %c0_111 = arith.constant 0 : index
      %c0_112 = arith.constant 0 : index
      %271 = vector.load %arg22[%c0_111, %c0_112] : memref<16x32xf32, #tpu.memory_space<vmem>>, vector<16x32xf32>
      tpu.vector_store %arg22[%c0_111, %c0_112], %270 {strides = array<i32>} : memref<16x32xf32, #tpu.memory_space<vmem>>, vector<16x32xf32>,
    } else {
    }
    %c0 = arith.constant 0 : index
    %c0_1 = arith.constant 0 : index
    %3 = vector.load %arg22[%c0, %c0_1] : memref<16x32xf32, #tpu.memory_space<vmem>>, vector<16x32xf32>
    %c0_2 = arith.constant 0 : index
    %c0_3 = arith.constant 0 : index
    %c0_4 = arith.constant 0 : index
    %c0_5 = arith.constant 0 : index
    %4 = vector.load %arg3[%c0_2, %c0_3, %c0_4, %c0_5] : memref<1x4x32x8xbf16, #tpu.memory_space<vmem>>, vector<1x4x32x8xbf16>
    %5 = vector.shape_cast %4 : vector<1x4x32x8xbf16> to vector<4x32x8xbf16>
    %c0_6 = arith.constant 0 : index
    %c0_7 = arith.constant 0 : index
    %c0_8 = arith.constant 0 : index
    %c0_9 = arith.constant 0 : index
    %6 = vector.load %arg4[%c0_6, %c0_7, %c0_8, %c0_9] : memref<1x4x1x8xf32, #tpu.memory_space<vmem>>, vector<1x4x1x8xf32>
    %7 = vector.shape_cast %6 : vector<1x4x1x8xf32> to vector<4x1x8xf32>
    %c0_10 = arith.constant 0 : index
    %c0_11 = arith.constant 0 : index
    %c0_12 = arith.constant 0 : index
    %c0_13 = arith.constant 0 : index
    %8 = vector.load %arg5[%c0_10, %c0_11, %c0_12, %c0_13] : memref<1x4x32x8xbf16, #tpu.memory_space<vmem>>, vector<1x4x32x8xbf16>
    %9 = vector.shape_cast %8 : vector<1x4x32x8xbf16> to vector<4x32x8xbf16>
    %c0_14 = arith.constant 0 : index
    %c0_15 = arith.constant 0 : index
    %c0_16 = arith.constant 0 : index
    %c0_17 = arith.constant 0 : index
    %10 = vector.load %arg6[%c0_14, %c0_15, %c0_16, %c0_17] : memref<1x4x1x8xf32, #tpu.memory_space<vmem>>, vector<1x4x1x8xf32>
    %11 = vector.shape_cast %10 : vector<1x4x1x8xf32> to vector<4x1x8xf32>
    %c0_18 = arith.constant 0 : index
    %c0_19 = arith.constant 0 : index
    %c0_20 = arith.constant 0 : index
    %c0_21 = arith.constant 0 : index
    %12 = vector.load %arg7[%c0_18, %c0_19, %c0_20, %c0_21] : memref<1x4x32x8xbf16, #tpu.memory_space<vmem>>, vector<1x4x32x8xbf16>
    %13 = vector.shape_cast %12 : vector<1x4x32x8xbf16> to vector<4x32x8xbf16>
    %c0_22 = arith.constant 0 : index
    %c0_23 = arith.constant 0 : index
    %c0_24 = arith.constant 0 : index
    %c0_25 = arith.constant 0 : index
    %14 = vector.load %arg8[%c0_22, %c0_23, %c0_24, %c0_25] : memref<1x4x1x8xf32, #tpu.memory_space<vmem>>, vector<1x4x1x8xf32>
    %15 = vector.shape_cast %14 : vector<1x4x1x8xf32> to vector<4x1x8xf32>
    %c0_26 = arith.constant 0 : index
    %c0_27 = arith.constant 0 : index
    %c0_28 = arith.constant 0 : index
    %c0_29 = arith.constant 0 : index
    %16 = vector.load %arg9[%c0_26, %c0_27, %c0_28, %c0_29] : memref<1x4x8x32xbf16, #tpu.memory_space<vmem>>, vector<1x4x8x32xbf16>
    %17 = vector.shape_cast %16 : vector<1x4x8x32xbf16> to vector<4x8x32xbf16>
    %c0_30 = arith.constant 0 : index
    %c0_31 = arith.constant 0 : index
    %c0_32 = arith.constant 0 : index
    %18 = vector.load %arg10[%c0_30, %c0_31, %c0_32] : memref<1x1x32xf32, #tpu.memory_space<vmem>>, vector<1x1x32xf32>
    %19 = vector.shape_cast %18 : vector<1x1x32xf32> to vector<1x32xf32>
    %20 = vector.extract_strided_slice %5 {offsets = [0, 0, 0], sizes = [1, 32, 8], strides = [1, 1, 1]} : vector<4x32x8xbf16> to vector<1x32x8xbf16>
    %21 = vector.shape_cast %20 : vector<1x32x8xbf16> to vector<32x8xbf16>
    %22 = arith.truncf %3 : vector<16x32xf32> to vector<16x32xbf16>
    %cst = arith.constant dense<0.000000e+00> : vector<16x8xf32>
    %23 = tpu.matmul %22, %21, %cst {dimension_numbers = #tpu.dot_dimension_numbers<[1], [0], [0], [1], [0, 0, 1, 1], [], []>} : vector<16x32xbf16>, vector<32x8xbf16>, vector<16x8xf32> -> vector<16x8xf32>
    %24 = vector.extract_strided_slice %7 {offsets = [0, 0, 0], sizes = [1, 1, 8], strides = [1, 1, 1]} : vector<4x1x8xf32> to vector<1x1x8xf32>
    %25 = vector.shape_cast %24 : vector<1x1x8xf32> to vector<1x8xf32>
    %26 = vector.broadcast %25 : vector<1x8xf32> to vector<16x8xf32>
    %27 = arith.addf %23, %26 : vector<16x8xf32>
    %28 = vector.extract_strided_slice %9 {offsets = [0, 0, 0], sizes = [1, 32, 8], strides = [1, 1, 1]} : vector<4x32x8xbf16> to vector<1x32x8xbf16>
    %29 = vector.shape_cast %28 : vector<1x32x8xbf16> to vector<32x8xbf16>
    %30 = arith.truncf %3 : vector<16x32xf32> to vector<16x32xbf16>
    %cst_33 = arith.constant dense<0.000000e+00> : vector<16x8xf32>
    %31 = tpu.matmul %30, %29, %cst_33 {dimension_numbers = #tpu.dot_dimension_numbers<[1], [0], [0], [1], [0, 0, 1, 1], [], []>} : vector<16x32xbf16>, vector<32x8xbf16>, vector<16x8xf32> -> vector<16x8xf32>
    %32 = vector.extract_strided_slice %11 {offsets = [0, 0, 0], sizes = [1, 1, 8], strides = [1, 1, 1]} : vector<4x1x8xf32> to vector<1x1x8xf32>
    %33 = vector.shape_cast %32 : vector<1x1x8xf32> to vector<1x8xf32>
    %34 = vector.broadcast %33 : vector<1x8xf32> to vector<16x8xf32>
    %35 = arith.addf %31, %34 : vector<16x8xf32>
    %36 = vector.extract_strided_slice %13 {offsets = [0, 0, 0], sizes = [1, 32, 8], strides = [1, 1, 1]} : vector<4x32x8xbf16> to vector<1x32x8xbf16>
    %37 = vector.shape_cast %36 : vector<1x32x8xbf16> to vector<32x8xbf16>
    %38 = arith.truncf %3 : vector<16x32xf32> to vector<16x32xbf16>
    %cst_34 = arith.constant dense<0.000000e+00> : vector<16x8xf32>
    %39 = tpu.matmul %38, %37, %cst_34 {dimension_numbers = #tpu.dot_dimension_numbers<[1], [0], [0], [1], [0, 0, 1, 1], [], []>} : vector<16x32xbf16>, vector<32x8xbf16>, vector<16x8xf32> -> vector<16x8xf32>
    %40 = vector.extract_strided_slice %15 {offsets = [0, 0, 0], sizes = [1, 1, 8], strides = [1, 1, 1]} : vector<4x1x8xf32> to vector<1x1x8xf32>
    %41 = vector.shape_cast %40 : vector<1x1x8xf32> to vector<1x8xf32>
    %42 = vector.broadcast %41 : vector<1x8xf32> to vector<16x8xf32>
    %43 = arith.addf %39, %42 : vector<16x8xf32>
    %cst_35 = arith.constant dense<0.000000e+00> : vector<16x16xf32>
    %44 = tpu.matmul %27, %35, %cst_35 {dimension_numbers = #tpu.dot_dimension_numbers<[1], [1], [0], [0], [0, 0, 1, 0], [], []>} : vector<16x8xf32>, vector<16x8xf32>, vector<16x16xf32> -> vector<16x16xf32>
    %cst_36 = arith.constant 0.353553385 : f32
    %45 = vector.broadcast %cst_36 : f32 to vector<16x16xf32>
    %46 = arith.mulf %44, %45 : vector<16x16xf32>
    %cst_37 = arith.constant dense<0xFF800000> : vector<16xf32>
    %47 = vector.multi_reduction <maximumf>, %46, %cst_37 [1] : vector<16x16xf32> to vector<16xf32>
    %48 = vector.shape_cast %47 : vector<16xf32> to vector<16x1xf32>
    %49 = vector.broadcast %48 : vector<16x1xf32> to vector<16x16xf32>
    %50 = arith.subf %46, %49 : vector<16x16xf32>
    %51 = math.exp %50 : vector<16x16xf32>
    %cst_38 = arith.constant dense<0.000000e+00> : vector<16xf32>
    %52 = vector.multi_reduction <add>, %51, %cst_38 [1] : vector<16x16xf32> to vector<16xf32>
    %53 = vector.shape_cast %52 : vector<16xf32> to vector<16x1xf32>
    %54 = tpu.reciprocal %53 {approx = true} : vector<16x1xf32> -> vector<16x1xf32>
    %55 = vector.broadcast %54 : vector<16x1xf32> to vector<16x16xf32>
    %56 = arith.mulf %51, %55 : vector<16x16xf32>
    %cst_39 = arith.constant dense<0.000000e+00> : vector<16x8xf32>
    %57 = tpu.matmul %56, %43, %cst_39 {dimension_numbers = #tpu.dot_dimension_numbers<[1], [0], [0], [1], [0, 0, 1, 1], [], []>} : vector<16x16xf32>, vector<16x8xf32>, vector<16x8xf32> -> vector<16x8xf32>
    %58 = vector.extract_strided_slice %17 {offsets = [0, 0, 0], sizes = [1, 8, 32], strides = [1, 1, 1]} : vector<4x8x32xbf16> to vector<1x8x32xbf16>
    %59 = vector.shape_cast %58 : vector<1x8x32xbf16> to vector<8x32xbf16>
    %60 = arith.truncf %57 : vector<16x8xf32> to vector<16x8xbf16>
    %cst_40 = arith.constant dense<0.000000e+00> : vector<16x32xf32>
    %61 = tpu.matmul %60, %59, %cst_40 {dimension_numbers = #tpu.dot_dimension_numbers<[1], [0], [0], [1], [0, 0, 1, 1], [], []>} : vector<16x8xbf16>, vector<8x32xbf16>, vector<16x32xf32> -> vector<16x32xf32>
    %62 = vector.extract_strided_slice %5 {offsets = [1, 0, 0], sizes = [1, 32, 8], strides = [1, 1, 1]} : vector<4x32x8xbf16> to vector<1x32x8xbf16>
    %63 = vector.shape_cast %62 : vector<1x32x8xbf16> to vector<32x8xbf16>
    %64 = arith.truncf %3 : vector<16x32xf32> to vector<16x32xbf16>
    %cst_41 = arith.constant dense<0.000000e+00> : vector<16x8xf32>
    %65 = tpu.matmul %64, %63, %cst_41 {dimension_numbers = #tpu.dot_dimension_numbers<[1], [0], [0], [1], [0, 0, 1, 1], [], []>} : vector<16x32xbf16>, vector<32x8xbf16>, vector<16x8xf32> -> vector<16x8xf32>
    %66 = vector.extract_strided_slice %7 {offsets = [1, 0, 0], sizes = [1, 1, 8], strides = [1, 1, 1]} : vector<4x1x8xf32> to vector<1x1x8xf32>
    %67 = vector.shape_cast %66 : vector<1x1x8xf32> to vector<1x8xf32>
    %68 = vector.broadcast %67 : vector<1x8xf32> to vector<16x8xf32>
    %69 = arith.addf %65, %68 : vector<16x8xf32>
    %70 = vector.extract_strided_slice %9 {offsets = [1, 0, 0], sizes = [1, 32, 8], strides = [1, 1, 1]} : vector<4x32x8xbf16> to vector<1x32x8xbf16>
    %71 = vector.shape_cast %70 : vector<1x32x8xbf16> to vector<32x8xbf16>
    %72 = arith.truncf %3 : vector<16x32xf32> to vector<16x32xbf16>
    %cst_42 = arith.constant dense<0.000000e+00> : vector<16x8xf32>
    %73 = tpu.matmul %72, %71, %cst_42 {dimension_numbers = #tpu.dot_dimension_numbers<[1], [0], [0], [1], [0, 0, 1, 1], [], []>} : vector<16x32xbf16>, vector<32x8xbf16>, vector<16x8xf32> -> vector<16x8xf32>
    %74 = vector.extract_strided_slice %11 {offsets = [1, 0, 0], sizes = [1, 1, 8], strides = [1, 1, 1]} : vector<4x1x8xf32> to vector<1x1x8xf32>
    %75 = vector.shape_cast %74 : vector<1x1x8xf32> to vector<1x8xf32>
    %76 = vector.broadcast %75 : vector<1x8xf32> to vector<16x8xf32>
    %77 = arith.addf %73, %76 : vector<16x8xf32>
    %78 = vector.extract_strided_slice %13 {offsets = [1, 0, 0], sizes = [1, 32, 8], strides = [1, 1, 1]} : vector<4x32x8xbf16> to vector<1x32x8xbf16>
    %79 = vector.shape_cast %78 : vector<1x32x8xbf16> to vector<32x8xbf16>
    %80 = arith.truncf %3 : vector<16x32xf32> to vector<16x32xbf16>
    %cst_43 = arith.constant dense<0.000000e+00> : vector<16x8xf32>
    %81 = tpu.matmul %80, %79, %cst_43 {dimension_numbers = #tpu.dot_dimension_numbers<[1], [0], [0], [1], [0, 0, 1, 1], [], []>} : vector<16x32xbf16>, vector<32x8xbf16>, vector<16x8xf32> -> vector<16x8xf32>
    %82 = vector.extract_strided_slice %15 {offsets = [1, 0, 0], sizes = [1, 1, 8], strides = [1, 1, 1]} : vector<4x1x8xf32> to vector<1x1x8xf32>
    %83 = vector.shape_cast %82 : vector<1x1x8xf32> to vector<1x8xf32>
    %84 = vector.broadcast %83 : vector<1x8xf32> to vector<16x8xf32>
    %85 = arith.addf %81, %84 : vector<16x8xf32>
    %cst_44 = arith.constant dense<0.000000e+00> : vector<16x16xf32>
    %86 = tpu.matmul %69, %77, %cst_44 {dimension_numbers = #tpu.dot_dimension_numbers<[1], [1], [0], [0], [0, 0, 1, 0], [], []>} : vector<16x8xf32>, vector<16x8xf32>, vector<16x16xf32> -> vector<16x16xf32>
    %cst_45 = arith.constant 0.353553385 : f32
    %87 = vector.broadcast %cst_45 : f32 to vector<16x16xf32>
    %88 = arith.mulf %86, %87 : vector<16x16xf32>
    %cst_46 = arith.constant dense<0xFF800000> : vector<16xf32>
    %89 = vector.multi_reduction <maximumf>, %88, %cst_46 [1] : vector<16x16xf32> to vector<16xf32>
    %90 = vector.shape_cast %89 : vector<16xf32> to vector<16x1xf32>
    %91 = vector.broadcast %90 : vector<16x1xf32> to vector<16x16xf32>
    %92 = arith.subf %88, %91 : vector<16x16xf32>
    %93 = math.exp %92 : vector<16x16xf32>
    %cst_47 = arith.constant dense<0.000000e+00> : vector<16xf32>
    %94 = vector.multi_reduction <add>, %93, %cst_47 [1] : vector<16x16xf32> to vector<16xf32>
    %95 = vector.shape_cast %94 : vector<16xf32> to vector<16x1xf32>
    %96 = tpu.reciprocal %95 {approx = true} : vector<16x1xf32> -> vector<16x1xf32>
    %97 = vector.broadcast %96 : vector<16x1xf32> to vector<16x16xf32>
    %98 = arith.mulf %93, %97 : vector<16x16xf32>
    %cst_48 = arith.constant dense<0.000000e+00> : vector<16x8xf32>
    %99 = tpu.matmul %98, %85, %cst_48 {dimension_numbers = #tpu.dot_dimension_numbers<[1], [0], [0], [1], [0, 0, 1, 1], [], []>} : vector<16x16xf32>, vector<16x8xf32>, vector<16x8xf32> -> vector<16x8xf32>
    %100 = vector.extract_strided_slice %17 {offsets = [1, 0, 0], sizes = [1, 8, 32], strides = [1, 1, 1]} : vector<4x8x32xbf16> to vector<1x8x32xbf16>
    %101 = vector.shape_cast %100 : vector<1x8x32xbf16> to vector<8x32xbf16>
    %102 = arith.truncf %99 : vector<16x8xf32> to vector<16x8xbf16>
    %cst_49 = arith.constant dense<0.000000e+00> : vector<16x32xf32>
    %103 = tpu.matmul %102, %101, %cst_49 {dimension_numbers = #tpu.dot_dimension_numbers<[1], [0], [0], [1], [0, 0, 1, 1], [], []>} : vector<16x8xbf16>, vector<8x32xbf16>, vector<16x32xf32> -> vector<16x32xf32>
    %104 = arith.addf %61, %103 : vector<16x32xf32>
    %105 = vector.extract_strided_slice %5 {offsets = [2, 0, 0], sizes = [1, 32, 8], strides = [1, 1, 1]} : vector<4x32x8xbf16> to vector<1x32x8xbf16>
    %106 = vector.shape_cast %105 : vector<1x32x8xbf16> to vector<32x8xbf16>
    %107 = arith.truncf %3 : vector<16x32xf32> to vector<16x32xbf16>
    %cst_50 = arith.constant dense<0.000000e+00> : vector<16x8xf32>
    %108 = tpu.matmul %107, %106, %cst_50 {dimension_numbers = #tpu.dot_dimension_numbers<[1], [0], [0], [1], [0, 0, 1, 1], [], []>} : vector<16x32xbf16>, vector<32x8xbf16>, vector<16x8xf32> -> vector<16x8xf32>
    %109 = vector.extract_strided_slice %7 {offsets = [2, 0, 0], sizes = [1, 1, 8], strides = [1, 1, 1]} : vector<4x1x8xf32> to vector<1x1x8xf32>
    %110 = vector.shape_cast %109 : vector<1x1x8xf32> to vector<1x8xf32>
    %111 = vector.broadcast %110 : vector<1x8xf32> to vector<16x8xf32>
    %112 = arith.addf %108, %111 : vector<16x8xf32>
    %113 = vector.extract_strided_slice %9 {offsets = [2, 0, 0], sizes = [1, 32, 8], strides = [1, 1, 1]} : vector<4x32x8xbf16> to vector<1x32x8xbf16>
    %114 = vector.shape_cast %113 : vector<1x32x8xbf16> to vector<32x8xbf16>
    %115 = arith.truncf %3 : vector<16x32xf32> to vector<16x32xbf16>
    %cst_51 = arith.constant dense<0.000000e+00> : vector<16x8xf32>
    %116 = tpu.matmul %115, %114, %cst_51 {dimension_numbers = #tpu.dot_dimension_numbers<[1], [0], [0], [1], [0, 0, 1, 1], [], []>} : vector<16x32xbf16>, vector<32x8xbf16>, vector<16x8xf32> -> vector<16x8xf32>
    %117 = vector.extract_strided_slice %11 {offsets = [2, 0, 0], sizes = [1, 1, 8], strides = [1, 1, 1]} : vector<4x1x8xf32> to vector<1x1x8xf32>
    %118 = vector.shape_cast %117 : vector<1x1x8xf32> to vector<1x8xf32>
    %119 = vector.broadcast %118 : vector<1x8xf32> to vector<16x8xf32>
    %120 = arith.addf %116, %119 : vector<16x8xf32>
    %121 = vector.extract_strided_slice %13 {offsets = [2, 0, 0], sizes = [1, 32, 8], strides = [1, 1, 1]} : vector<4x32x8xbf16> to vector<1x32x8xbf16>
    %122 = vector.shape_cast %121 : vector<1x32x8xbf16> to vector<32x8xbf16>
    %123 = arith.truncf %3 : vector<16x32xf32> to vector<16x32xbf16>
    %cst_52 = arith.constant dense<0.000000e+00> : vector<16x8xf32>
    %124 = tpu.matmul %123, %122, %cst_52 {dimension_numbers = #tpu.dot_dimension_numbers<[1], [0], [0], [1], [0, 0, 1, 1], [], []>} : vector<16x32xbf16>, vector<32x8xbf16>, vector<16x8xf32> -> vector<16x8xf32>
    %125 = vector.extract_strided_slice %15 {offsets = [2, 0, 0], sizes = [1, 1, 8], strides = [1, 1, 1]} : vector<4x1x8xf32> to vector<1x1x8xf32>
    %126 = vector.shape_cast %125 : vector<1x1x8xf32> to vector<1x8xf32>
    %127 = vector.broadcast %126 : vector<1x8xf32> to vector<16x8xf32>
    %128 = arith.addf %124, %127 : vector<16x8xf32>
    %cst_53 = arith.constant dense<0.000000e+00> : vector<16x16xf32>
    %129 = tpu.matmul %112, %120, %cst_53 {dimension_numbers = #tpu.dot_dimension_numbers<[1], [1], [0], [0], [0, 0, 1, 0], [], []>} : vector<16x8xf32>, vector<16x8xf32>, vector<16x16xf32> -> vector<16x16xf32>
    %cst_54 = arith.constant 0.353553385 : f32
    %130 = vector.broadcast %cst_54 : f32 to vector<16x16xf32>
    %131 = arith.mulf %129, %130 : vector<16x16xf32>
    %cst_55 = arith.constant dense<0xFF800000> : vector<16xf32>
    %132 = vector.multi_reduction <maximumf>, %131, %cst_55 [1] : vector<16x16xf32> to vector<16xf32>
    %133 = vector.shape_cast %132 : vector<16xf32> to vector<16x1xf32>
    %134 = vector.broadcast %133 : vector<16x1xf32> to vector<16x16xf32>
    %135 = arith.subf %131, %134 : vector<16x16xf32>
    %136 = math.exp %135 : vector<16x16xf32>
    %cst_56 = arith.constant dense<0.000000e+00> : vector<16xf32>
    %137 = vector.multi_reduction <add>, %136, %cst_56 [1] : vector<16x16xf32> to vector<16xf32>
    %138 = vector.shape_cast %137 : vector<16xf32> to vector<16x1xf32>
    %139 = tpu.reciprocal %138 {approx = true} : vector<16x1xf32> -> vector<16x1xf32>
    %140 = vector.broadcast %139 : vector<16x1xf32> to vector<16x16xf32>
    %141 = arith.mulf %136, %140 : vector<16x16xf32>
    %cst_57 = arith.constant dense<0.000000e+00> : vector<16x8xf32>
    %142 = tpu.matmul %141, %128, %cst_57 {dimension_numbers = #tpu.dot_dimension_numbers<[1], [0], [0], [1], [0, 0, 1, 1], [], []>} : vector<16x16xf32>, vector<16x8xf32>, vector<16x8xf32> -> vector<16x8xf32>
    %143 = vector.extract_strided_slice %17 {offsets = [2, 0, 0], sizes = [1, 8, 32], strides = [1, 1, 1]} : vector<4x8x32xbf16> to vector<1x8x32xbf16>
    %144 = vector.shape_cast %143 : vector<1x8x32xbf16> to vector<8x32xbf16>
    %145 = arith.truncf %142 : vector<16x8xf32> to vector<16x8xbf16>
    %cst_58 = arith.constant dense<0.000000e+00> : vector<16x32xf32>
    %146 = tpu.matmul %145, %144, %cst_58 {dimension_numbers = #tpu.dot_dimension_numbers<[1], [0], [0], [1], [0, 0, 1, 1], [], []>} : vector<16x8xbf16>, vector<8x32xbf16>, vector<16x32xf32> -> vector<16x32xf32>
    %147 = arith.addf %104, %146 : vector<16x32xf32>
    %148 = vector.extract_strided_slice %5 {offsets = [3, 0, 0], sizes = [1, 32, 8], strides = [1, 1, 1]} : vector<4x32x8xbf16> to vector<1x32x8xbf16>
    %149 = vector.shape_cast %148 : vector<1x32x8xbf16> to vector<32x8xbf16>
    %150 = arith.truncf %3 : vector<16x32xf32> to vector<16x32xbf16>
    %cst_59 = arith.constant dense<0.000000e+00> : vector<16x8xf32>
    %151 = tpu.matmul %150, %149, %cst_59 {dimension_numbers = #tpu.dot_dimension_numbers<[1], [0], [0], [1], [0, 0, 1, 1], [], []>} : vector<16x32xbf16>, vector<32x8xbf16>, vector<16x8xf32> -> vector<16x8xf32>
    %152 = vector.extract_strided_slice %7 {offsets = [3, 0, 0], sizes = [1, 1, 8], strides = [1, 1, 1]} : vector<4x1x8xf32> to vector<1x1x8xf32>
    %153 = vector.shape_cast %152 : vector<1x1x8xf32> to vector<1x8xf32>
    %154 = vector.broadcast %153 : vector<1x8xf32> to vector<16x8xf32>
    %155 = arith.addf %151, %154 : vector<16x8xf32>
    %156 = vector.extract_strided_slice %9 {offsets = [3, 0, 0], sizes = [1, 32, 8], strides = [1, 1, 1]} : vector<4x32x8xbf16> to vector<1x32x8xbf16>
    %157 = vector.shape_cast %156 : vector<1x32x8xbf16> to vector<32x8xbf16>
    %158 = arith.truncf %3 : vector<16x32xf32> to vector<16x32xbf16>
    %cst_60 = arith.constant dense<0.000000e+00> : vector<16x8xf32>
    %159 = tpu.matmul %158, %157, %cst_60 {dimension_numbers = #tpu.dot_dimension_numbers<[1], [0], [0], [1], [0, 0, 1, 1], [], []>} : vector<16x32xbf16>, vector<32x8xbf16>, vector<16x8xf32> -> vector<16x8xf32>
    %160 = vector.extract_strided_slice %11 {offsets = [3, 0, 0], sizes = [1, 1, 8], strides = [1, 1, 1]} : vector<4x1x8xf32> to vector<1x1x8xf32>
    %161 = vector.shape_cast %160 : vector<1x1x8xf32> to vector<1x8xf32>
    %162 = vector.broadcast %161 : vector<1x8xf32> to vector<16x8xf32>
    %163 = arith.addf %159, %162 : vector<16x8xf32>
    %164 = vector.extract_strided_slice %13 {offsets = [3, 0, 0], sizes = [1, 32, 8], strides = [1, 1, 1]} : vector<4x32x8xbf16> to vector<1x32x8xbf16>
    %165 = vector.shape_cast %164 : vector<1x32x8xbf16> to vector<32x8xbf16>
    %166 = arith.truncf %3 : vector<16x32xf32> to vector<16x32xbf16>
    %cst_61 = arith.constant dense<0.000000e+00> : vector<16x8xf32>
    %167 = tpu.matmul %166, %165, %cst_61 {dimension_numbers = #tpu.dot_dimension_numbers<[1], [0], [0], [1], [0, 0, 1, 1], [], []>} : vector<16x32xbf16>, vector<32x8xbf16>, vector<16x8xf32> -> vector<16x8xf32>
    %168 = vector.extract_strided_slice %15 {offsets = [3, 0, 0], sizes = [1, 1, 8], strides = [1, 1, 1]} : vector<4x1x8xf32> to vector<1x1x8xf32>
    %169 = vector.shape_cast %168 : vector<1x1x8xf32> to vector<1x8xf32>
    %170 = vector.broadcast %169 : vector<1x8xf32> to vector<16x8xf32>
    %171 = arith.addf %167, %170 : vector<16x8xf32>
    %cst_62 = arith.constant dense<0.000000e+00> : vector<16x16xf32>
    %172 = tpu.matmul %155, %163, %cst_62 {dimension_numbers = #tpu.dot_dimension_numbers<[1], [1], [0], [0], [0, 0, 1, 0], [], []>} : vector<16x8xf32>, vector<16x8xf32>, vector<16x16xf32> -> vector<16x16xf32>
    %cst_63 = arith.constant 0.353553385 : f32
    %173 = vector.broadcast %cst_63 : f32 to vector<16x16xf32>
    %174 = arith.mulf %172, %173 : vector<16x16xf32>
    %cst_64 = arith.constant dense<0xFF800000> : vector<16xf32>
    %175 = vector.multi_reduction <maximumf>, %174, %cst_64 [1] : vector<16x16xf32> to vector<16xf32>
    %176 = vector.shape_cast %175 : vector<16xf32> to vector<16x1xf32>
    %177 = vector.broadcast %176 : vector<16x1xf32> to vector<16x16xf32>
    %178 = arith.subf %174, %177 : vector<16x16xf32>
    %179 = math.exp %178 : vector<16x16xf32>
    %cst_65 = arith.constant dense<0.000000e+00> : vector<16xf32>
    %180 = vector.multi_reduction <add>, %179, %cst_65 [1] : vector<16x16xf32> to vector<16xf32>
    %181 = vector.shape_cast %180 : vector<16xf32> to vector<16x1xf32>
    %182 = tpu.reciprocal %181 {approx = true} : vector<16x1xf32> -> vector<16x1xf32>
    %183 = vector.broadcast %182 : vector<16x1xf32> to vector<16x16xf32>
    %184 = arith.mulf %179, %183 : vector<16x16xf32>
    %cst_66 = arith.constant dense<0.000000e+00> : vector<16x8xf32>
    %185 = tpu.matmul %184, %171, %cst_66 {dimension_numbers = #tpu.dot_dimension_numbers<[1], [0], [0], [1], [0, 0, 1, 1], [], []>} : vector<16x16xf32>, vector<16x8xf32>, vector<16x8xf32> -> vector<16x8xf32>
    %186 = vector.extract_strided_slice %17 {offsets = [3, 0, 0], sizes = [1, 8, 32], strides = [1, 1, 1]} : vector<4x8x32xbf16> to vector<1x8x32xbf16>
    %187 = vector.shape_cast %186 : vector<1x8x32xbf16> to vector<8x32xbf16>
    %188 = arith.truncf %185 : vector<16x8xf32> to vector<16x8xbf16>
    %cst_67 = arith.constant dense<0.000000e+00> : vector<16x32xf32>
    %189 = tpu.matmul %188, %187, %cst_67 {dimension_numbers = #tpu.dot_dimension_numbers<[1], [0], [0], [1], [0, 0, 1, 1], [], []>} : vector<16x8xbf16>, vector<8x32xbf16>, vector<16x32xf32> -> vector<16x32xf32>
    %190 = arith.addf %147, %189 : vector<16x32xf32>
    %191 = vector.broadcast %19 : vector<1x32xf32> to vector<16x32xf32>
    %192 = arith.addf %190, %191 : vector<16x32xf32>
    %193 = arith.addf %3, %192 : vector<16x32xf32>
    %c0_68 = arith.constant 0 : index
    %c0_69 = arith.constant 0 : index
    %c0_70 = arith.constant 0 : index
    %194 = vector.load %arg15[%c0_68, %c0_69, %c0_70] : memref<1x1x32xf32, #tpu.memory_space<vmem>>, vector<1x1x32xf32>
    %195 = vector.shape_cast %194 : vector<1x1x32xf32> to vector<1x32xf32>
    %c0_71 = arith.constant 0 : index
    %c0_72 = arith.constant 0 : index
    %c0_73 = arith.constant 0 : index
    %196 = vector.load %arg16[%c0_71, %c0_72, %c0_73] : memref<1x1x32xf32, #tpu.memory_space<vmem>>, vector<1x1x32xf32>
    %197 = vector.shape_cast %196 : vector<1x1x32xf32> to vector<1x32xf32>
    %cst_74 = arith.constant dense<0.000000e+00> : vector<16xf32>
    %198 = vector.multi_reduction <add>, %193, %cst_74 [1] : vector<16x32xf32> to vector<16xf32>
    %199 = vector.shape_cast %198 : vector<16xf32> to vector<16x1xf32>
    %cst_75 = arith.constant 3.200000e+01 : f32
    %200 = vector.broadcast %cst_75 : f32 to vector<16x1xf32>
    %201 = arith.divf %199, %200 : vector<16x1xf32>
    %202 = vector.broadcast %201 : vector<16x1xf32> to vector<16x32xf32>
    %203 = arith.subf %193, %202 : vector<16x32xf32>
    %204 = arith.mulf %203, %203 : vector<16x32xf32>
    %cst_76 = arith.constant dense<0.000000e+00> : vector<16xf32>
    %205 = vector.multi_reduction <add>, %204, %cst_76 [1] : vector<16x32xf32> to vector<16xf32>
    %206 = vector.shape_cast %205 : vector<16xf32> to vector<16x1xf32>
    %cst_77 = arith.constant 3.200000e+01 : f32
    %207 = vector.broadcast %cst_77 : f32 to vector<16x1xf32>
    %208 = arith.divf %206, %207 : vector<16x1xf32>
    %209 = vector.broadcast %201 : vector<16x1xf32> to vector<16x32xf32>
    %210 = arith.subf %193, %209 : vector<16x32xf32>
    %cst_78 = arith.constant 9.99999974E-6 : f32
    %211 = vector.broadcast %cst_78 : f32 to vector<16x1xf32>
    %212 = arith.addf %208, %211 : vector<16x1xf32>
    %213 = math.rsqrt %212 : vector<16x1xf32>
    %214 = vector.broadcast %213 : vector<16x1xf32> to vector<16x32xf32>
    %215 = arith.mulf %210, %214 : vector<16x32xf32>
    %216 = vector.broadcast %195 : vector<1x32xf32> to vector<16x32xf32>
    %217 = arith.mulf %215, %216 : vector<16x32xf32>
    %218 = vector.broadcast %197 : vector<1x32xf32> to vector<16x32xf32>
    %219 = arith.addf %217, %218 : vector<16x32xf32>
    %c0_79 = arith.constant 0 : index
    %c0_80 = arith.constant 0 : index
    %c0_81 = arith.constant 0 : index
    %220 = vector.load %arg11[%c0_79, %c0_80, %c0_81] : memref<1x32x2048xbf16, #tpu.memory_space<vmem>>, vector<1x32x2048xbf16>
    %221 = vector.shape_cast %220 : vector<1x32x2048xbf16> to vector<32x2048xbf16>
    %222 = arith.truncf %219 : vector<16x32xf32> to vector<16x32xbf16>
    %cst_82 = arith.constant dense<0.000000e+00> : vector<16x2048xf32>
    %223 = tpu.matmul %222, %221, %cst_82 {dimension_numbers = #tpu.dot_dimension_numbers<[1], [0], [0], [1], [0, 0, 1, 1], [], []>} : vector<16x32xbf16>, vector<32x2048xbf16>, vector<16x2048xf32> -> vector<16x2048xf32>
    %c0_83 = arith.constant 0 : index
    %c0_84 = arith.constant 0 : index
    %c0_85 = arith.constant 0 : index
    %224 = vector.load %arg12[%c0_83, %c0_84, %c0_85] : memref<1x1x2048xf32, #tpu.memory_space<vmem>>, vector<1x1x2048xf32>
    %225 = vector.shape_cast %224 : vector<1x1x2048xf32> to vector<1x2048xf32>
    %226 = vector.broadcast %225 : vector<1x2048xf32> to vector<16x2048xf32>
    %227 = arith.addf %223, %226 : vector<16x2048xf32>
    %cst_86 = arith.constant 0.000000e+00 : f32
    %228 = vector.broadcast %cst_86 : f32 to vector<16x2048xf32>
    %229 = arith.maximumf %227, %228 : vector<16x2048xf32>
    %c0_87 = arith.constant 0 : index
    %c0_88 = arith.constant 0 : index
    %c0_89 = arith.constant 0 : index
    %230 = vector.load %arg13[%c0_87, %c0_88, %c0_89] : memref<1x2048x32xbf16, #tpu.memory_space<vmem>>, vector<1x2048x32xbf16>
    %231 = vector.shape_cast %230 : vector<1x2048x32xbf16> to vector<2048x32xbf16>
    %232 = arith.truncf %229 : vector<16x2048xf32> to vector<16x2048xbf16>
    %cst_90 = arith.constant dense<0.000000e+00> : vector<16x32xf32>
    %233 = tpu.matmul %232, %231, %cst_90 {dimension_numbers = #tpu.dot_dimension_numbers<[1], [0], [0], [1], [0, 0, 1, 1], [], []>} : vector<16x2048xbf16>, vector<2048x32xbf16>, vector<16x32xf32> -> vector<16x32xf32>
    %c0_91 = arith.constant 0 : index
    %c0_92 = arith.constant 0 : index
    %c0_93 = arith.constant 0 : index
    %234 = vector.load %arg14[%c0_91, %c0_92, %c0_93] : memref<1x1x32xf32, #tpu.memory_space<vmem>>, vector<1x1x32xf32>
    %235 = vector.shape_cast %234 : vector<1x1x32xf32> to vector<1x32xf32>
    %236 = vector.broadcast %235 : vector<1x32xf32> to vector<16x32xf32>
    %237 = arith.addf %233, %236 : vector<16x32xf32>
    %238 = arith.addf %219, %237 : vector<16x32xf32>
    %c0_94 = arith.constant 0 : index
    %c0_95 = arith.constant 0 : index
    %c0_96 = arith.constant 0 : index
    %239 = vector.load %arg17[%c0_94, %c0_95, %c0_96] : memref<1x1x32xf32, #tpu.memory_space<vmem>>, vector<1x1x32xf32>
    %240 = vector.shape_cast %239 : vector<1x1x32xf32> to vector<1x32xf32>
    %c0_97 = arith.constant 0 : index
    %c0_98 = arith.constant 0 : index
    %c0_99 = arith.constant 0 : index
    %241 = vector.load %arg18[%c0_97, %c0_98, %c0_99] : memref<1x1x32xf32, #tpu.memory_space<vmem>>, vector<1x1x32xf32>
    %242 = vector.shape_cast %241 : vector<1x1x32xf32> to vector<1x32xf32>
    %cst_100 = arith.constant dense<0.000000e+00> : vector<16xf32>
    %243 = vector.multi_reduction <add>, %238, %cst_100 [1] : vector<16x32xf32> to vector<16xf32>
    %244 = vector.shape_cast %243 : vector<16xf32> to vector<16x1xf32>
    %cst_101 = arith.constant 3.200000e+01 : f32
    %245 = vector.broadcast %cst_101 : f32 to vector<16x1xf32>
    %246 = arith.divf %244, %245 : vector<16x1xf32>
    %247 = vector.broadcast %246 : vector<16x1xf32> to vector<16x32xf32>
    %248 = arith.subf %238, %247 : vector<16x32xf32>
    %249 = arith.mulf %248, %248 : vector<16x32xf32>
    %cst_102 = arith.constant dense<0.000000e+00> : vector<16xf32>
    %250 = vector.multi_reduction <add>, %249, %cst_102 [1] : vector<16x32xf32> to vector<16xf32>
    %251 = vector.shape_cast %250 : vector<16xf32> to vector<16x1xf32>
    %cst_103 = arith.constant 3.200000e+01 : f32
    %252 = vector.broadcast %cst_103 : f32 to vector<16x1xf32>
    %253 = arith.divf %251, %252 : vector<16x1xf32>
    %254 = vector.broadcast %246 : vector<16x1xf32> to vector<16x32xf32>
    %255 = arith.subf %238, %254 : vector<16x32xf32>
    %cst_104 = arith.constant 9.99999974E-6 : f32
    %256 = vector.broadcast %cst_104 : f32 to vector<16x1xf32>
    %257 = arith.addf %253, %256 : vector<16x1xf32>
    %258 = math.rsqrt %257 : vector<16x1xf32>
    %259 = vector.broadcast %258 : vector<16x1xf32> to vector<16x32xf32>
    %260 = arith.mulf %255, %259 : vector<16x32xf32>
    %261 = vector.broadcast %240 : vector<1x32xf32> to vector<16x32xf32>
    %262 = arith.mulf %260, %261 : vector<16x32xf32>
    %263 = vector.broadcast %242 : vector<1x32xf32> to vector<16x32xf32>
    %264 = arith.addf %262, %263 : vector<16x32xf32>
    %c0_105 = arith.constant 0 : index
    %c0_106 = arith.constant 0 : index
    %265 = vector.load %arg22[%c0_105, %c0_106] : memref<16x32xf32, #tpu.memory_space<vmem>>, vector<16x32xf32>
    tpu.vector_store %arg22[%c0_105, %c0_106], %264 {strides = array<i32>} : memref<16x32xf32, #tpu.memory_space<vmem>>, vector<16x32xf32>,
    %c1_i32 = arith.constant 1 : i32
    %266 = arith.cmpi eq, %arg1, %c1_i32 : i32
    %267 = arith.extui %266 : i1 to i32
    %c0_i32_107 = arith.constant 0 : i32
    %268 = arith.cmpi ne, %267, %c0_i32_107 : i32
    scf.if %268 {
      %c0_108 = arith.constant 0 : index
      %c0_109 = arith.constant 0 : index
      %269 = vector.load %arg19[%c0_108, %c0_109] : memref<1x32xf32, #tpu.memory_space<vmem>>, vector<1x32xf32>
      %c0_110 = arith.constant 0 : index
      %c0_111 = arith.constant 0 : index
      %270 = vector.load %arg20[%c0_110, %c0_111] : memref<1x32xf32, #tpu.memory_space<vmem>>, vector<1x32xf32>
      %cst_112 = arith.constant dense<0.000000e+00> : vector<16xf32>
      %271 = vector.multi_reduction <add>, %264, %cst_112 [1] : vector<16x32xf32> to vector<16xf32>
      %272 = vector.shape_cast %271 : vector<16xf32> to vector<16x1xf32>
      %cst_113 = arith.constant 3.200000e+01 : f32
      %273 = vector.broadcast %cst_113 : f32 to vector<16x1xf32>
      %274 = arith.divf %272, %273 : vector<16x1xf32>
      %275 = vector.broadcast %274 : vector<16x1xf32> to vector<16x32xf32>
      %276 = arith.subf %264, %275 : vector<16x32xf32>
      %277 = arith.mulf %276, %276 : vector<16x32xf32>
      %cst_114 = arith.constant dense<0.000000e+00> : vector<16xf32>
      %278 = vector.multi_reduction <add>, %277, %cst_114 [1] : vector<16x32xf32> to vector<16xf32>
      %279 = vector.shape_cast %278 : vector<16xf32> to vector<16x1xf32>
      %cst_115 = arith.constant 3.200000e+01 : f32
      %280 = vector.broadcast %cst_115 : f32 to vector<16x1xf32>
      %281 = arith.divf %279, %280 : vector<16x1xf32>
      %282 = vector.broadcast %274 : vector<16x1xf32> to vector<16x32xf32>
      %283 = arith.subf %264, %282 : vector<16x32xf32>
      %cst_116 = arith.constant 9.99999974E-6 : f32
      %284 = vector.broadcast %cst_116 : f32 to vector<16x1xf32>
      %285 = arith.addf %281, %284 : vector<16x1xf32>
      %286 = math.rsqrt %285 : vector<16x1xf32>
      %287 = vector.broadcast %286 : vector<16x1xf32> to vector<16x32xf32>
      %288 = arith.mulf %283, %287 : vector<16x32xf32>
      %289 = vector.broadcast %269 : vector<1x32xf32> to vector<16x32xf32>
      %290 = arith.mulf %288, %289 : vector<16x32xf32>
      %291 = vector.broadcast %270 : vector<1x32xf32> to vector<16x32xf32>
      %292 = arith.addf %290, %291 : vector<16x32xf32>
      %c0_117 = arith.constant 0 : index
      %c0_118 = arith.constant 0 : index
      %c0_119 = arith.constant 0 : index
      %293 = vector.load %arg21[%c0_117, %c0_118, %c0_119] : memref<1x16x32xf32, #tpu.memory_space<vmem>>, vector<1x16x32xf32>
      %294 = vector.shape_cast %293 : vector<1x16x32xf32> to vector<16x32xf32>
      %295 = vector.shape_cast %292 : vector<16x32xf32> to vector<1x16x32xf32>
      tpu.vector_store %arg21[%c0_117, %c0_118, %c0_119], %295 {strides = array<i32>} : memref<1x16x32xf32, #tpu.memory_space<vmem>>, vector<1x16x32xf32>,
    } else {
    }
    return
  }
  func.func @transform_0(%arg0: i32, %arg1: i32) -> (i32, i32, i32) {
    %c0_i32 = arith.constant 0 : i32
    %c0_i32_0 = arith.constant 0 : i32
    %c0_i32_1 = arith.constant 0 : i32
    return %arg0, %c0_i32, %c0_i32_0 : i32, i32, i32
  }
  func.func @transform_1(%arg0: i32, %arg1: i32) -> (i32, i32, i32, i32) {
    %c0_i32 = arith.constant 0 : i32
    %c0_i32_0 = arith.constant 0 : i32
    %c0_i32_1 = arith.constant 0 : i32
    %c0_i32_2 = arith.constant 0 : i32
    return %arg1, %c0_i32, %c0_i32_0, %c0_i32_1 : i32, i32, i32, i32
  }
  func.func @transform_2(%arg0: i32, %arg1: i32) -> (i32, i32, i32, i32) {
    %c0_i32 = arith.constant 0 : i32
    %c0_i32_0 = arith.constant 0 : i32
    %c0_i32_1 = arith.constant 0 : i32
    %c0_i32_2 = arith.constant 0 : i32
    return %arg1, %c0_i32, %c0_i32_0, %c0_i32_1 : i32, i32, i32, i32
  }
  func.func @transform_3(%arg0: i32, %arg1: i32) -> (i32, i32, i32, i32) {
    %c0_i32 = arith.constant 0 : i32
    %c0_i32_0 = arith.constant 0 : i32
    %c0_i32_1 = arith.constant 0 : i32
    %c0_i32_2 = arith.constant 0 : i32
    return %arg1, %c0_i32, %c0_i32_0, %c0_i32_1 : i32, i32, i32, i32
  }
  func.func @transform_4(%arg0: i32, %arg1: i32) -> (i32, i32, i32, i32) {
    %c0_i32 = arith.constant 0 : i32
    %c0_i32_0 = arith.constant 0 : i32
    %c0_i32_1 = arith.constant 0 : i32
    %c0_i32_2 = arith.constant 0 : i32
    return %arg1, %c0_i32, %c0_i32_0, %c0_i32_1 : i32, i32, i32, i32
  }
  func.func @transform_5(%arg0: i32, %arg1: i32) -> (i32, i32, i32, i32) {
    %c0_i32 = arith.constant 0 : i32
    %c0_i32_0 = arith.constant 0 : i32
    %c0_i32_1 = arith.constant 0 : i32
    %c0_i32_2 = arith.constant 0 : i32
    return %arg1, %c0_i32, %c0_i32_0, %c0_i32_1 : i32, i32, i32, i32
  }
  func.func @transform_6(%arg0: i32, %arg1: i32) -> (i32, i32, i32, i32) {
    %c0_i32 = arith.constant 0 : i32
    %c0_i32_0 = arith.constant 0 : i32
    %c0_i32_1 = arith.constant 0 : i32
    %c0_i32_2 = arith.constant 0 : i32
    return %arg1, %c0_i32, %c0_i32_0, %c0_i32_1 : i32, i32, i32, i32
  }
  func.func @transform_7(%arg0: i32, %arg1: i32) -> (i32, i32, i32, i32) {
    %c0_i32 = arith.constant 0 : i32
    %c0_i32_0 = arith.constant 0 : i32
    %c0_i32_1 = arith.constant 0 : i32
    %c0_i32_2 = arith.constant 0 : i32
    return %arg1, %c0_i32, %c0_i32_0, %c0_i32_1 : i32, i32, i32, i32
  }
  func.func @transform_8(%arg0: i32, %arg1: i32) -> (i32, i32, i32) {
    %c0_i32 = arith.constant 0 : i32
    %c0_i32_0 = arith.constant 0 : i32
    %c0_i32_1 = arith.constant 0 : i32
    return %arg1, %c0_i32, %c0_i32_0 : i32, i32, i32
  }
  func.func @transform_9(%arg0: i32, %arg1: i32) -> (i32, i32, i32) {
    %c0_i32 = arith.constant 0 : i32
    %c0_i32_0 = arith.constant 0 : i32
    %c0_i32_1 = arith.constant 0 : i32
    return %arg1, %c0_i32, %c0_i32_0 : i32, i32, i32
  }
  func.func @transform_10(%arg0: i32, %arg1: i32) -> (i32, i32, i32) {
    %c0_i32 = arith.constant 0 : i32
    %c0_i32_0 = arith.constant 0 : i32
    %c0_i32_1 = arith.constant 0 : i32
    return %arg1, %c0_i32, %c0_i32_0 : i32, i32, i32
  }
  func.func @transform_11(%arg0: i32, %arg1: i32) -> (i32, i32, i32) {
    %c0_i32 = arith.constant 0 : i32
    %c0_i32_0 = arith.constant 0 : i32
    %c0_i32_1 = arith.constant 0 : i32
    return %arg1, %c0_i32, %c0_i32_0 : i32, i32, i32
  }
  func.func @transform_12(%arg0: i32, %arg1: i32) -> (i32, i32, i32) {
    %c0_i32 = arith.constant 0 : i32
    %c0_i32_0 = arith.constant 0 : i32
    %c0_i32_1 = arith.constant 0 : i32
    return %arg1, %c0_i32, %c0_i32_0 : i32, i32, i32
  }
  func.func @transform_13(%arg0: i32, %arg1: i32) -> (i32, i32, i32) {
    %c0_i32 = arith.constant 0 : i32
    %c0_i32_0 = arith.constant 0 : i32
    %c0_i32_1 = arith.constant 0 : i32
    return %arg1, %c0_i32, %c0_i32_0 : i32, i32, i32
  }
  func.func @transform_14(%arg0: i32, %arg1: i32) -> (i32, i32, i32) {
    %c0_i32 = arith.constant 0 : i32
    %c0_i32_0 = arith.constant 0 : i32
    %c0_i32_1 = arith.constant 0 : i32
    return %arg1, %c0_i32, %c0_i32_0 : i32, i32, i32
  }
  func.func @transform_15(%arg0: i32, %arg1: i32) -> (i32, i32, i32) {
    %c0_i32 = arith.constant 0 : i32
    %c0_i32_0 = arith.constant 0 : i32
    %c0_i32_1 = arith.constant 0 : i32
    return %arg1, %c0_i32, %c0_i32_0 : i32, i32, i32
  }
  func.func @transform_16(%arg0: i32, %arg1: i32) -> (i32, i32, i32) {
    %c0_i32 = arith.constant 0 : i32
    %c0_i32_0 = arith.constant 0 : i32
    %c0_i32_1 = arith.constant 0 : i32
    return %arg1, %c0_i32, %c0_i32_0 : i32, i32, i32
  }
  func.func @transform_17(%arg0: i32, %arg1: i32) -> (i32, i32) {
    %c0_i32 = arith.constant 0 : i32
    %c0_i32_0 = arith.constant 0 : i32
    %c0_i32_1 = arith.constant 0 : i32
    return %c0_i32, %c0_i32_0 : i32, i32
  }
  func.func @transform_18(%arg0: i32, %arg1: i32) -> (i32, i32) {
    %c0_i32 = arith.constant 0 : i32
    %c0_i32_0 = arith.constant 0 : i32
    %c0_i32_1 = arith.constant 0 : i32
    return %c0_i32, %c0_i32_0 : i32, i32
  }
  func.func @transform_19(%arg0: i32, %arg1: i32) -> (i32, i32, i32) {
    %c0_i32 = arith.constant 0 : i32
    %c0_i32_0 = arith.constant 0 : i32
    %c0_i32_1 = arith.constant 0 : i32
    return %arg0, %c0_i32, %c0_i32_0 : i32, i32, i32
  }
}

module attributes {stable_mosaic.version = 11 : i64} {
  func.func @decoder_layer_kernel(%arg0: i32, %arg1: i32, %arg2: memref<1x8x32xf32, #tpu.memory_space<vmem>>, %arg3: memref<1x16x32xf32, #tpu.memory_space<vmem>>, %arg4: memref<1x1x8xf32, #tpu.memory_space<vmem>>, %arg5: memref<1x4x32x8xbf16, #tpu.memory_space<vmem>>, %arg6: memref<1x4x1x8xf32, #tpu.memory_space<vmem>>, %arg7: memref<1x4x32x8xbf16, #tpu.memory_space<vmem>>, %arg8: memref<1x4x1x8xf32, #tpu.memory_space<vmem>>, %arg9: memref<1x4x32x8xbf16, #tpu.memory_space<vmem>>, %arg10: memref<1x4x1x8xf32, #tpu.memory_space<vmem>>, %arg11: memref<1x4x8x32xbf16, #tpu.memory_space<vmem>>, %arg12: memref<1x1x32xf32, #tpu.memory_space<vmem>>, %arg13: memref<1x1x32xf32, #tpu.memory_space<vmem>>, %arg14: memref<1x1x32xf32, #tpu.memory_space<vmem>>, %arg15: memref<1x4x32x8xbf16, #tpu.memory_space<vmem>>, %arg16: memref<1x4x1x8xf32, #tpu.memory_space<vmem>>, %arg17: memref<1x4x32x8xbf16, #tpu.memory_space<vmem>>, %arg18: memref<1x4x1x8xf32, #tpu.memory_space<vmem>>, %arg19: memref<1x4x32x8xbf16, #tpu.memory_space<vmem>>, %arg20: memref<1x4x1x8xf32, #tpu.memory_space<vmem>>, %arg21: memref<1x4x8x32xbf16, #tpu.memory_space<vmem>>, %arg22: memref<1x1x32xf32, #tpu.memory_space<vmem>>, %arg23: memref<1x1x32xf32, #tpu.memory_space<vmem>>, %arg24: memref<1x1x32xf32, #tpu.memory_space<vmem>>, %arg25: memref<1x32x2048xbf16, #tpu.memory_space<vmem>>, %arg26: memref<1x1x2048xf32, #tpu.memory_space<vmem>>, %arg27: memref<1x2048x32xbf16, #tpu.memory_space<vmem>>, %arg28: memref<1x1x32xf32, #tpu.memory_space<vmem>>, %arg29: memref<1x1x32xf32, #tpu.memory_space<vmem>>, %arg30: memref<1x1x32xf32, #tpu.memory_space<vmem>>, %arg31: memref<1x32xf32, #tpu.memory_space<vmem>>, %arg32: memref<1x32xf32, #tpu.memory_space<vmem>>, %arg33: memref<1x8x32xf32, #tpu.memory_space<vmem>>, %arg34: memref<8x32xf32, #tpu.memory_space<vmem>>) attributes {dimension_semantics = [#tpu.dimension_semantics<parallel>, #tpu.dimension_semantics<arbitrary>], iteration_bounds = array<i64: 2, 2>, scalar_prefetch = 0 : i64, scratch_operands = 1 : i64, tpu.core_type = #tpu.core_type<tc>, window_params = [{transform_indices = @transform_0, window_bounds = array<i64: 1, 8, 32>}, {transform_indices = @transform_1, window_bounds = array<i64: 1, 16, 32>}, {transform_indices = @transform_2, window_bounds = array<i64: 1, 1, 8>}, {transform_indices = @transform_3, window_bounds = array<i64: 1, 4, 32, 8>}, {transform_indices = @transform_4, window_bounds = array<i64: 1, 4, 1, 8>}, {transform_indices = @transform_5, window_bounds = array<i64: 1, 4, 32, 8>}, {transform_indices = @transform_6, window_bounds = array<i64: 1, 4, 1, 8>}, {transform_indices = @transform_7, window_bounds = array<i64: 1, 4, 32, 8>}, {transform_indices = @transform_8, window_bounds = array<i64: 1, 4, 1, 8>}, {transform_indices = @transform_9, window_bounds = array<i64: 1, 4, 8, 32>}, {transform_indices = @transform_10, window_bounds = array<i64: 1, 1, 32>}, {transform_indices = @transform_11, window_bounds = array<i64: 1, 1, 32>}, {transform_indices = @transform_12, window_bounds = array<i64: 1, 1, 32>}, {transform_indices = @transform_13, window_bounds = array<i64: 1, 4, 32, 8>}, {transform_indices = @transform_14, window_bounds = array<i64: 1, 4, 1, 8>}, {transform_indices = @transform_15, window_bounds = array<i64: 1, 4, 32, 8>}, {transform_indices = @transform_16, window_bounds = array<i64: 1, 4, 1, 8>}, {transform_indices = @transform_17, window_bounds = array<i64: 1, 4, 32, 8>}, {transform_indices = @transform_18, window_bounds = array<i64: 1, 4, 1, 8>}, {transform_indices = @transform_19, window_bounds = array<i64: 1, 4, 8, 32>}, {transform_indices = @transform_20, window_bounds = array<i64: 1, 1, 32>}, {transform_indices = @transform_21, window_bounds = array<i64: 1, 1, 32>}, {transform_indices = @transform_22, window_bounds = array<i64: 1, 1, 32>}, {transform_indices = @transform_23, window_bounds = array<i64: 1, 32, 2048>}, {transform_indices = @transform_24, window_bounds = array<i64: 1, 1, 2048>}, {transform_indices = @transform_25, window_bounds = array<i64: 1, 2048, 32>}, {transform_indices = @transform_26, window_bounds = array<i64: 1, 1, 32>}, {transform_indices = @transform_27, window_bounds = array<i64: 1, 1, 32>}, {transform_indices = @transform_28, window_bounds = array<i64: 1, 1, 32>}, {pipeline_mode = #tpu.pipeline_mode<synchronous>, transform_indices = @transform_29, window_bounds = array<i64: 1, 32>}, {pipeline_mode = #tpu.pipeline_mode<synchronous>, transform_indices = @transform_30, window_bounds = array<i64: 1, 32>}, {transform_indices = @transform_31, window_bounds = array<i64: 1, 8, 32>}]} {
    %c0_i32 = arith.constant 0 : i32
    %0 = arith.cmpi eq, %arg1, %c0_i32 : i32
    %1 = arith.extui %0 : i1 to i32
    %c0_i32_0 = arith.constant 0 : i32
    %2 = arith.cmpi ne, %1, %c0_i32_0 : i32
    scf.if %2 {
      %c0_194 = arith.constant 0 : index
      %c0_195 = arith.constant 0 : index
      %c0_196 = arith.constant 0 : index
      %501 = vector.load %arg2[%c0_194, %c0_195, %c0_196] : memref<1x8x32xf32, #tpu.memory_space<vmem>>, vector<1x8x32xf32>
      %502 = vector.shape_cast %501 : vector<1x8x32xf32> to vector<8x32xf32>
      %c0_197 = arith.constant 0 : index
      %c0_198 = arith.constant 0 : index
      %503 = vector.load %arg34[%c0_197, %c0_198] : memref<8x32xf32, #tpu.memory_space<vmem>>, vector<8x32xf32>
      tpu.vector_store %arg34[%c0_197, %c0_198], %502 {strides = array<i32>} : memref<8x32xf32, #tpu.memory_space<vmem>>, vector<8x32xf32>,
    } else {
    }
    %c0 = arith.constant 0 : index
    %c0_1 = arith.constant 0 : index
    %3 = vector.load %arg34[%c0, %c0_1] : memref<8x32xf32, #tpu.memory_space<vmem>>, vector<8x32xf32>
    %4 = tpu.iota {dimensions = array<i32: 0>} : vector<8x8xi32>
    %5 = tpu.iota {dimensions = array<i32: 1>} : vector<8x8xi32>
    %6 = arith.cmpi sgt, %5, %4 : vector<8x8xi32>
    %cst = arith.constant -1.000000e+30 : f32
    %cst_2 = arith.constant 0.000000e+00 : f32
    %7 = vector.broadcast %cst : f32 to vector<8x8xf32>
    %8 = vector.broadcast %cst_2 : f32 to vector<8x8xf32>
    %9 = arith.select %6, %7, %8 : vector<8x8xi1>, vector<8x8xf32>
    %c0_3 = arith.constant 0 : index
    %c0_4 = arith.constant 0 : index
    %c0_5 = arith.constant 0 : index
    %10 = vector.load %arg4[%c0_3, %c0_4, %c0_5] : memref<1x1x8xf32, #tpu.memory_space<vmem>>, vector<1x1x8xf32>
    %11 = vector.shape_cast %10 : vector<1x1x8xf32> to vector<1x8xf32>
    %12 = vector.broadcast %11 : vector<1x8xf32> to vector<8x8xf32>
    %13 = arith.addf %9, %12 : vector<8x8xf32>
    %c0_6 = arith.constant 0 : index
    %c0_7 = arith.constant 0 : index
    %c0_8 = arith.constant 0 : index
    %c0_9 = arith.constant 0 : index
    %14 = vector.load %arg5[%c0_6, %c0_7, %c0_8, %c0_9] : memref<1x4x32x8xbf16, #tpu.memory_space<vmem>>, vector<1x4x32x8xbf16>
    %15 = vector.shape_cast %14 : vector<1x4x32x8xbf16> to vector<4x32x8xbf16>
    %c0_10 = arith.constant 0 : index
    %c0_11 = arith.constant 0 : index
    %c0_12 = arith.constant 0 : index
    %c0_13 = arith.constant 0 : index
    %16 = vector.load %arg6[%c0_10, %c0_11, %c0_12, %c0_13] : memref<1x4x1x8xf32, #tpu.memory_space<vmem>>, vector<1x4x1x8xf32>
    %17 = vector.shape_cast %16 : vector<1x4x1x8xf32> to vector<4x1x8xf32>
    %c0_14 = arith.constant 0 : index
    %c0_15 = arith.constant 0 : index
    %c0_16 = arith.constant 0 : index
    %c0_17 = arith.constant 0 : index
    %18 = vector.load %arg7[%c0_14, %c0_15, %c0_16, %c0_17] : memref<1x4x32x8xbf16, #tpu.memory_space<vmem>>, vector<1x4x32x8xbf16>
    %19 = vector.shape_cast %18 : vector<1x4x32x8xbf16> to vector<4x32x8xbf16>
    %c0_18 = arith.constant 0 : index
    %c0_19 = arith.constant 0 : index
    %c0_20 = arith.constant 0 : index
    %c0_21 = arith.constant 0 : index
    %20 = vector.load %arg8[%c0_18, %c0_19, %c0_20, %c0_21] : memref<1x4x1x8xf32, #tpu.memory_space<vmem>>, vector<1x4x1x8xf32>
    %21 = vector.shape_cast %20 : vector<1x4x1x8xf32> to vector<4x1x8xf32>
    %c0_22 = arith.constant 0 : index
    %c0_23 = arith.constant 0 : index
    %c0_24 = arith.constant 0 : index
    %c0_25 = arith.constant 0 : index
    %22 = vector.load %arg9[%c0_22, %c0_23, %c0_24, %c0_25] : memref<1x4x32x8xbf16, #tpu.memory_space<vmem>>, vector<1x4x32x8xbf16>
    %23 = vector.shape_cast %22 : vector<1x4x32x8xbf16> to vector<4x32x8xbf16>
    %c0_26 = arith.constant 0 : index
    %c0_27 = arith.constant 0 : index
    %c0_28 = arith.constant 0 : index
    %c0_29 = arith.constant 0 : index
    %24 = vector.load %arg10[%c0_26, %c0_27, %c0_28, %c0_29] : memref<1x4x1x8xf32, #tpu.memory_space<vmem>>, vector<1x4x1x8xf32>
    %25 = vector.shape_cast %24 : vector<1x4x1x8xf32> to vector<4x1x8xf32>
    %c0_30 = arith.constant 0 : index
    %c0_31 = arith.constant 0 : index
    %c0_32 = arith.constant 0 : index
    %c0_33 = arith.constant 0 : index
    %26 = vector.load %arg11[%c0_30, %c0_31, %c0_32, %c0_33] : memref<1x4x8x32xbf16, #tpu.memory_space<vmem>>, vector<1x4x8x32xbf16>
    %27 = vector.shape_cast %26 : vector<1x4x8x32xbf16> to vector<4x8x32xbf16>
    %c0_34 = arith.constant 0 : index
    %c0_35 = arith.constant 0 : index
    %c0_36 = arith.constant 0 : index
    %28 = vector.load %arg12[%c0_34, %c0_35, %c0_36] : memref<1x1x32xf32, #tpu.memory_space<vmem>>, vector<1x1x32xf32>
    %29 = vector.shape_cast %28 : vector<1x1x32xf32> to vector<1x32xf32>
    %30 = vector.extract_strided_slice %15 {offsets = [0, 0, 0], sizes = [1, 32, 8], strides = [1, 1, 1]} : vector<4x32x8xbf16> to vector<1x32x8xbf16>
    %31 = vector.shape_cast %30 : vector<1x32x8xbf16> to vector<32x8xbf16>
    %32 = arith.truncf %3 : vector<8x32xf32> to vector<8x32xbf16>
    %cst_37 = arith.constant dense<0.000000e+00> : vector<8x8xf32>
    %33 = tpu.matmul %32, %31, %cst_37 {dimension_numbers = #tpu.dot_dimension_numbers<[1], [0], [0], [1], [0, 0, 1, 1], [], []>} : vector<8x32xbf16>, vector<32x8xbf16>, vector<8x8xf32> -> vector<8x8xf32>
    %34 = vector.extract_strided_slice %17 {offsets = [0, 0, 0], sizes = [1, 1, 8], strides = [1, 1, 1]} : vector<4x1x8xf32> to vector<1x1x8xf32>
    %35 = vector.shape_cast %34 : vector<1x1x8xf32> to vector<1x8xf32>
    %36 = vector.broadcast %35 : vector<1x8xf32> to vector<8x8xf32>
    %37 = arith.addf %33, %36 : vector<8x8xf32>
    %38 = vector.extract_strided_slice %19 {offsets = [0, 0, 0], sizes = [1, 32, 8], strides = [1, 1, 1]} : vector<4x32x8xbf16> to vector<1x32x8xbf16>
    %39 = vector.shape_cast %38 : vector<1x32x8xbf16> to vector<32x8xbf16>
    %40 = arith.truncf %3 : vector<8x32xf32> to vector<8x32xbf16>
    %cst_38 = arith.constant dense<0.000000e+00> : vector<8x8xf32>
    %41 = tpu.matmul %40, %39, %cst_38 {dimension_numbers = #tpu.dot_dimension_numbers<[1], [0], [0], [1], [0, 0, 1, 1], [], []>} : vector<8x32xbf16>, vector<32x8xbf16>, vector<8x8xf32> -> vector<8x8xf32>
    %42 = vector.extract_strided_slice %21 {offsets = [0, 0, 0], sizes = [1, 1, 8], strides = [1, 1, 1]} : vector<4x1x8xf32> to vector<1x1x8xf32>
    %43 = vector.shape_cast %42 : vector<1x1x8xf32> to vector<1x8xf32>
    %44 = vector.broadcast %43 : vector<1x8xf32> to vector<8x8xf32>
    %45 = arith.addf %41, %44 : vector<8x8xf32>
    %46 = vector.extract_strided_slice %23 {offsets = [0, 0, 0], sizes = [1, 32, 8], strides = [1, 1, 1]} : vector<4x32x8xbf16> to vector<1x32x8xbf16>
    %47 = vector.shape_cast %46 : vector<1x32x8xbf16> to vector<32x8xbf16>
    %48 = arith.truncf %3 : vector<8x32xf32> to vector<8x32xbf16>
    %cst_39 = arith.constant dense<0.000000e+00> : vector<8x8xf32>
    %49 = tpu.matmul %48, %47, %cst_39 {dimension_numbers = #tpu.dot_dimension_numbers<[1], [0], [0], [1], [0, 0, 1, 1], [], []>} : vector<8x32xbf16>, vector<32x8xbf16>, vector<8x8xf32> -> vector<8x8xf32>
    %50 = vector.extract_strided_slice %25 {offsets = [0, 0, 0], sizes = [1, 1, 8], strides = [1, 1, 1]} : vector<4x1x8xf32> to vector<1x1x8xf32>
    %51 = vector.shape_cast %50 : vector<1x1x8xf32> to vector<1x8xf32>
    %52 = vector.broadcast %51 : vector<1x8xf32> to vector<8x8xf32>
    %53 = arith.addf %49, %52 : vector<8x8xf32>
    %cst_40 = arith.constant dense<0.000000e+00> : vector<8x8xf32>
    %54 = tpu.matmul %37, %45, %cst_40 {dimension_numbers = #tpu.dot_dimension_numbers<[1], [1], [0], [0], [0, 0, 1, 0], [], []>} : vector<8x8xf32>, vector<8x8xf32>, vector<8x8xf32> -> vector<8x8xf32>
    %cst_41 = arith.constant 0.353553385 : f32
    %55 = vector.broadcast %cst_41 : f32 to vector<8x8xf32>
    %56 = arith.mulf %54, %55 : vector<8x8xf32>
    %57 = arith.addf %56, %13 : vector<8x8xf32>
    %cst_42 = arith.constant dense<0xFF800000> : vector<8xf32>
    %58 = vector.multi_reduction <maximumf>, %57, %cst_42 [1] : vector<8x8xf32> to vector<8xf32>
    %59 = vector.shape_cast %58 : vector<8xf32> to vector<8x1xf32>
    %60 = vector.broadcast %59 : vector<8x1xf32> to vector<8x8xf32>
    %61 = arith.subf %57, %60 : vector<8x8xf32>
    %62 = math.exp %61 : vector<8x8xf32>
    %cst_43 = arith.constant dense<0.000000e+00> : vector<8xf32>
    %63 = vector.multi_reduction <add>, %62, %cst_43 [1] : vector<8x8xf32> to vector<8xf32>
    %64 = vector.shape_cast %63 : vector<8xf32> to vector<8x1xf32>
    %65 = tpu.reciprocal %64 {approx = true} : vector<8x1xf32> -> vector<8x1xf32>
    %66 = vector.broadcast %65 : vector<8x1xf32> to vector<8x8xf32>
    %67 = arith.mulf %62, %66 : vector<8x8xf32>
    %cst_44 = arith.constant dense<0.000000e+00> : vector<8x8xf32>
    %68 = tpu.matmul %67, %53, %cst_44 {dimension_numbers = #tpu.dot_dimension_numbers<[1], [0], [0], [1], [0, 0, 1, 1], [], []>} : vector<8x8xf32>, vector<8x8xf32>, vector<8x8xf32> -> vector<8x8xf32>
    %69 = vector.extract_strided_slice %27 {offsets = [0, 0, 0], sizes = [1, 8, 32], strides = [1, 1, 1]} : vector<4x8x32xbf16> to vector<1x8x32xbf16>
    %70 = vector.shape_cast %69 : vector<1x8x32xbf16> to vector<8x32xbf16>
    %71 = arith.truncf %68 : vector<8x8xf32> to vector<8x8xbf16>
    %cst_45 = arith.constant dense<0.000000e+00> : vector<8x32xf32>
    %72 = tpu.matmul %71, %70, %cst_45 {dimension_numbers = #tpu.dot_dimension_numbers<[1], [0], [0], [1], [0, 0, 1, 1], [], []>} : vector<8x8xbf16>, vector<8x32xbf16>, vector<8x32xf32> -> vector<8x32xf32>
    %73 = vector.extract_strided_slice %15 {offsets = [1, 0, 0], sizes = [1, 32, 8], strides = [1, 1, 1]} : vector<4x32x8xbf16> to vector<1x32x8xbf16>
    %74 = vector.shape_cast %73 : vector<1x32x8xbf16> to vector<32x8xbf16>
    %75 = arith.truncf %3 : vector<8x32xf32> to vector<8x32xbf16>
    %cst_46 = arith.constant dense<0.000000e+00> : vector<8x8xf32>
    %76 = tpu.matmul %75, %74, %cst_46 {dimension_numbers = #tpu.dot_dimension_numbers<[1], [0], [0], [1], [0, 0, 1, 1], [], []>} : vector<8x32xbf16>, vector<32x8xbf16>, vector<8x8xf32> -> vector<8x8xf32>
    %77 = vector.extract_strided_slice %17 {offsets = [1, 0, 0], sizes = [1, 1, 8], strides = [1, 1, 1]} : vector<4x1x8xf32> to vector<1x1x8xf32>
    %78 = vector.shape_cast %77 : vector<1x1x8xf32> to vector<1x8xf32>
    %79 = vector.broadcast %78 : vector<1x8xf32> to vector<8x8xf32>
    %80 = arith.addf %76, %79 : vector<8x8xf32>
    %81 = vector.extract_strided_slice %19 {offsets = [1, 0, 0], sizes = [1, 32, 8], strides = [1, 1, 1]} : vector<4x32x8xbf16> to vector<1x32x8xbf16>
    %82 = vector.shape_cast %81 : vector<1x32x8xbf16> to vector<32x8xbf16>
    %83 = arith.truncf %3 : vector<8x32xf32> to vector<8x32xbf16>
    %cst_47 = arith.constant dense<0.000000e+00> : vector<8x8xf32>
    %84 = tpu.matmul %83, %82, %cst_47 {dimension_numbers = #tpu.dot_dimension_numbers<[1], [0], [0], [1], [0, 0, 1, 1], [], []>} : vector<8x32xbf16>, vector<32x8xbf16>, vector<8x8xf32> -> vector<8x8xf32>
    %85 = vector.extract_strided_slice %21 {offsets = [1, 0, 0], sizes = [1, 1, 8], strides = [1, 1, 1]} : vector<4x1x8xf32> to vector<1x1x8xf32>
    %86 = vector.shape_cast %85 : vector<1x1x8xf32> to vector<1x8xf32>
    %87 = vector.broadcast %86 : vector<1x8xf32> to vector<8x8xf32>
    %88 = arith.addf %84, %87 : vector<8x8xf32>
    %89 = vector.extract_strided_slice %23 {offsets = [1, 0, 0], sizes = [1, 32, 8], strides = [1, 1, 1]} : vector<4x32x8xbf16> to vector<1x32x8xbf16>
    %90 = vector.shape_cast %89 : vector<1x32x8xbf16> to vector<32x8xbf16>
    %91 = arith.truncf %3 : vector<8x32xf32> to vector<8x32xbf16>
    %cst_48 = arith.constant dense<0.000000e+00> : vector<8x8xf32>
    %92 = tpu.matmul %91, %90, %cst_48 {dimension_numbers = #tpu.dot_dimension_numbers<[1], [0], [0], [1], [0, 0, 1, 1], [], []>} : vector<8x32xbf16>, vector<32x8xbf16>, vector<8x8xf32> -> vector<8x8xf32>
    %93 = vector.extract_strided_slice %25 {offsets = [1, 0, 0], sizes = [1, 1, 8], strides = [1, 1, 1]} : vector<4x1x8xf32> to vector<1x1x8xf32>
    %94 = vector.shape_cast %93 : vector<1x1x8xf32> to vector<1x8xf32>
    %95 = vector.broadcast %94 : vector<1x8xf32> to vector<8x8xf32>
    %96 = arith.addf %92, %95 : vector<8x8xf32>
    %cst_49 = arith.constant dense<0.000000e+00> : vector<8x8xf32>
    %97 = tpu.matmul %80, %88, %cst_49 {dimension_numbers = #tpu.dot_dimension_numbers<[1], [1], [0], [0], [0, 0, 1, 0], [], []>} : vector<8x8xf32>, vector<8x8xf32>, vector<8x8xf32> -> vector<8x8xf32>
    %cst_50 = arith.constant 0.353553385 : f32
    %98 = vector.broadcast %cst_50 : f32 to vector<8x8xf32>
    %99 = arith.mulf %97, %98 : vector<8x8xf32>
    %100 = arith.addf %99, %13 : vector<8x8xf32>
    %cst_51 = arith.constant dense<0xFF800000> : vector<8xf32>
    %101 = vector.multi_reduction <maximumf>, %100, %cst_51 [1] : vector<8x8xf32> to vector<8xf32>
    %102 = vector.shape_cast %101 : vector<8xf32> to vector<8x1xf32>
    %103 = vector.broadcast %102 : vector<8x1xf32> to vector<8x8xf32>
    %104 = arith.subf %100, %103 : vector<8x8xf32>
    %105 = math.exp %104 : vector<8x8xf32>
    %cst_52 = arith.constant dense<0.000000e+00> : vector<8xf32>
    %106 = vector.multi_reduction <add>, %105, %cst_52 [1] : vector<8x8xf32> to vector<8xf32>
    %107 = vector.shape_cast %106 : vector<8xf32> to vector<8x1xf32>
    %108 = tpu.reciprocal %107 {approx = true} : vector<8x1xf32> -> vector<8x1xf32>
    %109 = vector.broadcast %108 : vector<8x1xf32> to vector<8x8xf32>
    %110 = arith.mulf %105, %109 : vector<8x8xf32>
    %cst_53 = arith.constant dense<0.000000e+00> : vector<8x8xf32>
    %111 = tpu.matmul %110, %96, %cst_53 {dimension_numbers = #tpu.dot_dimension_numbers<[1], [0], [0], [1], [0, 0, 1, 1], [], []>} : vector<8x8xf32>, vector<8x8xf32>, vector<8x8xf32> -> vector<8x8xf32>
    %112 = vector.extract_strided_slice %27 {offsets = [1, 0, 0], sizes = [1, 8, 32], strides = [1, 1, 1]} : vector<4x8x32xbf16> to vector<1x8x32xbf16>
    %113 = vector.shape_cast %112 : vector<1x8x32xbf16> to vector<8x32xbf16>
    %114 = arith.truncf %111 : vector<8x8xf32> to vector<8x8xbf16>
    %cst_54 = arith.constant dense<0.000000e+00> : vector<8x32xf32>
    %115 = tpu.matmul %114, %113, %cst_54 {dimension_numbers = #tpu.dot_dimension_numbers<[1], [0], [0], [1], [0, 0, 1, 1], [], []>} : vector<8x8xbf16>, vector<8x32xbf16>, vector<8x32xf32> -> vector<8x32xf32>
    %116 = arith.addf %72, %115 : vector<8x32xf32>
    %117 = vector.extract_strided_slice %15 {offsets = [2, 0, 0], sizes = [1, 32, 8], strides = [1, 1, 1]} : vector<4x32x8xbf16> to vector<1x32x8xbf16>
    %118 = vector.shape_cast %117 : vector<1x32x8xbf16> to vector<32x8xbf16>
    %119 = arith.truncf %3 : vector<8x32xf32> to vector<8x32xbf16>
    %cst_55 = arith.constant dense<0.000000e+00> : vector<8x8xf32>
    %120 = tpu.matmul %119, %118, %cst_55 {dimension_numbers = #tpu.dot_dimension_numbers<[1], [0], [0], [1], [0, 0, 1, 1], [], []>} : vector<8x32xbf16>, vector<32x8xbf16>, vector<8x8xf32> -> vector<8x8xf32>
    %121 = vector.extract_strided_slice %17 {offsets = [2, 0, 0], sizes = [1, 1, 8], strides = [1, 1, 1]} : vector<4x1x8xf32> to vector<1x1x8xf32>
    %122 = vector.shape_cast %121 : vector<1x1x8xf32> to vector<1x8xf32>
    %123 = vector.broadcast %122 : vector<1x8xf32> to vector<8x8xf32>
    %124 = arith.addf %120, %123 : vector<8x8xf32>
    %125 = vector.extract_strided_slice %19 {offsets = [2, 0, 0], sizes = [1, 32, 8], strides = [1, 1, 1]} : vector<4x32x8xbf16> to vector<1x32x8xbf16>
    %126 = vector.shape_cast %125 : vector<1x32x8xbf16> to vector<32x8xbf16>
    %127 = arith.truncf %3 : vector<8x32xf32> to vector<8x32xbf16>
    %cst_56 = arith.constant dense<0.000000e+00> : vector<8x8xf32>
    %128 = tpu.matmul %127, %126, %cst_56 {dimension_numbers = #tpu.dot_dimension_numbers<[1], [0], [0], [1], [0, 0, 1, 1], [], []>} : vector<8x32xbf16>, vector<32x8xbf16>, vector<8x8xf32> -> vector<8x8xf32>
    %129 = vector.extract_strided_slice %21 {offsets = [2, 0, 0], sizes = [1, 1, 8], strides = [1, 1, 1]} : vector<4x1x8xf32> to vector<1x1x8xf32>
    %130 = vector.shape_cast %129 : vector<1x1x8xf32> to vector<1x8xf32>
    %131 = vector.broadcast %130 : vector<1x8xf32> to vector<8x8xf32>
    %132 = arith.addf %128, %131 : vector<8x8xf32>
    %133 = vector.extract_strided_slice %23 {offsets = [2, 0, 0], sizes = [1, 32, 8], strides = [1, 1, 1]} : vector<4x32x8xbf16> to vector<1x32x8xbf16>
    %134 = vector.shape_cast %133 : vector<1x32x8xbf16> to vector<32x8xbf16>
    %135 = arith.truncf %3 : vector<8x32xf32> to vector<8x32xbf16>
    %cst_57 = arith.constant dense<0.000000e+00> : vector<8x8xf32>
    %136 = tpu.matmul %135, %134, %cst_57 {dimension_numbers = #tpu.dot_dimension_numbers<[1], [0], [0], [1], [0, 0, 1, 1], [], []>} : vector<8x32xbf16>, vector<32x8xbf16>, vector<8x8xf32> -> vector<8x8xf32>
    %137 = vector.extract_strided_slice %25 {offsets = [2, 0, 0], sizes = [1, 1, 8], strides = [1, 1, 1]} : vector<4x1x8xf32> to vector<1x1x8xf32>
    %138 = vector.shape_cast %137 : vector<1x1x8xf32> to vector<1x8xf32>
    %139 = vector.broadcast %138 : vector<1x8xf32> to vector<8x8xf32>
    %140 = arith.addf %136, %139 : vector<8x8xf32>
    %cst_58 = arith.constant dense<0.000000e+00> : vector<8x8xf32>
    %141 = tpu.matmul %124, %132, %cst_58 {dimension_numbers = #tpu.dot_dimension_numbers<[1], [1], [0], [0], [0, 0, 1, 0], [], []>} : vector<8x8xf32>, vector<8x8xf32>, vector<8x8xf32> -> vector<8x8xf32>
    %cst_59 = arith.constant 0.353553385 : f32
    %142 = vector.broadcast %cst_59 : f32 to vector<8x8xf32>
    %143 = arith.mulf %141, %142 : vector<8x8xf32>
    %144 = arith.addf %143, %13 : vector<8x8xf32>
    %cst_60 = arith.constant dense<0xFF800000> : vector<8xf32>
    %145 = vector.multi_reduction <maximumf>, %144, %cst_60 [1] : vector<8x8xf32> to vector<8xf32>
    %146 = vector.shape_cast %145 : vector<8xf32> to vector<8x1xf32>
    %147 = vector.broadcast %146 : vector<8x1xf32> to vector<8x8xf32>
    %148 = arith.subf %144, %147 : vector<8x8xf32>
    %149 = math.exp %148 : vector<8x8xf32>
    %cst_61 = arith.constant dense<0.000000e+00> : vector<8xf32>
    %150 = vector.multi_reduction <add>, %149, %cst_61 [1] : vector<8x8xf32> to vector<8xf32>
    %151 = vector.shape_cast %150 : vector<8xf32> to vector<8x1xf32>
    %152 = tpu.reciprocal %151 {approx = true} : vector<8x1xf32> -> vector<8x1xf32>
    %153 = vector.broadcast %152 : vector<8x1xf32> to vector<8x8xf32>
    %154 = arith.mulf %149, %153 : vector<8x8xf32>
    %cst_62 = arith.constant dense<0.000000e+00> : vector<8x8xf32>
    %155 = tpu.matmul %154, %140, %cst_62 {dimension_numbers = #tpu.dot_dimension_numbers<[1], [0], [0], [1], [0, 0, 1, 1], [], []>} : vector<8x8xf32>, vector<8x8xf32>, vector<8x8xf32> -> vector<8x8xf32>
    %156 = vector.extract_strided_slice %27 {offsets = [2, 0, 0], sizes = [1, 8, 32], strides = [1, 1, 1]} : vector<4x8x32xbf16> to vector<1x8x32xbf16>
    %157 = vector.shape_cast %156 : vector<1x8x32xbf16> to vector<8x32xbf16>
    %158 = arith.truncf %155 : vector<8x8xf32> to vector<8x8xbf16>
    %cst_63 = arith.constant dense<0.000000e+00> : vector<8x32xf32>
    %159 = tpu.matmul %158, %157, %cst_63 {dimension_numbers = #tpu.dot_dimension_numbers<[1], [0], [0], [1], [0, 0, 1, 1], [], []>} : vector<8x8xbf16>, vector<8x32xbf16>, vector<8x32xf32> -> vector<8x32xf32>
    %160 = arith.addf %116, %159 : vector<8x32xf32>
    %161 = vector.extract_strided_slice %15 {offsets = [3, 0, 0], sizes = [1, 32, 8], strides = [1, 1, 1]} : vector<4x32x8xbf16> to vector<1x32x8xbf16>
    %162 = vector.shape_cast %161 : vector<1x32x8xbf16> to vector<32x8xbf16>
    %163 = arith.truncf %3 : vector<8x32xf32> to vector<8x32xbf16>
    %cst_64 = arith.constant dense<0.000000e+00> : vector<8x8xf32>
    %164 = tpu.matmul %163, %162, %cst_64 {dimension_numbers = #tpu.dot_dimension_numbers<[1], [0], [0], [1], [0, 0, 1, 1], [], []>} : vector<8x32xbf16>, vector<32x8xbf16>, vector<8x8xf32> -> vector<8x8xf32>
    %165 = vector.extract_strided_slice %17 {offsets = [3, 0, 0], sizes = [1, 1, 8], strides = [1, 1, 1]} : vector<4x1x8xf32> to vector<1x1x8xf32>
    %166 = vector.shape_cast %165 : vector<1x1x8xf32> to vector<1x8xf32>
    %167 = vector.broadcast %166 : vector<1x8xf32> to vector<8x8xf32>
    %168 = arith.addf %164, %167 : vector<8x8xf32>
    %169 = vector.extract_strided_slice %19 {offsets = [3, 0, 0], sizes = [1, 32, 8], strides = [1, 1, 1]} : vector<4x32x8xbf16> to vector<1x32x8xbf16>
    %170 = vector.shape_cast %169 : vector<1x32x8xbf16> to vector<32x8xbf16>
    %171 = arith.truncf %3 : vector<8x32xf32> to vector<8x32xbf16>
    %cst_65 = arith.constant dense<0.000000e+00> : vector<8x8xf32>
    %172 = tpu.matmul %171, %170, %cst_65 {dimension_numbers = #tpu.dot_dimension_numbers<[1], [0], [0], [1], [0, 0, 1, 1], [], []>} : vector<8x32xbf16>, vector<32x8xbf16>, vector<8x8xf32> -> vector<8x8xf32>
    %173 = vector.extract_strided_slice %21 {offsets = [3, 0, 0], sizes = [1, 1, 8], strides = [1, 1, 1]} : vector<4x1x8xf32> to vector<1x1x8xf32>
    %174 = vector.shape_cast %173 : vector<1x1x8xf32> to vector<1x8xf32>
    %175 = vector.broadcast %174 : vector<1x8xf32> to vector<8x8xf32>
    %176 = arith.addf %172, %175 : vector<8x8xf32>
    %177 = vector.extract_strided_slice %23 {offsets = [3, 0, 0], sizes = [1, 32, 8], strides = [1, 1, 1]} : vector<4x32x8xbf16> to vector<1x32x8xbf16>
    %178 = vector.shape_cast %177 : vector<1x32x8xbf16> to vector<32x8xbf16>
    %179 = arith.truncf %3 : vector<8x32xf32> to vector<8x32xbf16>
    %cst_66 = arith.constant dense<0.000000e+00> : vector<8x8xf32>
    %180 = tpu.matmul %179, %178, %cst_66 {dimension_numbers = #tpu.dot_dimension_numbers<[1], [0], [0], [1], [0, 0, 1, 1], [], []>} : vector<8x32xbf16>, vector<32x8xbf16>, vector<8x8xf32> -> vector<8x8xf32>
    %181 = vector.extract_strided_slice %25 {offsets = [3, 0, 0], sizes = [1, 1, 8], strides = [1, 1, 1]} : vector<4x1x8xf32> to vector<1x1x8xf32>
    %182 = vector.shape_cast %181 : vector<1x1x8xf32> to vector<1x8xf32>
    %183 = vector.broadcast %182 : vector<1x8xf32> to vector<8x8xf32>
    %184 = arith.addf %180, %183 : vector<8x8xf32>
    %cst_67 = arith.constant dense<0.000000e+00> : vector<8x8xf32>
    %185 = tpu.matmul %168, %176, %cst_67 {dimension_numbers = #tpu.dot_dimension_numbers<[1], [1], [0], [0], [0, 0, 1, 0], [], []>} : vector<8x8xf32>, vector<8x8xf32>, vector<8x8xf32> -> vector<8x8xf32>
    %cst_68 = arith.constant 0.353553385 : f32
    %186 = vector.broadcast %cst_68 : f32 to vector<8x8xf32>
    %187 = arith.mulf %185, %186 : vector<8x8xf32>
    %188 = arith.addf %187, %13 : vector<8x8xf32>
    %cst_69 = arith.constant dense<0xFF800000> : vector<8xf32>
    %189 = vector.multi_reduction <maximumf>, %188, %cst_69 [1] : vector<8x8xf32> to vector<8xf32>
    %190 = vector.shape_cast %189 : vector<8xf32> to vector<8x1xf32>
    %191 = vector.broadcast %190 : vector<8x1xf32> to vector<8x8xf32>
    %192 = arith.subf %188, %191 : vector<8x8xf32>
    %193 = math.exp %192 : vector<8x8xf32>
    %cst_70 = arith.constant dense<0.000000e+00> : vector<8xf32>
    %194 = vector.multi_reduction <add>, %193, %cst_70 [1] : vector<8x8xf32> to vector<8xf32>
    %195 = vector.shape_cast %194 : vector<8xf32> to vector<8x1xf32>
    %196 = tpu.reciprocal %195 {approx = true} : vector<8x1xf32> -> vector<8x1xf32>
    %197 = vector.broadcast %196 : vector<8x1xf32> to vector<8x8xf32>
    %198 = arith.mulf %193, %197 : vector<8x8xf32>
    %cst_71 = arith.constant dense<0.000000e+00> : vector<8x8xf32>
    %199 = tpu.matmul %198, %184, %cst_71 {dimension_numbers = #tpu.dot_dimension_numbers<[1], [0], [0], [1], [0, 0, 1, 1], [], []>} : vector<8x8xf32>, vector<8x8xf32>, vector<8x8xf32> -> vector<8x8xf32>
    %200 = vector.extract_strided_slice %27 {offsets = [3, 0, 0], sizes = [1, 8, 32], strides = [1, 1, 1]} : vector<4x8x32xbf16> to vector<1x8x32xbf16>
    %201 = vector.shape_cast %200 : vector<1x8x32xbf16> to vector<8x32xbf16>
    %202 = arith.truncf %199 : vector<8x8xf32> to vector<8x8xbf16>
    %cst_72 = arith.constant dense<0.000000e+00> : vector<8x32xf32>
    %203 = tpu.matmul %202, %201, %cst_72 {dimension_numbers = #tpu.dot_dimension_numbers<[1], [0], [0], [1], [0, 0, 1, 1], [], []>} : vector<8x8xbf16>, vector<8x32xbf16>, vector<8x32xf32> -> vector<8x32xf32>
    %204 = arith.addf %160, %203 : vector<8x32xf32>
    %205 = vector.broadcast %29 : vector<1x32xf32> to vector<8x32xf32>
    %206 = arith.addf %204, %205 : vector<8x32xf32>
    %207 = arith.addf %3, %206 : vector<8x32xf32>
    %c0_73 = arith.constant 0 : index
    %c0_74 = arith.constant 0 : index
    %c0_75 = arith.constant 0 : index
    %208 = vector.load %arg13[%c0_73, %c0_74, %c0_75] : memref<1x1x32xf32, #tpu.memory_space<vmem>>, vector<1x1x32xf32>
    %209 = vector.shape_cast %208 : vector<1x1x32xf32> to vector<1x32xf32>
    %c0_76 = arith.constant 0 : index
    %c0_77 = arith.constant 0 : index
    %c0_78 = arith.constant 0 : index
    %210 = vector.load %arg14[%c0_76, %c0_77, %c0_78] : memref<1x1x32xf32, #tpu.memory_space<vmem>>, vector<1x1x32xf32>
    %211 = vector.shape_cast %210 : vector<1x1x32xf32> to vector<1x32xf32>
    %cst_79 = arith.constant dense<0.000000e+00> : vector<8xf32>
    %212 = vector.multi_reduction <add>, %207, %cst_79 [1] : vector<8x32xf32> to vector<8xf32>
    %213 = vector.shape_cast %212 : vector<8xf32> to vector<8x1xf32>
    %cst_80 = arith.constant 3.200000e+01 : f32
    %214 = vector.broadcast %cst_80 : f32 to vector<8x1xf32>
    %215 = arith.divf %213, %214 : vector<8x1xf32>
    %216 = vector.broadcast %215 : vector<8x1xf32> to vector<8x32xf32>
    %217 = arith.subf %207, %216 : vector<8x32xf32>
    %218 = arith.mulf %217, %217 : vector<8x32xf32>
    %cst_81 = arith.constant dense<0.000000e+00> : vector<8xf32>
    %219 = vector.multi_reduction <add>, %218, %cst_81 [1] : vector<8x32xf32> to vector<8xf32>
    %220 = vector.shape_cast %219 : vector<8xf32> to vector<8x1xf32>
    %cst_82 = arith.constant 3.200000e+01 : f32
    %221 = vector.broadcast %cst_82 : f32 to vector<8x1xf32>
    %222 = arith.divf %220, %221 : vector<8x1xf32>
    %223 = vector.broadcast %215 : vector<8x1xf32> to vector<8x32xf32>
    %224 = arith.subf %207, %223 : vector<8x32xf32>
    %cst_83 = arith.constant 9.99999974E-6 : f32
    %225 = vector.broadcast %cst_83 : f32 to vector<8x1xf32>
    %226 = arith.addf %222, %225 : vector<8x1xf32>
    %227 = math.rsqrt %226 : vector<8x1xf32>
    %228 = vector.broadcast %227 : vector<8x1xf32> to vector<8x32xf32>
    %229 = arith.mulf %224, %228 : vector<8x32xf32>
    %230 = vector.broadcast %209 : vector<1x32xf32> to vector<8x32xf32>
    %231 = arith.mulf %229, %230 : vector<8x32xf32>
    %232 = vector.broadcast %211 : vector<1x32xf32> to vector<8x32xf32>
    %233 = arith.addf %231, %232 : vector<8x32xf32>
    %c0_84 = arith.constant 0 : index
    %c0_85 = arith.constant 0 : index
    %c0_86 = arith.constant 0 : index
    %234 = vector.load %arg3[%c0_84, %c0_85, %c0_86] : memref<1x16x32xf32, #tpu.memory_space<vmem>>, vector<1x16x32xf32>
    %235 = vector.shape_cast %234 : vector<1x16x32xf32> to vector<16x32xf32>
    %c0_87 = arith.constant 0 : index
    %c0_88 = arith.constant 0 : index
    %c0_89 = arith.constant 0 : index
    %c0_90 = arith.constant 0 : index
    %236 = vector.load %arg15[%c0_87, %c0_88, %c0_89, %c0_90] : memref<1x4x32x8xbf16, #tpu.memory_space<vmem>>, vector<1x4x32x8xbf16>
    %237 = vector.shape_cast %236 : vector<1x4x32x8xbf16> to vector<4x32x8xbf16>
    %c0_91 = arith.constant 0 : index
    %c0_92 = arith.constant 0 : index
    %c0_93 = arith.constant 0 : index
    %c0_94 = arith.constant 0 : index
    %238 = vector.load %arg16[%c0_91, %c0_92, %c0_93, %c0_94] : memref<1x4x1x8xf32, #tpu.memory_space<vmem>>, vector<1x4x1x8xf32>
    %239 = vector.shape_cast %238 : vector<1x4x1x8xf32> to vector<4x1x8xf32>
    %c0_95 = arith.constant 0 : index
    %c0_96 = arith.constant 0 : index
    %c0_97 = arith.constant 0 : index
    %c0_98 = arith.constant 0 : index
    %240 = vector.load %arg17[%c0_95, %c0_96, %c0_97, %c0_98] : memref<1x4x32x8xbf16, #tpu.memory_space<vmem>>, vector<1x4x32x8xbf16>
    %241 = vector.shape_cast %240 : vector<1x4x32x8xbf16> to vector<4x32x8xbf16>
    %c0_99 = arith.constant 0 : index
    %c0_100 = arith.constant 0 : index
    %c0_101 = arith.constant 0 : index
    %c0_102 = arith.constant 0 : index
    %242 = vector.load %arg18[%c0_99, %c0_100, %c0_101, %c0_102] : memref<1x4x1x8xf32, #tpu.memory_space<vmem>>, vector<1x4x1x8xf32>
    %243 = vector.shape_cast %242 : vector<1x4x1x8xf32> to vector<4x1x8xf32>
    %c0_103 = arith.constant 0 : index
    %c0_104 = arith.constant 0 : index
    %c0_105 = arith.constant 0 : index
    %c0_106 = arith.constant 0 : index
    %244 = vector.load %arg19[%c0_103, %c0_104, %c0_105, %c0_106] : memref<1x4x32x8xbf16, #tpu.memory_space<vmem>>, vector<1x4x32x8xbf16>
    %245 = vector.shape_cast %244 : vector<1x4x32x8xbf16> to vector<4x32x8xbf16>
    %c0_107 = arith.constant 0 : index
    %c0_108 = arith.constant 0 : index
    %c0_109 = arith.constant 0 : index
    %c0_110 = arith.constant 0 : index
    %246 = vector.load %arg20[%c0_107, %c0_108, %c0_109, %c0_110] : memref<1x4x1x8xf32, #tpu.memory_space<vmem>>, vector<1x4x1x8xf32>
    %247 = vector.shape_cast %246 : vector<1x4x1x8xf32> to vector<4x1x8xf32>
    %c0_111 = arith.constant 0 : index
    %c0_112 = arith.constant 0 : index
    %c0_113 = arith.constant 0 : index
    %c0_114 = arith.constant 0 : index
    %248 = vector.load %arg21[%c0_111, %c0_112, %c0_113, %c0_114] : memref<1x4x8x32xbf16, #tpu.memory_space<vmem>>, vector<1x4x8x32xbf16>
    %249 = vector.shape_cast %248 : vector<1x4x8x32xbf16> to vector<4x8x32xbf16>
    %c0_115 = arith.constant 0 : index
    %c0_116 = arith.constant 0 : index
    %c0_117 = arith.constant 0 : index
    %250 = vector.load %arg22[%c0_115, %c0_116, %c0_117] : memref<1x1x32xf32, #tpu.memory_space<vmem>>, vector<1x1x32xf32>
    %251 = vector.shape_cast %250 : vector<1x1x32xf32> to vector<1x32xf32>
    %252 = vector.extract_strided_slice %237 {offsets = [0, 0, 0], sizes = [1, 32, 8], strides = [1, 1, 1]} : vector<4x32x8xbf16> to vector<1x32x8xbf16>
    %253 = vector.shape_cast %252 : vector<1x32x8xbf16> to vector<32x8xbf16>
    %254 = arith.truncf %233 : vector<8x32xf32> to vector<8x32xbf16>
    %cst_118 = arith.constant dense<0.000000e+00> : vector<8x8xf32>
    %255 = tpu.matmul %254, %253, %cst_118 {dimension_numbers = #tpu.dot_dimension_numbers<[1], [0], [0], [1], [0, 0, 1, 1], [], []>} : vector<8x32xbf16>, vector<32x8xbf16>, vector<8x8xf32> -> vector<8x8xf32>
    %256 = vector.extract_strided_slice %239 {offsets = [0, 0, 0], sizes = [1, 1, 8], strides = [1, 1, 1]} : vector<4x1x8xf32> to vector<1x1x8xf32>
    %257 = vector.shape_cast %256 : vector<1x1x8xf32> to vector<1x8xf32>
    %258 = vector.broadcast %257 : vector<1x8xf32> to vector<8x8xf32>
    %259 = arith.addf %255, %258 : vector<8x8xf32>
    %260 = vector.extract_strided_slice %241 {offsets = [0, 0, 0], sizes = [1, 32, 8], strides = [1, 1, 1]} : vector<4x32x8xbf16> to vector<1x32x8xbf16>
    %261 = vector.shape_cast %260 : vector<1x32x8xbf16> to vector<32x8xbf16>
    %262 = arith.truncf %235 : vector<16x32xf32> to vector<16x32xbf16>
    %cst_119 = arith.constant dense<0.000000e+00> : vector<16x8xf32>
    %263 = tpu.matmul %262, %261, %cst_119 {dimension_numbers = #tpu.dot_dimension_numbers<[1], [0], [0], [1], [0, 0, 1, 1], [], []>} : vector<16x32xbf16>, vector<32x8xbf16>, vector<16x8xf32> -> vector<16x8xf32>
    %264 = vector.extract_strided_slice %243 {offsets = [0, 0, 0], sizes = [1, 1, 8], strides = [1, 1, 1]} : vector<4x1x8xf32> to vector<1x1x8xf32>
    %265 = vector.shape_cast %264 : vector<1x1x8xf32> to vector<1x8xf32>
    %266 = vector.broadcast %265 : vector<1x8xf32> to vector<16x8xf32>
    %267 = arith.addf %263, %266 : vector<16x8xf32>
    %268 = vector.extract_strided_slice %245 {offsets = [0, 0, 0], sizes = [1, 32, 8], strides = [1, 1, 1]} : vector<4x32x8xbf16> to vector<1x32x8xbf16>
    %269 = vector.shape_cast %268 : vector<1x32x8xbf16> to vector<32x8xbf16>
    %270 = arith.truncf %235 : vector<16x32xf32> to vector<16x32xbf16>
    %cst_120 = arith.constant dense<0.000000e+00> : vector<16x8xf32>
    %271 = tpu.matmul %270, %269, %cst_120 {dimension_numbers = #tpu.dot_dimension_numbers<[1], [0], [0], [1], [0, 0, 1, 1], [], []>} : vector<16x32xbf16>, vector<32x8xbf16>, vector<16x8xf32> -> vector<16x8xf32>
    %272 = vector.extract_strided_slice %247 {offsets = [0, 0, 0], sizes = [1, 1, 8], strides = [1, 1, 1]} : vector<4x1x8xf32> to vector<1x1x8xf32>
    %273 = vector.shape_cast %272 : vector<1x1x8xf32> to vector<1x8xf32>
    %274 = vector.broadcast %273 : vector<1x8xf32> to vector<16x8xf32>
    %275 = arith.addf %271, %274 : vector<16x8xf32>
    %cst_121 = arith.constant dense<0.000000e+00> : vector<8x16xf32>
    %276 = tpu.matmul %259, %267, %cst_121 {dimension_numbers = #tpu.dot_dimension_numbers<[1], [1], [0], [0], [0, 0, 1, 0], [], []>} : vector<8x8xf32>, vector<16x8xf32>, vector<8x16xf32> -> vector<8x16xf32>
    %cst_122 = arith.constant 0.353553385 : f32
    %277 = vector.broadcast %cst_122 : f32 to vector<8x16xf32>
    %278 = arith.mulf %276, %277 : vector<8x16xf32>
    %cst_123 = arith.constant dense<0xFF800000> : vector<8xf32>
    %279 = vector.multi_reduction <maximumf>, %278, %cst_123 [1] : vector<8x16xf32> to vector<8xf32>
    %280 = vector.shape_cast %279 : vector<8xf32> to vector<8x1xf32>
    %281 = vector.broadcast %280 : vector<8x1xf32> to vector<8x16xf32>
    %282 = arith.subf %278, %281 : vector<8x16xf32>
    %283 = math.exp %282 : vector<8x16xf32>
    %cst_124 = arith.constant dense<0.000000e+00> : vector<8xf32>
    %284 = vector.multi_reduction <add>, %283, %cst_124 [1] : vector<8x16xf32> to vector<8xf32>
    %285 = vector.shape_cast %284 : vector<8xf32> to vector<8x1xf32>
    %286 = tpu.reciprocal %285 {approx = true} : vector<8x1xf32> -> vector<8x1xf32>
    %287 = vector.broadcast %286 : vector<8x1xf32> to vector<8x16xf32>
    %288 = arith.mulf %283, %287 : vector<8x16xf32>
    %cst_125 = arith.constant dense<0.000000e+00> : vector<8x8xf32>
    %289 = tpu.matmul %288, %275, %cst_125 {dimension_numbers = #tpu.dot_dimension_numbers<[1], [0], [0], [1], [0, 0, 1, 1], [], []>} : vector<8x16xf32>, vector<16x8xf32>, vector<8x8xf32> -> vector<8x8xf32>
    %290 = vector.extract_strided_slice %249 {offsets = [0, 0, 0], sizes = [1, 8, 32], strides = [1, 1, 1]} : vector<4x8x32xbf16> to vector<1x8x32xbf16>
    %291 = vector.shape_cast %290 : vector<1x8x32xbf16> to vector<8x32xbf16>
    %292 = arith.truncf %289 : vector<8x8xf32> to vector<8x8xbf16>
    %cst_126 = arith.constant dense<0.000000e+00> : vector<8x32xf32>
    %293 = tpu.matmul %292, %291, %cst_126 {dimension_numbers = #tpu.dot_dimension_numbers<[1], [0], [0], [1], [0, 0, 1, 1], [], []>} : vector<8x8xbf16>, vector<8x32xbf16>, vector<8x32xf32> -> vector<8x32xf32>
    %294 = vector.extract_strided_slice %237 {offsets = [1, 0, 0], sizes = [1, 32, 8], strides = [1, 1, 1]} : vector<4x32x8xbf16> to vector<1x32x8xbf16>
    %295 = vector.shape_cast %294 : vector<1x32x8xbf16> to vector<32x8xbf16>
    %296 = arith.truncf %233 : vector<8x32xf32> to vector<8x32xbf16>
    %cst_127 = arith.constant dense<0.000000e+00> : vector<8x8xf32>
    %297 = tpu.matmul %296, %295, %cst_127 {dimension_numbers = #tpu.dot_dimension_numbers<[1], [0], [0], [1], [0, 0, 1, 1], [], []>} : vector<8x32xbf16>, vector<32x8xbf16>, vector<8x8xf32> -> vector<8x8xf32>
    %298 = vector.extract_strided_slice %239 {offsets = [1, 0, 0], sizes = [1, 1, 8], strides = [1, 1, 1]} : vector<4x1x8xf32> to vector<1x1x8xf32>
    %299 = vector.shape_cast %298 : vector<1x1x8xf32> to vector<1x8xf32>
    %300 = vector.broadcast %299 : vector<1x8xf32> to vector<8x8xf32>
    %301 = arith.addf %297, %300 : vector<8x8xf32>
    %302 = vector.extract_strided_slice %241 {offsets = [1, 0, 0], sizes = [1, 32, 8], strides = [1, 1, 1]} : vector<4x32x8xbf16> to vector<1x32x8xbf16>
    %303 = vector.shape_cast %302 : vector<1x32x8xbf16> to vector<32x8xbf16>
    %304 = arith.truncf %235 : vector<16x32xf32> to vector<16x32xbf16>
    %cst_128 = arith.constant dense<0.000000e+00> : vector<16x8xf32>
    %305 = tpu.matmul %304, %303, %cst_128 {dimension_numbers = #tpu.dot_dimension_numbers<[1], [0], [0], [1], [0, 0, 1, 1], [], []>} : vector<16x32xbf16>, vector<32x8xbf16>, vector<16x8xf32> -> vector<16x8xf32>
    %306 = vector.extract_strided_slice %243 {offsets = [1, 0, 0], sizes = [1, 1, 8], strides = [1, 1, 1]} : vector<4x1x8xf32> to vector<1x1x8xf32>
    %307 = vector.shape_cast %306 : vector<1x1x8xf32> to vector<1x8xf32>
    %308 = vector.broadcast %307 : vector<1x8xf32> to vector<16x8xf32>
    %309 = arith.addf %305, %308 : vector<16x8xf32>
    %310 = vector.extract_strided_slice %245 {offsets = [1, 0, 0], sizes = [1, 32, 8], strides = [1, 1, 1]} : vector<4x32x8xbf16> to vector<1x32x8xbf16>
    %311 = vector.shape_cast %310 : vector<1x32x8xbf16> to vector<32x8xbf16>
    %312 = arith.truncf %235 : vector<16x32xf32> to vector<16x32xbf16>
    %cst_129 = arith.constant dense<0.000000e+00> : vector<16x8xf32>
    %313 = tpu.matmul %312, %311, %cst_129 {dimension_numbers = #tpu.dot_dimension_numbers<[1], [0], [0], [1], [0, 0, 1, 1], [], []>} : vector<16x32xbf16>, vector<32x8xbf16>, vector<16x8xf32> -> vector<16x8xf32>
    %314 = vector.extract_strided_slice %247 {offsets = [1, 0, 0], sizes = [1, 1, 8], strides = [1, 1, 1]} : vector<4x1x8xf32> to vector<1x1x8xf32>
    %315 = vector.shape_cast %314 : vector<1x1x8xf32> to vector<1x8xf32>
    %316 = vector.broadcast %315 : vector<1x8xf32> to vector<16x8xf32>
    %317 = arith.addf %313, %316 : vector<16x8xf32>
    %cst_130 = arith.constant dense<0.000000e+00> : vector<8x16xf32>
    %318 = tpu.matmul %301, %309, %cst_130 {dimension_numbers = #tpu.dot_dimension_numbers<[1], [1], [0], [0], [0, 0, 1, 0], [], []>} : vector<8x8xf32>, vector<16x8xf32>, vector<8x16xf32> -> vector<8x16xf32>
    %cst_131 = arith.constant 0.353553385 : f32
    %319 = vector.broadcast %cst_131 : f32 to vector<8x16xf32>
    %320 = arith.mulf %318, %319 : vector<8x16xf32>
    %cst_132 = arith.constant dense<0xFF800000> : vector<8xf32>
    %321 = vector.multi_reduction <maximumf>, %320, %cst_132 [1] : vector<8x16xf32> to vector<8xf32>
    %322 = vector.shape_cast %321 : vector<8xf32> to vector<8x1xf32>
    %323 = vector.broadcast %322 : vector<8x1xf32> to vector<8x16xf32>
    %324 = arith.subf %320, %323 : vector<8x16xf32>
    %325 = math.exp %324 : vector<8x16xf32>
    %cst_133 = arith.constant dense<0.000000e+00> : vector<8xf32>
    %326 = vector.multi_reduction <add>, %325, %cst_133 [1] : vector<8x16xf32> to vector<8xf32>
    %327 = vector.shape_cast %326 : vector<8xf32> to vector<8x1xf32>
    %328 = tpu.reciprocal %327 {approx = true} : vector<8x1xf32> -> vector<8x1xf32>
    %329 = vector.broadcast %328 : vector<8x1xf32> to vector<8x16xf32>
    %330 = arith.mulf %325, %329 : vector<8x16xf32>
    %cst_134 = arith.constant dense<0.000000e+00> : vector<8x8xf32>
    %331 = tpu.matmul %330, %317, %cst_134 {dimension_numbers = #tpu.dot_dimension_numbers<[1], [0], [0], [1], [0, 0, 1, 1], [], []>} : vector<8x16xf32>, vector<16x8xf32>, vector<8x8xf32> -> vector<8x8xf32>
    %332 = vector.extract_strided_slice %249 {offsets = [1, 0, 0], sizes = [1, 8, 32], strides = [1, 1, 1]} : vector<4x8x32xbf16> to vector<1x8x32xbf16>
    %333 = vector.shape_cast %332 : vector<1x8x32xbf16> to vector<8x32xbf16>
    %334 = arith.truncf %331 : vector<8x8xf32> to vector<8x8xbf16>
    %cst_135 = arith.constant dense<0.000000e+00> : vector<8x32xf32>
    %335 = tpu.matmul %334, %333, %cst_135 {dimension_numbers = #tpu.dot_dimension_numbers<[1], [0], [0], [1], [0, 0, 1, 1], [], []>} : vector<8x8xbf16>, vector<8x32xbf16>, vector<8x32xf32> -> vector<8x32xf32>
    %336 = arith.addf %293, %335 : vector<8x32xf32>
    %337 = vector.extract_strided_slice %237 {offsets = [2, 0, 0], sizes = [1, 32, 8], strides = [1, 1, 1]} : vector<4x32x8xbf16> to vector<1x32x8xbf16>
    %338 = vector.shape_cast %337 : vector<1x32x8xbf16> to vector<32x8xbf16>
    %339 = arith.truncf %233 : vector<8x32xf32> to vector<8x32xbf16>
    %cst_136 = arith.constant dense<0.000000e+00> : vector<8x8xf32>
    %340 = tpu.matmul %339, %338, %cst_136 {dimension_numbers = #tpu.dot_dimension_numbers<[1], [0], [0], [1], [0, 0, 1, 1], [], []>} : vector<8x32xbf16>, vector<32x8xbf16>, vector<8x8xf32> -> vector<8x8xf32>
    %341 = vector.extract_strided_slice %239 {offsets = [2, 0, 0], sizes = [1, 1, 8], strides = [1, 1, 1]} : vector<4x1x8xf32> to vector<1x1x8xf32>
    %342 = vector.shape_cast %341 : vector<1x1x8xf32> to vector<1x8xf32>
    %343 = vector.broadcast %342 : vector<1x8xf32> to vector<8x8xf32>
    %344 = arith.addf %340, %343 : vector<8x8xf32>
    %345 = vector.extract_strided_slice %241 {offsets = [2, 0, 0], sizes = [1, 32, 8], strides = [1, 1, 1]} : vector<4x32x8xbf16> to vector<1x32x8xbf16>
    %346 = vector.shape_cast %345 : vector<1x32x8xbf16> to vector<32x8xbf16>
    %347 = arith.truncf %235 : vector<16x32xf32> to vector<16x32xbf16>
    %cst_137 = arith.constant dense<0.000000e+00> : vector<16x8xf32>
    %348 = tpu.matmul %347, %346, %cst_137 {dimension_numbers = #tpu.dot_dimension_numbers<[1], [0], [0], [1], [0, 0, 1, 1], [], []>} : vector<16x32xbf16>, vector<32x8xbf16>, vector<16x8xf32> -> vector<16x8xf32>
    %349 = vector.extract_strided_slice %243 {offsets = [2, 0, 0], sizes = [1, 1, 8], strides = [1, 1, 1]} : vector<4x1x8xf32> to vector<1x1x8xf32>
    %350 = vector.shape_cast %349 : vector<1x1x8xf32> to vector<1x8xf32>
    %351 = vector.broadcast %350 : vector<1x8xf32> to vector<16x8xf32>
    %352 = arith.addf %348, %351 : vector<16x8xf32>
    %353 = vector.extract_strided_slice %245 {offsets = [2, 0, 0], sizes = [1, 32, 8], strides = [1, 1, 1]} : vector<4x32x8xbf16> to vector<1x32x8xbf16>
    %354 = vector.shape_cast %353 : vector<1x32x8xbf16> to vector<32x8xbf16>
    %355 = arith.truncf %235 : vector<16x32xf32> to vector<16x32xbf16>
    %cst_138 = arith.constant dense<0.000000e+00> : vector<16x8xf32>
    %356 = tpu.matmul %355, %354, %cst_138 {dimension_numbers = #tpu.dot_dimension_numbers<[1], [0], [0], [1], [0, 0, 1, 1], [], []>} : vector<16x32xbf16>, vector<32x8xbf16>, vector<16x8xf32> -> vector<16x8xf32>
    %357 = vector.extract_strided_slice %247 {offsets = [2, 0, 0], sizes = [1, 1, 8], strides = [1, 1, 1]} : vector<4x1x8xf32> to vector<1x1x8xf32>
    %358 = vector.shape_cast %357 : vector<1x1x8xf32> to vector<1x8xf32>
    %359 = vector.broadcast %358 : vector<1x8xf32> to vector<16x8xf32>
    %360 = arith.addf %356, %359 : vector<16x8xf32>
    %cst_139 = arith.constant dense<0.000000e+00> : vector<8x16xf32>
    %361 = tpu.matmul %344, %352, %cst_139 {dimension_numbers = #tpu.dot_dimension_numbers<[1], [1], [0], [0], [0, 0, 1, 0], [], []>} : vector<8x8xf32>, vector<16x8xf32>, vector<8x16xf32> -> vector<8x16xf32>
    %cst_140 = arith.constant 0.353553385 : f32
    %362 = vector.broadcast %cst_140 : f32 to vector<8x16xf32>
    %363 = arith.mulf %361, %362 : vector<8x16xf32>
    %cst_141 = arith.constant dense<0xFF800000> : vector<8xf32>
    %364 = vector.multi_reduction <maximumf>, %363, %cst_141 [1] : vector<8x16xf32> to vector<8xf32>
    %365 = vector.shape_cast %364 : vector<8xf32> to vector<8x1xf32>
    %366 = vector.broadcast %365 : vector<8x1xf32> to vector<8x16xf32>
    %367 = arith.subf %363, %366 : vector<8x16xf32>
    %368 = math.exp %367 : vector<8x16xf32>
    %cst_142 = arith.constant dense<0.000000e+00> : vector<8xf32>
    %369 = vector.multi_reduction <add>, %368, %cst_142 [1] : vector<8x16xf32> to vector<8xf32>
    %370 = vector.shape_cast %369 : vector<8xf32> to vector<8x1xf32>
    %371 = tpu.reciprocal %370 {approx = true} : vector<8x1xf32> -> vector<8x1xf32>
    %372 = vector.broadcast %371 : vector<8x1xf32> to vector<8x16xf32>
    %373 = arith.mulf %368, %372 : vector<8x16xf32>
    %cst_143 = arith.constant dense<0.000000e+00> : vector<8x8xf32>
    %374 = tpu.matmul %373, %360, %cst_143 {dimension_numbers = #tpu.dot_dimension_numbers<[1], [0], [0], [1], [0, 0, 1, 1], [], []>} : vector<8x16xf32>, vector<16x8xf32>, vector<8x8xf32> -> vector<8x8xf32>
    %375 = vector.extract_strided_slice %249 {offsets = [2, 0, 0], sizes = [1, 8, 32], strides = [1, 1, 1]} : vector<4x8x32xbf16> to vector<1x8x32xbf16>
    %376 = vector.shape_cast %375 : vector<1x8x32xbf16> to vector<8x32xbf16>
    %377 = arith.truncf %374 : vector<8x8xf32> to vector<8x8xbf16>
    %cst_144 = arith.constant dense<0.000000e+00> : vector<8x32xf32>
    %378 = tpu.matmul %377, %376, %cst_144 {dimension_numbers = #tpu.dot_dimension_numbers<[1], [0], [0], [1], [0, 0, 1, 1], [], []>} : vector<8x8xbf16>, vector<8x32xbf16>, vector<8x32xf32> -> vector<8x32xf32>
    %379 = arith.addf %336, %378 : vector<8x32xf32>
    %380 = vector.extract_strided_slice %237 {offsets = [3, 0, 0], sizes = [1, 32, 8], strides = [1, 1, 1]} : vector<4x32x8xbf16> to vector<1x32x8xbf16>
    %381 = vector.shape_cast %380 : vector<1x32x8xbf16> to vector<32x8xbf16>
    %382 = arith.truncf %233 : vector<8x32xf32> to vector<8x32xbf16>
    %cst_145 = arith.constant dense<0.000000e+00> : vector<8x8xf32>
    %383 = tpu.matmul %382, %381, %cst_145 {dimension_numbers = #tpu.dot_dimension_numbers<[1], [0], [0], [1], [0, 0, 1, 1], [], []>} : vector<8x32xbf16>, vector<32x8xbf16>, vector<8x8xf32> -> vector<8x8xf32>
    %384 = vector.extract_strided_slice %239 {offsets = [3, 0, 0], sizes = [1, 1, 8], strides = [1, 1, 1]} : vector<4x1x8xf32> to vector<1x1x8xf32>
    %385 = vector.shape_cast %384 : vector<1x1x8xf32> to vector<1x8xf32>
    %386 = vector.broadcast %385 : vector<1x8xf32> to vector<8x8xf32>
    %387 = arith.addf %383, %386 : vector<8x8xf32>
    %388 = vector.extract_strided_slice %241 {offsets = [3, 0, 0], sizes = [1, 32, 8], strides = [1, 1, 1]} : vector<4x32x8xbf16> to vector<1x32x8xbf16>
    %389 = vector.shape_cast %388 : vector<1x32x8xbf16> to vector<32x8xbf16>
    %390 = arith.truncf %235 : vector<16x32xf32> to vector<16x32xbf16>
    %cst_146 = arith.constant dense<0.000000e+00> : vector<16x8xf32>
    %391 = tpu.matmul %390, %389, %cst_146 {dimension_numbers = #tpu.dot_dimension_numbers<[1], [0], [0], [1], [0, 0, 1, 1], [], []>} : vector<16x32xbf16>, vector<32x8xbf16>, vector<16x8xf32> -> vector<16x8xf32>
    %392 = vector.extract_strided_slice %243 {offsets = [3, 0, 0], sizes = [1, 1, 8], strides = [1, 1, 1]} : vector<4x1x8xf32> to vector<1x1x8xf32>
    %393 = vector.shape_cast %392 : vector<1x1x8xf32> to vector<1x8xf32>
    %394 = vector.broadcast %393 : vector<1x8xf32> to vector<16x8xf32>
    %395 = arith.addf %391, %394 : vector<16x8xf32>
    %396 = vector.extract_strided_slice %245 {offsets = [3, 0, 0], sizes = [1, 32, 8], strides = [1, 1, 1]} : vector<4x32x8xbf16> to vector<1x32x8xbf16>
    %397 = vector.shape_cast %396 : vector<1x32x8xbf16> to vector<32x8xbf16>
    %398 = arith.truncf %235 : vector<16x32xf32> to vector<16x32xbf16>
    %cst_147 = arith.constant dense<0.000000e+00> : vector<16x8xf32>
    %399 = tpu.matmul %398, %397, %cst_147 {dimension_numbers = #tpu.dot_dimension_numbers<[1], [0], [0], [1], [0, 0, 1, 1], [], []>} : vector<16x32xbf16>, vector<32x8xbf16>, vector<16x8xf32> -> vector<16x8xf32>
    %400 = vector.extract_strided_slice %247 {offsets = [3, 0, 0], sizes = [1, 1, 8], strides = [1, 1, 1]} : vector<4x1x8xf32> to vector<1x1x8xf32>
    %401 = vector.shape_cast %400 : vector<1x1x8xf32> to vector<1x8xf32>
    %402 = vector.broadcast %401 : vector<1x8xf32> to vector<16x8xf32>
    %403 = arith.addf %399, %402 : vector<16x8xf32>
    %cst_148 = arith.constant dense<0.000000e+00> : vector<8x16xf32>
    %404 = tpu.matmul %387, %395, %cst_148 {dimension_numbers = #tpu.dot_dimension_numbers<[1], [1], [0], [0], [0, 0, 1, 0], [], []>} : vector<8x8xf32>, vector<16x8xf32>, vector<8x16xf32> -> vector<8x16xf32>
    %cst_149 = arith.constant 0.353553385 : f32
    %405 = vector.broadcast %cst_149 : f32 to vector<8x16xf32>
    %406 = arith.mulf %404, %405 : vector<8x16xf32>
    %cst_150 = arith.constant dense<0xFF800000> : vector<8xf32>
    %407 = vector.multi_reduction <maximumf>, %406, %cst_150 [1] : vector<8x16xf32> to vector<8xf32>
    %408 = vector.shape_cast %407 : vector<8xf32> to vector<8x1xf32>
    %409 = vector.broadcast %408 : vector<8x1xf32> to vector<8x16xf32>
    %410 = arith.subf %406, %409 : vector<8x16xf32>
    %411 = math.exp %410 : vector<8x16xf32>
    %cst_151 = arith.constant dense<0.000000e+00> : vector<8xf32>
    %412 = vector.multi_reduction <add>, %411, %cst_151 [1] : vector<8x16xf32> to vector<8xf32>
    %413 = vector.shape_cast %412 : vector<8xf32> to vector<8x1xf32>
    %414 = tpu.reciprocal %413 {approx = true} : vector<8x1xf32> -> vector<8x1xf32>
    %415 = vector.broadcast %414 : vector<8x1xf32> to vector<8x16xf32>
    %416 = arith.mulf %411, %415 : vector<8x16xf32>
    %cst_152 = arith.constant dense<0.000000e+00> : vector<8x8xf32>
    %417 = tpu.matmul %416, %403, %cst_152 {dimension_numbers = #tpu.dot_dimension_numbers<[1], [0], [0], [1], [0, 0, 1, 1], [], []>} : vector<8x16xf32>, vector<16x8xf32>, vector<8x8xf32> -> vector<8x8xf32>
    %418 = vector.extract_strided_slice %249 {offsets = [3, 0, 0], sizes = [1, 8, 32], strides = [1, 1, 1]} : vector<4x8x32xbf16> to vector<1x8x32xbf16>
    %419 = vector.shape_cast %418 : vector<1x8x32xbf16> to vector<8x32xbf16>
    %420 = arith.truncf %417 : vector<8x8xf32> to vector<8x8xbf16>
    %cst_153 = arith.constant dense<0.000000e+00> : vector<8x32xf32>
    %421 = tpu.matmul %420, %419, %cst_153 {dimension_numbers = #tpu.dot_dimension_numbers<[1], [0], [0], [1], [0, 0, 1, 1], [], []>} : vector<8x8xbf16>, vector<8x32xbf16>, vector<8x32xf32> -> vector<8x32xf32>
    %422 = arith.addf %379, %421 : vector<8x32xf32>
    %423 = vector.broadcast %251 : vector<1x32xf32> to vector<8x32xf32>
    %424 = arith.addf %422, %423 : vector<8x32xf32>
    %425 = arith.addf %233, %424 : vector<8x32xf32>
    %c0_154 = arith.constant 0 : index
    %c0_155 = arith.constant 0 : index
    %c0_156 = arith.constant 0 : index
    %426 = vector.load %arg23[%c0_154, %c0_155, %c0_156] : memref<1x1x32xf32, #tpu.memory_space<vmem>>, vector<1x1x32xf32>
    %427 = vector.shape_cast %426 : vector<1x1x32xf32> to vector<1x32xf32>
    %c0_157 = arith.constant 0 : index
    %c0_158 = arith.constant 0 : index
    %c0_159 = arith.constant 0 : index
    %428 = vector.load %arg24[%c0_157, %c0_158, %c0_159] : memref<1x1x32xf32, #tpu.memory_space<vmem>>, vector<1x1x32xf32>
    %429 = vector.shape_cast %428 : vector<1x1x32xf32> to vector<1x32xf32>
    %cst_160 = arith.constant dense<0.000000e+00> : vector<8xf32>
    %430 = vector.multi_reduction <add>, %425, %cst_160 [1] : vector<8x32xf32> to vector<8xf32>
    %431 = vector.shape_cast %430 : vector<8xf32> to vector<8x1xf32>
    %cst_161 = arith.constant 3.200000e+01 : f32
    %432 = vector.broadcast %cst_161 : f32 to vector<8x1xf32>
    %433 = arith.divf %431, %432 : vector<8x1xf32>
    %434 = vector.broadcast %433 : vector<8x1xf32> to vector<8x32xf32>
    %435 = arith.subf %425, %434 : vector<8x32xf32>
    %436 = arith.mulf %435, %435 : vector<8x32xf32>
    %cst_162 = arith.constant dense<0.000000e+00> : vector<8xf32>
    %437 = vector.multi_reduction <add>, %436, %cst_162 [1] : vector<8x32xf32> to vector<8xf32>
    %438 = vector.shape_cast %437 : vector<8xf32> to vector<8x1xf32>
    %cst_163 = arith.constant 3.200000e+01 : f32
    %439 = vector.broadcast %cst_163 : f32 to vector<8x1xf32>
    %440 = arith.divf %438, %439 : vector<8x1xf32>
    %441 = vector.broadcast %433 : vector<8x1xf32> to vector<8x32xf32>
    %442 = arith.subf %425, %441 : vector<8x32xf32>
    %cst_164 = arith.constant 9.99999974E-6 : f32
    %443 = vector.broadcast %cst_164 : f32 to vector<8x1xf32>
    %444 = arith.addf %440, %443 : vector<8x1xf32>
    %445 = math.rsqrt %444 : vector<8x1xf32>
    %446 = vector.broadcast %445 : vector<8x1xf32> to vector<8x32xf32>
    %447 = arith.mulf %442, %446 : vector<8x32xf32>
    %448 = vector.broadcast %427 : vector<1x32xf32> to vector<8x32xf32>
    %449 = arith.mulf %447, %448 : vector<8x32xf32>
    %450 = vector.broadcast %429 : vector<1x32xf32> to vector<8x32xf32>
    %451 = arith.addf %449, %450 : vector<8x32xf32>
    %c0_165 = arith.constant 0 : index
    %c0_166 = arith.constant 0 : index
    %c0_167 = arith.constant 0 : index
    %452 = vector.load %arg25[%c0_165, %c0_166, %c0_167] : memref<1x32x2048xbf16, #tpu.memory_space<vmem>>, vector<1x32x2048xbf16>
    %453 = vector.shape_cast %452 : vector<1x32x2048xbf16> to vector<32x2048xbf16>
    %454 = arith.truncf %451 : vector<8x32xf32> to vector<8x32xbf16>
    %cst_168 = arith.constant dense<0.000000e+00> : vector<8x2048xf32>
    %455 = tpu.matmul %454, %453, %cst_168 {dimension_numbers = #tpu.dot_dimension_numbers<[1], [0], [0], [1], [0, 0, 1, 1], [], []>} : vector<8x32xbf16>, vector<32x2048xbf16>, vector<8x2048xf32> -> vector<8x2048xf32>
    %c0_169 = arith.constant 0 : index
    %c0_170 = arith.constant 0 : index
    %c0_171 = arith.constant 0 : index
    %456 = vector.load %arg26[%c0_169, %c0_170, %c0_171] : memref<1x1x2048xf32, #tpu.memory_space<vmem>>, vector<1x1x2048xf32>
    %457 = vector.shape_cast %456 : vector<1x1x2048xf32> to vector<1x2048xf32>
    %458 = vector.broadcast %457 : vector<1x2048xf32> to vector<8x2048xf32>
    %459 = arith.addf %455, %458 : vector<8x2048xf32>
    %cst_172 = arith.constant 0.000000e+00 : f32
    %460 = vector.broadcast %cst_172 : f32 to vector<8x2048xf32>
    %461 = arith.maximumf %459, %460 : vector<8x2048xf32>
    %c0_173 = arith.constant 0 : index
    %c0_174 = arith.constant 0 : index
    %c0_175 = arith.constant 0 : index
    %462 = vector.load %arg27[%c0_173, %c0_174, %c0_175] : memref<1x2048x32xbf16, #tpu.memory_space<vmem>>, vector<1x2048x32xbf16>
    %463 = vector.shape_cast %462 : vector<1x2048x32xbf16> to vector<2048x32xbf16>
    %464 = arith.truncf %461 : vector<8x2048xf32> to vector<8x2048xbf16>
    %cst_176 = arith.constant dense<0.000000e+00> : vector<8x32xf32>
    %465 = tpu.matmul %464, %463, %cst_176 {dimension_numbers = #tpu.dot_dimension_numbers<[1], [0], [0], [1], [0, 0, 1, 1], [], []>} : vector<8x2048xbf16>, vector<2048x32xbf16>, vector<8x32xf32> -> vector<8x32xf32>
    %c0_177 = arith.constant 0 : index
    %c0_178 = arith.constant 0 : index
    %c0_179 = arith.constant 0 : index
    %466 = vector.load %arg28[%c0_177, %c0_178, %c0_179] : memref<1x1x32xf32, #tpu.memory_space<vmem>>, vector<1x1x32xf32>
    %467 = vector.shape_cast %466 : vector<1x1x32xf32> to vector<1x32xf32>
    %468 = vector.broadcast %467 : vector<1x32xf32> to vector<8x32xf32>
    %469 = arith.addf %465, %468 : vector<8x32xf32>
    %470 = arith.addf %451, %469 : vector<8x32xf32>
    %c0_180 = arith.constant 0 : index
    %c0_181 = arith.constant 0 : index
    %c0_182 = arith.constant 0 : index
    %471 = vector.load %arg29[%c0_180, %c0_181, %c0_182] : memref<1x1x32xf32, #tpu.memory_space<vmem>>, vector<1x1x32xf32>
    %472 = vector.shape_cast %471 : vector<1x1x32xf32> to vector<1x32xf32>
    %c0_183 = arith.constant 0 : index
    %c0_184 = arith.constant 0 : index
    %c0_185 = arith.constant 0 : index
    %473 = vector.load %arg30[%c0_183, %c0_184, %c0_185] : memref<1x1x32xf32, #tpu.memory_space<vmem>>, vector<1x1x32xf32>
    %474 = vector.shape_cast %473 : vector<1x1x32xf32> to vector<1x32xf32>
    %cst_186 = arith.constant dense<0.000000e+00> : vector<8xf32>
    %475 = vector.multi_reduction <add>, %470, %cst_186 [1] : vector<8x32xf32> to vector<8xf32>
    %476 = vector.shape_cast %475 : vector<8xf32> to vector<8x1xf32>
    %cst_187 = arith.constant 3.200000e+01 : f32
    %477 = vector.broadcast %cst_187 : f32 to vector<8x1xf32>
    %478 = arith.divf %476, %477 : vector<8x1xf32>
    %479 = vector.broadcast %478 : vector<8x1xf32> to vector<8x32xf32>
    %480 = arith.subf %470, %479 : vector<8x32xf32>
    %481 = arith.mulf %480, %480 : vector<8x32xf32>
    %cst_188 = arith.constant dense<0.000000e+00> : vector<8xf32>
    %482 = vector.multi_reduction <add>, %481, %cst_188 [1] : vector<8x32xf32> to vector<8xf32>
    %483 = vector.shape_cast %482 : vector<8xf32> to vector<8x1xf32>
    %cst_189 = arith.constant 3.200000e+01 : f32
    %484 = vector.broadcast %cst_189 : f32 to vector<8x1xf32>
    %485 = arith.divf %483, %484 : vector<8x1xf32>
    %486 = vector.broadcast %478 : vector<8x1xf32> to vector<8x32xf32>
    %487 = arith.subf %470, %486 : vector<8x32xf32>
    %cst_190 = arith.constant 9.99999974E-6 : f32
    %488 = vector.broadcast %cst_190 : f32 to vector<8x1xf32>
    %489 = arith.addf %485, %488 : vector<8x1xf32>
    %490 = math.rsqrt %489 : vector<8x1xf32>
    %491 = vector.broadcast %490 : vector<8x1xf32> to vector<8x32xf32>
    %492 = arith.mulf %487, %491 : vector<8x32xf32>
    %493 = vector.broadcast %472 : vector<1x32xf32> to vector<8x32xf32>
    %494 = arith.mulf %492, %493 : vector<8x32xf32>
    %495 = vector.broadcast %474 : vector<1x32xf32> to vector<8x32xf32>
    %496 = arith.addf %494, %495 : vector<8x32xf32>
    %c0_191 = arith.constant 0 : index
    %c0_192 = arith.constant 0 : index
    %497 = vector.load %arg34[%c0_191, %c0_192] : memref<8x32xf32, #tpu.memory_space<vmem>>, vector<8x32xf32>
    tpu.vector_store %arg34[%c0_191, %c0_192], %496 {strides = array<i32>} : memref<8x32xf32, #tpu.memory_space<vmem>>, vector<8x32xf32>,
    %c1_i32 = arith.constant 1 : i32
    %498 = arith.cmpi eq, %arg1, %c1_i32 : i32
    %499 = arith.extui %498 : i1 to i32
    %c0_i32_193 = arith.constant 0 : i32
    %500 = arith.cmpi ne, %499, %c0_i32_193 : i32
    scf.if %500 {
      %c0_194 = arith.constant 0 : index
      %c0_195 = arith.constant 0 : index
      %501 = vector.load %arg31[%c0_194, %c0_195] : memref<1x32xf32, #tpu.memory_space<vmem>>, vector<1x32xf32>
      %c0_196 = arith.constant 0 : index
      %c0_197 = arith.constant 0 : index
      %502 = vector.load %arg32[%c0_196, %c0_197] : memref<1x32xf32, #tpu.memory_space<vmem>>, vector<1x32xf32>
      %cst_198 = arith.constant dense<0.000000e+00> : vector<8xf32>
      %503 = vector.multi_reduction <add>, %496, %cst_198 [1] : vector<8x32xf32> to vector<8xf32>
      %504 = vector.shape_cast %503 : vector<8xf32> to vector<8x1xf32>
      %cst_199 = arith.constant 3.200000e+01 : f32
      %505 = vector.broadcast %cst_199 : f32 to vector<8x1xf32>
      %506 = arith.divf %504, %505 : vector<8x1xf32>
      %507 = vector.broadcast %506 : vector<8x1xf32> to vector<8x32xf32>
      %508 = arith.subf %496, %507 : vector<8x32xf32>
      %509 = arith.mulf %508, %508 : vector<8x32xf32>
      %cst_200 = arith.constant dense<0.000000e+00> : vector<8xf32>
      %510 = vector.multi_reduction <add>, %509, %cst_200 [1] : vector<8x32xf32> to vector<8xf32>
      %511 = vector.shape_cast %510 : vector<8xf32> to vector<8x1xf32>
      %cst_201 = arith.constant 3.200000e+01 : f32
      %512 = vector.broadcast %cst_201 : f32 to vector<8x1xf32>
      %513 = arith.divf %511, %512 : vector<8x1xf32>
      %514 = vector.broadcast %506 : vector<8x1xf32> to vector<8x32xf32>
      %515 = arith.subf %496, %514 : vector<8x32xf32>
      %cst_202 = arith.constant 9.99999974E-6 : f32
      %516 = vector.broadcast %cst_202 : f32 to vector<8x1xf32>
      %517 = arith.addf %513, %516 : vector<8x1xf32>
      %518 = math.rsqrt %517 : vector<8x1xf32>
      %519 = vector.broadcast %518 : vector<8x1xf32> to vector<8x32xf32>
      %520 = arith.mulf %515, %519 : vector<8x32xf32>
      %521 = vector.broadcast %501 : vector<1x32xf32> to vector<8x32xf32>
      %522 = arith.mulf %520, %521 : vector<8x32xf32>
      %523 = vector.broadcast %502 : vector<1x32xf32> to vector<8x32xf32>
      %524 = arith.addf %522, %523 : vector<8x32xf32>
      %c0_203 = arith.constant 0 : index
      %c0_204 = arith.constant 0 : index
      %c0_205 = arith.constant 0 : index
      %525 = vector.load %arg33[%c0_203, %c0_204, %c0_205] : memref<1x8x32xf32, #tpu.memory_space<vmem>>, vector<1x8x32xf32>
      %526 = vector.shape_cast %525 : vector<1x8x32xf32> to vector<8x32xf32>
      %527 = vector.shape_cast %524 : vector<8x32xf32> to vector<1x8x32xf32>
      tpu.vector_store %arg33[%c0_203, %c0_204, %c0_205], %527 {strides = array<i32>} : memref<1x8x32xf32, #tpu.memory_space<vmem>>, vector<1x8x32xf32>,
    } else {
    }
    return
  }
  func.func @transform_0(%arg0: i32, %arg1: i32) -> (i32, i32, i32) {
    %c0_i32 = arith.constant 0 : i32
    %c0_i32_0 = arith.constant 0 : i32
    %c0_i32_1 = arith.constant 0 : i32
    return %arg0, %c0_i32, %c0_i32_0 : i32, i32, i32
  }
  func.func @transform_1(%arg0: i32, %arg1: i32) -> (i32, i32, i32) {
    %c0_i32 = arith.constant 0 : i32
    %c0_i32_0 = arith.constant 0 : i32
    %c0_i32_1 = arith.constant 0 : i32
    return %arg0, %c0_i32, %c0_i32_0 : i32, i32, i32
  }
  func.func @transform_2(%arg0: i32, %arg1: i32) -> (i32, i32, i32) {
    %c0_i32 = arith.constant 0 : i32
    %c0_i32_0 = arith.constant 0 : i32
    %c0_i32_1 = arith.constant 0 : i32
    return %arg0, %c0_i32, %c0_i32_0 : i32, i32, i32
  }
  func.func @transform_3(%arg0: i32, %arg1: i32) -> (i32, i32, i32, i32) {
    %c0_i32 = arith.constant 0 : i32
    %c0_i32_0 = arith.constant 0 : i32
    %c0_i32_1 = arith.constant 0 : i32
    %c0_i32_2 = arith.constant 0 : i32
    return %arg1, %c0_i32, %c0_i32_0, %c0_i32_1 : i32, i32, i32, i32
  }
  func.func @transform_4(%arg0: i32, %arg1: i32) -> (i32, i32, i32, i32) {
    %c0_i32 = arith.constant 0 : i32
    %c0_i32_0 = arith.constant 0 : i32
    %c0_i32_1 = arith.constant 0 : i32
    %c0_i32_2 = arith.constant 0 : i32
    return %arg1, %c0_i32, %c0_i32_0, %c0_i32_1 : i32, i32, i32, i32
  }
  func.func @transform_5(%arg0: i32, %arg1: i32) -> (i32, i32, i32, i32) {
    %c0_i32 = arith.constant 0 : i32
    %c0_i32_0 = arith.constant 0 : i32
    %c0_i32_1 = arith.constant 0 : i32
    %c0_i32_2 = arith.constant 0 : i32
    return %arg1, %c0_i32, %c0_i32_0, %c0_i32_1 : i32, i32, i32, i32
  }
  func.func @transform_6(%arg0: i32, %arg1: i32) -> (i32, i32, i32, i32) {
    %c0_i32 = arith.constant 0 : i32
    %c0_i32_0 = arith.constant 0 : i32
    %c0_i32_1 = arith.constant 0 : i32
    %c0_i32_2 = arith.constant 0 : i32
    return %arg1, %c0_i32, %c0_i32_0, %c0_i32_1 : i32, i32, i32, i32
  }
  func.func @transform_7(%arg0: i32, %arg1: i32) -> (i32, i32, i32, i32) {
    %c0_i32 = arith.constant 0 : i32
    %c0_i32_0 = arith.constant 0 : i32
    %c0_i32_1 = arith.constant 0 : i32
    %c0_i32_2 = arith.constant 0 : i32
    return %arg1, %c0_i32, %c0_i32_0, %c0_i32_1 : i32, i32, i32, i32
  }
  func.func @transform_8(%arg0: i32, %arg1: i32) -> (i32, i32, i32, i32) {
    %c0_i32 = arith.constant 0 : i32
    %c0_i32_0 = arith.constant 0 : i32
    %c0_i32_1 = arith.constant 0 : i32
    %c0_i32_2 = arith.constant 0 : i32
    return %arg1, %c0_i32, %c0_i32_0, %c0_i32_1 : i32, i32, i32, i32
  }
  func.func @transform_9(%arg0: i32, %arg1: i32) -> (i32, i32, i32, i32) {
    %c0_i32 = arith.constant 0 : i32
    %c0_i32_0 = arith.constant 0 : i32
    %c0_i32_1 = arith.constant 0 : i32
    %c0_i32_2 = arith.constant 0 : i32
    return %arg1, %c0_i32, %c0_i32_0, %c0_i32_1 : i32, i32, i32, i32
  }
  func.func @transform_10(%arg0: i32, %arg1: i32) -> (i32, i32, i32) {
    %c0_i32 = arith.constant 0 : i32
    %c0_i32_0 = arith.constant 0 : i32
    %c0_i32_1 = arith.constant 0 : i32
    return %arg1, %c0_i32, %c0_i32_0 : i32, i32, i32
  }
  func.func @transform_11(%arg0: i32, %arg1: i32) -> (i32, i32, i32) {
    %c0_i32 = arith.constant 0 : i32
    %c0_i32_0 = arith.constant 0 : i32
    %c0_i32_1 = arith.constant 0 : i32
    return %arg1, %c0_i32, %c0_i32_0 : i32, i32, i32
  }
  func.func @transform_12(%arg0: i32, %arg1: i32) -> (i32, i32, i32) {
    %c0_i32 = arith.constant 0 : i32
    %c0_i32_0 = arith.constant 0 : i32
    %c0_i32_1 = arith.constant 0 : i32
    return %arg1, %c0_i32, %c0_i32_0 : i32, i32, i32
  }
  func.func @transform_13(%arg0: i32, %arg1: i32) -> (i32, i32, i32, i32) {
    %c0_i32 = arith.constant 0 : i32
    %c0_i32_0 = arith.constant 0 : i32
    %c0_i32_1 = arith.constant 0 : i32
    %c0_i32_2 = arith.constant 0 : i32
    return %arg1, %c0_i32, %c0_i32_0, %c0_i32_1 : i32, i32, i32, i32
  }
  func.func @transform_14(%arg0: i32, %arg1: i32) -> (i32, i32, i32, i32) {
    %c0_i32 = arith.constant 0 : i32
    %c0_i32_0 = arith.constant 0 : i32
    %c0_i32_1 = arith.constant 0 : i32
    %c0_i32_2 = arith.constant 0 : i32
    return %arg1, %c0_i32, %c0_i32_0, %c0_i32_1 : i32, i32, i32, i32
  }
  func.func @transform_15(%arg0: i32, %arg1: i32) -> (i32, i32, i32, i32) {
    %c0_i32 = arith.constant 0 : i32
    %c0_i32_0 = arith.constant 0 : i32
    %c0_i32_1 = arith.constant 0 : i32
    %c0_i32_2 = arith.constant 0 : i32
    return %arg1, %c0_i32, %c0_i32_0, %c0_i32_1 : i32, i32, i32, i32
  }
  func.func @transform_16(%arg0: i32, %arg1: i32) -> (i32, i32, i32, i32) {
    %c0_i32 = arith.constant 0 : i32
    %c0_i32_0 = arith.constant 0 : i32
    %c0_i32_1 = arith.constant 0 : i32
    %c0_i32_2 = arith.constant 0 : i32
    return %arg1, %c0_i32, %c0_i32_0, %c0_i32_1 : i32, i32, i32, i32
  }
  func.func @transform_17(%arg0: i32, %arg1: i32) -> (i32, i32, i32, i32) {
    %c0_i32 = arith.constant 0 : i32
    %c0_i32_0 = arith.constant 0 : i32
    %c0_i32_1 = arith.constant 0 : i32
    %c0_i32_2 = arith.constant 0 : i32
    return %arg1, %c0_i32, %c0_i32_0, %c0_i32_1 : i32, i32, i32, i32
  }
  func.func @transform_18(%arg0: i32, %arg1: i32) -> (i32, i32, i32, i32) {
    %c0_i32 = arith.constant 0 : i32
    %c0_i32_0 = arith.constant 0 : i32
    %c0_i32_1 = arith.constant 0 : i32
    %c0_i32_2 = arith.constant 0 : i32
    return %arg1, %c0_i32, %c0_i32_0, %c0_i32_1 : i32, i32, i32, i32
  }
  func.func @transform_19(%arg0: i32, %arg1: i32) -> (i32, i32, i32, i32) {
    %c0_i32 = arith.constant 0 : i32
    %c0_i32_0 = arith.constant 0 : i32
    %c0_i32_1 = arith.constant 0 : i32
    %c0_i32_2 = arith.constant 0 : i32
    return %arg1, %c0_i32, %c0_i32_0, %c0_i32_1 : i32, i32, i32, i32
  }
  func.func @transform_20(%arg0: i32, %arg1: i32) -> (i32, i32, i32) {
    %c0_i32 = arith.constant 0 : i32
    %c0_i32_0 = arith.constant 0 : i32
    %c0_i32_1 = arith.constant 0 : i32
    return %arg1, %c0_i32, %c0_i32_0 : i32, i32, i32
  }
  func.func @transform_21(%arg0: i32, %arg1: i32) -> (i32, i32, i32) {
    %c0_i32 = arith.constant 0 : i32
    %c0_i32_0 = arith.constant 0 : i32
    %c0_i32_1 = arith.constant 0 : i32
    return %arg1, %c0_i32, %c0_i32_0 : i32, i32, i32
  }
  func.func @transform_22(%arg0: i32, %arg1: i32) -> (i32, i32, i32) {
    %c0_i32 = arith.constant 0 : i32
    %c0_i32_0 = arith.constant 0 : i32
    %c0_i32_1 = arith.constant 0 : i32
    return %arg1, %c0_i32, %c0_i32_0 : i32, i32, i32
  }
  func.func @transform_23(%arg0: i32, %arg1: i32) -> (i32, i32, i32) {
    %c0_i32 = arith.constant 0 : i32
    %c0_i32_0 = arith.constant 0 : i32
    %c0_i32_1 = arith.constant 0 : i32
    return %arg1, %c0_i32, %c0_i32_0 : i32, i32, i32
  }
  func.func @transform_24(%arg0: i32, %arg1: i32) -> (i32, i32, i32) {
    %c0_i32 = arith.constant 0 : i32
    %c0_i32_0 = arith.constant 0 : i32
    %c0_i32_1 = arith.constant 0 : i32
    return %arg1, %c0_i32, %c0_i32_0 : i32, i32, i32
  }
  func.func @transform_25(%arg0: i32, %arg1: i32) -> (i32, i32, i32) {
    %c0_i32 = arith.constant 0 : i32
    %c0_i32_0 = arith.constant 0 : i32
    %c0_i32_1 = arith.constant 0 : i32
    return %arg1, %c0_i32, %c0_i32_0 : i32, i32, i32
  }
  func.func @transform_26(%arg0: i32, %arg1: i32) -> (i32, i32, i32) {
    %c0_i32 = arith.constant 0 : i32
    %c0_i32_0 = arith.constant 0 : i32
    %c0_i32_1 = arith.constant 0 : i32
    return %arg1, %c0_i32, %c0_i32_0 : i32, i32, i32
  }
  func.func @transform_27(%arg0: i32, %arg1: i32) -> (i32, i32, i32) {
    %c0_i32 = arith.constant 0 : i32
    %c0_i32_0 = arith.constant 0 : i32
    %c0_i32_1 = arith.constant 0 : i32
    return %arg1, %c0_i32, %c0_i32_0 : i32, i32, i32
  }
  func.func @transform_28(%arg0: i32, %arg1: i32) -> (i32, i32, i32) {
    %c0_i32 = arith.constant 0 : i32
    %c0_i32_0 = arith.constant 0 : i32
    %c0_i32_1 = arith.constant 0 : i32
    return %arg1, %c0_i32, %c0_i32_0 : i32, i32, i32
  }
  func.func @transform_29(%arg0: i32, %arg1: i32) -> (i32, i32) {
    %c0_i32 = arith.constant 0 : i32
    %c0_i32_0 = arith.constant 0 : i32
    %c0_i32_1 = arith.constant 0 : i32
    return %c0_i32, %c0_i32_0 : i32, i32
  }
  func.func @transform_30(%arg0: i32, %arg1: i32) -> (i32, i32) {
    %c0_i32 = arith.constant 0 : i32
    %c0_i32_0 = arith.constant 0 : i32
    %c0_i32_1 = arith.constant 0 : i32
    return %c0_i32, %c0_i32_0 : i32, i32
  }
  func.func @transform_31(%arg0: i32, %arg1: i32) -> (i32, i32, i32) {
    %c0_i32 = arith.constant 0 : i32
    %c0_i32_0 = arith.constant 0 : i32
    %c0_i32_1 = arith.constant 0 : i32
    return %arg0, %c0_i32, %c0_i32_0 : i32, i32, i32
  }
}

</mosaic_0001>

<bundles_post_ra>
// kernel: decoder_forward.2
= control target key start
LH: loop header
LB: loop body
LE: loop exit
PB: predicated region body
PF: predicated region fallthrough
CT: control target
= control target key end

     0   :  { %s6211_s30 = smov 0   ;;  %s6213_s20 = smov 0   ;;  %s6882_s0 = inlined_call_operand.vmem [shape: f32[2,16,32], index: 0, kind: input, shape index: {}]   ;;  %s6883_s1 = inlined_call_operand.vmem [shape: bf16[2,4,32,8], index: 1, kind: input, shape index: {}]   ;;  %s6884_s2 = inlined_call_operand.vmem [shape: f32[2,4,1,8], index: 2, kind: input, shape index: {}]   ;;  %s6885_s3 = inlined_call_operand.vmem [shape: bf16[2,4,32,8], index: 3, kind: input, shape index: {}]   ;;  %s6886_s4 = inlined_call_operand.vmem [shape: f32[2,4,1,8], index: 4, kind: input, shape index: {}]   ;;  %s6887_s5 = inlined_call_operand.vmem [shape: bf16[2,4,32,8], index: 5, kind: input, shape index: {}]   ;;  %s6888_s6 = inlined_call_operand.vmem [shape: f32[2,4,1,8], index: 6, kind: input, shape index: {}]   ;;  %s6889_s7 = inlined_call_operand.vmem [shape: bf16[2,4,8,32], index: 7, kind: input, shape index: {}]   ;;  %s6890_s8 = inlined_call_operand.vmem [shape: f32[2,1,32], index: 8, kind: input, shape index: {}]   ;;  %s6891_s9 = inlined_call_operand.vmem [shape: bf16[2,32,2048], index: 9, kind: input, shape index: {}]   ;;  %s6892_s10 = inlined_call_operand.vmem [shape: f32[2,1,2048], index: 10, kind: input, shape index: {}]   ;;  %s6893_s11 = inlined_call_operand.vmem [shape: bf16[2,2048,32], index: 11, kind: input, shape index: {}]   ;;  %s6894_s12 = inlined_call_operand.vmem [shape: f32[2,1,32], index: 12, kind: input, shape index: {}]   ;;  %s6895_s13 = inlined_call_operand.vmem [shape: f32[2,1,32], index: 13, kind: input, shape index: {}]   ;;  %s6896_s14 = inlined_call_operand.vmem [shape: f32[2,1,32], index: 14, kind: input, shape index: {}]   ;;  %s6897_s15 = inlined_call_operand.vmem [shape: f32[2,1,32], index: 15, kind: input, shape index: {}]   ;;  %s6898_s16 = inlined_call_operand.vmem [shape: f32[2,1,32], index: 16, kind: input, shape index: {}]   ;;  %s6899_s17 = inlined_call_operand.vmem [shape: f32[1,32], index: 17, kind: input, shape index: {}]   ;;  %s6900_s18 = inlined_call_operand.vmem [shape: f32[1,32], index: 18, kind: input, shape index: {}]   ;;  %s6901_s19 = inlined_call_operand.vmem [shape: f32[2,16,32], index: 19, kind: output, shape index: {}]  }
   0x1   :  { %6911 = sst [smem:[#allocation14_spill]] %s6882_s0  ;;  %s6209_s0 = smov 0  }
   0x2   :  { %6912 = sst [smem:[#allocation15_spill]] %s6883_s1  ;;  %s6215_s21 = smov 0  }
   0x3   :  { %6913 = sst [smem:[#allocation16_spill]] %s6884_s2  ;;  %s6217_s1 = smov 0  }
   0x4   :  { %6914 = sst [smem:[#allocation17_spill]] %s6885_s3 }
   0x5   :  { %6915 = sst [smem:[#allocation18_spill]] %s6886_s4 }
   0x6   :  { %6916 = sst [smem:[#allocation19_spill]] %s6887_s5 }
   0x7   :  { %6917 = sst [smem:[#allocation20_spill]] %s6888_s6 }
   0x8   :  { %6918 = sst [smem:[#allocation21_spill]] %s6889_s7 }
   0x9   :  { %6919 = sst [smem:[#allocation22_spill]] %s6891_s9 }
   0xa   :  { %6920 = sst [smem:[#allocation23_spill]] %s6892_s10 }
   0xb   :  { %6921 = sst [smem:[#allocation24_spill]] %s6893_s11 }
   0xc   :  { %6922 = sst [smem:[#allocation25_spill]] %s6898_s16 }
   0xd   :  { %6923 = sst [smem:[#allocation26_spill]] %s6899_s17 }
   0xe   :  { %6924 = sst [smem:[#allocation27_spill]] %s6900_s18 }
   0xf   :  { %6925 = sst [smem:[#allocation28_spill]] %s6901_s19 }
  0x10 LB: > { %6926 = sst [smem:[#allocation3_spill]] %s6088_s0  ;;  %s38_s22 = sadd.s32 1, %s6096_s20  ;;  %s6104_s1 = sphi %s6217_s1, %s29_s1   ;;  %s6100_s21 = sphi %s6215_s21, %s6968_s21   ;;  %s6096_s20 = sphi %s6213_s20, %s6967_s20   ;;  %s6092_s30 = sphi %s6211_s30, %s6966_s30   ;;  %s6088_s0 = sphi %s6209_s0, %s6965_s0  }
  0x11   : > { %6927 = sst [smem:[#allocation4_spill]] %s6096_s20  ;;  %s41_s2 = sadd.s32 1, %s6100_s21 }
  0x12   : > { %6928 = sst [smem:[#allocation5_spill]] %s6100_s21  ;;  %p39_p0 = scmp.ge.s32.totalorder %s38_s22, 2 }
  0x13   : > { %6929 = sst [smem:[#allocation6_spill]] %s6104_s1  ;;  %p5072_p1 = scmp.ge.s32.totalorder %s6104_s1, 1 }
  0x14   : > { %p693_p2 = scmp.lt.s32.totalorder %s6104_s1, 5  ;;  %s6970_s22 = smov (%p39_p0, %s38_s22), 0 }
  0x15   : > { %6930 = sst [smem:[#allocation7_spill]] %s6970_s22  ;;  %s6972_s2 = smov (!%p39_p0, %s41_s2), %s6100_s21 }
  0x16   : > { %p694_p3 = pnand %p5072_p1, %p693_p2  ;;  %p43_p4 = scmp.ge.s32.totalorder %s6972_s2, 2 }
  0x18   : > { %s6974_s2 = smov (%p43_p4, %s6972_s2), 0  ;;  %697 = sbr.rel (%p694_p3) target bundleno = 5469 (0x155d), region = 96 }
  0x19   : > { %6931 = sst [smem:[#allocation8_spill]] %s6974_s2 }
  0x1f   : > { %p813_p5 = scmp.lt.s32.totalorder %s6092_s30, 1  ;;  %p818_p6 = scmp.lt.s32.totalorder %s6088_s0, 1 }
  0x20   : > { %s6932_s26 = sld [smem:[#allocation14_spill]]  ;;  %s6933_s22 = sld [smem:[#allocation15_spill]] }
  0x21   : > { %s6976_s30 = smov (!%p813_p5, %s6092_s30), 1  ;;  %s6935_s17 = sld [smem:[#allocation16_spill]] }
  0x22   : > { %s6243_s23 = scalar_select %p818_p6, %s6088_s0, 1 }
  0x23   : > { %s5349_s24 = sshll.u32 %s6976_s30, 4  ;;  %s6937_s25 = sld [smem:[#allocation17_spill]] }
  0x24   : > { %s5350_s28 = sshll.u32 %s6243_s23, 6  ;;  %s5077_s20 = sshll.u32 %s6243_s23, 2 }
  0x25   : > { %s6939_s4 = sld [smem:[#allocation18_spill]]  ;;  %s6941_s5 = sld [smem:[#allocation19_spill]] }
  0x26   : > { %s817_s27 = scalar_lea.vmem %s6932_s26, %s5349_s24  ;;  %s6252_s21 = scalar_lea.vmem %s6933_s22, %s5350_s28 }
  0x27   : > { %6934 = sst [smem:[#allocation9_spill]] %s6252_s21  ;;  %s6258_s0 = scalar_lea.vmem %s6935_s17, %s5077_s20 }
  0x28   : > { %6936 = sst [smem:[#allocation10_spill]] %s6258_s0  ;;  %s6942_s6 = sld [smem:[#allocation20_spill]] }
  0x29   : > { %s6263_s3 = scalar_lea.vmem %s6937_s25, %s5350_s28  ;;  %s5353_s19 = sshll.u32 %s6243_s23, 4 }
  0x2a   : > { %6938 = sst [smem:[#allocation11_spill]] %s6263_s3  ;;  %s6943_s7 = sld [smem:[#allocation21_spill]] }
  0x2b   : > { %s6268_s22 = scalar_lea.vmem %s6939_s4, %s5077_s20  ;;  %s6273_s21 = scalar_lea.vmem %s6941_s5, %s5350_s28 }
  0x2c   : > { %6940 = sst [smem:[#allocation12_spill]] %s6268_s22  ;;  %s5354_s22 = sshll.u32 %s6243_s23, 8 }
  0x2d   : > { %s6944_s10 = sld [smem:[#allocation23_spill]]  ;;  %s6946_s9 = sld [smem:[#allocation22_spill]] }
  0x2e   : > { %s6278_s1 = scalar_lea.vmem %s6942_s6, %s5077_s20  ;;  %s5355_s17 = sshll.u32 %s6243_s23, 10 }
  0x2f   : > { %s6947_s11 = sld [smem:[#allocation24_spill]]  ;;  %s872_s3 = scalar_lea.vmem %s6895_s13, %s6243_s23 }
  0x30   : > { %s6284_s0 = scalar_lea.vmem %s6943_s7, %s5353_s19  ;;  %s875_s29 = scalar_lea.vmem %s6896_s14, %s6243_s23 }
  0x31   : > { %s6949_s6 = sld [smem:[#allocation28_spill]]  ;;  %s6950_s26 = sld [smem:[#allocation3_spill]] }
  0x33   : > { %s6294_s28 = scalar_lea.vmem %s6944_s10, %s5353_s19  ;;  %s6299_s20 = scalar_lea.vmem %s6946_s9, %s5354_s22 }
  0x34   : > { %6945 = sst [smem:[#allocation13_spill]] %s6294_s28  ;;  %s878_s9 = scalar_lea.vmem %s6897_s15, %s6243_s23 }
  0x35   : > { %s6305_s25 = scalar_lea.vmem %s6947_s11, %s5355_s17  ;;  %s6948_s17 = sld [smem:[#allocation25_spill]] }
  0x37   : > { %s6330_s16 = scalar_lea.vmem %s6949_s6, %s5349_s24  ;;  %p5093_p7 = scmp.ne.s32.totalorder %s6950_s26, 0 }
  0x38   : > { %v892_v0 = vld [vmem:[%s817_s27] sm:$0xff] (!%p5093_p7)  ;;  %vm894_vm0 = vcmask (!%p5093_p7), 261120   ;;  %v893_v1 = vld [vmem:[%s817_s27 + $0x8] sm:$0xff] (!%p5093_p7) }
  0x39   : > { %891 = sbr.rel (%p5093_p7) target bundleno = 64 (0x40), region = 100  ;;  %895 = vst.msk [vmem:[#allocation2] sm:$0xff] (!%p5093_p7), %vm894_vm0, %v892_v0  ;;  %896 = vst.msk [vmem:[#allocation2 + $0x8] sm:$0xff] (!%p5093_p7), %vm894_vm0, %v893_v1 }
  0x3b   : > { %s881_s30 = scalar_lea.vmem %s6948_s17, %s6243_s23 }
  0x40 PF: > { %s6951_s4 = sld [smem:[#allocation11_spill]]  ;;  %s6952_s7 = sld [smem:[#allocation9_spill]]  ;;  %v6106_v3 = vmov 0.0   ;;  %vm6107_vm1 = vmmov 0   ;;  %v897_v6 = vld [vmem:[#allocation2] sm:$0xff]  ;;  %v898_v7 = vld [vmem:[#allocation2 + $0x8] sm:$0xff] }
  0x41   : > { %5617 = vmatprep.subr.bf16.mxu1 %v6106_v3  ;;  %5609 = vmatprep.subr.bf16.mxu0 %v6106_v3  ;;  %s6953_s10 = sld [smem:[#allocation12_spill]]  ;;  %s6954_s11 = sld [smem:[#allocation10_spill]]  ;;  %vm983_vm2 = vcmask 261120   ;;  %v6344_v9 = vpack.c.bf16 %v898_v7, %v897_v6  ;;  %vm1146_vm3 = vcmask 64512   ;;  %v5872_v26 = vld [vmem:[%s6273_s21] sm:$0xff]   ;;  %v5873_v27 = vld [vmem:[%s6273_s21 + $0x8] sm:$0xff]  }
  0x42   : > { %5621 = vmatprep.mubr.msk.bf16.mxu1 %vm6107_vm1, %v6106_v3  ;;  %5613 = vmatprep.mubr.msk.bf16.mxu0 %vm6107_vm1, %v6106_v3  ;;  %vm6358_vm4 = vmpackc.low %vm1146_vm3, %vm1146_vm3  ;;  %vm1236_vm5 = vcmask 130048   ;;  %v5102_v44 = vld [vmem:[%s6278_s1] ss:$0 sm:$0xff]  ;;  %vm1714_vm6 = vcmask 1043456   ;;  %s6957_s24 = scalar_lea.vmem %s6890_s8, %s6243_s23  ;;  %s6959_s2 = scalar_lea.vmem %s6894_s12, %s6243_s23 }
  0x43   : > { %s6961_s17 = sld [smem:[#allocation3_spill]] }
  0x46   : > { %v5868_v2 = vld [vmem:[%s6951_s4] sm:$0xff]   ;;  %v5869_v4 = vld [vmem:[%s6951_s4 + $0x8] sm:$0xff]   ;;  %v5876_v52 = vld [vmem:[%s6952_s7 + $0x10] sm:$0xff]  }
  0x47   : > { %5618 = vmatpush3.bf16.msra.mxu1 %v5868_v2  ;;  %v5870_v5 = vld [vmem:[%s6952_s7] sm:$0xff]   ;;  %v5871_v8 = vld [vmem:[%s6952_s7 + $0x8] sm:$0xff]   ;;  %v5877_v53 = vld [vmem:[%s6952_s7 + $0x18] sm:$0xff]  }
  0x48   : > { %5619 = vmatprep.subr.bf16.mxu1 %v6106_v3  ;;  %5610 = vmatpush3.bf16.msra.mxu0 %v5870_v5  ;;  %v5098_v10 = vld [vmem:[%s6953_s10] ss:$0 sm:$0xff]  ;;  %v5874_v59 = vld [vmem:[%s6951_s4 + $0x10] sm:$0xff]   ;;  %v5875_v61 = vld [vmem:[%s6951_s4 + $0x18] sm:$0xff]  }
  0x49   : > { %5611 = vmatprep.subr.bf16.mxu0 %v6106_v3  ;;  %v5094_v12 = vld [vmem:[%s6954_s11] ss:$0 sm:$0xff]  ;;  %v5112_v62 = vld [vmem:[%s6954_s11 + $0x1] ss:$0 sm:$0xff]  ;;  %p5344_p8 = scmp.ne.s32.totalorder %s6961_s17, 1 }
  0x4b   : > { %5620 = vmatpush3.bf16.msra.mxu1 %v5869_v4 }
  0x4c   : > { %5612 = vmatpush3.bf16.msra.mxu0 %v5871_v8 }
  0x4d   : > { %5625 = vmatprep.subr.bf16.mxu0 %v6106_v3 }
  0x4e   : > { %5622 = vmatmul.mubr.msk.bf16.vlgmr.msra.gmra.mrb[0].mxu1 %vm983_vm2, %v6344_v9 }
  0x4f   : > { %5614 = vmatmul.mubr.msk.bf16.vlgmr.msra.gmra.mrb[0].mxu0 %vm983_vm2, %v6344_v9 }
  0x50   : > { %5629 = vmatprep.mubr.msk.bf16.mxu0 %vm6107_vm1, %v6106_v3  ;;  %5626 = vmatpush3.bf16.msra.mxu0 %v5872_v26 }
  0x51   : > { %5627 = vmatprep.subr.bf16.mxu0 %v6106_v3 }
  0x54   : > { %5628 = vmatpush3.bf16.msra.mxu0 %v5873_v27 }
  0x55   : > { %5647 = vmatprep.subr.bf16.mxu0 %v6106_v3 }
  0x57   : > { %5630 = vmatmul.mubr.msk.bf16.vlgmr.msra.gmra.mrb[4].mxu0 %vm983_vm2, %v6344_v9 }
  0x58   : > { %5651 = vmatprep.mubr.msk.bf16.mxu0 %vm6107_vm1, %v6106_v3  ;;  %5648 = vmatpush3.bf16.msra.mxu0 %v5876_v52 }
  0x59   : > { %5649 = vmatprep.subr.bf16.mxu0 %v6106_v3 }
  0x5c   : > { %5650 = vmatpush3.bf16.msra.mxu0 %v5877_v53  ;;  %v5880_v53 = vld [vmem:[%s6951_s4 + $0x20] sm:$0xff]  }
  0x5d   : > { %5663 = vmatprep.subr.bf16.mxu0 %v6106_v3 }
  0x5f   : > { %5652 = vmatmul.mubr.msk.bf16.vlgmr.msra.gmra.mrb[8].mxu0 %vm983_vm2, %v6344_v9 }
  0x60   : > { %5667 = vmatprep.mubr.msk.bf16.mxu0 %vm6107_vm1, %v6106_v3 }
 0x121   : > { %v1080_v11 = vpop.f32.mrb[0].mxu1 }
 0x122   : > { %v5623_v13 = vpop.f32.mrb[1].mxu1  ;;  %v1021_v15 = vpop.f32.mrb[0].mxu0  ;;  %v1081_v16 = vadd.f32 %v5098_v10, %v1080_v11 }
 0x123   : > { %v1083_v14 = vpop.f32.mrb[2].mxu1  ;;  %v1022_v19 = vadd.f32 %v5094_v12, %v1021_v15  ;;  %v5615_v20 = vpop.f32.mrb[1].mxu0 }
 0x124   : > { %v1084_v17 = vadd.f32 %v5098_v10, %v1083_v14  ;;  %v5624_v18 = vpop.f32.mrb[3].mxu1  ;;  %v1024_v22 = vpop.f32.mrb[2].mxu0  ;;  %v5116_v10 = vld [vmem:[%s6953_s10 + $0x1] ss:$0 sm:$0xff] }
 0x125   : > { %v5616_v24 = vpop.f32.mrb[3].mxu0  ;;  %5637 = vmatprep.mubr.msk.f32.mxu1 %vm1146_vm3, %v1022_v19  ;;  %v1025_v25 = vadd.f32 %v5094_v12, %v1024_v22  ;;  %v5878_v18 = vld [vmem:[%s6273_s21 + $0x10] sm:$0xff]   ;;  %v5879_v19 = vld [vmem:[%s6273_s21 + $0x18] sm:$0xff]  }
 0x126   : > { %v5785_v23 = vpack.c.bf16 %v1084_v17, %v1081_v16  ;;  %5664 = vmatpush3.bf16.msra.mxu0 %v5878_v18  ;;  %v5132_v18 = vld [vmem:[%s6954_s11 + $0x2] ss:$0 sm:$0xff] }
 0x127   : > { %5665 = vmatprep.subr.bf16.mxu0 %v6106_v3 }
 0x128   : > { %5787 = vmatprep.subr.msk.bf16.mxu1 %vm6358_vm4, %v5785_v23 }
 0x129   : > { %5790 = vmatpush3.bf16.xpose.msk.msra.mxu1 %vm6358_vm4, %v5785_v23 }
 0x12a   : > { %v1139_v45 = vpop.f32.mrb[4].mxu0  ;;  %5666 = vmatpush3.bf16.msra.mxu0 %v5879_v19 }
 0x12b   : > { %v5631_v46 = vpop.f32.mrb[5].mxu0  ;;  %v1140_v47 = vadd.f32 %v5102_v44, %v1139_v45 }
 0x12c   : > { %v1142_v48 = vpop.f32.mrb[6].mxu0 }
 0x12d   : > { %v1143_v49 = vadd.f32 %v5102_v44, %v1142_v48  ;;  %v5632_v50 = vpop.f32.mrb[7].mxu0  ;;  %5668 = vmatmul.mubr.msk.bf16.vlgmr.msra.gmra.mrb[12].mxu0 %vm983_vm2, %v6344_v9  ;;  %v959_v48 = vld [vmem:[%s6284_s0] sm:$0xf] }
 0x12e   : > { %v1763_v52 = vsel %vm1714_vm6, %v959_v48, 0 }
 0x12f   : > { %v5791_v51 = vpack.c.bf16 %v1143_v49, %v1140_v47 }
 0x130   : > { %5638 = vmatmul.mubr.msk.f32.vlgmr.msra.gmra.mrb[4].mxu1 %vm1146_vm3, %v1025_v25 }
 0x131   : > { %5792 = vmatprep.subr.bf16.mxu1 %v5791_v51 }
 0x132   : > { %5794 = vmatpush3.bf16.msra.mxu1 %v5791_v51  ;;  %v1393_v63 = vpop.f32.mrb[8].mxu0 }
 0x133   : > { %5655 = vmatprep.subr.bf16.mxu1 %v6106_v3  ;;  %v1394_v0 = vadd.f32 %v5112_v62, %v1393_v63  ;;  %v5653_v1 = vpop.f32.mrb[9].mxu0  ;;  %v5883_v63 = vld [vmem:[%s6952_s7 + $0x28] sm:$0xff]  }
 0x134   : > { %v1396_v2 = vpop.f32.mrb[10].mxu0 }
 0x135   : > { %v1397_v4 = vadd.f32 %v5112_v62, %v1396_v2  ;;  %v5654_v5 = vpop.f32.mrb[11].mxu0  ;;  %v5136_v2 = vld [vmem:[%s6953_s10 + $0x2] ss:$0 sm:$0xff] }
 0x200   : > { %v1511_v27 = vpop.f32.mrb[12].mxu0 }
 0x203   : > { %v5639_v28 = vpop.f32.mrb[4].mxu1 }
 0x204   : > { %v1225_v29 = vpop.f32.mrb[5].mxu1  ;;  %v1235_v31 = vmul.f32 0.35355338, %v5639_v28  ;;  %v5669_v28 = vpop.f32.mrb[13].mxu0 }
 0x205   : > { %v1234_v30 = vmul.f32 0.35355338, %v1225_v29 }
 0x206   : > { %v1240_v33 = vsel %vm1236_vm5, %v1235_v31, -inf }
 0x207   : > { %v1237_v32 = vsel %vm1236_vm5, %v1234_v30, -inf }
 0x208   : > { %1238 = vmax.xlane.f32.xlu0 %v1237_v32 }
 0x20c   : > { %1241 = vmax.xlane.f32.xlu0 %v1240_v33 }
 0x295   : > { %v1239_v34 = vpop.xlane.xlu0 %1238 }
 0x296   : > { %v1243_v35 = vsub.f32 %v1234_v30, %v1239_v34 }
 0x298   : > { %v1245_v36 = vmul.f32 1.442695, %v1243_v35 }
 0x299   : > { %v1242_v37 = vpop.xlane.xlu0 %1241 }
 0x29a   : > { %6020 = vpow2.f32 %v1245_v36  ;;  %v1244_v38 = vsub.f32 %v1235_v31, %v1242_v37 }
 0x29c   : > { %v1247_v39 = vmul.f32 1.442695, %v1244_v38 }
 0x29e   : > { %6022 = vpow2.f32 %v1247_v39  ;;  %v5120_v39 = vld [vmem:[%s6278_s1 + $0x1] ss:$0 sm:$0xff] }
 0x2a4   : > { %v6021_v40 = vpop.eup %6020 }
 0x2a5   : > { %v1249_v41 = vsel %vm1236_vm5, %v6021_v40, 0.0 }
 0x2a6   : > { %1250 = vadd.xlane.f32.xlu1 %v1249_v41  ;;  %v1514_v41 = vpop.f32.mrb[14].mxu0 }
 0x2a8   : > { %v6023_v42 = vpop.eup %6022 }
 0x2a9   : > { %v1252_v43 = vsel %vm1236_vm5, %v6023_v42, 0.0 }
 0x2aa   : > { %1253 = vadd.xlane.f32.xlu1 %v1252_v43  ;;  %v5670_v43 = vpop.f32.mrb[15].mxu0 }
 0x333   : > { %v1251_v54 = vpop.xlane.xlu1 %1250 }
 0x334   : > { %6024 = vrcp.f32 %v1251_v54  ;;  %v5881_v54 = vld [vmem:[%s6951_s4 + $0x28] sm:$0xff]  }
 0x337   : > { %v1254_v55 = vpop.xlane.xlu1 %1253 }
 0x338   : > { %6026 = vrcp.f32 %v1254_v55  ;;  %v960_v55 = vld [vmem:[%s6284_s0 + $0x4] sm:$0xf] }
 0x33e   : > { %v6025_v56 = vpop.eup %6024 }
 0x33f   : > { %v1257_v57 = vmul.f32 %v6025_v56, %v6021_v40  ;;  %v1512_v40 = vadd.f32 %v5120_v39, %v1511_v27  ;;  %v1716_v56 = vsel %vm1714_vm6, %v960_v55, 0  ;;  %v5885_v27 = vld [vmem:[%s6273_s21 + $0x28] sm:$0xff]  }
 0x341   : > { %5644 = vmatprep.mubr.msk.f32.mxu1 %vm1236_vm5, %v1257_v57 }
 0x342   : > { %v6027_v58 = vpop.eup %6026 }
 0x343   : > { %v1258_v60 = vmul.f32 %v6027_v58, %v6023_v42  ;;  %v1515_v42 = vadd.f32 %v5120_v39, %v1514_v41 }
 0x345   : > { %5645 = vmatmul.mubr.msk.f32.vlgmr.msra.gmra.mrb[6].mxu1 %vm1236_vm5, %v1258_v60  ;;  %v5801_v44 = vpack.c.bf16 %v1515_v42, %v1512_v40 }
 0x346   : > { %5656 = vmatpush3.bf16.msra.mxu1 %v5874_v59  ;;  %5659 = vmatprep.mubr.msk.bf16.mxu1 %vm6107_vm1, %v6106_v3  ;;  %v5882_v59 = vld [vmem:[%s6952_s7 + $0x20] sm:$0xff]  }
 0x347   : > { %5657 = vmatprep.subr.bf16.mxu1 %v6106_v3  ;;  %5802 = vmatprep.subr.bf16.mxu0 %v5801_v44 }
 0x348   : > { %5804 = vmatpush3.bf16.msra.mxu0 %v5801_v44 }
 0x349   : > { %5691 = vmatprep.subr.bf16.mxu0 %v6106_v3 }
 0x34a   : > { %5658 = vmatpush3.bf16.msra.mxu1 %v5875_v61 }
 0x34d   : > { %5660 = vmatmul.mubr.msk.bf16.vlgmr.msra.gmra.mrb[8].mxu1 %vm983_vm2, %v6344_v9 }
 0x34e   : > { %5675 = vmatprep.mubr.msk.f32.mxu1 %vm1146_vm3, %v1394_v0 }
 0x418   : > { %v6401_v6 = vpop.f32.mrb[6].mxu1 }
 0x419   : > { %v6403_v7 = vpop.f32.mrb[7].mxu1 }
 0x41a   : > { %v1340_v8 = vpack.c.bf16 %v6401_v6, %v6403_v7 }
 0x420   : > { %v1452_v11 = vpop.f32.mrb[8].mxu1 }
 0x421   : > { %v5661_v12 = vpop.f32.mrb[9].mxu1  ;;  %v1453_v14 = vadd.f32 %v5116_v10, %v1452_v11 }
 0x422   : > { %v1455_v13 = vpop.f32.mrb[10].mxu1 }
 0x423   : > { %v1456_v15 = vadd.f32 %v5116_v10, %v1455_v13  ;;  %v5662_v16 = vpop.f32.mrb[11].mxu1 }
 0x425   : > { %v5795_v17 = vpack.c.bf16 %v1456_v15, %v1453_v14 }
 0x427   : > { %5797 = vmatprep.subr.msk.bf16.mxu1 %vm6358_vm4, %v5795_v17 }
 0x428   : > { %5800 = vmatpush3.bf16.xpose.msk.msra.mxu1 %vm6358_vm4, %v5795_v17 }
 0x429   : > { %5685 = vmatprep.subr.bf16.mxu1 %v6106_v3 }
 0x42f   : > { %5676 = vmatmul.mubr.msk.f32.vlgmr.msra.gmra.mrb[12].mxu1 %vm1146_vm3, %v1397_v4 }
 0x430   : > { %5687 = vmatprep.mubr.msk.bf16.mxu1 %vm6107_vm1, %v6106_v3  ;;  %5686 = vmatpush3.bf16.msra.mxu1 %v1716_v56 }
 0x431   : > { %5697 = vmatprep.subr.bf16.mxu1 %v6106_v3 }
 0x502   : > { %v5677_v20 = vpop.f32.mrb[12].mxu1 }
 0x503   : > { %v1606_v22 = vmul.f32 0.35355338, %v5677_v20  ;;  %v1596_v23 = vpop.f32.mrb[13].mxu1 }
 0x504   : > { %v1605_v24 = vmul.f32 0.35355338, %v1596_v23 }
 0x505   : > { %v1610_v25 = vsel %vm1236_vm5, %v1606_v22, -inf }
 0x506   : > { %1611 = vmax.xlane.f32.xlu1 %v1610_v25  ;;  %v1607_v26 = vsel %vm1236_vm5, %v1605_v24, -inf }
 0x507   : > { %1608 = vmax.xlane.f32.xlu0 %v1607_v26  ;;  %v5884_v26 = vld [vmem:[%s6273_s21 + $0x20] sm:$0xff]  }
 0x593   : > { %v1612_v29 = vpop.xlane.xlu1 %1611 }
 0x594   : > { %v1614_v30 = vsub.f32 %v1606_v22, %v1612_v29  ;;  %v1609_v31 = vpop.xlane.xlu0 %1608 }
 0x595   : > { %v1613_v32 = vsub.f32 %v1605_v24, %v1609_v31 }
 0x596   : > { %v1617_v33 = vmul.f32 1.442695, %v1614_v30 }
 0x597   : > { %v1615_v34 = vmul.f32 1.442695, %v1613_v32 }
 0x598   : > { %6028 = vpow2.f32 %v1617_v33 }
 0x599   : > { %6030 = vpow2.f32 %v1615_v34 }
 0x5a2   : > { %v6029_v35 = vpop.eup %6028 }
 0x5a3   : > { %v6031_v36 = vpop.eup %6030  ;;  %v1622_v37 = vsel %vm1236_vm5, %v6029_v35, 0.0 }
 0x5a4   : > { %1623 = vadd.xlane.f32.xlu1 %v1622_v37  ;;  %v1619_v38 = vsel %vm1236_vm5, %v6031_v36, 0.0 }
 0x5a5   : > { %1620 = vadd.xlane.f32.xlu0 %v1619_v38 }
 0x631   : > { %v1624_v45 = vpop.xlane.xlu1 %1623 }
 0x632   : > { %6032 = vrcp.f32 %v1624_v45  ;;  %v1621_v46 = vpop.xlane.xlu0 %1620 }
 0x633   : > { %6034 = vrcp.f32 %v1621_v46  ;;  %v5140_v46 = vld [vmem:[%s6278_s1 + $0x2] ss:$0 sm:$0xff] }
 0x63c   : > { %v6033_v47 = vpop.eup %6032 }
 0x63d   : > { %v6035_v49 = vpop.eup %6034  ;;  %v1628_v51 = vmul.f32 %v6033_v47, %v6029_v35 }
 0x63e   : > { %v1627_v50 = vmul.f32 %v6035_v49, %v6031_v36 }
 0x640   : > { %5682 = vmatprep.mubr.msk.f32.mxu0 %vm1236_vm5, %v1627_v50 }
 0x641   : > { %5683 = vmatmul.mubr.msk.f32.vlgmr.msra.gmra.mrb[16].mxu0 %vm1236_vm5, %v1628_v51 }
 0x642   : > { %5692 = vmatpush3.bf16.msra.mxu0 %v1763_v52  ;;  %5693 = vmatprep.mubr.msk.bf16.mxu0 %vm6107_vm1, %v6106_v3  ;;  %v961_v52 = vld [vmem:[%s6284_s0 + $0x8] sm:$0xf] }
 0x643   : > { %5705 = vmatprep.subr.bf16.mxu0 %v6106_v3 }
 0x645   : > { %5694 = vmatmul.mubr.msk.bf16.vlgmr.msra.gmra.mrb[20].mxu0 %vm1146_vm3, %v1340_v8 }
 0x646   : > { %5706 = vmatpush3.bf16.msra.mxu0 %v5880_v53  ;;  %5709 = vmatprep.mubr.msk.bf16.mxu0 %vm6107_vm1, %v6106_v3  ;;  %v2180_v53 = vsel %vm1714_vm6, %v961_v52, 0 }
 0x647   : > { %5707 = vmatprep.subr.bf16.mxu0 %v6106_v3 }
 0x64a   : > { %5708 = vmatpush3.bf16.msra.mxu0 %v5881_v54 }
 0x64d   : > { %5710 = vmatmul.mubr.msk.bf16.vlgmr.msra.gmra.mrb[24].mxu0 %vm983_vm2, %v6344_v9 }
 0x714   : > { %v5684_v57 = vpop.f32.mrb[16].mxu0 }
 0x715   : > { %v1701_v58 = vpop.f32.mrb[17].mxu0 }
 0x716   : > { %v1710_v60 = vpack.c.bf16 %v5684_v57, %v1701_v58 }
 0x718   : > { %5688 = vmatmul.mubr.msk.bf16.vlgmr.msra.gmra.mrb[16].mxu1 %vm1146_vm3, %v1710_v60  ;;  %v1799_v61 = vpop.f32.mrb[20].mxu0  ;;  %v5888_v60 = vld [vmem:[%s6952_s7 + $0x30] sm:$0xff]  }
 0x719   : > { %v5695_v62 = vpop.f32.mrb[21].mxu0  ;;  %5698 = vmatpush3.bf16.msra.mxu1 %v5882_v59  ;;  %5701 = vmatprep.mubr.msk.bf16.mxu1 %vm6107_vm1, %v6106_v3 }
 0x71a   : > { %v1802_v0 = vpop.f32.mrb[22].mxu0  ;;  %5699 = vmatprep.subr.bf16.mxu1 %v6106_v3 }
 0x71b   : > { %v5696_v1 = vpop.f32.mrb[23].mxu0 }
 0x71d   : > { %5700 = vmatpush3.bf16.msra.mxu1 %v5883_v63 }
 0x71e   : > { %5713 = vmatprep.subr.bf16.mxu1 %v6106_v3 }
 0x720   : > { %5702 = vmatmul.mubr.msk.bf16.vlgmr.msra.gmra.mrb[20].mxu1 %vm983_vm2, %v6344_v9  ;;  %v1917_v4 = vpop.f32.mrb[24].mxu0 }
 0x721   : > { %v1918_v5 = vadd.f32 %v5136_v2, %v1917_v4  ;;  %v5711_v6 = vpop.f32.mrb[25].mxu0  ;;  %5717 = vmatprep.mubr.msk.bf16.mxu1 %vm6107_vm1, %v6106_v3  ;;  %5714 = vmatpush3.bf16.msra.mxu1 %v5884_v26  ;;  %v5151_v4 = vld [vmem:[%s6954_s11 + $0x3] ss:$0 sm:$0xff] }
 0x722   : > { %v1920_v7 = vpop.f32.mrb[26].mxu0  ;;  %5715 = vmatprep.subr.bf16.mxu1 %v6106_v3 }
 0x723   : > { %v1921_v8 = vadd.f32 %v5136_v2, %v1920_v7  ;;  %v5712_v10 = vpop.f32.mrb[27].mxu0  ;;  %v5887_v2 = vld [vmem:[%s6951_s4 + $0x38] sm:$0xff]  }
 0x725   : > { %v5805_v11 = vpack.c.bf16 %v1921_v8, %v1918_v5  ;;  %5716 = vmatpush3.bf16.msra.mxu1 %v5885_v27 }
 0x726   : > { %5735 = vmatprep.subr.bf16.mxu1 %v6106_v3 }
 0x727   : > { %5807 = vmatprep.subr.msk.bf16.mxu0 %vm6358_vm4, %v5805_v11 }
 0x728   : > { %5810 = vmatpush3.bf16.xpose.msk.msra.mxu0 %vm6358_vm4, %v5805_v11  ;;  %5718 = vmatmul.mubr.msk.bf16.vlgmr.msra.gmra.mrb[24].mxu1 %vm983_vm2, %v6344_v9 }
 0x729   : > { %5737 = vmatprep.mubr.msk.bf16.mxu1 %vm6107_vm1, %v6106_v3  ;;  %5736 = vmatpush3.bf16.msra.mxu1 %v2180_v53 }
 0x72a   : > { %5749 = vmatprep.subr.bf16.mxu1 %v6106_v3 }
 0x7eb   : > { %v1752_v12 = vpop.f32.mrb[16].mxu1 }
 0x7ec   : > { %v6464_v13 = vadd.f32 %v1799_v61, %v1752_v12  ;;  %v5689_v14 = vpop.f32.mrb[17].mxu1  ;;  %v5889_v61 = vld [vmem:[%s6952_s7 + $0x38] sm:$0xff]   ;;  %s6963_s7 = sld [smem:[#allocation27_spill]] (!%p5344_p8) }
 0x7ed   : > { %v1755_v15 = vpop.f32.mrb[18].mxu1 }
 0x7ee   : > { %v6466_v16 = vadd.f32 %v1802_v0, %v1755_v15  ;;  %v5690_v17 = vpop.f32.mrb[19].mxu1  ;;  %v5886_v0 = vld [vmem:[%s6951_s4 + $0x30] sm:$0xff]  }
 0x7f3   : > { %v1858_v19 = vpop.f32.mrb[20].mxu1 }
 0x7f4   : > { %v1859_v20 = vadd.f32 %v5132_v18, %v1858_v19  ;;  %v5703_v22 = vpop.f32.mrb[21].mxu1 }
 0x7f5   : > { %v1861_v23 = vpop.f32.mrb[22].mxu1 }
 0x7f6   : > { %v1862_v24 = vadd.f32 %v5132_v18, %v1861_v23  ;;  %v5704_v25 = vpop.f32.mrb[23].mxu1  ;;  %5725 = vmatprep.mubr.msk.f32.mxu0 %vm1146_vm3, %v1859_v20  ;;  %v5155_v20 = vld [vmem:[%s6953_s10 + $0x3] ss:$0 sm:$0xff] }
 0x7f8   : > { %5726 = vmatmul.mubr.msk.f32.vlgmr.msra.gmra.mrb[18].mxu0 %vm1146_vm3, %v1862_v24 }
 0x7fb   : > { %v1976_v44 = vpop.f32.mrb[24].mxu1 }
 0x7fc   : > { %v5719_v45 = vpop.f32.mrb[25].mxu1  ;;  %v1977_v48 = vadd.f32 %v5140_v46, %v1976_v44  ;;  %v5159_v44 = vld [vmem:[%s6278_s1 + $0x3] ss:$0 sm:$0xff] }
 0x7fd   : > { %v1979_v47 = vpop.f32.mrb[26].mxu1 }
 0x7fe   : > { %v1980_v49 = vadd.f32 %v5140_v46, %v1979_v47  ;;  %v5720_v50 = vpop.f32.mrb[27].mxu1 }
 0x7ff   : > { %v962_v50 = vld [vmem:[%s6284_s0 + $0xc] sm:$0xf] }
 0x800   : > { %v5811_v51 = vpack.c.bf16 %v1980_v49, %v1977_v48 }
 0x802   : > { %5812 = vmatprep.subr.bf16.mxu0 %v5811_v51 }
 0x803   : > { %5814 = vmatpush3.bf16.msra.mxu0 %v5811_v51  ;;  %v2599_v51 = vsel %vm1714_vm6, %v962_v50, 0 }
 0x804   : > { %5741 = vmatprep.subr.bf16.mxu0 %v6106_v3 }
 0x8cb   : > { %v5727_v28 = vpop.f32.mrb[18].mxu0 }
 0x8cc   : > { %v2071_v29 = vmul.f32 0.35355338, %v5727_v28  ;;  %v2061_v30 = vpop.f32.mrb[19].mxu0 }
 0x8cd   : > { %v2070_v31 = vmul.f32 0.35355338, %v2061_v30 }
 0x8ce   : > { %v2075_v32 = vsel %vm1236_vm5, %v2071_v29, -inf }
 0x8cf   : > { %2076 = vmax.xlane.f32.xlu1 %v2075_v32  ;;  %v2072_v33 = vsel %vm1236_vm5, %v2070_v31, -inf }
 0x8d0   : > { %2073 = vmax.xlane.f32.xlu0 %v2072_v33 }
 0x95c   : > { %v2077_v34 = vpop.xlane.xlu1 %2076 }
 0x95d   : > { %v2079_v35 = vsub.f32 %v2071_v29, %v2077_v34  ;;  %v2074_v36 = vpop.xlane.xlu0 %2073 }
 0x95e   : > { %v2078_v37 = vsub.f32 %v2070_v31, %v2074_v36 }
 0x95f   : > { %v2082_v38 = vmul.f32 1.442695, %v2079_v35 }
 0x960   : > { %v2080_v39 = vmul.f32 1.442695, %v2078_v37 }
 0x961   : > { %6036 = vpow2.f32 %v2082_v38 }
 0x962   : > { %6038 = vpow2.f32 %v2080_v39 }
 0x96b   : > { %v6037_v40 = vpop.eup %6036 }
 0x96c   : > { %v6039_v41 = vpop.eup %6038  ;;  %v2087_v42 = vsel %vm1236_vm5, %v6037_v40, 0.0 }
 0x96d   : > { %2088 = vadd.xlane.f32.xlu1 %v2087_v42  ;;  %v2084_v43 = vsel %vm1236_vm5, %v6039_v41, 0.0 }
 0x96e   : > { %2085 = vadd.xlane.f32.xlu0 %v2084_v43 }
 0x9fa   : > { %v2089_v54 = vpop.xlane.xlu1 %2088 }
 0x9fb   : > { %6040 = vrcp.f32 %v2089_v54  ;;  %v2086_v55 = vpop.xlane.xlu0 %2085 }
 0x9fc   : > { %6042 = vrcp.f32 %v2086_v55 }
 0xa05   : > { %v6041_v56 = vpop.eup %6040 }
 0xa06   : > { %v6043_v57 = vpop.eup %6042  ;;  %v2093_v59 = vmul.f32 %v6041_v56, %v6037_v40 }
 0xa07   : > { %v2092_v58 = vmul.f32 %v6043_v57, %v6039_v41 }
 0xa09   : > { %5732 = vmatprep.mubr.msk.f32.mxu0 %vm1236_vm5, %v2092_v58 }
 0xa0a   : > { %5733 = vmatmul.mubr.msk.f32.vlgmr.msra.gmra.mrb[28].mxu0 %vm1236_vm5, %v2093_v59 }
 0xa0b   : > { %5745 = vmatprep.mubr.msk.bf16.mxu0 %vm6107_vm1, %v6106_v3  ;;  %5742 = vmatpush3.bf16.msra.mxu0 %v5888_v60 }
 0xa0c   : > { %5743 = vmatprep.subr.bf16.mxu0 %v6106_v3 }
 0xa0f   : > { %5744 = vmatpush3.bf16.msra.mxu0 %v5889_v61  ;;  %v5170_v61 = vld [vmem:[%s6957_s24] ss:$0 sm:$0xff] }
 0xa10   : > { %5757 = vmatprep.subr.bf16.mxu0 %v6106_v3 }
 0xa12   : > { %5746 = vmatmul.mubr.msk.bf16.vlgmr.msra.gmra.mrb[32].mxu0 %vm983_vm2, %v6344_v9 }
 0xa13   : > { %5761 = vmatprep.mubr.msk.bf16.mxu0 %vm6107_vm1, %v6106_v3 }
 0xadd   : > { %v5734_v62 = vpop.f32.mrb[28].mxu0 }
 0xade   : > { %v2166_v63 = vpop.f32.mrb[29].mxu0 }
 0xadf   : > { %v2175_v1 = vpack.c.bf16 %v5734_v62, %v2166_v63 }
 0xae1   : > { %5738 = vmatmul.mubr.msk.bf16.vlgmr.msra.gmra.mrb[28].mxu1 %vm1146_vm3, %v2175_v1 }
 0xae2   : > { %5750 = vmatpush3.bf16.msra.mxu1 %v5886_v0  ;;  %5753 = vmatprep.mubr.msk.bf16.mxu1 %vm6107_vm1, %v6106_v3 }
 0xae3   : > { %5751 = vmatprep.subr.bf16.mxu1 %v6106_v3 }
 0xae5   : > { %v2277_v5 = vpop.f32.mrb[32].mxu0 }
 0xae6   : > { %5752 = vmatpush3.bf16.msra.mxu1 %v5887_v2  ;;  %v2278_v6 = vadd.f32 %v5151_v4, %v2277_v5  ;;  %v5747_v7 = vpop.f32.mrb[33].mxu0 }
 0xae7   : > { %v2280_v8 = vpop.f32.mrb[34].mxu0  ;;  %v6060_v7 = vld [vmem:[#allocation2] sm:$0xff] }
 0xae8   : > { %v2281_v10 = vadd.f32 %v5151_v4, %v2280_v8  ;;  %v5748_v11 = vpop.f32.mrb[35].mxu0 }
 0xae9   : > { %5754 = vmatmul.mubr.msk.bf16.vlgmr.msra.gmra.mrb[32].mxu1 %vm983_vm2, %v6344_v9  ;;  %v6061_v11 = vld [vmem:[#allocation2 + $0x8] sm:$0xff] }
 0xaea   : > { %5769 = vmatprep.mubr.msk.f32.mxu1 %vm1146_vm3, %v2278_v6 }
 0xbb4   : > { %v2216_v12 = vpop.f32.mrb[28].mxu1 }
 0xbb5   : > { %v6511_v14 = vadd.f32 %v2216_v12, %v6464_v13  ;;  %v5739_v15 = vpop.f32.mrb[29].mxu1  ;;  %v5890_v13 = vld [vmem:[%s6273_s21 + $0x30] sm:$0xff]  }
 0xbb6   : > { %v2219_v17 = vpop.f32.mrb[30].mxu1  ;;  %5758 = vmatpush3.bf16.msra.mxu0 %v5890_v13  ;;  %v2700_v13 = vld [vmem:[%s6299_s20 + $0x8] sm:$0xff] }
 0xbb7   : > { %v6514_v18 = vadd.f32 %v2219_v17, %v6466_v16  ;;  %v5740_v19 = vpop.f32.mrb[31].mxu1  ;;  %v5891_v16 = vld [vmem:[%s6273_s21 + $0x38] sm:$0xff]   ;;  %5759 = vmatprep.subr.bf16.mxu0 %v6106_v3 }
 0xbba   : > { %5760 = vmatpush3.bf16.msra.mxu0 %v5891_v16 }
 0xbbb   : > { %5779 = vmatprep.subr.bf16.mxu0 %v6106_v3 }
 0xbbc   : > { %v2336_v22 = vpop.f32.mrb[32].mxu1 }
 0xbbd   : > { %v5755_v23 = vpop.f32.mrb[33].mxu1  ;;  %v2337_v25 = vadd.f32 %v5155_v20, %v2336_v22  ;;  %5762 = vmatmul.mubr.msk.bf16.vlgmr.msra.gmra.mrb[36].mxu0 %vm983_vm2, %v6344_v9 }
 0xbbe   : > { %v2339_v24 = vpop.f32.mrb[34].mxu1  ;;  %5781 = vmatprep.mubr.msk.bf16.mxu0 %vm6107_vm1, %v6106_v3  ;;  %5780 = vmatpush3.bf16.msra.mxu0 %v2599_v51 }
 0xbbf   : > { %v2340_v26 = vadd.f32 %v5155_v20, %v2339_v24  ;;  %v5756_v27 = vpop.f32.mrb[35].mxu1 }
 0xbc0   : > { %v2699_v27 = vld [vmem:[%s6299_s20] sm:$0xff] }
 0xbc1   : > { %v5815_v28 = vpack.c.bf16 %v2340_v26, %v2337_v25 }
 0xbc3   : > { %5817 = vmatprep.subr.msk.bf16.mxu1 %vm6358_vm4, %v5815_v28 }
 0xbc4   : > { %5820 = vmatpush3.bf16.xpose.msk.msra.mxu1 %vm6358_vm4, %v5815_v28  ;;  %v2707_v28 = vld [vmem:[%s6299_s20 + $0x40] sm:$0xff] }
 0xbc5   : > { %v5174_v16 = vcombine.high %v2699_v27, %v2707_v28 }
 0xbcb   : > { %5770 = vmatmul.mubr.msk.f32.vlgmr.msra.gmra.mrb[14].mxu1 %vm1146_vm3, %v2281_v10 }
 0xc90   : > { %v2395_v42 = vpop.f32.mrb[36].mxu0 }
 0xc91   : > { %v5763_v43 = vpop.f32.mrb[37].mxu0  ;;  %v2396_v46 = vadd.f32 %v5159_v44, %v2395_v42  ;;  %v2710_v42 = vld [vmem:[%s6299_s20 + $0x58] sm:$0xff] }
 0xc92   : > { %v2398_v45 = vpop.f32.mrb[38].mxu0  ;;  %v6108_v43 = vmov 0  }
 0xc93   : > { %v2399_v47 = vadd.f32 %v5159_v44, %v2398_v45  ;;  %v5764_v48 = vpop.f32.mrb[39].mxu0 }
 0xc95   : > { %v5821_v49 = vpack.c.bf16 %v2399_v47, %v2396_v46 }
 0xc97   : > { %5822 = vmatprep.subr.bf16.mxu1 %v5821_v49 }
 0xc98   : > { %5824 = vmatpush3.bf16.msra.mxu1 %v5821_v49 }
 0xc99   : > { %2979 = vmatprep.subr.bf16.mxu1 %v5174_v16  ;;  %v2714_v16 = vld [vmem:[%s6299_s20 + $0x78] sm:$0xff] }
 0xc9e   : > { %v5771_v29 = vpop.f32.mrb[14].mxu1 }
 0xc9f   : > { %v2490_v30 = vmul.f32 0.35355338, %v5771_v29  ;;  %v2480_v21 = vpop.f32.mrb[15].mxu1  ;;  %v2708_v29 = vld [vmem:[%s6299_s20 + $0x48] sm:$0xff] }
 0xca0   : > { %v2489_v31 = vmul.f32 0.35355338, %v2480_v21  ;;  %v5175_v21 = vcombine.low %v2700_v13, %v2708_v29 }
 0xca1   : > { %v2494_v32 = vsel %vm1236_vm5, %v2490_v30, -inf }
 0xca2   : > { %2495 = vmax.xlane.f32.xlu1 %v2494_v32  ;;  %v2491_v33 = vsel %vm1236_vm5, %v2489_v31, -inf  ;;  %v2715_v32 = vld [vmem:[%s6299_s20 + $0x80] sm:$0xff] }
 0xca3   : > { %2492 = vmax.xlane.f32.xlu0 %v2491_v33  ;;  %v2723_v33 = vld [vmem:[%s6299_s20 + $0xc0] sm:$0xff] }
 0xd2f   : > { %v2496_v34 = vpop.xlane.xlu1 %2495 }
 0xd30   : > { %v2498_v35 = vsub.f32 %v2490_v30, %v2496_v34  ;;  %v2493_v36 = vpop.xlane.xlu0 %2492  ;;  %v5173_v30 = vcombine.low %v2699_v27, %v2707_v28  ;;  %v2716_v34 = vld [vmem:[%s6299_s20 + $0x88] sm:$0xff]  ;;  %v2705_v27 = vld [vmem:[%s6299_s20 + $0x30] sm:$0xff] }
 0xd31   : > { %v2497_v37 = vsub.f32 %v2489_v31, %v2493_v36  ;;  %v5176_v31 = vcombine.high %v2700_v13, %v2708_v29  ;;  %v2724_v36 = vld [vmem:[%s6299_s20 + $0xc8] sm:$0xff]  ;;  %v2713_v28 = vld [vmem:[%s6299_s20 + $0x70] sm:$0xff]  ;;  %v2706_v13 = vld [vmem:[%s6299_s20 + $0x38] sm:$0xff] }
 0xd32   : > { %v2501_v38 = vmul.f32 1.442695, %v2498_v35  ;;  %v5190_v35 = vcombine.high %v2715_v32, %v2723_v33 }
 0xd33   : > { %v2499_v9 = vmul.f32 1.442695, %v2497_v37  ;;  %3022 = vmatprep.subr.bf16.mxu0 %v5176_v31  ;;  %v5189_v37 = vcombine.low %v2715_v32, %v2723_v33  ;;  %v5188_v31 = vcombine.high %v2706_v13, %v2714_v16  ;;  %v2721_v32 = vld [vmem:[%s6299_s20 + $0xb0] sm:$0xff] }
 0xd34   : > { %6044 = vpow2.f32 %v2501_v38  ;;  %v5191_v38 = vcombine.low %v2716_v34, %v2724_v36  ;;  %v2729_v33 = vld [vmem:[%s6299_s20 + $0xf0] sm:$0xff] }
 0xd35   : > { %6046 = vpow2.f32 %v2499_v9  ;;  %v5192_v9 = vcombine.high %v2716_v34, %v2724_v36  ;;  %v2722_v34 = vld [vmem:[%s6299_s20 + $0xb8] sm:$0xff]  ;;  %v5185_v36 = vcombine.low %v2705_v27, %v2713_v28 }
 0xd3e   : > { %v6045_v3 = vpop.eup %6044 }
 0xd3f   : > { %v6047_v39 = vpop.eup %6046  ;;  %v2506_v40 = vsel %vm1236_vm5, %v6045_v3, 0.0 }
 0xd40   : > { %2507 = vadd.xlane.f32.xlu1 %v2506_v40  ;;  %v2503_v41 = vsel %vm1236_vm5, %v6047_v39, 0.0  ;;  %v2702_v40 = vld [vmem:[%s6299_s20 + $0x18] sm:$0xff] }
 0xd41   : > { %2504 = vadd.xlane.f32.xlu0 %v2503_v41  ;;  %v5179_v45 = vcombine.low %v2702_v40, %v2710_v42  ;;  %v5180_v46 = vcombine.high %v2702_v40, %v2710_v42  ;;  %v5892_v40 = vld [vmem:[%s6305_s25 + $0x40] sm:$0xff]  }
 0xd42   : > { %v5894_v42 = vld [vmem:[%s6305_s25] sm:$0xff]  }
 0xdcd   : > { %v2508_v52 = vpop.xlane.xlu1 %2507 }
 0xdce   : > { %6048 = vrcp.f32 %v2508_v52  ;;  %v2505_v53 = vpop.xlane.xlu0 %2504 }
 0xdcf   : > { %6050 = vrcp.f32 %v2505_v53 }
 0xdd8   : > { %v6049_v54 = vpop.eup %6048 }
 0xdd9   : > { %v6051_v55 = vpop.eup %6050  ;;  %v2512_v57 = vmul.f32 %v6049_v54, %v6045_v3  ;;  %v2701_v3 = vld [vmem:[%s6299_s20 + $0x10] sm:$0xff]  ;;  %v5171_v54 = vld [vmem:[%s872_s3] ss:$0 sm:$0xff] }
 0xdda   : > { %v2511_v56 = vmul.f32 %v6051_v55, %v6047_v39  ;;  %v2709_v39 = vld [vmem:[%s6299_s20 + $0x50] sm:$0xff] }
 0xddb   : > { %v5178_v41 = vcombine.high %v2701_v3, %v2709_v39  ;;  %v5177_v44 = vcombine.low %v2701_v3, %v2709_v39  ;;  %v5201_v3 = vcombine.low %v2721_v32, %v2729_v33 }
 0xddc   : > { %5776 = vmatprep.mubr.msk.f32.mxu1 %vm1236_vm5, %v2511_v56 }
 0xddd   : > { %5777 = vmatmul.mubr.msk.f32.vlgmr.msra.gmra.mrb[36].mxu1 %vm1236_vm5, %v2512_v57 }
 0xdde   : > { %2980 = vmatpush1.bf16.msra.mxu1 %v5173_v30  ;;  %3011 = vmatprep.mubr.bf16.mxu1 %v6108_v43 }
 0xddf   : > { %2981 = vmatprep.subr.bf16.mxu1 %v5190_v35  ;;  %v2730_v35 = vld [vmem:[%s6299_s20 + $0xf8] sm:$0xff] }
 0xde0   : > { %v5203_v39 = vcombine.low %v2722_v34, %v2730_v35 }
 0xde2   : > { %2982 = vmatpush1.bf16.msra.mxu1 %v5189_v37  ;;  %v5187_v37 = vcombine.low %v2706_v13, %v2714_v16 }
 0xde3   : > { %3065 = vmatprep.subr.bf16.mxu1 %v5178_v41  ;;  %v5893_v41 = vld [vmem:[%s6305_s25 + $0xc0] sm:$0xff]  }
 0xeb0   : > { %v5778_v58 = vpop.f32.mrb[36].mxu1 }
 0xeb1   : > { %v2585_v59 = vpop.f32.mrb[37].mxu1 }
 0xeb2   : > { %v2594_v60 = vpack.c.bf16 %v5778_v58, %v2585_v59  ;;  %v5172_v59 = vld [vmem:[%s875_s29] ss:$0 sm:$0xff] }
 0xeb4   : > { %5782 = vmatmul.mubr.msk.bf16.vlgmr.msra.gmra.mrb[40].mxu0 %vm1146_vm3, %v2594_v60 }
 0xeb5   : > { %3023 = vmatpush1.bf16.msra.mxu0 %v5175_v21  ;;  %3054 = vmatprep.mubr.bf16.mxu0 %v6108_v43  ;;  %v5186_v21 = vcombine.high %v2705_v27, %v2713_v28 }
 0xeb6   : > { %3024 = vmatprep.subr.bf16.mxu0 %v5192_v9  ;;  %v5204_v9 = vcombine.high %v2722_v34, %v2730_v35 }
 0xeb9   : > { %3025 = vmatpush1.bf16.msra.mxu0 %v5191_v38  ;;  %v5202_v38 = vcombine.high %v2721_v32, %v2729_v33 }
 0xeba   : > { %3108 = vmatprep.subr.bf16.mxu0 %v5180_v46  ;;  %v5897_v46 = vld [vmem:[%s6305_s25 + $0xc8] sm:$0xff]  }
 0xf87   : > { %v2635_v62 = vpop.f32.mrb[40].mxu0 }
 0xf88   : > { %v2642_v63 = vadd.f32 %v2635_v62, %v6511_v14  ;;  %v5783_v0 = vpop.f32.mrb[41].mxu0  ;;  %v2725_v62 = vld [vmem:[%s6299_s20 + $0xd0] sm:$0xff] }
 0xf89   : > { %v2638_v1 = vpop.f32.mrb[42].mxu0  ;;  %v2726_v0 = vld [vmem:[%s6299_s20 + $0xd8] sm:$0xff] }
 0xf8a   : > { %v2650_v2 = vadd.f32 %v5170_v61, %v2642_v63  ;;  %v2643_v4 = vadd.f32 %v2638_v1, %v6514_v18  ;;  %v5784_v5 = vpop.f32.mrb[43].mxu0  ;;  %v2718_v63 = vld [vmem:[%s6299_s20 + $0x98] sm:$0xff] }
 0xf8c   : > { %v2651_v6 = vadd.f32 %v5170_v61, %v2643_v4  ;;  %v2652_v8 = vadd.f32 %v6060_v7, %v2650_v2  ;;  %v2717_v61 = vld [vmem:[%s6299_s20 + $0x90] sm:$0xff]  ;;  %v2703_v7 = vld [vmem:[%s6299_s20 + $0x20] sm:$0xff] }
 0xf8d   : > { %v5194_v5 = vcombine.high %v2717_v61, %v2725_v62 }
 0xf8e   : > { %v2656_v10 = vsel %vm983_vm2, %v2652_v8, 0.0  ;;  %v2653_v12 = vadd.f32 %v6061_v11, %v2651_v6  ;;  %v5196_v6 = vcombine.high %v2718_v63, %v2726_v0  ;;  %v2712_v11 = vld [vmem:[%s6299_s20 + $0x68] sm:$0xff] }
 0xf8f   : > { %2657 = vadd.xlane.f32.xlu0 %v2656_v10  ;;  %v2704_v10 = vld [vmem:[%s6299_s20 + $0x28] sm:$0xff] }
 0xf90   : > { %v2659_v15 = vsel %vm983_vm2, %v2653_v12, 0.0 }
 0xf91   : > { %2660 = vadd.xlane.f32.xlu1 %v2659_v15  ;;  %v5195_v15 = vcombine.low %v2718_v63, %v2726_v0  ;;  %v5915_v63 = vld [vmem:[%s6305_s25 + $0xa8] sm:$0xff]   ;;  %v5916_v0 = vld [vmem:[%s6305_s25 + $0x70] sm:$0xff]  }
0x101c   : > { %v2658_v14 = vpop.xlane.xlu0 %2657 }
0x101d   : > { %v2663_v17 = vmul.f32 0.03125, %v2658_v14 }
0x101e   : > { %v2661_v19 = vpop.xlane.xlu1 %2660 }
0x101f   : > { %v2665_v18 = vsub.f32 %v2652_v8, %v2663_v17  ;;  %v2664_v20 = vmul.f32 0.03125, %v2661_v19  ;;  %v2711_v8 = vld [vmem:[%s6299_s20 + $0x60] sm:$0xff]  ;;  %v5184_v17 = vcombine.high %v2704_v10, %v2712_v11 }
0x1020   : > { %v5182_v14 = vcombine.high %v2703_v7, %v2711_v8  ;;  %v2719_v19 = vld [vmem:[%s6299_s20 + $0xa0] sm:$0xff] }
0x1021   : > { %v2666_v22 = vsub.f32 %v2653_v12, %v2664_v20  ;;  %v2667_v23 = vmul.f32 %v2665_v18, %v2665_v18  ;;  %v5193_v12 = vcombine.low %v2717_v61, %v2725_v62  ;;  %v2720_v20 = vld [vmem:[%s6299_s20 + $0xa8] sm:$0xff] }
0x1022   : > { %v5913_v61 = vld [vmem:[%s6305_s25 + $0xe8] sm:$0xff]  }
0x1023   : > { %v2669_v24 = vsel %vm983_vm2, %v2667_v23, 0.0  ;;  %v2668_v25 = vmul.f32 %v2666_v22, %v2666_v22  ;;  %v5181_v23 = vcombine.low %v2703_v7, %v2711_v8  ;;  %v5914_v62 = vld [vmem:[%s6305_s25 + $0x28] sm:$0xff]   ;;  %v5920_v7 = vld [vmem:[%s6305_s25 + $0x78] sm:$0xff]  }
0x1024   : > { %2670 = vadd.xlane.f32.xlu0 %v2669_v24  ;;  %v5183_v24 = vcombine.low %v2704_v10, %v2712_v11  ;;  %v5921_v8 = vld [vmem:[%s6305_s25 + $0xf8] sm:$0xff]  }
0x1025   : > { %v2672_v26 = vsel %vm983_vm2, %v2668_v25, 0.0  ;;  %v5922_v10 = vld [vmem:[%s6305_s25 + $0x38] sm:$0xff]  }
0x1026   : > { %2673 = vadd.xlane.f32.xlu1 %v2672_v26  ;;  %v5923_v11 = vld [vmem:[%s6305_s25 + $0xb8] sm:$0xff]  }
0x10b1   : > { %v2671_v47 = vpop.xlane.xlu0 %2670 }
0x10b2   : > { %v2675_v48 = vmul.f32 0.03125, %v2671_v47  ;;  %v5899_v47 = vld [vmem:[%s6305_s25 + $0x88] sm:$0xff]  }
0x10b3   : > { %v2674_v49 = vpop.xlane.xlu1 %2673 }
0x10b4   : > { %v2677_v50 = vadd.f32 1e-05, %v2675_v48  ;;  %v2676_v51 = vmul.f32 0.03125, %v2674_v49  ;;  %v5900_v48 = vld [vmem:[%s6305_s25 + $0x50] sm:$0xff]  }
0x10b5   : > { %v5901_v49 = vld [vmem:[%s6305_s25 + $0xd0] sm:$0xff]  }
0x10b6   : > { %6052 = vrsqrt.f32 %v2677_v50  ;;  %v2678_v52 = vadd.f32 1e-05, %v2676_v51  ;;  %v5902_v50 = vld [vmem:[%s6305_s25 + $0x10] sm:$0xff]  }
0x10b7   : > { %v5903_v51 = vld [vmem:[%s6305_s25 + $0x90] sm:$0xff]  }
0x10b8   : > { %6054 = vrsqrt.f32 %v2678_v52  ;;  %v5904_v52 = vld [vmem:[%s6305_s25 + $0x58] sm:$0xff]  }
0x10c0   : > { %v6053_v53 = vpop.eup %6052 }
0x10c1   : > { %v2681_v55 = vmul.f32 %v6053_v53, %v2665_v18  ;;  %v2727_v18 = vld [vmem:[%s6299_s20 + $0xe0] sm:$0xff]  ;;  %v5905_v53 = vld [vmem:[%s6305_s25 + $0xd8] sm:$0xff]  }
0x10c2   : > { %v6055_v56 = vpop.eup %6054  ;;  %v5198_v25 = vcombine.high %v2719_v19, %v2727_v18  ;;  %v5197_v29 = vcombine.low %v2719_v19, %v2727_v18 }
0x10c3   : > { %v2689_v57 = vmul.f32 %v5171_v54, %v2681_v55  ;;  %v2682_v58 = vmul.f32 %v6055_v56, %v2666_v22  ;;  %v2728_v22 = vld [vmem:[%s6299_s20 + $0xe8] sm:$0xff]  ;;  %v5907_v55 = vld [vmem:[%s6305_s25 + $0x98] sm:$0xff]   ;;  %v5908_v56 = vld [vmem:[%s6305_s25 + $0x60] sm:$0xff]   ;;  %s6958_s20 = sld [smem:[#allocation13_spill]] }
0x10c4   : > { %v5200_v26 = vcombine.high %v2720_v20, %v2728_v22  ;;  %v5199_v30 = vcombine.low %v2720_v20, %v2728_v22 }
0x10c5   : > { %v2690_v60 = vmul.f32 %v5171_v54, %v2682_v58  ;;  %v6579_v1 = vadd.f32 %v5172_v59, %v2689_v57  ;;  %v5906_v54 = vld [vmem:[%s6305_s25 + $0x18] sm:$0xff]   ;;  %v5909_v57 = vld [vmem:[%s6305_s25 + $0xe0] sm:$0xff]  }
0x10c6   : > { %v5910_v58 = vld [vmem:[%s6305_s25 + $0x20] sm:$0xff]  }
0x10c7   : > { %v6581_v2 = vadd.f32 %v5172_v59, %v2690_v60  ;;  %v5911_v59 = vld [vmem:[%s6305_s25 + $0xa0] sm:$0xff]   ;;  %v5912_v60 = vld [vmem:[%s6305_s25 + $0x68] sm:$0xff]  }
0x10c9   : > { %v6585_v4 = vpack.c.bf16 %v6581_v2, %v6579_v1  ;;  %v6663_v18 = vld [vmem:[%s6958_s20 + $0x8] sm:$0xff] }
0x10cb   : > { %5205 = vmatmul.mubr.msk.bf16.vlgmr.msra.gmra.mrb[40].mxu1 %vm983_vm2, %v6585_v4  ;;  %5206 = vmatmul.mubr.msk.bf16.vlgmr.msra.gmra.mrb[44].mxu0 %vm983_vm2, %v6585_v4 }
0x10cc   : > { %3066 = vmatpush1.bf16.msra.mxu1 %v5177_v44  ;;  %3109 = vmatpush1.bf16.msra.mxu0 %v5179_v45  ;;  %v5895_v44 = vld [vmem:[%s6305_s25 + $0x80] sm:$0xff]   ;;  %v5896_v45 = vld [vmem:[%s6305_s25 + $0x48] sm:$0xff]  }
0x10cd   : > { %3067 = vmatprep.subr.bf16.mxu1 %v5194_v5  ;;  %3110 = vmatprep.subr.bf16.mxu0 %v5196_v6  ;;  %v5918_v5 = vld [vmem:[%s6305_s25 + $0x30] sm:$0xff]  }
0x10ce   : > { %3097 = vmatprep.mubr.bf16.mxu1 %v6108_v43  ;;  %3140 = vmatprep.mubr.bf16.mxu0 %v6108_v43  ;;  %v5919_v6 = vld [vmem:[%s6305_s25 + $0xb0] sm:$0xff]  }
0x10d0   : > { %3068 = vmatpush1.bf16.msra.mxu1 %v5193_v12  ;;  %3111 = vmatpush1.bf16.msra.mxu0 %v5195_v15  ;;  %v5924_v12 = vld [vmem:[%s6305_s25 + $0x140] sm:$0xff]  }
0x10d1   : > { %3151 = vmatprep.subr.bf16.mxu1 %v5182_v14  ;;  %3194 = vmatprep.subr.bf16.mxu0 %v5184_v17  ;;  %v5925_v15 = vld [vmem:[%s6305_s25 + $0x1c0] sm:$0xff]   ;;  %v2736_v14 = vlaneseq }
0x10d3   : > { %5207 = vmatmul.mubr.msk.bf16.vlgmr.msra.gmra.mrb[44].mxu1 %vm983_vm2, %v6585_v4  ;;  %5208 = vmatmul.mubr.msk.bf16.vlgmr.msra.gmra.mrb[48].mxu0 %vm983_vm2, %v6585_v4  ;;  %v6659_v17 = vshrl.u32 %v2736_v14, 7 }
0x10d4   : > { %3152 = vmatpush1.bf16.msra.mxu1 %v5181_v23  ;;  %3195 = vmatpush1.bf16.msra.mxu0 %v5183_v24  ;;  %v2732_v24 = vld [vmem:[%s6958_s20] sm:$0xff] }
0x10d5   : > { %3153 = vmatprep.subr.bf16.mxu1 %v5198_v25  ;;  %3196 = vmatprep.subr.bf16.mxu0 %v5200_v26  ;;  %v2762_v19 = vsub.s32 6, %v6659_v17  ;;  %v2738_v22 = vsub.s32 0, %v6659_v17  ;;  %v2746_v23 = vsub.s32 2, %v6659_v17  ;;  %v2742_v25 = vsub.s32 1, %v6659_v17 }
0x10d6   : > { %3183 = vmatprep.mubr.bf16.mxu1 %v6108_v43  ;;  %3226 = vmatprep.mubr.bf16.mxu0 %v6108_v43  ;;  %v2750_v26 = vsub.s32 3, %v6659_v17  ;;  %v2766_v32 = vsub.s32 7, %v6659_v17 }
0x10d7   : > { %v6666_v20 = vrot.slane %v6663_v18, %v2762_v19  ;;  %v2739_v27 = vrot.slane %v2732_v24, %v2738_v22  ;;  %v2747_v28 = vrot.slane %v2732_v24, %v2746_v23  ;;  %v2743_v13 = vrot.slane %v2732_v24, %v2742_v25 }
0x10d8   : > { %3154 = vmatpush1.bf16.msra.mxu1 %v5197_v29  ;;  %3197 = vmatpush1.bf16.msra.mxu0 %v5199_v30  ;;  %v2751_v16 = vrot.slane %v2732_v24, %v2750_v26  ;;  %v2754_v29 = vsub.s32 4, %v6659_v17 }
0x10d9   : > { %3237 = vmatprep.subr.bf16.mxu1 %v5186_v21  ;;  %3280 = vmatprep.subr.bf16.mxu0 %v5188_v31  ;;  %v2758_v31 = vsub.s32 5, %v6659_v17 }
0x10db   : > { %5209 = vmatmul.mubr.msk.bf16.vlgmr.msra.gmra.mrb[48].mxu1 %vm983_vm2, %v6585_v4  ;;  %5210 = vmatmul.mubr.msk.bf16.vlgmr.msra.gmra.mrb[52].mxu0 %vm983_vm2, %v6585_v4 }
0x10dc   : > { %3238 = vmatpush1.bf16.msra.mxu1 %v5185_v36  ;;  %3281 = vmatpush1.bf16.msra.mxu0 %v5187_v37 }
0x10dd   : > { %3239 = vmatprep.subr.bf16.mxu1 %v5202_v38  ;;  %3282 = vmatprep.subr.bf16.mxu0 %v5204_v9 }
0x10de   : > { %3269 = vmatprep.mubr.bf16.mxu1 %v6108_v43  ;;  %3312 = vmatprep.mubr.bf16.mxu0 %v6108_v43  ;;  %v5898_v43 = vld [vmem:[%s6305_s25 + $0x8] sm:$0xff]  }
0x10e0   : > { %3240 = vmatpush1.bf16.msra.mxu1 %v5201_v3  ;;  %3283 = vmatpush1.bf16.msra.mxu0 %v5203_v39 }
0x10e1   : > { %5433 = vmatprep.subr.bf16.mxu1 %v5892_v40  ;;  %5455 = vmatprep.subr.bf16.mxu0 %v5893_v41 }
0x10e3   : > { %5211 = vmatmul.mubr.msk.bf16.vlgmr.msra.gmra.mrb[52].mxu1 %vm983_vm2, %v6585_v4  ;;  %5212 = vmatmul.mubr.msk.bf16.vlgmr.msra.gmra.mrb[56].mxu0 %vm983_vm2, %v6585_v4  ;;  %v5917_v4 = vld [vmem:[%s6305_s25 + $0xf0] sm:$0xff]  }
0x10e4   : > { %5434 = vmatpush3.bf16.msra.mxu1 %v5894_v42  ;;  %5456 = vmatpush3.bf16.msra.mxu0 %v5895_v44  ;;  %v2755_v44 = vrot.slane %v2732_v24, %v2754_v29 }
0x10e5   : > { %5435 = vmatprep.subr.bf16.mxu1 %v5896_v45  ;;  %5457 = vmatprep.subr.bf16.mxu0 %v5897_v46  ;;  %v2763_v45 = vrot.slane %v2732_v24, %v2762_v19 }
0x10e8   : > { %5436 = vmatpush3.bf16.msra.mxu1 %v5898_v43  ;;  %5458 = vmatpush3.bf16.msra.mxu0 %v5899_v47  ;;  %v2759_v47 = vrot.slane %v2732_v24, %v2758_v31 }
0x10e9   : > { %5437 = vmatprep.subr.bf16.mxu1 %v5900_v48  ;;  %5459 = vmatprep.subr.bf16.mxu0 %v5901_v49  ;;  %v2767_v48 = vrot.slane %v2732_v24, %v2766_v32  ;;  %v2779_v24 = vrot.slane %v6663_v18, %v2746_v23  ;;  %v2783_v23 = vrot.slane %v6663_v18, %v2750_v26 }
0x10ec   : > { %5438 = vmatpush3.bf16.msra.mxu1 %v5902_v50  ;;  %5460 = vmatpush3.bf16.msra.mxu0 %v5903_v51 }
0x10ed   : > { %5439 = vmatprep.subr.bf16.mxu1 %v5904_v52  ;;  %5461 = vmatprep.subr.bf16.mxu0 %v5905_v53 }
0x10f0   : > { %5440 = vmatpush3.bf16.msra.mxu1 %v5906_v54  ;;  %5462 = vmatpush3.bf16.msra.mxu0 %v5907_v55 }
0x10f1   : > { %5441 = vmatprep.subr.bf16.mxu1 %v5908_v56  ;;  %5463 = vmatprep.subr.bf16.mxu0 %v5909_v57 }
0x10f4   : > { %5442 = vmatpush3.bf16.msra.mxu1 %v5910_v58  ;;  %5464 = vmatpush3.bf16.msra.mxu0 %v5911_v59 }
0x10f5   : > { %5443 = vmatprep.subr.bf16.mxu1 %v5912_v60  ;;  %5465 = vmatprep.subr.bf16.mxu0 %v5913_v61 }
0x10f8   : > { %5444 = vmatpush3.bf16.msra.mxu1 %v5914_v62  ;;  %5466 = vmatpush3.bf16.msra.mxu0 %v5915_v63  ;;  %v5926_v63 = vld [vmem:[%s6305_s25 + $0x100] sm:$0xff]  }
0x10f9   : > { %5445 = vmatprep.subr.bf16.mxu1 %v5916_v0  ;;  %5467 = vmatprep.subr.bf16.mxu0 %v5917_v4  ;;  %v5927_v0 = vld [vmem:[%s6305_s25 + $0x180] sm:$0xff]  }
0x10fc   : > { %5446 = vmatpush3.bf16.msra.mxu1 %v5918_v5  ;;  %5468 = vmatpush3.bf16.msra.mxu0 %v5919_v6 }
0x10fd   : > { %5447 = vmatprep.subr.bf16.mxu1 %v5920_v7  ;;  %5469 = vmatprep.subr.bf16.mxu0 %v5921_v8  ;;  %v5928_v8 = vld [vmem:[%s6305_s25 + $0x148] sm:$0xff]  }
0x1100   : > { %5448 = vmatpush3.bf16.msra.mxu1 %v5922_v10  ;;  %5470 = vmatpush3.bf16.msra.mxu0 %v5923_v11  ;;  %v5929_v10 = vld [vmem:[%s6305_s25 + $0x1c8] sm:$0xff]   ;;  %v2771_v11 = vrot.slane %v6663_v18, %v2738_v22  ;;  %v2775_v22 = vrot.slane %v6663_v18, %v2742_v25  ;;  %v5933_v25 = vld [vmem:[%s6305_s25 + $0x1d0] sm:$0xff]  }
0x1101   : > { %5477 = vmatprep.subr.bf16.mxu1 %v5924_v12  ;;  %5499 = vmatprep.subr.bf16.mxu0 %v5925_v15 }
0x119e   : > { %v3013_v30 = vpop.f32.mrb[40].mxu1  ;;  %v3056_v21 = vpop.f32.mrb[44].mxu0 }
0x119f   : > { %v3014_v33 = vadd.f32 %v3013_v30, %v2739_v27  ;;  %v3057_v34 = vadd.f32 %v3056_v21, %v2747_v28  ;;  %v3015_v35 = vpop.f32.mrb[41].mxu1  ;;  %v3058_v36 = vpop.f32.mrb[45].mxu0 }
0x11a0   : > { %v3016_v37 = vadd.f32 %v3015_v35, %v2743_v13  ;;  %v3059_v38 = vadd.f32 %v3058_v36, %v2751_v16  ;;  %v3017_v9 = vpop.f32.mrb[42].mxu1  ;;  %v3060_v3 = vpop.f32.mrb[46].mxu0 }
0x11a1   : > { %v3018_v39 = vadd.f32 %v3017_v9, %v2739_v27  ;;  %v3061_v40 = vadd.f32 %v3060_v3, %v2747_v28  ;;  %v3019_v41 = vpop.f32.mrb[43].mxu1  ;;  %v3062_v42 = vpop.f32.mrb[47].mxu0  ;;  %v3323_v49 = vmax.f32 %v3014_v33, 0.0  ;;  %v3325_v50 = vmax.f32 %v3057_v34, 0.0  ;;  %v5930_v33 = vld [vmem:[%s6305_s25 + $0x108] sm:$0xff]   ;;  %v5932_v9 = vld [vmem:[%s6305_s25 + $0x150] sm:$0xff]  }
0x11a2   : > { %v3020_v46 = vadd.f32 %v3019_v41, %v2743_v13  ;;  %v3063_v43 = vadd.f32 %v3062_v42, %v2751_v16  ;;  %v3324_v53 = vmax.f32 %v3016_v37, 0.0  ;;  %v3326_v54 = vmax.f32 %v3059_v38, 0.0  ;;  %v5931_v34 = vld [vmem:[%s6305_s25 + $0x188] sm:$0xff]  }
0x11a3   : > { %v3339_v51 = vmax.f32 %v3018_v39, 0.0  ;;  %v3341_v52 = vmax.f32 %v3061_v40, 0.0 }
0x11a4   : > { %v3340_v55 = vmax.f32 %v3020_v46, 0.0  ;;  %v3342_v56 = vmax.f32 %v3063_v43, 0.0 }
0x11a5   : > { %v3611_v57 = vpack.c.bf16 %v3339_v51, %v3323_v49  ;;  %v3613_v58 = vpack.c.bf16 %v3341_v52, %v3325_v50 }
0x11a6   : > { %v3612_v59 = vpack.c.bf16 %v3340_v55, %v3324_v53  ;;  %v3614_v60 = vpack.c.bf16 %v3342_v56, %v3326_v54  ;;  %v3099_v61 = vpop.f32.mrb[44].mxu1  ;;  %v3142_v62 = vpop.f32.mrb[48].mxu0  ;;  %v5936_v53 = vld [vmem:[%s6305_s25 + $0x158] sm:$0xff]  }
0x11a7   : > { %v3100_v4 = vadd.f32 %v3099_v61, %v2755_v44  ;;  %v3143_v5 = vadd.f32 %v3142_v62, %v2763_v45  ;;  %v3101_v6 = vpop.f32.mrb[45].mxu1  ;;  %v3144_v7 = vpop.f32.mrb[49].mxu0  ;;  %v5937_v54 = vld [vmem:[%s6305_s25 + $0x1d8] sm:$0xff]  }
0x11a8   : > { %v3102_v12 = vadd.f32 %v3101_v6, %v2759_v47  ;;  %v3145_v15 = vadd.f32 %v3144_v7, %v2767_v48  ;;  %v3103_v14 = vpop.f32.mrb[46].mxu1  ;;  %v3146_v19 = vpop.f32.mrb[50].mxu0  ;;  %4434 = vmatprep.mubr.bf16.mxu1 %v3612_v59  ;;  %4475 = vmatprep.mubr.bf16.mxu0 %v3614_v60  ;;  %v5938_v6 = vld [vmem:[%s6305_s25 + $0x118] sm:$0xff]  }
0x11a9   : > { %v3104_v27 = vadd.f32 %v3103_v14, %v2755_v44  ;;  %v3147_v28 = vadd.f32 %v3146_v19, %v2763_v45  ;;  %v3105_v13 = vpop.f32.mrb[47].mxu1  ;;  %v3148_v16 = vpop.f32.mrb[51].mxu0  ;;  %4435 = vmatmul.mubr.bf16.vlgmr.msra.gmra.mrb[56].mxu1 %v3611_v57  ;;  %4476 = vmatmul.mubr.bf16.vlgmr.msra.gmra.mrb[60].mxu0 %v3613_v58  ;;  %v3327_v35 = vmax.f32 %v3100_v4, 0.0  ;;  %v3329_v36 = vmax.f32 %v3143_v5, 0.0  ;;  %v5939_v7 = vld [vmem:[%s6305_s25 + $0x198] sm:$0xff]  }
0x11aa   : > { %v3106_v30 = vadd.f32 %v3105_v13, %v2759_v47  ;;  %v3149_v21 = vadd.f32 %v3148_v16, %v2767_v48  ;;  %5478 = vmatpush3.bf16.msra.mxu1 %v5926_v63  ;;  %5500 = vmatpush3.bf16.msra.mxu0 %v5927_v0  ;;  %v3328_v3 = vmax.f32 %v3102_v12, 0.0  ;;  %v3330_v39 = vmax.f32 %v3145_v15, 0.0  ;;  %v5934_v47 = vld [vmem:[%s6305_s25 + $0x110] sm:$0xff]  }
0x11ab   : > { %v3343_v37 = vmax.f32 %v3104_v27, 0.0  ;;  %v3345_v38 = vmax.f32 %v3147_v28, 0.0  ;;  %5479 = vmatprep.subr.bf16.mxu1 %v5928_v8  ;;  %5501 = vmatprep.subr.bf16.mxu0 %v5929_v10  ;;  %v5935_v48 = vld [vmem:[%s6305_s25 + $0x190] sm:$0xff]   ;;  %v2787_v63 = vrot.slane %v6663_v18, %v2754_v29  ;;  %v2791_v0 = vrot.slane %v6663_v18, %v2758_v31  ;;  %v5940_v29 = vld [vmem:[%s6305_s25 + $0x160] sm:$0xff]  }
0x11ac   : > { %v3344_v40 = vmax.f32 %v3106_v30, 0.0  ;;  %v3346_v41 = vmax.f32 %v3149_v21, 0.0  ;;  %v2799_v8 = vrot.slane %v6663_v18, %v2766_v32  ;;  %v5941_v31 = vld [vmem:[%s6305_s25 + $0x1e0] sm:$0xff]  }
0x11ad   : > { %v6702_v42 = vpack.c.bf16 %v3343_v37, %v3327_v35  ;;  %v6704_v44 = vpack.c.bf16 %v3345_v38, %v3329_v36  ;;  %v5943_v30 = vld [vmem:[%s6305_s25 + $0x1a0] sm:$0xff]   ;;  %v5944_v35 = vld [vmem:[%s6305_s25 + $0x168] sm:$0xff]  }
0x11ae   : > { %v3616_v26 = vpack.c.bf16 %v3344_v40, %v3328_v3  ;;  %v3618_v45 = vpack.c.bf16 %v3346_v41, %v3330_v39  ;;  %5480 = vmatpush3.bf16.msra.mxu1 %v5930_v33  ;;  %5502 = vmatpush3.bf16.msra.mxu0 %v5931_v34  ;;  %v3185_v46 = vpop.f32.mrb[48].mxu1  ;;  %v3228_v43 = vpop.f32.mrb[52].mxu0  ;;  %v5945_v36 = vld [vmem:[%s6305_s25 + $0x1e8] sm:$0xff]  }
0x11af   : > { %v3186_v49 = vadd.f32 %v3185_v46, %v2771_v11  ;;  %v3229_v50 = vadd.f32 %v3228_v43, %v2779_v24  ;;  %v3187_v51 = vpop.f32.mrb[49].mxu1  ;;  %v3230_v52 = vpop.f32.mrb[53].mxu0  ;;  %5481 = vmatprep.subr.bf16.mxu1 %v5932_v9  ;;  %5503 = vmatprep.subr.bf16.mxu0 %v5933_v25  ;;  %v5946_v46 = vld [vmem:[%s6305_s25 + $0x128] sm:$0xff]  }
0x11b0   : > { %v3188_v55 = vadd.f32 %v3187_v51, %v2775_v22  ;;  %v3231_v56 = vadd.f32 %v3230_v52, %v2783_v23  ;;  %v3189_v57 = vpop.f32.mrb[50].mxu1  ;;  %v3232_v58 = vpop.f32.mrb[54].mxu0  ;;  %4516 = vmatprep.mubr.bf16.mxu1 %v3616_v26  ;;  %4557 = vmatprep.mubr.bf16.mxu0 %v3618_v45  ;;  %v5947_v43 = vld [vmem:[%s6305_s25 + $0x1a8] sm:$0xff]   ;;  %v5948_v51 = vld [vmem:[%s6305_s25 + $0x170] sm:$0xff]  }
0x11b1   : > { %v3190_v59 = vadd.f32 %v3189_v57, %v2771_v11  ;;  %v3233_v60 = vadd.f32 %v3232_v58, %v2779_v24  ;;  %v3191_v61 = vpop.f32.mrb[51].mxu1  ;;  %v3234_v62 = vpop.f32.mrb[55].mxu0  ;;  %v3331_v10 = vmax.f32 %v3186_v49, 0.0  ;;  %v3333_v11 = vmax.f32 %v3229_v50, 0.0 }
0x11b2   : > { %v3192_v4 = vadd.f32 %v3191_v61, %v2775_v22  ;;  %v3235_v5 = vadd.f32 %v3234_v62, %v2783_v23  ;;  %5482 = vmatpush3.bf16.msra.mxu1 %v5934_v47  ;;  %5504 = vmatpush3.bf16.msra.mxu0 %v5935_v48  ;;  %v3332_v14 = vmax.f32 %v3188_v55, 0.0  ;;  %v3334_v19 = vmax.f32 %v3231_v56, 0.0  ;;  %v5942_v22 = vld [vmem:[%s6305_s25 + $0x120] sm:$0xff]   ;;  %v5951_v61 = vld [vmem:[%s6305_s25 + $0x1b0] sm:$0xff]   ;;  %v5952_v62 = vld [vmem:[%s6305_s25 + $0x178] sm:$0xff]  }
0x11b3   : > { %v3347_v12 = vmax.f32 %v3190_v59, 0.0  ;;  %v3349_v15 = vmax.f32 %v3233_v60, 0.0  ;;  %5483 = vmatprep.subr.bf16.mxu1 %v5936_v53  ;;  %5505 = vmatprep.subr.bf16.mxu0 %v5937_v54  ;;  %v5950_v60 = vld [vmem:[%s6305_s25 + $0x130] sm:$0xff]  }
0x11b4   : > { %v3348_v24 = vmax.f32 %v3192_v4, 0.0  ;;  %v3350_v27 = vmax.f32 %v3235_v5, 0.0  ;;  %v5955_v4 = vld [vmem:[%s6305_s25 + $0x1b8] sm:$0xff]   ;;  %v5956_v5 = vld [vmem:[%s6305_s25 + $0x240] sm:$0xff]  }
0x11b5   : > { %v6723_v28 = vpack.c.bf16 %v3347_v12, %v3331_v10  ;;  %v6725_v17 = vpack.c.bf16 %v3349_v15, %v3333_v11  ;;  %v5960_v10 = vld [vmem:[%s6305_s25 + $0x248] sm:$0xff]  }
0x11b6   : > { %v6727_v18 = vpack.c.bf16 %v3348_v24, %v3332_v14  ;;  %v6729_v32 = vpack.c.bf16 %v3350_v27, %v3334_v19  ;;  %5484 = vmatpush3.bf16.msra.mxu1 %v5938_v6  ;;  %5506 = vmatpush3.bf16.msra.mxu0 %v5939_v7  ;;  %v3271_v13 = vpop.f32.mrb[52].mxu1  ;;  %v3314_v16 = vpop.f32.mrb[56].mxu0  ;;  %v5957_v6 = vld [vmem:[%s6305_s25 + $0x2c0] sm:$0xff]   ;;  %v5961_v11 = vld [vmem:[%s6305_s25 + $0x2c8] sm:$0xff]   ;;  %v5968_v14 = vld [vmem:[%s6305_s25 + $0x258] sm:$0xff]  }
0x11b7   : > { %v3272_v21 = vadd.f32 %v3271_v13, %v2787_v63  ;;  %v3315_v33 = vadd.f32 %v3314_v16, %v6666_v20  ;;  %v3273_v34 = vpop.f32.mrb[53].mxu1  ;;  %v3316_v23 = vpop.f32.mrb[57].mxu0  ;;  %5485 = vmatprep.subr.bf16.mxu1 %v5940_v29  ;;  %5507 = vmatprep.subr.bf16.mxu0 %v5941_v31  ;;  %v5958_v7 = vld [vmem:[%s6305_s25 + $0x200] sm:$0xff]   ;;  %v5962_v12 = vld [vmem:[%s6305_s25 + $0x208] sm:$0xff]   ;;  %v5964_v29 = vld [vmem:[%s6305_s25 + $0x250] sm:$0xff]  }
0x11b8   : > { %v3274_v37 = vadd.f32 %v3273_v34, %v2791_v0  ;;  %v3317_v38 = vadd.f32 %v3316_v23, %v2799_v8  ;;  %v3275_v9 = vpop.f32.mrb[54].mxu1  ;;  %v3318_v25 = vpop.f32.mrb[58].mxu0  ;;  %v5963_v15 = vld [vmem:[%s6305_s25 + $0x288] sm:$0xff]   ;;  %v5967_v31 = vld [vmem:[%s6305_s25 + $0x290] sm:$0xff]   ;;  %v5969_v19 = vld [vmem:[%s6305_s25 + $0x2d8] sm:$0xff]  }
0x11b9   : > { %v3276_v3 = vadd.f32 %v3275_v9, %v2787_v63  ;;  %v3319_v39 = vadd.f32 %v3318_v25, %v6666_v20  ;;  %v3277_v40 = vpop.f32.mrb[55].mxu1  ;;  %v3320_v41 = vpop.f32.mrb[59].mxu0  ;;  %v3335_v47 = vmax.f32 %v3272_v21, 0.0  ;;  %v3337_v48 = vmax.f32 %v3315_v33, 0.0  ;;  %v5949_v20 = vld [vmem:[%s6305_s25 + $0x1f0] sm:$0xff]   ;;  %v5953_v63 = vld [vmem:[%s6305_s25 + $0x1f8] sm:$0xff]  }
0x11ba   : > { %v3278_v26 = vadd.f32 %v3277_v40, %v2791_v0  ;;  %v3321_v45 = vadd.f32 %v3320_v41, %v2799_v8  ;;  %5486 = vmatpush3.bf16.msra.mxu1 %v5942_v22  ;;  %5508 = vmatpush3.bf16.msra.mxu0 %v5943_v30  ;;  %v3336_v52 = vmax.f32 %v3274_v37, 0.0  ;;  %v3338_v53 = vmax.f32 %v3317_v38, 0.0  ;;  %v5954_v0 = vld [vmem:[%s6305_s25 + $0x138] sm:$0xff]   ;;  %v5959_v8 = vld [vmem:[%s6305_s25 + $0x280] sm:$0xff]   ;;  %v5976_v22 = vld [vmem:[%s6305_s25 + $0x268] sm:$0xff]  }
0x11bb   : > { %v3351_v49 = vmax.f32 %v3276_v3, 0.0  ;;  %v3353_v50 = vmax.f32 %v3319_v39, 0.0  ;;  %5487 = vmatprep.subr.bf16.mxu1 %v5944_v35  ;;  %5509 = vmatprep.subr.bf16.mxu0 %v5945_v36  ;;  %v5970_v24 = vld [vmem:[%s6305_s25 + $0x218] sm:$0xff]   ;;  %v5974_v13 = vld [vmem:[%s6305_s25 + $0x220] sm:$0xff]   ;;  %v5977_v30 = vld [vmem:[%s6305_s25 + $0x2e8] sm:$0xff]  }
0x11bc   : > { %v3352_v54 = vmax.f32 %v3278_v26, 0.0  ;;  %v3354_v55 = vmax.f32 %v3321_v45, 0.0  ;;  %v5971_v27 = vld [vmem:[%s6305_s25 + $0x298] sm:$0xff]   ;;  %v5975_v16 = vld [vmem:[%s6305_s25 + $0x2a0] sm:$0xff]   ;;  %v5978_v21 = vld [vmem:[%s6305_s25 + $0x228] sm:$0xff]  }
0x11bd   : > { %v6741_v56 = vpack.c.bf16 %v3351_v49, %v3335_v47  ;;  %v6743_v57 = vpack.c.bf16 %v3353_v50, %v3337_v48  ;;  %v5979_v33 = vld [vmem:[%s6305_s25 + $0x2a8] sm:$0xff]   ;;  %v5980_v34 = vld [vmem:[%s6305_s25 + $0x270] sm:$0xff]   ;;  %v5984_v37 = vld [vmem:[%s6305_s25 + $0x278] sm:$0xff]  }
0x11be   : > { %v6745_v58 = vpack.c.bf16 %v3352_v54, %v3336_v52  ;;  %v6747_v59 = vpack.c.bf16 %v3354_v55, %v3338_v53  ;;  %5488 = vmatpush3.bf16.msra.mxu1 %v5946_v46  ;;  %5510 = vmatpush3.bf16.msra.mxu0 %v5947_v43  ;;  %v5981_v23 = vld [vmem:[%s6305_s25 + $0x2f0] sm:$0xff]   ;;  %v5985_v38 = vld [vmem:[%s6305_s25 + $0x2f8] sm:$0xff]   ;;  %v5988_v3 = vld [vmem:[%s6305_s25 + $0x340] sm:$0xff]  }
0x11bf   : > { %5489 = vmatprep.subr.bf16.mxu1 %v5948_v51  ;;  %5511 = vmatprep.subr.bf16.mxu0 %v5949_v20  ;;  %v5982_v35 = vld [vmem:[%s6305_s25 + $0x230] sm:$0xff]   ;;  %v5986_v9 = vld [vmem:[%s6305_s25 + $0x238] sm:$0xff]   ;;  %v5989_v39 = vld [vmem:[%s6305_s25 + $0x3c0] sm:$0xff]  }
0x11c0   : > { %v5983_v36 = vld [vmem:[%s6305_s25 + $0x2b0] sm:$0xff]   ;;  %v5987_v25 = vld [vmem:[%s6305_s25 + $0x2b8] sm:$0xff]   ;;  %v5990_v40 = vld [vmem:[%s6305_s25 + $0x300] sm:$0xff]  }
0x11c1   : > { %v5991_v41 = vld [vmem:[%s6305_s25 + $0x380] sm:$0xff]   ;;  %v5992_v26 = vld [vmem:[%s6305_s25 + $0x348] sm:$0xff]   ;;  %v5996_v47 = vld [vmem:[%s6305_s25 + $0x350] sm:$0xff]  }
0x11c2   : > { %5490 = vmatpush3.bf16.msra.mxu1 %v5950_v60  ;;  %5512 = vmatpush3.bf16.msra.mxu0 %v5951_v61  ;;  %v5993_v45 = vld [vmem:[%s6305_s25 + $0x3c8] sm:$0xff]   ;;  %v5999_v48 = vld [vmem:[%s6305_s25 + $0x390] sm:$0xff]   ;;  %v6000_v49 = vld [vmem:[%s6305_s25 + $0x358] sm:$0xff]  }
0x11c3   : > { %5491 = vmatprep.subr.bf16.mxu1 %v5952_v62  ;;  %5513 = vmatprep.subr.bf16.mxu0 %v5953_v63  ;;  %v5994_v46 = vld [vmem:[%s6305_s25 + $0x308] sm:$0xff]   ;;  %v6001_v50 = vld [vmem:[%s6305_s25 + $0x3d8] sm:$0xff]   ;;  %v6004_v52 = vld [vmem:[%s6305_s25 + $0x360] sm:$0xff]  }
0x11c4   : > { %v5995_v43 = vld [vmem:[%s6305_s25 + $0x388] sm:$0xff]   ;;  %v6002_v51 = vld [vmem:[%s6305_s25 + $0x318] sm:$0xff]   ;;  %v6005_v53 = vld [vmem:[%s6305_s25 + $0x3e0] sm:$0xff]  }
0x11c5   : > { %v6003_v20 = vld [vmem:[%s6305_s25 + $0x398] sm:$0xff]   ;;  %v6006_v54 = vld [vmem:[%s6305_s25 + $0x320] sm:$0xff]   ;;  %v6010_v60 = vld [vmem:[%s6305_s25 + $0x328] sm:$0xff]  }
0x11c6   : > { %5492 = vmatpush3.bf16.msra.mxu1 %v5954_v0  ;;  %5514 = vmatpush3.bf16.msra.mxu0 %v5955_v4  ;;  %v6007_v55 = vld [vmem:[%s6305_s25 + $0x3a0] sm:$0xff]   ;;  %v6011_v61 = vld [vmem:[%s6305_s25 + $0x3a8] sm:$0xff]   ;;  %v6012_v62 = vld [vmem:[%s6305_s25 + $0x370] sm:$0xff]  }
0x11c7   : > { %5521 = vmatprep.subr.bf16.mxu1 %v5956_v5  ;;  %5543 = vmatprep.subr.bf16.mxu0 %v5957_v6  ;;  %v6013_v63 = vld [vmem:[%s6305_s25 + $0x3f0] sm:$0xff]   ;;  %v6016_v5 = vld [vmem:[%s6305_s25 + $0x378] sm:$0xff]  }
0x11c8   : > { %v6014_v0 = vld [vmem:[%s6305_s25 + $0x330] sm:$0xff]   ;;  %v6017_v6 = vld [vmem:[%s6305_s25 + $0x3f8] sm:$0xff]  }
0x11c9   : > { %4517 = vmatmul.mubr.bf16.vlgmr.msra.gmra.mrb[60].mxu1 %v6702_v42  ;;  %4558 = vmatmul.mubr.bf16.vlgmr.msra.gmra.mrb[64].mxu0 %v6704_v44  ;;  %v5965_v42 = vld [vmem:[%s6305_s25 + $0x2d0] sm:$0xff]  }
0x11ca   : > { %5522 = vmatpush3.bf16.msra.mxu1 %v5958_v7  ;;  %4598 = vmatprep.mubr.bf16.mxu1 %v6727_v18  ;;  %v5966_v44 = vld [vmem:[%s6305_s25 + $0x210] sm:$0xff]   ;;  %v5972_v18 = vld [vmem:[%s6305_s25 + $0x260] sm:$0xff]   ;;  %v6018_v7 = vld [vmem:[%s6305_s25 + $0x338] sm:$0xff]  }
0x11cb   : > { %5544 = vmatpush3.bf16.msra.mxu0 %v5959_v8  ;;  %4639 = vmatprep.mubr.bf16.mxu0 %v6729_v32  ;;  %v5973_v32 = vld [vmem:[%s6305_s25 + $0x2e0] sm:$0xff]   ;;  %v6015_v4 = vld [vmem:[%s6305_s25 + $0x3b0] sm:$0xff]   ;;  %v6019_v8 = vld [vmem:[%s6305_s25 + $0x3b8] sm:$0xff]  }
0x11cc   : > { %5523 = vmatprep.subr.bf16.mxu1 %v5960_v10  ;;  %5545 = vmatprep.subr.bf16.mxu0 %v5961_v11 }
0x11ce   : > { %5524 = vmatpush3.bf16.msra.mxu1 %v5962_v12  ;;  %v5213_v12 = vld [vmem:[%s6959_s2] ss:$0 sm:$0xff] }
0x11cf   : > { %5546 = vmatpush3.bf16.msra.mxu0 %v5963_v15  ;;  %5525 = vmatprep.subr.bf16.mxu1 %v5964_v29 }
0x11d0   : > { %5547 = vmatprep.subr.bf16.mxu0 %v5965_v42 }
0x11d2   : > { %5526 = vmatpush3.bf16.msra.mxu1 %v5966_v44 }
0x11d3   : > { %5548 = vmatpush3.bf16.msra.mxu0 %v5967_v31  ;;  %5527 = vmatprep.subr.bf16.mxu1 %v5968_v14 }
0x11d4   : > { %5549 = vmatprep.subr.bf16.mxu0 %v5969_v19 }
0x11d6   : > { %5528 = vmatpush3.bf16.msra.mxu1 %v5970_v24 }
0x11d7   : > { %5550 = vmatpush3.bf16.msra.mxu0 %v5971_v27  ;;  %5529 = vmatprep.subr.bf16.mxu1 %v5972_v18 }
0x11d8   : > { %5551 = vmatprep.subr.bf16.mxu0 %v5973_v32 }
0x11da   : > { %5530 = vmatpush3.bf16.msra.mxu1 %v5974_v13 }
0x11db   : > { %5552 = vmatpush3.bf16.msra.mxu0 %v5975_v16  ;;  %5531 = vmatprep.subr.bf16.mxu1 %v5976_v22 }
0x11dc   : > { %5553 = vmatprep.subr.bf16.mxu0 %v5977_v30 }
0x11de   : > { %5532 = vmatpush3.bf16.msra.mxu1 %v5978_v21 }
0x11df   : > { %5554 = vmatpush3.bf16.msra.mxu0 %v5979_v33  ;;  %5533 = vmatprep.subr.bf16.mxu1 %v5980_v34 }
0x11e0   : > { %5555 = vmatprep.subr.bf16.mxu0 %v5981_v23 }
0x11e2   : > { %5534 = vmatpush3.bf16.msra.mxu1 %v5982_v35 }
0x11e3   : > { %5556 = vmatpush3.bf16.msra.mxu0 %v5983_v36  ;;  %5535 = vmatprep.subr.bf16.mxu1 %v5984_v37 }
0x11e4   : > { %5557 = vmatprep.subr.bf16.mxu0 %v5985_v38 }
0x11e6   : > { %5536 = vmatpush3.bf16.msra.mxu1 %v5986_v9 }
0x11e7   : > { %5558 = vmatpush3.bf16.msra.mxu0 %v5987_v25  ;;  %5565 = vmatprep.subr.bf16.mxu1 %v5988_v3 }
0x11e8   : > { %5587 = vmatprep.subr.bf16.mxu0 %v5989_v39 }
0x11e9   : > { %4599 = vmatmul.mubr.bf16.vlgmr.msra.gmra.mrb[64].mxu1 %v6723_v28  ;;  %v5997_v28 = vld [vmem:[%s6305_s25 + $0x3d0] sm:$0xff]  }
0x11ea   : > { %4640 = vmatmul.mubr.bf16.vlgmr.msra.gmra.mrb[68].mxu0 %v6725_v17  ;;  %5566 = vmatpush3.bf16.msra.mxu1 %v5990_v40  ;;  %v5998_v17 = vld [vmem:[%s6305_s25 + $0x310] sm:$0xff]  }
0x11eb   : > { %4680 = vmatprep.mubr.bf16.mxu1 %v6745_v58  ;;  %5588 = vmatpush3.bf16.msra.mxu0 %v5991_v41  ;;  %v6008_v58 = vld [vmem:[%s6305_s25 + $0x368] sm:$0xff]  }
0x11ec   : > { %4721 = vmatprep.mubr.bf16.mxu0 %v6747_v59  ;;  %5567 = vmatprep.subr.bf16.mxu1 %v5992_v26  ;;  %v6009_v59 = vld [vmem:[%s6305_s25 + $0x3e8] sm:$0xff]  }
0x11ed   : > { %5589 = vmatprep.subr.bf16.mxu0 %v5993_v45 }
0x11ee   : > { %5568 = vmatpush3.bf16.msra.mxu1 %v5994_v46 }
0x11ef   : > { %5590 = vmatpush3.bf16.msra.mxu0 %v5995_v43  ;;  %5569 = vmatprep.subr.bf16.mxu1 %v5996_v47 }
0x11f0   : > { %5591 = vmatprep.subr.bf16.mxu0 %v5997_v28 }
0x11f2   : > { %5570 = vmatpush3.bf16.msra.mxu1 %v5998_v17 }
0x11f3   : > { %5592 = vmatpush3.bf16.msra.mxu0 %v5999_v48  ;;  %5571 = vmatprep.subr.bf16.mxu1 %v6000_v49 }
0x11f4   : > { %5593 = vmatprep.subr.bf16.mxu0 %v6001_v50 }
0x11f6   : > { %5572 = vmatpush3.bf16.msra.mxu1 %v6002_v51 }
0x11f7   : > { %5594 = vmatpush3.bf16.msra.mxu0 %v6003_v20  ;;  %5573 = vmatprep.subr.bf16.mxu1 %v6004_v52 }
0x11f8   : > { %5595 = vmatprep.subr.bf16.mxu0 %v6005_v53 }
0x11fa   : > { %5574 = vmatpush3.bf16.msra.mxu1 %v6006_v54 }
0x11fb   : > { %5596 = vmatpush3.bf16.msra.mxu0 %v6007_v55  ;;  %5575 = vmatprep.subr.bf16.mxu1 %v6008_v58 }
0x11fc   : > { %5597 = vmatprep.subr.bf16.mxu0 %v6009_v59 }
0x11fe   : > { %5576 = vmatpush3.bf16.msra.mxu1 %v6010_v60 }
0x11ff   : > { %5598 = vmatpush3.bf16.msra.mxu0 %v6011_v61  ;;  %5577 = vmatprep.subr.bf16.mxu1 %v6012_v62 }
0x1200   : > { %5599 = vmatprep.subr.bf16.mxu0 %v6013_v63 }
0x1202   : > { %5578 = vmatpush3.bf16.msra.mxu1 %v6014_v0 }
0x1203   : > { %5600 = vmatpush3.bf16.msra.mxu0 %v6015_v4  ;;  %5579 = vmatprep.subr.bf16.mxu1 %v6016_v5 }
0x1204   : > { %5601 = vmatprep.subr.bf16.mxu0 %v6017_v6 }
0x1206   : > { %5580 = vmatpush3.bf16.msra.mxu1 %v6018_v7 }
0x1207   : > { %5602 = vmatpush3.bf16.msra.mxu0 %v6019_v8 }
0x1209   : > { %4681 = vmatmul.mubr.bf16.vlgmr.msra.gmra.mrb[68].mxu1 %v6741_v56 }
0x120a   : > { %4722 = vmatmul.mubr.bf16.vlgmr.msra.gmra.mrb[72].mxu0 %v6743_v57 }
0x127c   : > { %v5449_v10 = vpop.f32.mrb[56].mxu1  ;;  %v5471_v11 = vpop.f32.mrb[60].mxu0 }
0x127d   : > { %v5450_v15 = vpop.f32.mrb[57].mxu1  ;;  %v5472_v29 = vpop.f32.mrb[61].mxu0 }
0x127e   : > { %v5451_v42 = vadd.f32 %v5450_v15, %v5449_v10  ;;  %v5473_v44 = vadd.f32 %v5472_v29, %v5471_v11  ;;  %v5452_v31 = vpop.f32.mrb[58].mxu1  ;;  %v5474_v14 = vpop.f32.mrb[62].mxu0 }
0x127f   : > { %v5453_v19 = vpop.f32.mrb[59].mxu1  ;;  %v5475_v24 = vpop.f32.mrb[63].mxu0 }
0x1280   : > { %v4437_v27 = vadd.f32 %v5451_v42, %v5213_v12  ;;  %v5454_v18 = vadd.f32 %v5453_v19, %v5452_v31  ;;  %v5476_v56 = vadd.f32 %v5475_v24, %v5474_v14 }
0x1282   : > { %v4478_v32 = vadd.f32 %v5473_v44, %v4437_v27  ;;  %v4440_v57 = vadd.f32 %v5454_v18, %v5213_v12 }
0x1284   : > { %v4481_v13 = vadd.f32 %v5476_v56, %v4440_v57 }
0x129c   : > { %v5493_v16 = vpop.f32.mrb[60].mxu1  ;;  %v5515_v22 = vpop.f32.mrb[64].mxu0 }
0x129d   : > { %v5494_v30 = vpop.f32.mrb[61].mxu1  ;;  %v5516_v21 = vpop.f32.mrb[65].mxu0 }
0x129e   : > { %v5495_v33 = vadd.f32 %v5494_v30, %v5493_v16  ;;  %v5517_v34 = vadd.f32 %v5516_v21, %v5515_v22  ;;  %v5496_v23 = vpop.f32.mrb[62].mxu1  ;;  %v5518_v35 = vpop.f32.mrb[66].mxu0 }
0x129f   : > { %v5497_v36 = vpop.f32.mrb[63].mxu1  ;;  %v5519_v37 = vpop.f32.mrb[67].mxu0 }
0x12a0   : > { %v4519_v38 = vadd.f32 %v5495_v33, %v4478_v32  ;;  %v5498_v9 = vadd.f32 %v5497_v36, %v5496_v23  ;;  %v5520_v25 = vadd.f32 %v5519_v37, %v5518_v35  ;;  %v5343_v36 = vld [vmem:[%s881_s30] ss:$0 sm:$0xff]  ;;  %s6962_s30 = sld [smem:[#allocation26_spill]] (!%p5344_p8) }
0x12a2   : > { %v4560_v3 = vadd.f32 %v5517_v34, %v4519_v38  ;;  %v4522_v39 = vadd.f32 %v5498_v9, %v4481_v13  ;;  %v5342_v34 = vld [vmem:[%s878_s9] ss:$0 sm:$0xff] }
0x12a4   : > { %v4563_v40 = vadd.f32 %v5520_v25, %v4522_v39 }
0x12bc   : > { %v5537_v41 = vpop.f32.mrb[64].mxu1 }
0x12bd   : > { %v5559_v26 = vpop.f32.mrb[68].mxu0  ;;  %v5538_v45 = vpop.f32.mrb[65].mxu1 }
0x12be   : > { %v5539_v46 = vadd.f32 %v5538_v45, %v5537_v41  ;;  %v5560_v43 = vpop.f32.mrb[69].mxu0  ;;  %v5540_v47 = vpop.f32.mrb[66].mxu1 }
0x12bf   : > { %v5561_v28 = vadd.f32 %v5560_v43, %v5559_v26  ;;  %v5562_v17 = vpop.f32.mrb[70].mxu0  ;;  %v5541_v48 = vpop.f32.mrb[67].mxu1 }
0x12c0   : > { %v4601_v49 = vadd.f32 %v5539_v46, %v4560_v3  ;;  %v5542_v50 = vadd.f32 %v5541_v48, %v5540_v47  ;;  %v5563_v51 = vpop.f32.mrb[71].mxu0 }
0x12c1   : > { %v5564_v20 = vadd.f32 %v5563_v51, %v5562_v17 }
0x12c2   : > { %v4642_v52 = vadd.f32 %v5561_v28, %v4601_v49  ;;  %v4604_v53 = vadd.f32 %v5542_v50, %v4563_v40 }
0x12c4   : > { %v4645_v54 = vadd.f32 %v5564_v20, %v4604_v53 }
0x12dc   : > { %v5581_v55 = vpop.f32.mrb[68].mxu1 }
0x12dd   : > { %v5603_v58 = vpop.f32.mrb[72].mxu0  ;;  %v5582_v59 = vpop.f32.mrb[69].mxu1 }
0x12de   : > { %v5583_v60 = vadd.f32 %v5582_v59, %v5581_v55  ;;  %v5604_v61 = vpop.f32.mrb[73].mxu0  ;;  %v5584_v62 = vpop.f32.mrb[70].mxu1 }
0x12df   : > { %v5605_v63 = vadd.f32 %v5604_v61, %v5603_v58  ;;  %v5606_v0 = vpop.f32.mrb[74].mxu0  ;;  %v5585_v4 = vpop.f32.mrb[71].mxu1  ;;  %v5345_v58 = vld [vmem:[%s6962_s30] ss:$0 sm:$0xff] (!%p5344_p8) }
0x12e0   : > { %v4683_v5 = vadd.f32 %v5583_v60, %v4642_v52  ;;  %v5586_v6 = vadd.f32 %v5585_v4, %v5584_v62  ;;  %v5607_v7 = vpop.f32.mrb[75].mxu0  ;;  %v5346_v60 = vld [vmem:[%s6963_s7] ss:$0 sm:$0xff] (!%p5344_p8) }
0x12e1   : > { %v5608_v8 = vadd.f32 %v5607_v7, %v5606_v0 }
0x12e2   : > { %v4724_v10 = vadd.f32 %v5605_v63, %v4683_v5  ;;  %v4686_v11 = vadd.f32 %v5586_v6, %v4645_v54 }
0x12e4   : > { %v4727_v12 = vadd.f32 %v5608_v8, %v4686_v11  ;;  %v4730_v15 = vadd.f32 %v4724_v10, %v6579_v1 }
0x12e6   : > { %v4734_v29 = vsel %vm983_vm2, %v4730_v15, 0.0  ;;  %v4731_v42 = vadd.f32 %v4727_v12, %v6581_v2 }
0x12e7   : > { %4735 = vadd.xlane.f32.xlu0 %v4734_v29 }
0x12e8   : > { %v4737_v44 = vsel %vm983_vm2, %v4731_v42, 0.0 }
0x12e9   : > { %4738 = vadd.xlane.f32.xlu1 %v4737_v44 }
0x1374   : > { %v4736_v31 = vpop.xlane.xlu0 %4735 }
0x1375   : > { %v4740_v14 = vmul.f32 0.03125, %v4736_v31 }
0x1376   : > { %v4739_v19 = vpop.xlane.xlu1 %4738 }
0x1377   : > { %v4742_v24 = vsub.f32 %v4730_v15, %v4740_v14  ;;  %v4741_v27 = vmul.f32 0.03125, %v4739_v19 }
0x1379   : > { %v4743_v18 = vsub.f32 %v4731_v42, %v4741_v27  ;;  %v4744_v56 = vmul.f32 %v4742_v24, %v4742_v24 }
0x137b   : > { %v4746_v32 = vsel %vm983_vm2, %v4744_v56, 0.0  ;;  %v4745_v57 = vmul.f32 %v4743_v18, %v4743_v18 }
0x137c   : > { %4747 = vadd.xlane.f32.xlu0 %v4746_v32 }
0x137d   : > { %v4749_v1 = vsel %vm983_vm2, %v4745_v57, 0.0 }
0x137e   : > { %4750 = vadd.xlane.f32.xlu1 %v4749_v1 }
0x1409   : > { %v4748_v2 = vpop.xlane.xlu0 %4747 }
0x140a   : > { %v4752_v13 = vmul.f32 0.03125, %v4748_v2 }
0x140b   : > { %v4751_v16 = vpop.xlane.xlu1 %4750 }
0x140c   : > { %v4754_v22 = vadd.f32 1e-05, %v4752_v13  ;;  %v4753_v30 = vmul.f32 0.03125, %v4751_v16 }
0x140e   : > { %6056 = vrsqrt.f32 %v4754_v22  ;;  %v4755_v21 = vadd.f32 1e-05, %v4753_v30 }
0x1410   : > { %6058 = vrsqrt.f32 %v4755_v21 }
0x1418   : > { %v6057_v33 = vpop.eup %6056 }
0x1419   : > { %v4758_v23 = vmul.f32 %v6057_v33, %v4742_v24 }
0x141a   : > { %v6059_v35 = vpop.eup %6058 }
0x141b   : > { %v4766_v37 = vmul.f32 %v5342_v34, %v4758_v23  ;;  %v4759_v38 = vmul.f32 %v6059_v35, %v4743_v18  ;;  %4781 = sbr.rel (%p5344_p8) target bundleno = 5469 (0x155d), region = 104 }
0x141d   : > { %v4774_v9 = vadd.f32 %v5343_v36, %v4766_v37  ;;  %v4767_v25 = vmul.f32 %v5342_v34, %v4759_v38 }
0x141f   : > { %4776 = vst.msk [vmem:[#allocation2] sm:$0xff] %vm983_vm2, %v4774_v9  ;;  %v4775_v3 = vadd.f32 %v5343_v36, %v4767_v25  ;;  %v4784_v39 = vsel (!%p5344_p8), %vm983_vm2, %v4774_v9, 0.0 }
0x1420   : > { %4785 = vadd.xlane.f32.xlu0 (!%p5344_p8), %v4784_v39 }
0x1421   : > { %4777 = vst.msk [vmem:[#allocation2 + $0x8] sm:$0xff] %vm983_vm2, %v4775_v3  ;;  %v4787_v40 = vsel (!%p5344_p8), %vm983_vm2, %v4775_v3, 0.0 }
0x1424   : > { %4788 = vadd.xlane.f32.xlu0 %v4787_v40 }
0x14ad   : > { %v4786_v41 = vpop.xlane.xlu0 %4785 }
0x14ae   : > { %v4790_v26 = vmul.f32 0.03125, %v4786_v41 }
0x14b0   : > { %v4792_v45 = vsub.f32 %v4774_v9, %v4790_v26 }
0x14b1   : > { %v4789_v46 = vpop.xlane.xlu0 %4788 }
0x14b2   : > { %v4791_v43 = vmul.f32 0.03125, %v4789_v46  ;;  %v4794_v47 = vmul.f32 %v4792_v45, %v4792_v45 }
0x14b4   : > { %v4793_v28 = vsub.f32 %v4775_v3, %v4791_v43  ;;  %v4796_v17 = vsel %vm983_vm2, %v4794_v47, 0.0 }
0x14b5   : > { %4797 = vadd.xlane.f32.xlu1 %v4796_v17 }
0x14b6   : > { %v4795_v48 = vmul.f32 %v4793_v28, %v4793_v28 }
0x14b8   : > { %v4799_v49 = vsel %vm983_vm2, %v4795_v48, 0.0 }
0x14b9   : > { %4800 = vadd.xlane.f32.xlu1 %v4799_v49 }
0x1542   : > { %v4798_v50 = vpop.xlane.xlu1 %4797 }
0x1543   : > { %v4802_v51 = vmul.f32 0.03125, %v4798_v50 }
0x1545   : > { %v4804_v20 = vadd.f32 1e-05, %v4802_v51 }
0x1546   : > { %v4801_v52 = vpop.xlane.xlu1 %4800 }
0x1547   : > { %6062 = vrsqrt.f32 %v4804_v20  ;;  %v4803_v53 = vmul.f32 0.03125, %v4801_v52 }
0x1549   : > { %v4805_v54 = vadd.f32 1e-05, %v4803_v53 }
0x154b   : > { %6064 = vrsqrt.f32 %v4805_v54 }
0x1551   : > { %v6063_v55 = vpop.eup %6062 }
0x1552   : > { %v4808_v59 = vmul.f32 %v6063_v55, %v4792_v45 }
0x1554   : > { %v4816_v61 = vmul.f32 %v5345_v58, %v4808_v59 }
0x1555   : > { %v6065_v62 = vpop.eup %6064 }
0x1556   : > { %v4824_v63 = vadd.f32 %v5346_v60, %v4816_v61  ;;  %v4809_v0 = vmul.f32 %v6065_v62, %v4793_v28 }
0x1558   : > { %4826 = vst.msk [vmem:[%s6330_s16] sm:$0xff] %vm983_vm2, %v4824_v63  ;;  %v4817_v4 = vmul.f32 %v5345_v58, %v4809_v0 }
0x155a   : > { %v4825_v5 = vadd.f32 %v5346_v60, %v4817_v4 }
0x155c   : > { %4827 = vst.msk [vmem:[%s6330_s16 + $0x8] sm:$0xff] %vm983_vm2, %v4825_v5 }
0x155d PF: > { %s6964_s10 = sld [smem:[#allocation6_spill]]  ;;  %s6965_s0 = sld [smem:[#allocation4_spill]] }
0x155e   : > { %s6966_s30 = sld [smem:[#allocation5_spill]]  ;;  %s6967_s20 = sld [smem:[#allocation7_spill]] }
0x155f   : > { %s6968_s21 = sld [smem:[#allocation8_spill]] }
0x1563   : > { %s29_s1 = sadd.s32 1, %s6964_s10  }
0x1564   : > { %p26_p9 = scmp.ge.s32.totalorder %s29_s1, 6  }
0x1566   :  { %28 = sbr.rel (!%p26_p9) target bundleno = 16 (0x10), region = 182 }

// kernel: decoder_forward.3
= control target key start
LH: loop header
LB: loop body
LE: loop exit
PB: predicated region body
PF: predicated region fallthrough
CT: control target
= control target key end

     0   :  { %s8704_s6 = smov 1   ;;  %s8705_s10 = smov 2   ;;  %s9827_s0 = inlined_call_operand.smem [shape: u32[32], index: -1, kind: input, shape index: {}] }
   0x1   :  { %s8748_s5 = sld [smem:[%s9827_s0]]   ;;  %s8706_s14 = smov 3  }
   0x2   :  { %s8753_s9 = sld [smem:[%s9827_s0 + %s8704_s6]]   ;;  %s8707_s18 = smov 4  }
   0x3   :  { %s8758_s13 = sld [smem:[%s9827_s0 + %s8705_s10]]   ;;  %s8708_s22 = smov 5  }
   0x4   :  { %s8763_s17 = sld [smem:[%s9827_s0 + %s8706_s14]]   ;;  %s8709_s26 = smov 6  }
   0x5   :  { %s8768_s21 = sld [smem:[%s9827_s0 + %s8707_s18]]   ;;  %s8710_s30 = smov 7  }
   0x6   :  { %s8773_s25 = sld [smem:[%s9827_s0 + %s8708_s22]]   ;;  %s8711_s4 = smov 8  }
   0x7   :  { %9856 = sst [smem:[#allocation6_spill]] %s8748_s5  ;;  %s8712_s10 = smov 9  }
   0x8   :  { %9857 = sst [smem:[#allocation7_spill]] %s8753_s9  ;;  %s8713_s15 = smov 10  }
   0x9   :  { %9858 = sst [smem:[#allocation8_spill]] %s8758_s13  ;;  %s8714_s20 = smov 11  }
   0xa   :  { %9859 = sst [smem:[#allocation9_spill]] %s8763_s17  ;;  %s8716_s1 = smov 13  }
   0xb   :  { %9860 = sst [smem:[#allocation10_spill]] %s8768_s21  ;;  %s8717_s7 = smov 14  }
   0xc   :  { %9861 = sst [smem:[#allocation11_spill]] %s8773_s25  ;;  %s8719_s22 = smov 16  }
   0xd   :  { %s8778_s29 = sld [smem:[%s9827_s0 + %s8709_s26]]   ;;  %s8715_s26 = smov 12  }
   0xe   :  { %s8783_s3 = sld [smem:[%s9827_s0 + %s8710_s30]]   ;;  %s8720_s28 = smov 17  }
   0xf   :  { %s8788_s8 = sld [smem:[%s9827_s0 + %s8711_s4]]  }
  0x10   :  { %s8793_s14 = sld [smem:[%s9827_s0 + %s8712_s10]]  }
  0x11   :  { %s8798_s19 = sld [smem:[%s9827_s0 + %s8713_s15]]   ;;  %s8718_s15 = smov 15  }
  0x12   :  { %s8803_s24 = sld [smem:[%s9827_s0 + %s8714_s20]]  }
  0x13   :  { %9862 = sst [smem:[#allocation12_spill]] %s8778_s29 }
  0x14   :  { %9863 = sst [smem:[#allocation13_spill]] %s8783_s3 }
  0x15   :  { %9864 = sst [smem:[#allocation14_spill]] %s8788_s8 }
  0x16   :  { %9865 = sst [smem:[#allocation15_spill]] %s8793_s14 }
  0x17   :  { %9866 = sst [smem:[#allocation16_spill]] %s8798_s19 }
  0x18   :  { %9867 = sst [smem:[#allocation17_spill]] %s8803_s24 }
  0x19   :  { %s8808_s30 = sld [smem:[%s9827_s0 + %s8715_s26]]  }
  0x1a   :  { %s8813_s6 = sld [smem:[%s9827_s0 + %s8716_s1]]  }
  0x1b   :  { %s8818_s12 = sld [smem:[%s9827_s0 + %s8717_s7]]   ;;  %s8721_s7 = smov 18  }
  0x1c   :  { %s8823_s20 = sld [smem:[%s9827_s0 + %s8718_s15]]   ;;  %s8722_s15 = smov 19  }
  0x1d   :  { %s8828_s27 = sld [smem:[%s9827_s0 + %s8719_s22]]   ;;  %s8723_s22 = smov 20  }
  0x1e   :  { %s8833_s4 = sld [smem:[%s9827_s0 + %s8720_s28]]   ;;  %s8724_s28 = smov 21  }
  0x1f   :  { %9868 = sst [smem:[#allocation18_spill]] %s8808_s30 }
  0x20   :  { %9869 = sst [smem:[#allocation19_spill]] %s8813_s6 }
  0x21   :  { %9870 = sst [smem:[#allocation20_spill]] %s8818_s12 }
  0x22   :  { %9871 = sst [smem:[#allocation21_spill]] %s8823_s20 }
  0x23   :  { %9872 = sst [smem:[#allocation22_spill]] %s8828_s27 }
  0x24   :  { %9873 = sst [smem:[#allocation23_spill]] %s8833_s4 }
  0x25   :  { %s8838_s12 = sld [smem:[%s9827_s0 + %s8721_s7]]   ;;  %s8725_s7 = smov 22  }
  0x26   :  { %s8843_s20 = sld [smem:[%s9827_s0 + %s8722_s15]]   ;;  %s8726_s15 = smov 23  }
  0x27   :  { %s8848_s27 = sld [smem:[%s9827_s0 + %s8723_s22]]   ;;  %s8727_s22 = smov 24  }
  0x28   :  { %s8853_s4 = sld [smem:[%s9827_s0 + %s8724_s28]]   ;;  %s8728_s28 = smov 25  }
  0x2b   :  { %9874 = sst [smem:[#allocation24_spill]] %s8838_s12 }
  0x2c   :  { %9875 = sst [smem:[#allocation25_spill]] %s8843_s20 }
  0x2d   :  { %9876 = sst [smem:[#allocation26_spill]] %s8848_s27 }
  0x2e   :  { %9877 = sst [smem:[#allocation27_spill]] %s8853_s4 }
  0x2f   :  { %s8858_s12 = sld [smem:[%s9827_s0 + %s8725_s7]]   ;;  %s8729_s7 = smov 26  }
  0x30   :  { %s8863_s20 = sld [smem:[%s9827_s0 + %s8726_s15]]   ;;  %s8730_s15 = smov 27  }
  0x31   :  { %s8868_s27 = sld [smem:[%s9827_s0 + %s8727_s22]]   ;;  %s8731_s22 = smov 28  }
  0x32   :  { %s8873_s4 = sld [smem:[%s9827_s0 + %s8728_s28]]   ;;  %s8732_s28 = smov 29  }
  0x35   :  { %9878 = sst [smem:[#allocation28_spill]] %s8858_s12 }
  0x36   :  { %9879 = sst [smem:[#allocation29_spill]] %s8863_s20 }
  0x37   :  { %9880 = sst [smem:[#allocation30_spill]] %s8868_s27 }
  0x38   :  { %9881 = sst [smem:[#allocation31_spill]] %s8873_s4 }
  0x39   :  { %s8878_s12 = sld [smem:[%s9827_s0 + %s8729_s7]]   ;;  %s8733_s7 = smov 30  }
  0x3a   :  { %s8883_s20 = sld [smem:[%s9827_s0 + %s8730_s15]]   ;;  %s8734_s15 = smov 31  }
  0x3b   :  { %s8888_s27 = sld [smem:[%s9827_s0 + %s8731_s22]]  }
  0x3c   :  { %s8893_s4 = sld [smem:[%s9827_s0 + %s8732_s28]]  }
  0x3f   :  { %9882 = sst [smem:[#allocation32_spill]] %s8878_s12 }
  0x40   :  { %9883 = sst [smem:[#allocation33_spill]] %s8883_s20 }
  0x41   :  { %9884 = sst [smem:[#allocation34_spill]] %s8888_s27 }
  0x42   :  { %9885 = sst [smem:[#allocation35_spill]] %s8893_s4 }
  0x43   :  { %s8898_s12 = sld [smem:[%s9827_s0 + %s8733_s7]]  }
  0x44   :  { %s8903_s20 = sld [smem:[%s9827_s0 + %s8734_s15]]  }
  0x49   :  { %9886 = sst [smem:[#allocation36_spill]] %s8898_s12 }
  0x4a   :  { %9887 = sst [smem:[#allocation37_spill]] %s8903_s20 }
  0x4b   :  { %68 = vsyncpa [#allocation4], 0 }
  0x4c   :  { %70 = vsyncpa [#allocation4 + $0x1], 0  ;;  %s8905_s22 = smov 0   ;;  %s8907_s23 = smov 0  }
  0x4d   :  { %s8909_s26 = smov 0   ;;  %s8911_s28 = smov 0  }
  0x4e   :  { %s8913_s1 = smov 0   ;;  %s8915_s2 = smov 0  }
  0x4f   :  { %s8917_s7 = smov 0   ;;  %s8919_s10 = smov 0  }
  0x50 LB: > { %9888 = sst [smem:[#allocation38_spill]] %s8674_s22  ;;  %s7252_s0 = sadd.s32 4294967295, %s8702_s10   ;;  %s8702_s10 = sphi %s8919_s10, %s76_s10   ;;  %s8698_s7 = sphi %s8917_s7, %s9998_s7   ;;  %s8694_s2 = sphi %s8915_s2, %s9997_s2   ;;  %s8690_s1 = sphi %s8913_s1, %s9996_s1   ;;  %s8686_s28 = sphi %s8911_s28, %s9995_s28   ;;  %s8682_s26 = sphi %s8909_s26, %s9994_s26   ;;  %s8678_s23 = sphi %s8907_s23, %s9993_s23   ;;  %s8674_s22 = sphi %s8905_s22, %s9992_s22  }
  0x51   : > { %9889 = sst [smem:[#allocation39_spill]] %s8678_s23  ;;  %s7253_s11 = sadd.s32 4294967294, %s8702_s10  }
  0x52   : > { %9890 = sst [smem:[#allocation40_spill]] %s8682_s26  ;;  %s85_s15 = sadd.s32 1, %s8694_s2 }
  0x53   : > { %9891 = sst [smem:[#allocation41_spill]] %s8686_s28  ;;  %p86_p0 = scmp.ge.s32.totalorder %s85_s15, 2 }
  0x54   : > { %9892 = sst [smem:[#allocation42_spill]] %s8690_s1  ;;  %s88_s16 = sadd.s32 1, %s8698_s7 }
  0x55   : > { %9893 = sst [smem:[#allocation43_spill]] %s8694_s2  ;;  %p901_p1 = scmp.ne.s32.totalorder %s8682_s26, %s8678_s23 }
  0x56   : > { %9894 = sst [smem:[#allocation44_spill]] %s8698_s7  ;;  %p902_p2 = scmp.eq.s32.totalorder %s7252_s0, 3 }
  0x57   : > { %9895 = sst [smem:[#allocation45_spill]] %s8702_s10  ;;  %s10000_s15 = smov (%p86_p0, %s85_s15), 0 }
  0x58   : > { %9896 = sst [smem:[#allocation46_spill]] %s10000_s15  ;;  %s10002_s16 = smov (!%p86_p0, %s88_s16), %s8698_s7 }
  0x59   : > { %p8954_p3 = por %p902_p2, %p901_p1  ;;  %p907_p4 = scmp.ne.s32.totalorder %s8678_s23, %s8674_s22 }
  0x5a   : > { %p90_p5 = scmp.ge.s32.totalorder %s10002_s16, 2  ;;  %p908_p6 = scmp.eq.s32.totalorder %s7253_s11, 3 }
  0x5b   : > { %s9897_s18 = scalar_select %p8954_p3, 1, 0 }
  0x5c   : > { %p7256_p7 = scmp.ge.s32.totalorder %s8702_s10, 1  ;;  %p1136_p8 = scmp.lt.s32.totalorder %s8702_s10, 5 }
  0x5d   : > { %9898 = sst [smem:[#allocation47_spill]] %s9897_s18  ;;  %s10004_s16 = smov (%p90_p5, %s10002_s16), 0 }
  0x5e   : > { %9899 = sst [smem:[#allocation48_spill]] %s10004_s16  ;;  %p8964_p9 = por %p908_p6, %p907_p4 }
  0x5f   : > { %p1137_p10 = pnand %p7256_p7, %p1136_p8  ;;  %s888_s0 = ssub.s32 %s8698_s7, %s10004_s16 }
  0x60   : > { %s9900_s2 = scalar_select %p8964_p9, 1, 0 }
  0x61   : > { %s891_s15 = sadd.s32 1, %s8682_s26  ;;  %p889_p11 = scmp.eq.s32.totalorder %s888_s0, 0 }
  0x62   : > { %9901 = sst [smem:[#allocation49_spill]] %s9900_s2  ;;  %1140 = sbr.rel (%p1137_p10) target bundleno = 9739 (0x260b), region = 144 }
  0x63   : > { %s8972_s20 = scalar_select %p889_p11, %s8682_s26, %s891_s15  }
  0x65   : > { %9902 = sst [smem:[#allocation50_spill]] %s8972_s20 }
  0x69   : > { %s9903_s5 = sld [smem:[#allocation6_spill]]  ;;  %s9904_s9 = sld [smem:[#allocation7_spill]] }
  0x6a   : > { %s9906_s17 = sld [smem:[#allocation9_spill]]  ;;  %s9907_s21 = sld [smem:[#allocation10_spill]] }
  0x6b   : > { %s9908_s25 = sld [smem:[#allocation11_spill]]  ;;  %s9832_s11 = sand.u32 1, %s8678_s23  }
  0x6c   : > { %s9909_s29 = sld [smem:[#allocation12_spill]]  ;;  %p1328_p12 = scmp.lt.s32.totalorder %s8690_s1, 1 }
  0x6d   : > { %s9910_s3 = sld [smem:[#allocation13_spill]]  ;;  %s8978_s15 = sshll.u32 %s9832_s11, 3 }
  0x6e   : > { %9911 = sst [smem:[#allocation51_spill]] %s8978_s15  ;;  %s9912_s8 = sld [smem:[#allocation14_spill]] }
  0x6f   : > { %p1340_p13 = scmp.lt.s32.totalorder %s8686_s28, 1  ;;  %s9914_s14 = sld [smem:[#allocation15_spill]] }
  0x70   : > { %s8982_s0 = scalar_select %p1328_p12, %s8690_s1, 1 }
  0x71   : > { %s8985_s16 = scalar_select %p1340_p13, %s8686_s28, 1 }
  0x72   : > { %9913 = sst [smem:[#allocation52_spill]] %s8982_s0  ;;  %s7258_s7 = sshll.u32 %s8982_s0, 3 }
  0x73   : > { %s7606_s11 = sshll.u32 %s8982_s0, 4  ;;  %s8990_s20 = scalar_lea.vmem %s9903_s5, %s7258_s7 }
  0x74   : > { %9918 = sst [smem:[#allocation53_spill]] %s8990_s20  ;;  %s9919_s6 = sld [smem:[#allocation19_spill]] }
  0x75   : > { %s8993_s26 = scalar_lea.vmem %s9904_s9, %s7606_s11  ;;  %s9921_s2 = sld [smem:[#allocation20_spill]] }
  0x76   : > { %9920 = sst [smem:[#allocation54_spill]] %s8993_s26  ;;  %s9922_s10 = sld [smem:[#allocation21_spill]] }
  0x77   : > { %s7607_s18 = sshll.u32 %s8985_s16, 6  ;;  %s9923_s23 = sld [smem:[#allocation22_spill]] }
  0x78   : > { %s8999_s1 = scalar_lea.vmem %s9906_s17, %s7607_s18  ;;  %s9925_s12 = sld [smem:[#allocation23_spill]] }
  0x79   : > { %9924 = sst [smem:[#allocation55_spill]] %s8999_s1  ;;  %s7263_s4 = sshll.u32 %s8985_s16, 2 }
  0x7a   : > { %s9926_s28 = sld [smem:[#allocation24_spill]]  ;;  %s9003_s15 = scalar_lea.vmem %s9907_s21, %s7263_s4 }
  0x7b   : > { %9927 = sst [smem:[#allocation56_spill]] %s9003_s15  ;;  %s9928_s27 = sld [smem:[#allocation25_spill]] }
  0x7c   : > { %s9006_s5 = scalar_lea.vmem %s9908_s25, %s7607_s18  ;;  %s9930_s7 = sld [smem:[#allocation26_spill]] }
  0x7d   : > { %9929 = sst [smem:[#allocation57_spill]] %s9006_s5  ;;  %s9009_s20 = scalar_lea.vmem %s9909_s29, %s7263_s4 }
  0x7e   : > { %9931 = sst [smem:[#allocation58_spill]] %s9009_s20  ;;  %s9932_s11 = sld [smem:[#allocation27_spill]] }
  0x7f   : > { %s9012_s22 = scalar_lea.vmem %s9910_s3, %s7607_s18  ;;  %s9934_s9 = sld [smem:[#allocation28_spill]] }
  0x80   : > { %9933 = sst [smem:[#allocation59_spill]] %s9012_s22  ;;  %s9015_s17 = scalar_lea.vmem %s9912_s8, %s7263_s4 }
  0x81   : > { %9935 = sst [smem:[#allocation60_spill]] %s9015_s17  ;;  %s7610_s26 = sshll.u32 %s8985_s16, 4 }
  0x82   : > { %s9936_s0 = sld [smem:[#allocation30_spill]]  ;;  %s9019_s21 = scalar_lea.vmem %s9914_s14, %s7610_s26 }
  0x83   : > { %9937 = sst [smem:[#allocation61_spill]] %s9019_s21  ;;  %s9939_s5 = sld [smem:[#allocation31_spill]] }
  0x84   : > { %s9938_s13 = sld [smem:[#allocation29_spill]]  ;;  %s9940_s20 = sld [smem:[#allocation32_spill]] }
  0x85   : > { %s9028_s1 = scalar_lea.vmem %s9919_s6, %s7607_s18  ;;  %s9942_s3 = sld [smem:[#allocation33_spill]] }
  0x86   : > { %9941 = sst [smem:[#allocation62_spill]] %s9028_s1  ;;  %s9031_s22 = scalar_lea.vmem %s9921_s2, %s7263_s4 }
  0x87   : > { %9943 = sst [smem:[#allocation63_spill]] %s9031_s22  ;;  %s9944_s8 = sld [smem:[#allocation34_spill]] }
  0x88   : > { %s9034_s17 = scalar_lea.vmem %s9922_s10, %s7607_s18  ;;  %s9946_s14 = sld [smem:[#allocation51_spill]] }
  0x89   : > { %9945 = sst [smem:[#allocation64_spill]] %s9034_s17  ;;  %s9037_s21 = scalar_lea.vmem %s9923_s23, %s7263_s4 }
  0x8a   : > { %9947 = sst [smem:[#allocation65_spill]] %s9037_s21  ;;  %s9040_s25 = scalar_lea.vmem %s9925_s12, %s7607_s18 }
  0x8b   : > { %s9043_s15 = scalar_lea.vmem %s9926_s28, %s7263_s4  ;;  %s9046_s29 = scalar_lea.vmem %s9928_s27, %s7610_s26 }
  0x8c   : > { %s1415_s30 = scalar_lea.vmem %s9930_s7, %s8985_s16  ;;  %s1418_s6 = scalar_lea.vmem %s9932_s11, %s8985_s16 }
  0x8d   : > { %s1421_s24 = scalar_lea.vmem %s9934_s9, %s8985_s16  ;;  %s7615_s1 = sshll.u32 %s8985_s16, 8 }
  0x8e   : > { %s9056_s19 = scalar_lea.vmem %s9936_s0, %s7610_s26  ;;  %s9059_s2 = scalar_lea.vmem %s9938_s13, %s7615_s1 }
  0x8f   : > { %s7616_s22 = sshll.u32 %s8985_s16, 10  ;;  %s1438_s17 = scalar_lea.vmem %s9940_s20, %s8985_s16 }
  0x90   : > { %s9063_s10 = scalar_lea.vmem %s9939_s5, %s7616_s22  ;;  %s1441_s23 = scalar_lea.vmem %s9942_s3, %s8985_s16 }
  0x91   : > { %s1444_s21 = scalar_lea.vmem %s9944_s8, %s8985_s16  ;;  %s1327_s12 = scalar_lea.vmem [#allocation3], %s9946_s14 }
  0x92   : > { %s9948_s18 = sld [smem:[#allocation41_spill]] }
  0x98   : > { %p7288_p0 = scmp.ne.s32.totalorder %s9948_s18, 0 }
  0x99   : > { %s9949_s27 = sld [smem:[#allocation53_spill]] (!%p7288_p0)  ;;  %vm1451_vm0 = vcmask (!%p7288_p0), 261120  }
  0x9a   : > { %1449 = sbr.rel (%p7288_p0) target bundleno = 161 (0xa1), region = 148 }
  0x9f   : > { %v1450_v0 = vld [vmem:[%s9949_s27] sm:$0xff] (!%p7288_p0) }
  0xa0   : > { %1452 = vst.msk [vmem:[#allocation2] sm:$0xff] (!%p7288_p0), %vm1451_vm0, %v1450_v0 }
  0xa1 PF: > { %s9950_s9 = sld [smem:[#allocation55_spill]]  ;;  %s9951_s4 = sld [smem:[#allocation57_spill]]  ;;  %v8735_v2 = vmov 0.0   ;;  %vm8736_vm1 = vmmov 0   ;;  %vm1552_vm2 = vcmask 261120   ;;  %vm1712_vm3 = vcmask 64512  }
  0xa2   : > { %7921 = vmatprep.subr.bf16.mxu0 %v8735_v2  ;;  %7929 = vmatprep.subr.bf16.mxu1 %v8735_v2  ;;  %s9952_s5 = sld [smem:[#allocation58_spill]]  ;;  %s9953_s13 = sld [smem:[#allocation56_spill]]  ;;  %v1454_v22 = vlaneseq  ;;  %vm2216_vm5 = vcmask 1043456   ;;  %vm9330_vm6 = vmpackc.low %vm1712_vm3, %vm1712_vm3  ;;  %vm3443_vm7 = vcmask 130048  }
  0xa3   : > { %7925 = vmatprep.mubr.msk.bf16.mxu0 %vm8736_vm1, %v8735_v2  ;;  %7933 = vmatprep.mubr.msk.bf16.mxu1 %vm8736_vm1, %v8735_v2  ;;  %s9954_s3 = sld [smem:[#allocation59_spill]]  ;;  %s9955_s8 = sld [smem:[#allocation8_spill]] }
  0xa4   : > { %s9956_s14 = sld [smem:[#allocation52_spill]]  ;;  %v9113_v23 = vshrl.u32 %v1454_v22, 7  ;;  %v1457_v24 = vand.u32 127, %v1454_v22  ;;  %s9959_s26 = sld [smem:[#allocation61_spill]] }
  0xa5   : > { %s9958_s22 = sld [smem:[#allocation60_spill]]  ;;  %s9960_s28 = sld [smem:[#allocation16_spill]] }
  0xa6   : > { %vm1458_vm4 = vcmp.gt.s32.totalorder %v1457_v24, %v9113_v23  ;;  %s9962_s0 = sld [smem:[#allocation64_spill]]  ;;  %s9963_s7 = sld [smem:[#allocation54_spill]] }
  0xa7   : > { %v8391_v1 = vld [vmem:[%s9950_s9] sm:$0xff]   ;;  %v8393_v4 = vld [vmem:[%s9950_s9 + $0x8] sm:$0xff]   ;;  %v1459_v25 = vsel %vm1458_vm4, -1e+30, %v8735_v2  ;;  %v8397_v44 = vld [vmem:[%s9950_s9 + $0x10] sm:$0xff]   ;;  %s9964_s11 = sld [smem:[#allocation62_spill]] }
  0xa8   : > { %v8392_v3 = vld [vmem:[%s9951_s4] sm:$0xff]   ;;  %7922 = vmatpush3.bf16.msra.mxu0 %v8391_v1  ;;  %v8394_v5 = vld [vmem:[%s9951_s4 + $0x8] sm:$0xff]   ;;  %v8399_v45 = vld [vmem:[%s9950_s9 + $0x18] sm:$0xff]   ;;  %s9965_s18 = sld [smem:[#allocation17_spill]]  ;;  %s9966_s27 = sld [smem:[#allocation18_spill]] }
  0xa9   : > { %7930 = vmatpush3.bf16.msra.mxu1 %v8392_v3  ;;  %7923 = vmatprep.subr.bf16.mxu0 %v8735_v2  ;;  %v1453_v6 = vld [vmem:[#allocation2] sm:$0xff]  ;;  %v8396_v21 = vld [vmem:[%s9954_s3 + $0x8] sm:$0xff]   ;;  %v8398_v48 = vld [vmem:[%s9951_s4 + $0x10] sm:$0xff]  }
  0xaa   : > { %7931 = vmatprep.subr.bf16.mxu1 %v8735_v2  ;;  %v9086_v7 = vpack.c.bf16 %v1453_v6, %v1453_v6  ;;  %v7294_v8 = vld [vmem:[%s9952_s5] ss:$0 sm:$0xff]  ;;  %s9957_s20 = scalar_lea.vmem %s9955_s8, %s9956_s14  ;;  %v8400_v50 = vld [vmem:[%s9951_s4 + $0x18] sm:$0xff]   ;;  %v7309_v57 = vld [vmem:[%s9952_s5 + $0x1] ss:$0 sm:$0xff] }
  0xab   : > { %v7290_v9 = vld [vmem:[%s9953_s13] ss:$0 sm:$0xff]  ;;  %v7305_v58 = vld [vmem:[%s9953_s13 + $0x1] ss:$0 sm:$0xff]  ;;  %v8401_v1 = vld [vmem:[%s9954_s3 + $0x10] sm:$0xff]   ;;  %s9961_s1 = scalar_lea.vmem %s9960_s28, %s8985_s16 }
  0xac   : > { %7924 = vmatpush3.bf16.msra.mxu0 %v8393_v4  ;;  %v8395_v20 = vld [vmem:[%s9954_s3] sm:$0xff]   ;;  %v8402_v3 = vld [vmem:[%s9954_s3 + $0x18] sm:$0xff]  }
  0xad   : > { %7932 = vmatpush3.bf16.msra.mxu1 %v8394_v5  ;;  %7937 = vmatprep.subr.bf16.mxu0 %v8735_v2  ;;  %v7289_v26 = vld [vmem:[%s9957_s20] ss:$0 sm:$0xff] }
  0xae   : > { %7945 = vmatprep.subr.mxu1 %v8735_v2  ;;  %v9120_v27 = vadd.f32 %v7289_v26, %v1459_v25  ;;  %v7298_v41 = vld [vmem:[%s9958_s22] ss:$0 sm:$0xff] }
  0xaf   : > { %7926 = vmatmul.mubr.msk.bf16.vlgmr.msra.gmra.mrb[0].mxu0 %vm1552_vm2, %v9086_v7  ;;  %v1528_v22 = vld [vmem:[%s9959_s26] sm:$0xf] }
  0xb0   : > { %7934 = vmatmul.mubr.msk.bf16.vlgmr.msra.gmra.mrb[0].mxu1 %vm1552_vm2, %v9086_v7  ;;  %7941 = vmatprep.mubr.msk.bf16.mxu0 %vm8736_vm1, %v8735_v2  ;;  %v2264_v26 = vsel %vm2216_vm5, %v1528_v22, 0 }
  0xb1   : > { %7947 = vmatprep.mubr.msk.f32.mxu1 %vm8736_vm1, %v8735_v2  ;;  %7938 = vmatpush3.bf16.msra.mxu0 %v8395_v20 }
  0xb2   : > { %7939 = vmatprep.subr.bf16.mxu0 %v8735_v2 }
  0xb5   : > { %7940 = vmatpush3.bf16.msra.mxu0 %v8396_v21 }
  0xb6   : > { %7955 = vmatprep.subr.bf16.mxu0 %v8735_v2 }
  0xb8   : > { %7942 = vmatmul.mubr.msk.bf16.vlgmr.msra.gmra.mrb[4].mxu0 %vm1552_vm2, %v9086_v7 }
  0xb9   : > { %7959 = vmatprep.mubr.msk.bf16.mxu0 %vm8736_vm1, %v8735_v2  ;;  %7956 = vmatpush3.bf16.msra.mxu0 %v8397_v44 }
  0xba   : > { %7957 = vmatprep.subr.bf16.mxu0 %v8735_v2 }
  0xbd   : > { %7958 = vmatpush3.bf16.msra.mxu0 %v8399_v45 }
  0xbe   : > { %7971 = vmatprep.subr.bf16.mxu0 %v8735_v2 }
  0xc0   : > { %7960 = vmatmul.mubr.msk.bf16.vlgmr.msra.gmra.mrb[8].mxu0 %vm1552_vm2, %v9086_v7 }
  0xc1   : > { %7975 = vmatprep.mubr.msk.bf16.mxu0 %vm8736_vm1, %v8735_v2  ;;  %7972 = vmatpush3.bf16.msra.mxu0 %v8401_v1 }
  0xc2   : > { %7973 = vmatprep.subr.bf16.mxu0 %v8735_v2 }
  0xc5   : > { %7974 = vmatpush3.bf16.msra.mxu0 %v8402_v3 }
  0xc6   : > { %7984 = vmatprep.subr.mxu0 %v8735_v2 }
  0xc8   : > { %7976 = vmatmul.mubr.msk.bf16.vlgmr.msra.gmra.mrb[12].mxu0 %vm1552_vm2, %v9086_v7 }
  0xc9   : > { %7986 = vmatprep.mubr.msk.f32.mxu0 %vm8736_vm1, %v8735_v2 }
 0x182   : > { %v1590_v10 = vpop.f32.mrb[0].mxu0 }
 0x183   : > { %v1648_v11 = vpop.f32.mrb[0].mxu1  ;;  %v7927_v12 = vpop.f32.mrb[1].mxu0  ;;  %v1591_v16 = vadd.f32 %v7290_v9, %v1590_v10 }
 0x184   : > { %v1649_v13 = vadd.f32 %v7294_v8, %v1648_v11  ;;  %v7935_v14 = vpop.f32.mrb[1].mxu1  ;;  %v1593_v15 = vpop.f32.mrb[2].mxu0 }
 0x185   : > { %v1651_v17 = vpop.f32.mrb[2].mxu1  ;;  %v7928_v18 = vpop.f32.mrb[3].mxu0 }
 0x186   : > { %v7936_v19 = vpop.f32.mrb[3].mxu1  ;;  %7946 = vmatpush3.xpose.msk.msra.mxu1 %vm1712_vm3, %v1649_v13  ;;  %v7313_v18 = vld [vmem:[%s9958_s22 + $0x1] ss:$0 sm:$0xff] }
 0x187   : > { %7950 = vmatprep.subr.mxu1 %v8735_v2 }
 0x189   : > { %7948 = vmatmul.mubr.msk.f32.vlgmr.msra.gmra.mrb[4].mxu1 %vm1712_vm3, %v1591_v16 }
 0x18a   : > { %7952 = vmatprep.mubr.msk.f32.mxu1 %vm8736_vm1, %v8735_v2 }
 0x18b   : > { %v1706_v38 = vpop.f32.mrb[4].mxu0 }
 0x18c   : > { %v7943_v39 = vpop.f32.mrb[5].mxu0  ;;  %v1707_v43 = vadd.f32 %v7298_v41, %v1706_v38  ;;  %v8406_v38 = vld [vmem:[%s9950_s9 + $0x28] sm:$0xff]  }
 0x18d   : > { %v1709_v40 = vpop.f32.mrb[6].mxu0 }
 0x18e   : > { %v7944_v42 = vpop.f32.mrb[7].mxu0  ;;  %7951 = vmatpush3.msra.mxu1 %v1707_v43 }
 0x18f   : > { %7963 = vmatprep.subr.bf16.mxu1 %v8735_v2  ;;  %v7326_v42 = vld [vmem:[%s9952_s5 + $0x2] ss:$0 sm:$0xff] }
 0x193   : > { %v1928_v51 = vpop.f32.mrb[8].mxu0 }
 0x194   : > { %v7961_v52 = vpop.f32.mrb[9].mxu0  ;;  %v1929_v62 = vadd.f32 %v7305_v58, %v1928_v51 }
 0x195   : > { %v1931_v53 = vpop.f32.mrb[10].mxu0 }
 0x196   : > { %v7962_v54 = vpop.f32.mrb[11].mxu0  ;;  %v7322_v53 = vld [vmem:[%s9953_s13 + $0x2] ss:$0 sm:$0xff] }
 0x19b   : > { %v2044_v15 = vpop.f32.mrb[12].mxu0 }
 0x19c   : > { %v7977_v16 = vpop.f32.mrb[13].mxu0  ;;  %v2045_v20 = vadd.f32 %v7313_v18, %v2044_v15  ;;  %v1530_v18 = vld [vmem:[%s9959_s26 + $0x8] sm:$0xf] }
 0x19d   : > { %v2047_v17 = vpop.f32.mrb[14].mxu0 }
 0x19e   : > { %v7978_v19 = vpop.f32.mrb[15].mxu0  ;;  %7985 = vmatpush3.msra.mxu0 %v2045_v20  ;;  %v8410_v20 = vld [vmem:[%s9950_s9 + $0x30] sm:$0xff]  }
 0x19f   : > { %7995 = vmatprep.subr.bf16.mxu0 %v8735_v2  ;;  %v2647_v19 = vsel %vm2216_vm5, %v1530_v18, 0 }
 0x25c   : > { %v1785_v28 = vpop.f32.mrb[4].mxu1 }
 0x25d   : > { %v1789_v29 = vmul.f32 0.35355338, %v1785_v28  ;;  %v7949_v30 = vpop.f32.mrb[5].mxu1  ;;  %v8403_v28 = vld [vmem:[%s9951_s4 + $0x20] sm:$0xff]  }
 0x25e   : > { %v1529_v30 = vld [vmem:[%s9959_s26 + $0x4] sm:$0xf] }
 0x25f   : > { %v1790_v31 = vadd.f32 %v1789_v29, %v9120_v27 }
 0x261   : > { %v1791_v32 = vsel %vm1712_vm3, %v1790_v31, -inf }
 0x262   : > { %1792 = vmax.xlane.f32.xlu0 %v1791_v32  ;;  %v8404_v32 = vld [vmem:[%s9951_s4 + $0x28] sm:$0xff]  }
 0x2ef   : > { %v1793_v33 = vpop.xlane.xlu0 %1792 }
 0x2f0   : > { %v1794_v34 = vsub.f32 %v1790_v31, %v1793_v33  ;;  %v2218_v31 = vsel %vm2216_vm5, %v1529_v30, 0 }
 0x2f2   : > { %v1795_v35 = vmul.f32 1.442695, %v1794_v34  ;;  %v8405_v34 = vld [vmem:[%s9950_s9 + $0x20] sm:$0xff]  }
 0x2f4   : > { %8567 = vpow2.f32 %v1795_v35 }
 0x2fe   : > { %v8568_v36 = vpop.eup %8567 }
 0x2ff   : > { %v1797_v37 = vsel %vm1712_vm3, %v8568_v36, 0.0 }
 0x300   : > { %1798 = vadd.xlane.f32.xlu0 %v1797_v37 }
 0x38d   : > { %v1799_v46 = vpop.xlane.xlu0 %1798 }
 0x38e   : > { %8569 = vrcp.f32 %v1799_v46 }
 0x398   : > { %v8570_v47 = vpop.eup %8569 }
 0x399   : > { %v1801_v49 = vmul.f32 %v8570_v47, %v8568_v36 }
 0x39b   : > { %7953 = vmatmul.mubr.msk.f32.vlgmr.msra.gmra.mrb[6].mxu1 %vm1712_vm3, %v1801_v49 }
 0x39c   : > { %7964 = vmatpush3.bf16.msra.mxu1 %v8398_v48  ;;  %7967 = vmatprep.mubr.msk.bf16.mxu1 %vm8736_vm1, %v8735_v2 }
 0x39d   : > { %7965 = vmatprep.subr.bf16.mxu1 %v8735_v2 }
 0x3a0   : > { %7966 = vmatpush3.bf16.msra.mxu1 %v8400_v50 }
 0x3a1   : > { %7979 = vmatprep.subr.mxu1 %v8735_v2 }
 0x3a3   : > { %7968 = vmatmul.mubr.msk.bf16.vlgmr.msra.gmra.mrb[8].mxu1 %vm1552_vm2, %v9086_v7 }
 0x3a4   : > { %7981 = vmatprep.mubr.msk.f32.mxu1 %vm8736_vm1, %v8735_v2 }
 0x46e   : > { %v1871_v55 = vpop.f32.mrb[6].mxu1 }
 0x46f   : > { %v7954_v56 = vpop.f32.mrb[7].mxu1  ;;  %v1875_v29 = vpack.c.bf16 %v1871_v55, %v1871_v55 }
 0x476   : > { %v1986_v59 = vpop.f32.mrb[8].mxu1 }
 0x477   : > { %v1987_v60 = vadd.f32 %v7309_v57, %v1986_v59  ;;  %v7969_v61 = vpop.f32.mrb[9].mxu1  ;;  %v8407_v59 = vld [vmem:[%s9954_s3 + $0x20] sm:$0xff]  }
 0x478   : > { %v1989_v63 = vpop.f32.mrb[10].mxu1 }
 0x479   : > { %v7970_v0 = vpop.f32.mrb[11].mxu1  ;;  %7980 = vmatpush3.xpose.msk.msra.mxu1 %vm1712_vm3, %v1987_v60  ;;  %v8408_v60 = vld [vmem:[%s9954_s3 + $0x28] sm:$0xff]  }
 0x47a   : > { %7989 = vmatprep.subr.bf16.mxu1 %v8735_v2 }
 0x47c   : > { %7982 = vmatmul.mubr.msk.f32.vlgmr.msra.gmra.mrb[12].mxu1 %vm1712_vm3, %v1929_v62 }
 0x47d   : > { %7991 = vmatprep.mubr.msk.bf16.mxu1 %vm8736_vm1, %v8735_v2  ;;  %7990 = vmatpush3.bf16.msra.mxu1 %v2218_v31 }
 0x47e   : > { %8001 = vmatprep.subr.bf16.mxu1 %v8735_v2 }
 0x54f   : > { %v2122_v4 = vpop.f32.mrb[12].mxu1 }
 0x550   : > { %v2126_v5 = vmul.f32 0.35355338, %v2122_v4  ;;  %v7983_v6 = vpop.f32.mrb[13].mxu1 }
 0x552   : > { %v2127_v8 = vadd.f32 %v2126_v5, %v9120_v27 }
 0x554   : > { %v2128_v9 = vsel %vm1712_vm3, %v2127_v8, -inf }
 0x555   : > { %2129 = vmax.xlane.f32.xlu1 %v2128_v9 }
 0x5e2   : > { %v2130_v10 = vpop.xlane.xlu1 %2129 }
 0x5e3   : > { %v2131_v11 = vsub.f32 %v2127_v8, %v2130_v10 }
 0x5e5   : > { %v2132_v12 = vmul.f32 1.442695, %v2131_v11 }
 0x5e7   : > { %8571 = vpow2.f32 %v2132_v12  ;;  %v7330_v12 = vld [vmem:[%s9958_s22 + $0x2] ss:$0 sm:$0xff] }
 0x5f1   : > { %v8572_v13 = vpop.eup %8571 }
 0x5f2   : > { %v2134_v14 = vsel %vm1712_vm3, %v8572_v13, 0.0 }
 0x5f3   : > { %2135 = vadd.xlane.f32.xlu1 %v2134_v14 }
 0x680   : > { %v2136_v21 = vpop.xlane.xlu1 %2135 }
 0x681   : > { %8573 = vrcp.f32 %v2136_v21  ;;  %v8412_v21 = vld [vmem:[%s9950_s9 + $0x38] sm:$0xff]   ;;  %s9967_s9 = scalar_lea.vmem %s9965_s18, %s8985_s16 }
 0x68b   : > { %v8574_v24 = vpop.eup %8573 }
 0x68c   : > { %v2138_v25 = vmul.f32 %v8574_v24, %v8572_v13  ;;  %v8409_v24 = vld [vmem:[%s9951_s4 + $0x30] sm:$0xff]  }
 0x68e   : > { %7987 = vmatmul.mubr.msk.f32.vlgmr.msra.gmra.mrb[16].mxu0 %vm1712_vm3, %v2138_v25 }
 0x68f   : > { %7996 = vmatpush3.bf16.msra.mxu0 %v2264_v26  ;;  %7997 = vmatprep.mubr.msk.bf16.mxu0 %vm8736_vm1, %v8735_v2 }
 0x690   : > { %8009 = vmatprep.subr.bf16.mxu0 %v8735_v2 }
 0x692   : > { %7998 = vmatmul.mubr.msk.bf16.vlgmr.msra.gmra.mrb[20].mxu0 %vm1712_vm3, %v1875_v29 }
 0x693   : > { %8010 = vmatpush3.bf16.msra.mxu0 %v8403_v28  ;;  %8013 = vmatprep.mubr.msk.bf16.mxu0 %vm8736_vm1, %v8735_v2  ;;  %v8411_v28 = vld [vmem:[%s9951_s4 + $0x38] sm:$0xff]   ;;  %s9968_s4 = scalar_lea.vmem %s9966_s27, %s8985_s16 }
 0x694   : > { %8011 = vmatprep.subr.bf16.mxu0 %v8735_v2 }
 0x697   : > { %8012 = vmatpush3.bf16.msra.mxu0 %v8404_v32 }
 0x698   : > { %8025 = vmatprep.subr.mxu0 %v8735_v2 }
 0x69a   : > { %8014 = vmatmul.mubr.msk.bf16.vlgmr.msra.gmra.mrb[24].mxu0 %vm1552_vm2, %v9086_v7 }
 0x69b   : > { %8027 = vmatprep.mubr.msk.f32.mxu0 %vm8736_vm1, %v8735_v2 }
 0x761   : > { %v2208_v33 = vpop.f32.mrb[16].mxu0 }
 0x762   : > { %v2212_v35 = vpack.c.bf16 %v2208_v33, %v2208_v33  ;;  %v7988_v36 = vpop.f32.mrb[17].mxu0 }
 0x764   : > { %7992 = vmatmul.mubr.msk.bf16.vlgmr.msra.gmra.mrb[16].mxu1 %vm1712_vm3, %v2212_v35 }
 0x765   : > { %v2300_v37 = vpop.f32.mrb[20].mxu0  ;;  %8002 = vmatpush3.bf16.msra.mxu1 %v8405_v34  ;;  %8005 = vmatprep.mubr.msk.bf16.mxu1 %vm8736_vm1, %v8735_v2 }
 0x766   : > { %v7999_v39 = vpop.f32.mrb[21].mxu0  ;;  %8003 = vmatprep.subr.bf16.mxu1 %v8735_v2 }
 0x767   : > { %v2303_v40 = vpop.f32.mrb[22].mxu0  ;;  %v7338_v39 = vld [vmem:[%s9953_s13 + $0x3] ss:$0 sm:$0xff]  ;;  %s9970_s13 = sld [smem:[#allocation63_spill]] }
 0x768   : > { %v8000_v41 = vpop.f32.mrb[23].mxu0 }
 0x769   : > { %8004 = vmatpush3.bf16.msra.mxu1 %v8406_v38  ;;  %v7342_v38 = vld [vmem:[%s9952_s5 + $0x3] ss:$0 sm:$0xff]  ;;  %s9969_s5 = sld [smem:[#allocation65_spill]] }
 0x76a   : > { %8017 = vmatprep.subr.bf16.mxu1 %v8735_v2 }
 0x76c   : > { %8006 = vmatmul.mubr.msk.bf16.vlgmr.msra.gmra.mrb[20].mxu1 %vm1552_vm2, %v9086_v7 }
 0x76d   : > { %8021 = vmatprep.mubr.msk.bf16.mxu1 %vm8736_vm1, %v8735_v2  ;;  %v2416_v43 = vpop.f32.mrb[24].mxu0  ;;  %8018 = vmatpush3.bf16.msra.mxu1 %v8407_v59 }
 0x76e   : > { %v2417_v44 = vadd.f32 %v7326_v42, %v2416_v43  ;;  %v8015_v45 = vpop.f32.mrb[25].mxu0  ;;  %8019 = vmatprep.subr.bf16.mxu1 %v8735_v2 }
 0x76f   : > { %v2419_v46 = vpop.f32.mrb[26].mxu0 }
 0x770   : > { %v8016_v47 = vpop.f32.mrb[27].mxu0  ;;  %8026 = vmatpush3.xpose.msk.msra.mxu0 %vm1712_vm3, %v2417_v44  ;;  %v8413_v46 = vld [vmem:[%s9954_s3 + $0x30] sm:$0xff]  }
 0x771   : > { %8030 = vmatprep.subr.mxu0 %v8735_v2  ;;  %8020 = vmatpush3.bf16.msra.mxu1 %v8408_v60  ;;  %v8414_v47 = vld [vmem:[%s9954_s3 + $0x38] sm:$0xff]   ;;  %v7346_v60 = vld [vmem:[%s9958_s22 + $0x3] ss:$0 sm:$0xff] }
 0x772   : > { %8035 = vmatprep.subr.bf16.mxu1 %v8735_v2 }
 0x774   : > { %8022 = vmatmul.mubr.msk.bf16.vlgmr.msra.gmra.mrb[24].mxu1 %vm1552_vm2, %v9086_v7 }
 0x775   : > { %8037 = vmatprep.mubr.msk.bf16.mxu1 %vm8736_vm1, %v8735_v2  ;;  %8036 = vmatpush3.bf16.msra.mxu1 %v2647_v19 }
 0x776   : > { %8049 = vmatprep.subr.bf16.mxu1 %v8735_v2 }
 0x837   : > { %v2254_v48 = vpop.f32.mrb[16].mxu1 }
 0x838   : > { %v9200_v49 = vadd.f32 %v2300_v37, %v2254_v48  ;;  %v7993_v50 = vpop.f32.mrb[17].mxu1 }
 0x839   : > { %v2257_v51 = vpop.f32.mrb[18].mxu1 }
 0x83a   : > { %v7994_v52 = vpop.f32.mrb[19].mxu1 }
 0x83f   : > { %v2358_v54 = vpop.f32.mrb[20].mxu1 }
 0x840   : > { %v2359_v55 = vadd.f32 %v7322_v53, %v2358_v54  ;;  %v8007_v56 = vpop.f32.mrb[21].mxu1 }
 0x841   : > { %v2361_v57 = vpop.f32.mrb[22].mxu1 }
 0x842   : > { %v8008_v58 = vpop.f32.mrb[23].mxu1  ;;  %8028 = vmatmul.mubr.msk.f32.vlgmr.msra.gmra.mrb[18].mxu0 %vm1712_vm3, %v2359_v55 }
 0x843   : > { %8032 = vmatprep.mubr.msk.f32.mxu0 %vm8736_vm1, %v8735_v2 }
 0x847   : > { %v2474_v9 = vpop.f32.mrb[24].mxu1 }
 0x848   : > { %v8023_v10 = vpop.f32.mrb[25].mxu1  ;;  %v2475_v14 = vadd.f32 %v7330_v12, %v2474_v9 }
 0x849   : > { %v2477_v11 = vpop.f32.mrb[26].mxu1 }
 0x84a   : > { %v8024_v13 = vpop.f32.mrb[27].mxu1  ;;  %8031 = vmatpush3.msra.mxu0 %v2475_v14 }
 0x84b   : > { %8041 = vmatprep.subr.bf16.mxu0 %v8735_v2 }
 0x915   : > { %v2552_v61 = vpop.f32.mrb[18].mxu0 }
 0x916   : > { %v2556_v62 = vmul.f32 0.35355338, %v2552_v61  ;;  %v8029_v63 = vpop.f32.mrb[19].mxu0 }
 0x918   : > { %v2557_v0 = vadd.f32 %v2556_v62, %v9120_v27 }
 0x91a   : > { %v2558_v1 = vsel %vm1712_vm3, %v2557_v0, -inf }
 0x91b   : > { %2559 = vmax.xlane.f32.xlu0 %v2558_v1  ;;  %v1531_v1 = vld [vmem:[%s9959_s26 + $0xc] sm:$0xf] }
 0x9a8   : > { %v2560_v3 = vpop.xlane.xlu0 %2559 }
 0x9a9   : > { %v2561_v4 = vsub.f32 %v2557_v0, %v2560_v3  ;;  %v3031_v3 = vsel %vm2216_vm5, %v1531_v1, 0 }
 0x9ab   : > { %v2562_v5 = vmul.f32 1.442695, %v2561_v4 }
 0x9ad   : > { %8575 = vpow2.f32 %v2562_v5 }
 0x9b7   : > { %v8576_v6 = vpop.eup %8575 }
 0x9b8   : > { %v2564_v8 = vsel %vm1712_vm3, %v8576_v6, 0.0 }
 0x9b9   : > { %2565 = vadd.xlane.f32.xlu1 %v2564_v8  ;;  %v7354_v8 = vld [vmem:[%s9961_s1] ss:$0 sm:$0xff] }
 0xa46   : > { %v2566_v15 = vpop.xlane.xlu1 %2565 }
 0xa47   : > { %8577 = vrcp.f32 %v2566_v15  ;;  %v8605_v15 = vld [vmem:[#allocation2] sm:$0xff] }
 0xa51   : > { %v8578_v16 = vpop.eup %8577 }
 0xa52   : > { %v2568_v17 = vmul.f32 %v8578_v16, %v8576_v6 }
 0xa54   : > { %8033 = vmatmul.mubr.msk.f32.vlgmr.msra.gmra.mrb[28].mxu0 %vm1712_vm3, %v2568_v17 }
 0xa55   : > { %8045 = vmatprep.mubr.msk.bf16.mxu0 %vm8736_vm1, %v8735_v2  ;;  %8042 = vmatpush3.bf16.msra.mxu0 %v8410_v20 }
 0xa56   : > { %8043 = vmatprep.subr.bf16.mxu0 %v8735_v2 }
 0xa59   : > { %8044 = vmatpush3.bf16.msra.mxu0 %v8412_v21 }
 0xa5a   : > { %8057 = vmatprep.subr.bf16.mxu0 %v8735_v2 }
 0xa5c   : > { %8046 = vmatmul.mubr.msk.bf16.vlgmr.msra.gmra.mrb[32].mxu0 %vm1552_vm2, %v9086_v7 }
 0xa5d   : > { %8061 = vmatprep.mubr.msk.bf16.mxu0 %vm8736_vm1, %v8735_v2  ;;  %8058 = vmatpush3.bf16.msra.mxu0 %v8413_v46  ;;  %v8422_v46 = vld [vmem:[%s9964_s11 + $0x18] sm:$0xff]  }
 0xa5e   : > { %8059 = vmatprep.subr.bf16.mxu0 %v8735_v2 }
 0xa61   : > { %8060 = vmatpush3.bf16.msra.mxu0 %v8414_v47  ;;  %v7361_v47 = vld [vmem:[%s9969_s5] ss:$0 sm:$0xff] }
 0xa62   : > { %8075 = vmatprep.subr.bf16.mxu0 %v8735_v2 }
 0xa64   : > { %8062 = vmatmul.mubr.msk.bf16.vlgmr.msra.gmra.mrb[36].mxu0 %vm1552_vm2, %v9086_v7 }
 0xa65   : > { %8077 = vmatprep.mubr.msk.bf16.mxu0 %vm8736_vm1, %v8735_v2  ;;  %8076 = vmatpush3.bf16.msra.mxu0 %v3031_v3 }
 0xa66   : > { %8089 = vmatprep.subr.bf16.mxu0 %v8735_v2 }
 0xb27   : > { %v2638_v22 = vpop.f32.mrb[28].mxu0 }
 0xb28   : > { %v2642_v25 = vpack.c.bf16 %v2638_v22, %v2638_v22  ;;  %v8034_v26 = vpop.f32.mrb[29].mxu0 }
 0xb29   : > { %v3112_v26 = vld [vmem:[%s9963_s7] sm:$0xff] }
 0xb2a   : > { %8038 = vmatmul.mubr.msk.bf16.vlgmr.msra.gmra.mrb[28].mxu1 %vm1712_vm3, %v2642_v25  ;;  %v8416_v25 = vld [vmem:[%s9962_s0 + $0x8] sm:$0xff]  }
 0xb2b   : > { %8050 = vmatpush3.bf16.msra.mxu1 %v8409_v24  ;;  %8053 = vmatprep.mubr.msk.bf16.mxu1 %vm8736_vm1, %v8735_v2  ;;  %v8415_v24 = vld [vmem:[%s9962_s0] sm:$0xff]  }
 0xb2c   : > { %8051 = vmatprep.subr.bf16.mxu1 %v8735_v2 }
 0xb2f   : > { %8052 = vmatpush3.bf16.msra.mxu1 %v8411_v28  ;;  %v2742_v29 = vpop.f32.mrb[32].mxu0  ;;  %v3113_v28 = vld [vmem:[%s9963_s7 + $0x8] sm:$0xff] }
 0xb30   : > { %8065 = vmatprep.subr.mxu1 %v8735_v2  ;;  %v8047_v30 = vpop.f32.mrb[33].mxu0  ;;  %v2743_v44 = vadd.f32 %v7338_v39, %v2742_v29  ;;  %v9284_v29 = vpack.c.bf16 %v3113_v28, %v3112_v26  ;;  %v7356_v39 = vld [vmem:[%s9968_s4] ss:$0 sm:$0xff]  ;;  %v7377_v28 = vld [vmem:[%s9969_s5 + $0x1] ss:$0 sm:$0xff] }
 0xb31   : > { %v2745_v31 = vpop.f32.mrb[34].mxu0  ;;  %v8417_v30 = vld [vmem:[%s9964_s11] sm:$0xff]  }
 0xb32   : > { %8054 = vmatmul.mubr.msk.bf16.vlgmr.msra.gmra.mrb[32].mxu1 %vm1552_vm2, %v9086_v7  ;;  %v8048_v32 = vpop.f32.mrb[35].mxu0  ;;  %v8418_v31 = vld [vmem:[%s9964_s11 + $0x8] sm:$0xff]  }
 0xb33   : > { %8067 = vmatprep.mubr.msk.f32.mxu1 %vm8736_vm1, %v8735_v2  ;;  %v8737_v32 = vmov 0.0|0.0  }
 0xb37   : > { %v2858_v7 = vpop.f32.mrb[36].mxu0 }
 0xb38   : > { %v8063_v58 = vpop.f32.mrb[37].mxu0  ;;  %v2859_v62 = vadd.f32 %v7346_v60, %v2858_v7 }
 0xb39   : > { %v2861_v59 = vpop.f32.mrb[38].mxu0 }
 0xb3a   : > { %v8064_v61 = vpop.f32.mrb[39].mxu0 }
 0xb3b   : > { %v7365_v61 = vld [vmem:[%s9043_s15] ss:$0 sm:$0xff] }
 0xbfd   : > { %v2683_v33 = vpop.f32.mrb[28].mxu1 }
 0xbfe   : > { %v2689_v34 = vadd.f32 %v2683_v33, %v9200_v49  ;;  %v8039_v35 = vpop.f32.mrb[29].mxu1 }
 0xbff   : > { %v2686_v36 = vpop.f32.mrb[30].mxu1 }
 0xc00   : > { %v8040_v37 = vpop.f32.mrb[31].mxu1 }
 0xc01   : > { %v7355_v37 = vld [vmem:[%s9967_s9] ss:$0 sm:$0xff] }
 0xc05   : > { %v2800_v40 = vpop.f32.mrb[32].mxu1 }
 0xc06   : > { %v2801_v41 = vadd.f32 %v7342_v38, %v2800_v40  ;;  %v8055_v42 = vpop.f32.mrb[33].mxu1 }
 0xc07   : > { %v2803_v43 = vpop.f32.mrb[34].mxu1  ;;  %v8419_v42 = vld [vmem:[%s9040_s25] sm:$0xff]  }
 0xc08   : > { %v8056_v45 = vpop.f32.mrb[35].mxu1  ;;  %8066 = vmatpush3.xpose.msk.msra.mxu1 %vm1712_vm3, %v2801_v41 }
 0xc09   : > { %8070 = vmatprep.subr.mxu1 %v8735_v2  ;;  %v8421_v45 = vld [vmem:[%s9964_s11 + $0x10] sm:$0xff]  }
 0xc0b   : > { %8068 = vmatmul.mubr.msk.f32.vlgmr.msra.gmra.mrb[14].mxu1 %vm1712_vm3, %v2743_v44  ;;  %v8420_v44 = vld [vmem:[%s9040_s25 + $0x8] sm:$0xff]  }
 0xc0c   : > { %8072 = vmatprep.mubr.msk.f32.mxu1 %vm8736_vm1, %v8735_v2  ;;  %8071 = vmatpush3.msra.mxu1 %v2859_v62 }
 0xc0d   : > { %8081 = vmatprep.subr.bf16.mxu1 %v8735_v2 }
 0xcde   : > { %v2936_v48 = vpop.f32.mrb[14].mxu1 }
 0xcdf   : > { %v2940_v49 = vmul.f32 0.35355338, %v2936_v48  ;;  %v8069_v50 = vpop.f32.mrb[15].mxu1 }
 0xce1   : > { %v2941_v51 = vadd.f32 %v2940_v49, %v9120_v27 }
 0xce3   : > { %v2942_v52 = vsel %vm1712_vm3, %v2941_v51, -inf }
 0xce4   : > { %2943 = vmax.xlane.f32.xlu0 %v2942_v52 }
 0xd71   : > { %v2944_v53 = vpop.xlane.xlu0 %2943 }
 0xd72   : > { %v2945_v54 = vsub.f32 %v2941_v51, %v2944_v53 }
 0xd74   : > { %v2946_v55 = vmul.f32 1.442695, %v2945_v54 }
 0xd76   : > { %8579 = vpow2.f32 %v2946_v55 }
 0xd80   : > { %v8580_v56 = vpop.eup %8579 }
 0xd81   : > { %v2948_v57 = vsel %vm1712_vm3, %v8580_v56, 0.0 }
 0xd82   : > { %2949 = vadd.xlane.f32.xlu1 %v2948_v57 }
 0xe0f   : > { %v2950_v27 = vpop.xlane.xlu1 %2949 }
 0xe10   : > { %8581 = vrcp.f32 %v2950_v27 }
 0xe1a   : > { %v8582_v63 = vpop.eup %8581 }
 0xe1b   : > { %v2952_v0 = vmul.f32 %v8582_v63, %v8580_v56  ;;  %v7357_v56 = vld [vmem:[%s9970_s13] ss:$0 sm:$0xff] }
 0xe1d   : > { %8073 = vmatmul.mubr.msk.f32.vlgmr.msra.gmra.mrb[36].mxu1 %vm1712_vm3, %v2952_v0 }
 0xe1e   : > { %8085 = vmatprep.mubr.msk.bf16.mxu1 %vm8736_vm1, %v8735_v2  ;;  %8082 = vmatpush3.bf16.msra.mxu1 %v8417_v30 }
 0xe1f   : > { %8083 = vmatprep.subr.bf16.mxu1 %v8735_v2 }
 0xe22   : > { %8084 = vmatpush3.bf16.msra.mxu1 %v8418_v31 }
 0xe23   : > { %8097 = vmatprep.subr.bf16.mxu1 %v8735_v2 }
 0xef0   : > { %v3022_v4 = vpop.f32.mrb[36].mxu1 }
 0xef1   : > { %v3026_v5 = vpack.c.bf16 %v3022_v4, %v3022_v4  ;;  %v8074_v6 = vpop.f32.mrb[37].mxu1 }
 0xef3   : > { %8078 = vmatmul.mubr.msk.bf16.vlgmr.msra.gmra.mrb[40].mxu0 %vm1712_vm3, %v3026_v5 }
 0xef4   : > { %8093 = vmatprep.mubr.msk.bf16.mxu0 %vm8736_vm1, %v8735_v2  ;;  %8090 = vmatpush3.bf16.msra.mxu0 %v8415_v24  ;;  %v8424_v24 = vld [vmem:[%s9962_s0 + $0x18] sm:$0xff]  }
 0xef5   : > { %8091 = vmatprep.subr.bf16.mxu0 %v8735_v2 }
 0xef8   : > { %8092 = vmatpush3.bf16.msra.mxu0 %v8416_v25 }
 0xef9   : > { %8257 = vmatprep.subr.bf16.mxu0 %v8737_v32 }
 0xefb   : > { %8094 = vmatmul.mubr.msk.bf16.vlgmr.msra.gmra.mrb[44].mxu0 %vm1552_vm2, %v9284_v29 }
 0xefc   : > { %8109 = vmatprep.mubr.msk.f32.mxu0 %vm8736_vm1, %v8735_v2 }
 0xfc6   : > { %v3067_v9 = vpop.f32.mrb[40].mxu0 }
 0xfc7   : > { %v3073_v10 = vadd.f32 %v3067_v9, %v2689_v34  ;;  %v8079_v11 = vpop.f32.mrb[41].mxu0 }
 0xfc8   : > { %v3070_v12 = vpop.f32.mrb[42].mxu0 }
 0xfc9   : > { %v3080_v13 = vadd.f32 %v7354_v8, %v3073_v10  ;;  %v8080_v14 = vpop.f32.mrb[43].mxu0 }
 0xfcb   : > { %v3081_v16 = vadd.f32 %v8605_v15, %v3080_v13 }
 0xfcd   : > { %v3084_v17 = vsel %vm1552_vm2, %v3081_v16, 0.0 }
 0xfce   : > { %3085 = vadd.xlane.f32.xlu0 %v3084_v17  ;;  %v3297_v48 = vpop.f32.mrb[44].mxu0 }
 0xfcf   : > { %v3298_v49 = vadd.f32 %v7361_v47, %v3297_v48  ;;  %v8095_v50 = vpop.f32.mrb[45].mxu0 }
 0xfd0   : > { %v3300_v51 = vpop.f32.mrb[46].mxu0 }
 0xfd1   : > { %v3301_v52 = vadd.f32 %v7361_v47, %v3300_v51  ;;  %v8096_v53 = vpop.f32.mrb[47].mxu0 }
 0xfd3   : > { %v8258_v55 = vpack.c.bf16 %v3301_v52, %v3298_v49 }
 0xfd5   : > { %8260 = vmatpush3.bf16.xpose.msk.msra.mxu0 %vm9330_vm6, %v8258_v55 }
 0xfd6   : > { %8261 = vmatprep.subr.bf16.mxu0 %v8737_v32 }
0x105b   : > { %v3086_v18 = vpop.xlane.xlu0 %3085 }
0x105c   : > { %v3088_v19 = vmul.f32 0.03125, %v3086_v18 }
0x105e   : > { %v3089_v20 = vsub.f32 %v3081_v16, %v3088_v19 }
0x1060   : > { %v3090_v21 = vmul.f32 %v3089_v20, %v3089_v20 }
0x1062   : > { %v3091_v22 = vsel %vm1552_vm2, %v3090_v21, 0.0  ;;  %v8423_v21 = vld [vmem:[%s9962_s0 + $0x10] sm:$0xff]  }
0x1063   : > { %3092 = vadd.xlane.f32.xlu1 %v3091_v22 }
0x10f0   : > { %v3093_v33 = vpop.xlane.xlu1 %3092 }
0x10f1   : > { %v3094_v34 = vmul.f32 0.03125, %v3093_v33 }
0x10f3   : > { %v3095_v35 = vadd.f32 1e-05, %v3094_v34 }
0x10f5   : > { %8583 = vrsqrt.f32 %v3095_v35 }
0x10ff   : > { %v8584_v36 = vpop.eup %8583 }
0x1100   : > { %v3097_v38 = vmul.f32 %v8584_v36, %v3089_v20 }
0x1102   : > { %v3104_v40 = vmul.f32 %v7355_v37, %v3097_v38  ;;  %v7373_v38 = vld [vmem:[%s9970_s13 + $0x1] ss:$0 sm:$0xff] }
0x1104   : > { %v9301_v41 = vadd.f32 %v7356_v39, %v3104_v40  ;;  %v8425_v40 = vld [vmem:[%s9040_s25 + $0x10] sm:$0xff]  }
0x1106   : > { %v9306_v43 = vpack.c.bf16 %v9301_v41, %v9301_v41 }
0x1108   : > { %8086 = vmatmul.mubr.msk.bf16.vlgmr.msra.gmra.mrb[40].mxu1 %vm1552_vm2, %v9306_v43 }
0x1109   : > { %8098 = vmatpush3.bf16.msra.mxu1 %v8419_v42  ;;  %8101 = vmatprep.mubr.msk.bf16.mxu1 %vm8736_vm1, %v8735_v2  ;;  %v8426_v42 = vld [vmem:[%s9040_s25 + $0x18] sm:$0xff]  }
0x110a   : > { %8099 = vmatprep.subr.bf16.mxu1 %v8735_v2 }
0x110d   : > { %8100 = vmatpush3.bf16.msra.mxu1 %v8420_v44 }
0x110e   : > { %8119 = vmatprep.subr.bf16.mxu1 %v8735_v2 }
0x1110   : > { %8102 = vmatmul.mubr.msk.bf16.vlgmr.msra.gmra.mrb[44].mxu1 %vm1552_vm2, %v9284_v29 }
0x1111   : > { %8120 = vmatpush3.bf16.msra.mxu1 %v8421_v45  ;;  %8123 = vmatprep.mubr.msk.bf16.mxu1 %vm8736_vm1, %v8735_v2 }
0x1112   : > { %8121 = vmatprep.subr.bf16.mxu1 %v8735_v2 }
0x1115   : > { %8122 = vmatpush3.bf16.msra.mxu1 %v8422_v46 }
0x1116   : > { %8135 = vmatprep.subr.bf16.mxu1 %v8735_v2 }
0x1118   : > { %8124 = vmatmul.mubr.msk.bf16.vlgmr.msra.gmra.mrb[48].mxu1 %vm1552_vm2, %v9306_v43 }
0x1119   : > { %8139 = vmatprep.mubr.msk.bf16.mxu1 %vm8736_vm1, %v8735_v2  ;;  %8136 = vmatpush3.bf16.msra.mxu1 %v8425_v40  ;;  %v8431_v40 = vld [vmem:[%s9040_s25 + $0x20] sm:$0xff]  }
0x111a   : > { %8137 = vmatprep.subr.bf16.mxu1 %v8735_v2 }
0x111d   : > { %8138 = vmatpush3.bf16.msra.mxu1 %v8426_v42  ;;  %v8432_v42 = vld [vmem:[%s9040_s25 + $0x28] sm:$0xff]  }
0x111e   : > { %8268 = vmatprep.subr.bf16.mxu1 %v8737_v32 }
0x1120   : > { %8140 = vmatmul.mubr.msk.bf16.vlgmr.msra.gmra.mrb[52].mxu1 %vm1552_vm2, %v9284_v29 }
0x1121   : > { %8154 = vmatprep.mubr.msk.f32.mxu1 %vm8736_vm1, %v8735_v2 }
0x11db   : > { %v3235_v57 = vpop.f32.mrb[40].mxu1 }
0x11dc   : > { %v3236_v7 = vadd.f32 %v7357_v56, %v3235_v57  ;;  %v8087_v58 = vpop.f32.mrb[41].mxu1  ;;  %v7381_v57 = vld [vmem:[%s9043_s15 + $0x1] ss:$0 sm:$0xff] }
0x11dd   : > { %v3238_v59 = vpop.f32.mrb[42].mxu1 }
0x11de   : > { %v8088_v60 = vpop.f32.mrb[43].mxu1  ;;  %8110 = vmatmul.mubr.msk.f32.vlgmr.msra.gmra.mrb[30].mxu0 %vm1712_vm3, %v3236_v7 }
0x11df   : > { %8116 = vmatprep.mubr.msk.f32.mxu0 %vm8736_vm1, %v8735_v2 }
0x11e3   : > { %v3356_v62 = vpop.f32.mrb[44].mxu1 }
0x11e4   : > { %v3357_v27 = vadd.f32 %v7365_v61, %v3356_v62  ;;  %v8103_v63 = vpop.f32.mrb[45].mxu1  ;;  %v3174_v62 = vld [vmem:[%s9046_s29] sm:$0xf] }
0x11e5   : > { %v3359_v0 = vpop.f32.mrb[46].mxu1 }
0x11e6   : > { %v3360_v1 = vadd.f32 %v7365_v61, %v3359_v0  ;;  %v8104_v3 = vpop.f32.mrb[47].mxu1  ;;  %v3920_v0 = vsel %vm2216_vm5, %v3174_v62, 0 }
0x11e8   : > { %v8262_v4 = vpack.c.bf16 %v3360_v1, %v3357_v27  ;;  %v8427_v1 = vld [vmem:[%s9962_s0 + $0x20] sm:$0xff]  }
0x11ea   : > { %8263 = vmatpush3.bf16.msra.mxu0 %v8262_v4  ;;  %v8428_v4 = vld [vmem:[%s9962_s0 + $0x28] sm:$0xff]  }
0x11eb   : > { %v3581_v5 = vpop.f32.mrb[48].mxu1  ;;  %8127 = vmatprep.subr.bf16.mxu0 %v8735_v2 }
0x11ec   : > { %v8125_v6 = vpop.f32.mrb[49].mxu1  ;;  %v3582_v39 = vadd.f32 %v7373_v38, %v3581_v5  ;;  %v3175_v5 = vld [vmem:[%s9046_s29 + $0x4] sm:$0xf] }
0x11ed   : > { %v3584_v8 = vpop.f32.mrb[50].mxu1  ;;  %v3874_v6 = vsel %vm2216_vm5, %v3175_v5, 0  ;;  %v8435_v5 = vld [vmem:[%s9962_s0 + $0x30] sm:$0xff]  }
0x11ee   : > { %v8126_v9 = vpop.f32.mrb[51].mxu1 }
0x11ef   : > { %v8429_v9 = vld [vmem:[%s9964_s11 + $0x20] sm:$0xff]  }
0x11f3   : > { %v3698_v53 = vpop.f32.mrb[52].mxu1 }
0x11f4   : > { %v8141_v55 = vpop.f32.mrb[53].mxu1  ;;  %v3699_v58 = vadd.f32 %v7381_v57, %v3698_v53 }
0x11f5   : > { %v3701_v56 = vpop.f32.mrb[54].mxu1 }
0x11f6   : > { %v8142_v7 = vpop.f32.mrb[55].mxu1  ;;  %v3702_v59 = vadd.f32 %v7381_v57, %v3701_v56  ;;  %v7399_v57 = vld [vmem:[%s9043_s15 + $0x2] ss:$0 sm:$0xff] }
0x11f8   : > { %v8269_v60 = vpack.c.bf16 %v3702_v59, %v3699_v58 }
0x11fa   : > { %8270 = vmatpush3.bf16.msra.mxu1 %v8269_v60 }
0x11fb   : > { %8163 = vmatprep.subr.bf16.mxu1 %v8735_v2 }
0x12b1   : > { %v3438_v10 = vpop.f32.mrb[30].mxu0 }
0x12b2   : > { %v3442_v11 = vmul.f32 0.35355338, %v3438_v10  ;;  %v8111_v12 = vpop.f32.mrb[31].mxu0 }
0x12b4   : > { %v3444_v13 = vsel %vm3443_vm7, %v3442_v11, -inf }
0x12b5   : > { %3445 = vmax.xlane.f32.xlu0 %v3444_v13  ;;  %v8430_v13 = vld [vmem:[%s9964_s11 + $0x28] sm:$0xff]  }
0x1342   : > { %v3446_v14 = vpop.xlane.xlu0 %3445 }
0x1343   : > { %v3447_v15 = vsub.f32 %v3442_v11, %v3446_v14 }
0x1345   : > { %v3448_v16 = vmul.f32 1.442695, %v3447_v15 }
0x1347   : > { %8585 = vpow2.f32 %v3448_v16 }
0x1351   : > { %v8586_v17 = vpop.eup %8585 }
0x1352   : > { %v3450_v18 = vsel %vm3443_vm7, %v8586_v17, 0.0 }
0x1353   : > { %3451 = vadd.xlane.f32.xlu1 %v3450_v18 }
0x13e0   : > { %v3452_v19 = vpop.xlane.xlu1 %3451 }
0x13e1   : > { %8587 = vrcp.f32 %v3452_v19 }
0x13eb   : > { %v8588_v20 = vpop.eup %8587 }
0x13ec   : > { %v3454_v22 = vmul.f32 %v8588_v20, %v8586_v17  ;;  %v7395_v17 = vld [vmem:[%s9969_s5 + $0x2] ss:$0 sm:$0xff] }
0x13ee   : > { %8117 = vmatmul.mubr.msk.f32.vlgmr.msra.gmra.mrb[48].mxu0 %vm3443_vm7, %v3454_v22 }
0x13ef   : > { %8128 = vmatpush3.bf16.msra.mxu0 %v8423_v21  ;;  %8131 = vmatprep.mubr.msk.bf16.mxu0 %vm8736_vm1, %v8735_v2 }
0x13f0   : > { %8129 = vmatprep.subr.bf16.mxu0 %v8735_v2 }
0x13f3   : > { %8130 = vmatpush3.bf16.msra.mxu0 %v8424_v24 }
0x13f4   : > { %8264 = vmatprep.subr.bf16.mxu0 %v8737_v32 }
0x13f6   : > { %8132 = vmatmul.mubr.msk.bf16.vlgmr.msra.gmra.mrb[52].mxu0 %vm1552_vm2, %v9284_v29 }
0x13f7   : > { %8147 = vmatprep.mubr.msk.f32.mxu0 %vm8736_vm1, %v8735_v2 }
0x14c1   : > { %v3524_v25 = vpop.f32.mrb[48].mxu0 }
0x14c2   : > { %v8118_v26 = vpop.f32.mrb[49].mxu0  ;;  %v3528_v3 = vpack.c.bf16 %v3524_v25, %v3524_v25 }
0x14c9   : > { %v3639_v30 = vpop.f32.mrb[52].mxu0 }
0x14ca   : > { %v8133_v31 = vpop.f32.mrb[53].mxu0  ;;  %v3640_v34 = vadd.f32 %v7377_v28, %v3639_v30 }
0x14cb   : > { %v3642_v33 = vpop.f32.mrb[54].mxu0 }
0x14cc   : > { %v3643_v35 = vadd.f32 %v7377_v28, %v3642_v33  ;;  %v8134_v36 = vpop.f32.mrb[55].mxu0 }
0x14ce   : > { %v8265_v37 = vpack.c.bf16 %v3643_v35, %v3640_v34  ;;  %v7391_v34 = vld [vmem:[%s9970_s13 + $0x2] ss:$0 sm:$0xff] }
0x14d0   : > { %8267 = vmatpush3.bf16.xpose.msk.msra.mxu0 %vm9330_vm6, %v8265_v37 }
0x14d1   : > { %8157 = vmatprep.subr.bf16.mxu0 %v8735_v2 }
0x14d7   : > { %8148 = vmatmul.mubr.msk.f32.vlgmr.msra.gmra.mrb[50].mxu0 %vm1712_vm3, %v3582_v39 }
0x14d8   : > { %8159 = vmatprep.mubr.msk.bf16.mxu0 %vm8736_vm1, %v8735_v2  ;;  %8158 = vmatpush3.bf16.msra.mxu0 %v3874_v6 }
0x14d9   : > { %8169 = vmatprep.subr.bf16.mxu0 %v8735_v2 }
0x15aa   : > { %v3780_v44 = vpop.f32.mrb[50].mxu0 }
0x15ab   : > { %v3784_v45 = vmul.f32 0.35355338, %v3780_v44  ;;  %v8149_v46 = vpop.f32.mrb[51].mxu0 }
0x15ad   : > { %v3785_v47 = vsel %vm3443_vm7, %v3784_v45, -inf }
0x15ae   : > { %3786 = vmax.xlane.f32.xlu0 %v3785_v47 }
0x163b   : > { %v3787_v48 = vpop.xlane.xlu0 %3786 }
0x163c   : > { %v3788_v49 = vsub.f32 %v3784_v45, %v3787_v48 }
0x163e   : > { %v3789_v50 = vmul.f32 1.442695, %v3788_v49 }
0x1640   : > { %8589 = vpow2.f32 %v3789_v50 }
0x164a   : > { %v8590_v51 = vpop.eup %8589 }
0x164b   : > { %v3791_v52 = vsel %vm3443_vm7, %v8590_v51, 0.0 }
0x164c   : > { %3792 = vadd.xlane.f32.xlu1 %v3791_v52 }
0x16d9   : > { %v3793_v61 = vpop.xlane.xlu1 %3792 }
0x16da   : > { %8591 = vrcp.f32 %v3793_v61 }
0x16e4   : > { %v8592_v27 = vpop.eup %8591 }
0x16e5   : > { %v3795_v63 = vmul.f32 %v8592_v27, %v8590_v51  ;;  %v8433_v27 = vld [vmem:[%s9964_s11 + $0x30] sm:$0xff]  }
0x16e7   : > { %8155 = vmatmul.mubr.msk.f32.vlgmr.msra.gmra.mrb[38].mxu1 %vm3443_vm7, %v3795_v63 }
0x16e8   : > { %8164 = vmatpush3.bf16.msra.mxu1 %v3920_v0  ;;  %8165 = vmatprep.mubr.msk.bf16.mxu1 %vm8736_vm1, %v8735_v2  ;;  %v8434_v0 = vld [vmem:[%s9964_s11 + $0x38] sm:$0xff]  }
0x16e9   : > { %8177 = vmatprep.subr.bf16.mxu1 %v8735_v2 }
0x16eb   : > { %8166 = vmatmul.mubr.msk.bf16.vlgmr.msra.gmra.mrb[56].mxu1 %vm1712_vm3, %v3528_v3 }
0x16ec   : > { %8178 = vmatpush3.bf16.msra.mxu1 %v8427_v1  ;;  %8181 = vmatprep.mubr.msk.bf16.mxu1 %vm8736_vm1, %v8735_v2  ;;  %v3176_v1 = vld [vmem:[%s9046_s29 + $0x8] sm:$0xf] }
0x16ed   : > { %8179 = vmatprep.subr.bf16.mxu1 %v8735_v2  ;;  %v4307_v3 = vsel %vm2216_vm5, %v3176_v1, 0 }
0x16f0   : > { %8180 = vmatpush3.bf16.msra.mxu1 %v8428_v4 }
0x16f1   : > { %8271 = vmatprep.subr.bf16.mxu1 %v8737_v32 }
0x16f3   : > { %8182 = vmatmul.mubr.msk.bf16.vlgmr.msra.gmra.mrb[60].mxu1 %vm1552_vm2, %v9284_v29 }
0x16f4   : > { %8197 = vmatprep.mubr.msk.f32.mxu1 %vm8736_vm1, %v8735_v2 }
0x17ba   : > { %v3865_v8 = vpop.f32.mrb[38].mxu1 }
0x17bb   : > { %v3869_v10 = vpack.c.bf16 %v3865_v8, %v3865_v8  ;;  %v8156_v11 = vpop.f32.mrb[39].mxu1 }
0x17bd   : > { %8160 = vmatmul.mubr.msk.bf16.vlgmr.msra.gmra.mrb[56].mxu0 %vm1712_vm3, %v3869_v10 }
0x17be   : > { %v3956_v12 = vpop.f32.mrb[56].mxu1  ;;  %8170 = vmatpush3.bf16.msra.mxu0 %v8429_v9  ;;  %8173 = vmatprep.mubr.msk.bf16.mxu0 %vm8736_vm1, %v8735_v2  ;;  %v8436_v9 = vld [vmem:[%s9962_s0 + $0x38] sm:$0xff]  }
0x17bf   : > { %v8167_v14 = vpop.f32.mrb[57].mxu1  ;;  %8171 = vmatprep.subr.bf16.mxu0 %v8735_v2 }
0x17c0   : > { %v3959_v15 = vpop.f32.mrb[58].mxu1 }
0x17c1   : > { %v8168_v16 = vpop.f32.mrb[59].mxu1 }
0x17c2   : > { %8172 = vmatpush3.bf16.msra.mxu0 %v8430_v13 }
0x17c3   : > { %8185 = vmatprep.subr.bf16.mxu0 %v8735_v2 }
0x17c5   : > { %8174 = vmatmul.mubr.msk.bf16.vlgmr.msra.gmra.mrb[60].mxu0 %vm1552_vm2, %v9306_v43 }
0x17c6   : > { %v4072_v18 = vpop.f32.mrb[60].mxu1  ;;  %8189 = vmatprep.mubr.msk.bf16.mxu0 %vm8736_vm1, %v8735_v2  ;;  %8186 = vmatpush3.bf16.msra.mxu0 %v8431_v40 }
0x17c7   : > { %v4073_v19 = vadd.f32 %v7395_v17, %v4072_v18  ;;  %v8183_v20 = vpop.f32.mrb[61].mxu1  ;;  %8187 = vmatprep.subr.bf16.mxu0 %v8735_v2  ;;  %v7412_v18 = vld [vmem:[%s9969_s5 + $0x3] ss:$0 sm:$0xff] }
0x17c8   : > { %v4075_v21 = vpop.f32.mrb[62].mxu1 }
0x17c9   : > { %v4076_v22 = vadd.f32 %v7395_v17, %v4075_v21  ;;  %v8184_v24 = vpop.f32.mrb[63].mxu1 }
0x17ca   : > { %8188 = vmatpush3.bf16.msra.mxu0 %v8432_v42 }
0x17cb   : > { %v8272_v25 = vpack.c.bf16 %v4076_v22, %v4073_v19  ;;  %8207 = vmatprep.subr.bf16.mxu0 %v8735_v2 }
0x17cd   : > { %8274 = vmatpush3.bf16.xpose.msk.msra.mxu1 %vm9330_vm6, %v8272_v25  ;;  %8190 = vmatmul.mubr.msk.bf16.vlgmr.msra.gmra.mrb[64].mxu0 %vm1552_vm2, %v9284_v29 }
0x17ce   : > { %8275 = vmatprep.subr.bf16.mxu1 %v8737_v32  ;;  %8209 = vmatprep.mubr.msk.bf16.mxu0 %vm8736_vm1, %v8735_v2 }
0x17cf   : > { %8208 = vmatpush3.bf16.msra.mxu0 %v4307_v3 }
0x17d0   : > { %8221 = vmatprep.subr.bf16.mxu0 %v8735_v2 }
0x1890   : > { %v3910_v26 = vpop.f32.mrb[56].mxu0 }
0x1891   : > { %v9411_v28 = vadd.f32 %v3956_v12, %v3910_v26  ;;  %v8161_v30 = vpop.f32.mrb[57].mxu0 }
0x1892   : > { %v3913_v31 = vpop.f32.mrb[58].mxu0  ;;  %v7408_v30 = vld [vmem:[%s9970_s13 + $0x3] ss:$0 sm:$0xff] }
0x1893   : > { %v8162_v33 = vpop.f32.mrb[59].mxu0  ;;  %v8437_v31 = vld [vmem:[%s9040_s25 + $0x30] sm:$0xff]  }
0x1894   : > { %v8438_v33 = vld [vmem:[%s9040_s25 + $0x38] sm:$0xff]  }
0x1898   : > { %v4014_v35 = vpop.f32.mrb[60].mxu0 }
0x1899   : > { %v4015_v36 = vadd.f32 %v7391_v34, %v4014_v35  ;;  %v8175_v37 = vpop.f32.mrb[61].mxu0 }
0x189a   : > { %v4017_v38 = vpop.f32.mrb[62].mxu0 }
0x189b   : > { %v8176_v39 = vpop.f32.mrb[63].mxu0  ;;  %8198 = vmatmul.mubr.msk.f32.vlgmr.msra.gmra.mrb[64].mxu1 %vm1712_vm3, %v4015_v36 }
0x189c   : > { %8204 = vmatprep.mubr.msk.f32.mxu1 %vm8736_vm1, %v8735_v2 }
0x18a0   : > { %v4131_v53 = vpop.f32.mrb[64].mxu0 }
0x18a1   : > { %v8191_v55 = vpop.f32.mrb[65].mxu0  ;;  %v4132_v58 = vadd.f32 %v7399_v57, %v4131_v53 }
0x18a2   : > { %v4134_v56 = vpop.f32.mrb[66].mxu0 }
0x18a3   : > { %v8192_v7 = vpop.f32.mrb[67].mxu0  ;;  %v4135_v59 = vadd.f32 %v7399_v57, %v4134_v56 }
0x18a4   : > { %v7425_v7 = vld [vmem:[%s1415_s30] ss:$0 sm:$0xff] }
0x18a5   : > { %v8276_v60 = vpack.c.bf16 %v4135_v59, %v4132_v58 }
0x18a7   : > { %8277 = vmatpush3.bf16.msra.mxu1 %v8276_v60 }
0x18a8   : > { %8213 = vmatprep.subr.bf16.mxu1 %v8735_v2 }
0x196e   : > { %v4213_v44 = vpop.f32.mrb[64].mxu1 }
0x196f   : > { %v4217_v45 = vmul.f32 0.35355338, %v4213_v44  ;;  %v8199_v46 = vpop.f32.mrb[65].mxu1 }
0x1971   : > { %v4218_v47 = vsel %vm3443_vm7, %v4217_v45, -inf }
0x1972   : > { %4219 = vmax.xlane.f32.xlu0 %v4218_v47 }
0x19ff   : > { %v4220_v48 = vpop.xlane.xlu0 %4219 }
0x1a00   : > { %v4221_v49 = vsub.f32 %v4217_v45, %v4220_v48 }
0x1a02   : > { %v4222_v50 = vmul.f32 1.442695, %v4221_v49 }
0x1a04   : > { %8593 = vpow2.f32 %v4222_v50 }
0x1a0e   : > { %v8594_v51 = vpop.eup %8593 }
0x1a0f   : > { %v4224_v52 = vsel %vm3443_vm7, %v8594_v51, 0.0 }
0x1a10   : > { %4225 = vadd.xlane.f32.xlu1 %v4224_v52  ;;  %v3177_v52 = vld [vmem:[%s9046_s29 + $0xc] sm:$0xf] }
0x1a11   : > { %v4695_v53 = vsel %vm2216_vm5, %v3177_v52, 0  ;;  %v4788_v52 = vld [vmem:[%s9059_s2 + $0x68] sm:$0xff] }
0x1a9d   : > { %v4226_v61 = vpop.xlane.xlu1 %4225 }
0x1a9e   : > { %8595 = vrcp.f32 %v4226_v61 }
0x1aa8   : > { %v8596_v62 = vpop.eup %8595 }
0x1aa9   : > { %v4228_v63 = vmul.f32 %v8596_v62, %v8594_v51 }
0x1aab   : > { %8205 = vmatmul.mubr.msk.f32.vlgmr.msra.gmra.mrb[66].mxu1 %vm3443_vm7, %v4228_v63 }
0x1aac   : > { %8214 = vmatpush3.bf16.msra.mxu1 %v8433_v27  ;;  %8217 = vmatprep.mubr.msk.bf16.mxu1 %vm8736_vm1, %v8735_v2 }
0x1aad   : > { %8215 = vmatprep.subr.bf16.mxu1 %v8735_v2 }
0x1ab0   : > { %8216 = vmatpush3.bf16.msra.mxu1 %v8434_v0 }
0x1ab1   : > { %8229 = vmatprep.subr.bf16.mxu1 %v8735_v2 }
0x1ab3   : > { %8218 = vmatmul.mubr.msk.bf16.vlgmr.msra.gmra.mrb[68].mxu1 %vm1552_vm2, %v9306_v43 }
0x1ab4   : > { %8233 = vmatprep.mubr.msk.bf16.mxu1 %vm8736_vm1, %v8735_v2  ;;  %8230 = vmatpush3.bf16.msra.mxu1 %v8437_v31 }
0x1ab5   : > { %8231 = vmatprep.subr.bf16.mxu1 %v8735_v2 }
0x1ab8   : > { %8232 = vmatpush3.bf16.msra.mxu1 %v8438_v33 }
0x1ab9   : > { %8251 = vmatprep.subr.bf16.mxu1 %v8735_v2 }
0x1abb   : > { %8234 = vmatmul.mubr.msk.bf16.vlgmr.msra.gmra.mrb[72].mxu1 %vm1552_vm2, %v9284_v29 }
0x1abc   : > { %8253 = vmatprep.mubr.msk.bf16.mxu1 %vm8736_vm1, %v8735_v2  ;;  %8252 = vmatpush3.bf16.msra.mxu1 %v4695_v53 }
0x1b7e   : > { %v4298_v4 = vpop.f32.mrb[66].mxu1 }
0x1b7f   : > { %v4302_v6 = vpack.c.bf16 %v4298_v4, %v4298_v4  ;;  %v8206_v8 = vpop.f32.mrb[67].mxu1 }
0x1b80   : > { %v4775_v8 = vld [vmem:[%s9059_s2] sm:$0xff] }
0x1b81   : > { %8210 = vmatmul.mubr.msk.bf16.vlgmr.msra.gmra.mrb[68].mxu0 %vm1712_vm3, %v4302_v6 }
0x1b82   : > { %8222 = vmatpush3.bf16.msra.mxu0 %v8435_v5  ;;  %8225 = vmatprep.mubr.msk.bf16.mxu0 %vm8736_vm1, %v8735_v2 }
0x1b83   : > { %8223 = vmatprep.subr.bf16.mxu0 %v8735_v2 }
0x1b86   : > { %v4402_v43 = vpop.f32.mrb[68].mxu1  ;;  %8224 = vmatpush3.bf16.msra.mxu0 %v8436_v9  ;;  %v4783_v9 = vld [vmem:[%s9059_s2 + $0x40] sm:$0xff] }
0x1b87   : > { %v8219_v10 = vpop.f32.mrb[69].mxu1  ;;  %8278 = vmatprep.subr.bf16.mxu0 %v8737_v32 }
0x1b88   : > { %v4405_v11 = vpop.f32.mrb[70].mxu1  ;;  %v7429_v10 = vcombine.high %v4775_v8, %v4783_v9 }
0x1b89   : > { %v8220_v12 = vpop.f32.mrb[71].mxu1  ;;  %8226 = vmatmul.mubr.msk.bf16.vlgmr.msra.gmra.mrb[72].mxu0 %vm1552_vm2, %v9284_v29  ;;  %v4784_v11 = vld [vmem:[%s9059_s2 + $0x48] sm:$0xff] }
0x1b8a   : > { %8241 = vmatprep.mubr.msk.f32.mxu0 %vm8736_vm1, %v8735_v2 }
0x1b8e   : > { %v4519_v29 = vpop.f32.mrb[72].mxu1 }
0x1b8f   : > { %v8235_v42 = vpop.f32.mrb[73].mxu1 }
0x1b90   : > { %v4522_v44 = vpop.f32.mrb[74].mxu1  ;;  %v4801_v42 = vld [vmem:[%s9059_s2 + $0xd0] sm:$0xff] }
0x1b91   : > { %v8236_v45 = vpop.f32.mrb[75].mxu1 }
0x1c54   : > { %v4343_v13 = vpop.f32.mrb[68].mxu0 }
0x1c55   : > { %v4349_v14 = vadd.f32 %v4343_v13, %v9411_v28  ;;  %v8211_v15 = vpop.f32.mrb[69].mxu0  ;;  %v4403_v28 = vadd.f32 %v7408_v30, %v4402_v43  ;;  %v4776_v43 = vld [vmem:[%s9059_s2 + $0x8] sm:$0xff] }
0x1c56   : > { %v4346_v16 = vpop.f32.mrb[70].mxu0  ;;  %v7430_v12 = vcombine.low %v4776_v43, %v4784_v11  ;;  %v7431_v13 = vcombine.high %v4776_v43, %v4784_v11  ;;  %v4799_v15 = vld [vmem:[%s9059_s2 + $0xc0] sm:$0xff]  ;;  %v4797_v43 = vld [vmem:[%s9059_s2 + $0xb0] sm:$0xff]  ;;  %v4798_v11 = vld [vmem:[%s9059_s2 + $0xb8] sm:$0xff] }
0x1c57   : > { %v8212_v17 = vpop.f32.mrb[71].mxu0  ;;  %v4792_v16 = vld [vmem:[%s9059_s2 + $0x88] sm:$0xff] }
0x1c58   : > { %5096 = vmatprep.subr.bf16.mxu1 %v7431_v13 }
0x1c5c   : > { %v4460_v19 = vpop.f32.mrb[72].mxu0 }
0x1c5d   : > { %v8227_v20 = vpop.f32.mrb[73].mxu0  ;;  %v4461_v22 = vadd.f32 %v7412_v18, %v4460_v19 }
0x1c5e   : > { %v4463_v21 = vpop.f32.mrb[74].mxu0 }
0x1c5f   : > { %v4464_v24 = vadd.f32 %v7412_v18, %v4463_v21  ;;  %v8228_v25 = vpop.f32.mrb[75].mxu0  ;;  %v4800_v18 = vld [vmem:[%s9059_s2 + $0xc8] sm:$0xff] }
0x1c60   : > { %v7446_v20 = vcombine.low %v4792_v16, %v4800_v18  ;;  %v7447_v21 = vcombine.high %v4792_v16, %v4800_v18  ;;  %v4778_v25 = vld [vmem:[%s9059_s2 + $0x18] sm:$0xff]  ;;  %v8439_v18 = vld [vmem:[%s9063_s10 + $0x40] sm:$0xff]  }
0x1c61   : > { %v8279_v26 = vpack.c.bf16 %v4464_v24, %v4461_v22  ;;  %v4777_v22 = vld [vmem:[%s9059_s2 + $0x10] sm:$0xff] }
0x1c62   : > { %v4785_v24 = vld [vmem:[%s9059_s2 + $0x50] sm:$0xff] }
0x1c63   : > { %8281 = vmatpush3.bf16.xpose.msk.msra.mxu0 %vm9330_vm6, %v8279_v26  ;;  %v8738_v26 = vmov 0   ;;  %v7433_v30 = vcombine.high %v4777_v22, %v4785_v24  ;;  %v7432_v31 = vcombine.low %v4777_v22, %v4785_v24  ;;  %v8443_v22 = vld [vmem:[%s9063_s10 + $0x48] sm:$0xff]  }
0x1c64   : > { %8282 = vmatprep.subr.bf16.mxu0 %v8737_v32  ;;  %v8444_v24 = vld [vmem:[%s9063_s10 + $0xc8] sm:$0xff]  }
0x1c6a   : > { %8242 = vmatmul.mubr.msk.f32.vlgmr.msra.gmra.mrb[76].mxu0 %vm1712_vm3, %v4403_v28  ;;  %v4786_v28 = vld [vmem:[%s9059_s2 + $0x58] sm:$0xff] }
0x1c6b   : > { %8248 = vmatprep.mubr.msk.f32.mxu0 %vm8736_vm1, %v8735_v2  ;;  %v7416_v2 = vld [vmem:[%s9043_s15 + $0x3] ss:$0 sm:$0xff]  ;;  %v7434_v33 = vcombine.low %v4778_v25, %v4786_v28 }
0x1c6c   : > { %v4520_v46 = vadd.f32 %v7416_v2, %v4519_v29  ;;  %v4523_v47 = vadd.f32 %v7416_v2, %v4522_v44  ;;  %v4793_v29 = vld [vmem:[%s9059_s2 + $0x90] sm:$0xff]  ;;  %v4794_v44 = vld [vmem:[%s9059_s2 + $0x98] sm:$0xff] }
0x1c6d   : > { %v4802_v2 = vld [vmem:[%s9059_s2 + $0xd8] sm:$0xff]  ;;  %v7448_v53 = vcombine.low %v4793_v29, %v4801_v42 }
0x1c6e   : > { %v8283_v48 = vpack.c.bf16 %v4523_v47, %v4520_v46  ;;  %v7449_v47 = vcombine.high %v4793_v29, %v4801_v42  ;;  %v8460_v29 = vld [vmem:[%s9063_s10 + $0xe8] sm:$0xff]  }
0x1c6f   : > { %v8461_v42 = vld [vmem:[%s9063_s10 + $0x28] sm:$0xff]  }
0x1c70   : > { %8284 = vmatpush3.bf16.msra.mxu0 %v8283_v48  ;;  %v7451_v48 = vcombine.high %v4794_v44, %v4802_v2 }
0x1c71   : > { %5055 = vmatprep.subr.bf16.mxu0 %v7429_v10  ;;  %v4805_v10 = vld [vmem:[%s9059_s2 + $0xf0] sm:$0xff] }
0x1c72   : > { %v7456_v16 = vcombine.low %v4797_v43, %v4805_v10 }
0x1d3d   : > { %v4601_v32 = vpop.f32.mrb[76].mxu0 }
0x1d3e   : > { %v4605_v54 = vmul.f32 0.35355338, %v4601_v32  ;;  %v8243_v34 = vpop.f32.mrb[77].mxu0  ;;  %v7435_v32 = vcombine.high %v4778_v25, %v4786_v28  ;;  %v8445_v25 = vld [vmem:[%s9063_s10 + $0x8] sm:$0xff]   ;;  %v8448_v28 = vld [vmem:[%s9063_s10 + $0xd0] sm:$0xff]  }
0x1d40   : > { %v4606_v35 = vsel %vm3443_vm7, %v4605_v54, -inf }
0x1d41   : > { %4607 = vmax.xlane.f32.xlu0 %v4606_v35 }
0x1dce   : > { %v4608_v36 = vpop.xlane.xlu0 %4607 }
0x1dcf   : > { %v4609_v37 = vsub.f32 %v4605_v54, %v4608_v36 }
0x1dd1   : > { %v4610_v38 = vmul.f32 1.442695, %v4609_v37  ;;  %v7426_v37 = vld [vmem:[%s1418_s6] ss:$0 sm:$0xff]  ;;  %s9979_s6 = sld [smem:[#allocation41_spill]] }
0x1dd3   : > { %8597 = vpow2.f32 %v4610_v38 }
0x1dd7   : > { %p7599_p1 = scmp.ne.s32.totalorder %s9979_s6, 1 }
0x1dd8   : > { %s9980_s15 = sld [smem:[#allocation35_spill]] (!%p7599_p1) }
0x1ddd   : > { %v8598_v39 = vpop.eup %8597 }
0x1dde   : > { %v4612_v40 = vsel %vm3443_vm7, %v8598_v39, 0.0 }
0x1ddf   : > { %4613 = vadd.xlane.f32.xlu1 %v4612_v40 }
0x1e6c   : > { %v4614_v49 = vpop.xlane.xlu1 %4613 }
0x1e6d   : > { %8599 = vrcp.f32 %v4614_v49  ;;  %v4779_v49 = vld [vmem:[%s9059_s2 + $0x20] sm:$0xff] }
0x1e77   : > { %v8600_v50 = vpop.eup %8599 }
0x1e78   : > { %v4616_v51 = vmul.f32 %v8600_v50, %v8598_v39  ;;  %v7427_v39 = vld [vmem:[%s1421_s24] ss:$0 sm:$0xff] }
0x1e79   : > { %v4787_v50 = vld [vmem:[%s9059_s2 + $0x60] sm:$0xff] }
0x1e7a   : > { %8249 = vmatmul.mubr.msk.f32.vlgmr.msra.gmra.mrb[78].mxu0 %vm3443_vm7, %v4616_v51  ;;  %v4780_v51 = vld [vmem:[%s9059_s2 + $0x28] sm:$0xff] }
0x1e7b   : > { %5087 = vmatprep.mubr.bf16.mxu0 %v8738_v26 }
0x1f4d   : > { %v4686_v55 = vpop.f32.mrb[78].mxu0 }
0x1f4e   : > { %v4690_v56 = vpack.c.bf16 %v4686_v55, %v4686_v55  ;;  %v8250_v57 = vpop.f32.mrb[79].mxu0  ;;  %v7450_v55 = vcombine.low %v4794_v44, %v4802_v2  ;;  %v8462_v44 = vld [vmem:[%s9063_s10 + $0xa8] sm:$0xff]   ;;  %v8463_v2 = vld [vmem:[%s9063_s10 + $0x70] sm:$0xff]  }
0x1f4f   : > { %v7439_v57 = vcombine.high %v4780_v51, %v4788_v52 }
0x1f50   : > { %8254 = vmatmul.mubr.msk.bf16.vlgmr.msra.gmra.mrb[76].mxu1 %vm1712_vm3, %v4690_v56  ;;  %v7437_v56 = vcombine.high %v4779_v49, %v4787_v50 }
0x1f51   : > { %5097 = vmatpush1.bf16.msra.mxu1 %v7430_v12  ;;  %5128 = vmatprep.mubr.bf16.mxu1 %v8738_v26 }
0x1f52   : > { %5098 = vmatprep.subr.bf16.mxu1 %v7447_v21  ;;  %v8442_v21 = vld [vmem:[%s9063_s10 + $0x80] sm:$0xff]  }
0x1f55   : > { %5099 = vmatpush1.bf16.msra.mxu1 %v7446_v20  ;;  %v8441_v20 = vld [vmem:[%s9063_s10] sm:$0xff]  }
0x1f56   : > { %5178 = vmatprep.subr.bf16.mxu1 %v7435_v32  ;;  %v8451_v32 = vld [vmem:[%s9063_s10 + $0x58] sm:$0xff]  }
0x2023   : > { %v4731_v58 = vpop.f32.mrb[76].mxu1 }
0x2024   : > { %v4737_v59 = vadd.f32 %v4731_v58, %v4349_v14  ;;  %v8255_v60 = vpop.f32.mrb[77].mxu1  ;;  %v4791_v14 = vld [vmem:[%s9059_s2 + $0x80] sm:$0xff] }
0x2025   : > { %v4734_v61 = vpop.f32.mrb[78].mxu1  ;;  %v7445_v17 = vcombine.high %v4791_v14, %v4799_v15  ;;  %v7444_v19 = vcombine.low %v4791_v14, %v4799_v15  ;;  %v4803_v58 = vld [vmem:[%s9059_s2 + $0xe0] sm:$0xff]  ;;  %v4804_v60 = vld [vmem:[%s9059_s2 + $0xe8] sm:$0xff]  ;;  %v7457_v14 = vcombine.high %v4797_v43, %v4805_v10 }
0x2026   : > { %v4744_v62 = vadd.f32 %v7425_v7, %v4737_v59  ;;  %v8256_v27 = vpop.f32.mrb[79].mxu1  ;;  %v4795_v7 = vld [vmem:[%s9059_s2 + $0xa0] sm:$0xff]  ;;  %v4796_v59 = vld [vmem:[%s9059_s2 + $0xa8] sm:$0xff]  ;;  %v7436_v61 = vcombine.low %v4779_v49, %v4787_v50  ;;  %v8467_v49 = vld [vmem:[%s9063_s10 + $0x78] sm:$0xff]  }
0x2027   : > { %v7453_v27 = vcombine.high %v4795_v7, %v4803_v58  ;;  %v8468_v50 = vld [vmem:[%s9063_s10 + $0xf8] sm:$0xff]  }
0x2028   : > { %v4745_v63 = vadd.f32 %v4744_v62, %v9301_v41  ;;  %v7428_v41 = vcombine.low %v4775_v8, %v4783_v9  ;;  %v7438_v62 = vcombine.low %v4780_v51, %v4788_v52  ;;  %v8469_v51 = vld [vmem:[%s9063_s10 + $0x38] sm:$0xff]  }
0x2029   : > { %v8470_v52 = vld [vmem:[%s9063_s10 + $0xb8] sm:$0xff]  }
0x202a   : > { %v4748_v0 = vsel %vm1552_vm2, %v4745_v63, 0.0  ;;  %5056 = vmatpush1.bf16.msra.mxu0 %v7428_v41  ;;  %v4806_v41 = vld [vmem:[%s9059_s2 + $0xf8] sm:$0xff] }
0x202b   : > { %4749 = vadd.xlane.f32.xlu0 %v4748_v0  ;;  %5057 = vmatprep.subr.bf16.mxu0 %v7445_v17  ;;  %v4781_v0 = vld [vmem:[%s9059_s2 + $0x30] sm:$0xff]  ;;  %v7459_v15 = vcombine.high %v4798_v11, %v4806_v41  ;;  %v7458_v17 = vcombine.low %v4798_v11, %v4806_v41 }
0x202e   : > { %5058 = vmatpush1.bf16.msra.mxu0 %v7444_v19  ;;  %v8440_v19 = vld [vmem:[%s9063_s10 + $0xc0] sm:$0xff]  }
0x202f   : > { %5137 = vmatprep.subr.bf16.mxu0 %v7433_v30  ;;  %v8447_v30 = vld [vmem:[%s9063_s10 + $0x50] sm:$0xff]  }
0x20b8   : > { %v4750_v1 = vpop.xlane.xlu0 %4749 }
0x20b9   : > { %v4751_v3 = vmul.f32 0.03125, %v4750_v1  ;;  %v4789_v1 = vld [vmem:[%s9059_s2 + $0x70] sm:$0xff] }
0x20ba   : > { %v7441_v8 = vcombine.high %v4781_v0, %v4789_v1  ;;  %v7440_v12 = vcombine.low %v4781_v0, %v4789_v1 }
0x20bb   : > { %v4752_v4 = vsub.f32 %v4745_v63, %v4751_v3  ;;  %v7455_v63 = vcombine.high %v4796_v59, %v4804_v60  ;;  %v4782_v3 = vld [vmem:[%s9059_s2 + $0x38] sm:$0xff] }
0x20bd   : > { %v4753_v5 = vmul.f32 %v4752_v4, %v4752_v4 }
0x20bf   : > { %v4754_v6 = vsel %vm1552_vm2, %v4753_v5, 0.0  ;;  %v7452_v5 = vcombine.low %v4795_v7, %v4803_v58  ;;  %v4814_v58 = vsub.s32 0, %v9113_v23 }
0x20c0   : > { %4755 = vadd.xlane.f32.xlu1 %v4754_v6  ;;  %v7454_v6 = vcombine.low %v4796_v59, %v4804_v60  ;;  %v4822_v59 = vsub.s32 2, %v9113_v23  ;;  %v9598_v60 = vld [vmem:[%s9056_s19] sm:$0xff] }
0x214d   : > { %v4756_v54 = vpop.xlane.xlu1 %4755 }
0x214e   : > { %v4757_v34 = vmul.f32 0.03125, %v4756_v54  ;;  %v8452_v54 = vld [vmem:[%s9063_s10 + $0xd8] sm:$0xff]  }
0x2150   : > { %v4758_v35 = vadd.f32 1e-05, %v4757_v34  ;;  %v8453_v34 = vld [vmem:[%s9063_s10 + $0x18] sm:$0xff]  }
0x2152   : > { %8601 = vrsqrt.f32 %v4758_v35  ;;  %v8454_v35 = vld [vmem:[%s9063_s10 + $0x98] sm:$0xff]  }
0x215c   : > { %v8602_v36 = vpop.eup %8601 }
0x215d   : > { %v4760_v38 = vmul.f32 %v8602_v36, %v4752_v4  ;;  %v4790_v4 = vld [vmem:[%s9059_s2 + $0x78] sm:$0xff]  ;;  %v8455_v36 = vld [vmem:[%s9063_s10 + $0x60] sm:$0xff]   ;;  %s9981_s2 = sld [smem:[#allocation36_spill]] (!%p7599_p1) }
0x215e   : > { %v7443_v9 = vcombine.high %v4782_v3, %v4790_v4  ;;  %v7442_v13 = vcombine.low %v4782_v3, %v4790_v4 }
0x215f   : > { %v4767_v40 = vmul.f32 %v7426_v37, %v4760_v38  ;;  %v8456_v37 = vld [vmem:[%s9063_s10 + $0xe0] sm:$0xff]  }
0x2160   : > { %v8457_v38 = vld [vmem:[%s9063_s10 + $0x20] sm:$0xff]  }
0x2161   : > { %v9508_v45 = vadd.f32 %v7427_v39, %v4767_v40  ;;  %v8458_v39 = vld [vmem:[%s9063_s10 + $0xa0] sm:$0xff]   ;;  %v8459_v40 = vld [vmem:[%s9063_s10 + $0x68] sm:$0xff]  }
0x2163   : > { %v9512_v46 = vpack.c.bf16 %v9508_v45, %v9508_v45 }
0x2165   : > { %7460 = vmatmul.mubr.msk.bf16.vlgmr.msra.gmra.mrb[80].mxu0 %vm1552_vm2, %v9512_v46  ;;  %7461 = vmatmul.mubr.msk.bf16.vlgmr.msra.gmra.mrb[80].mxu1 %vm1552_vm2, %v9512_v46 }
0x2166   : > { %5138 = vmatpush1.bf16.msra.mxu0 %v7432_v31  ;;  %5179 = vmatpush1.bf16.msra.mxu1 %v7434_v33  ;;  %v8449_v31 = vld [vmem:[%s9063_s10 + $0x10] sm:$0xff]  }
0x2167   : > { %5139 = vmatprep.subr.bf16.mxu0 %v7449_v47  ;;  %5180 = vmatprep.subr.bf16.mxu1 %v7451_v48  ;;  %v8450_v33 = vld [vmem:[%s9063_s10 + $0x90] sm:$0xff]  }
0x2168   : > { %5169 = vmatprep.mubr.bf16.mxu0 %v8738_v26  ;;  %5210 = vmatprep.mubr.bf16.mxu1 %v8738_v26  ;;  %v8465_v47 = vld [vmem:[%s9063_s10 + $0x30] sm:$0xff]  }
0x2169   : > { %v8466_v48 = vld [vmem:[%s9063_s10 + $0xb0] sm:$0xff]  }
0x216a   : > { %5140 = vmatpush1.bf16.msra.mxu0 %v7448_v53  ;;  %5181 = vmatpush1.bf16.msra.mxu1 %v7450_v55  ;;  %v8471_v53 = vld [vmem:[%s9063_s10 + $0x140] sm:$0xff]  }
0x216b   : > { %5219 = vmatprep.subr.bf16.mxu0 %v7437_v56  ;;  %5260 = vmatprep.subr.bf16.mxu1 %v7439_v57  ;;  %v8472_v55 = vld [vmem:[%s9063_s10 + $0x1c0] sm:$0xff]   ;;  %v4838_v56 = vsub.s32 6, %v9113_v23  ;;  %v9588_v57 = vld [vmem:[%s9056_s19 + $0x8] sm:$0xff] }
0x216d   : > { %7462 = vmatmul.mubr.msk.bf16.vlgmr.msra.gmra.mrb[84].mxu0 %vm1552_vm2, %v9512_v46  ;;  %7463 = vmatmul.mubr.msk.bf16.vlgmr.msra.gmra.mrb[84].mxu1 %vm1552_vm2, %v9512_v46  ;;  %v9593_v7 = vrot.slane %v9588_v57, %v4838_v56 }
0x216e   : > { %5220 = vmatpush1.bf16.msra.mxu0 %v7436_v61  ;;  %5261 = vmatpush1.bf16.msra.mxu1 %v7438_v62  ;;  %v4818_v61 = vsub.s32 1, %v9113_v23  ;;  %v4826_v62 = vsub.s32 3, %v9113_v23 }
0x216f   : > { %5221 = vmatprep.subr.bf16.mxu0 %v7453_v27  ;;  %5262 = vmatprep.subr.bf16.mxu1 %v7455_v63  ;;  %v4815_v27 = vrot.slane %v9598_v60, %v4814_v58  ;;  %v4823_v63 = vrot.slane %v9598_v60, %v4822_v59 }
0x2170   : > { %5251 = vmatprep.mubr.bf16.mxu0 %v8738_v26  ;;  %5292 = vmatprep.mubr.bf16.mxu1 %v8738_v26  ;;  %v4819_v0 = vrot.slane %v9598_v60, %v4818_v61  ;;  %v4827_v1 = vrot.slane %v9598_v60, %v4826_v62 }
0x2172   : > { %5222 = vmatpush1.bf16.msra.mxu0 %v7452_v5  ;;  %5263 = vmatpush1.bf16.msra.mxu1 %v7454_v6 }
0x2173   : > { %5301 = vmatprep.subr.bf16.mxu0 %v7441_v8  ;;  %5342 = vmatprep.subr.bf16.mxu1 %v7443_v9 }
0x2175   : > { %7464 = vmatmul.mubr.msk.bf16.vlgmr.msra.gmra.mrb[88].mxu0 %vm1552_vm2, %v9512_v46  ;;  %7465 = vmatmul.mubr.msk.bf16.vlgmr.msra.gmra.mrb[88].mxu1 %vm1552_vm2, %v9512_v46 }
0x2176   : > { %5302 = vmatpush1.bf16.msra.mxu0 %v7440_v12  ;;  %5343 = vmatpush1.bf16.msra.mxu1 %v7442_v13  ;;  %v4834_v12 = vsub.s32 5, %v9113_v23  ;;  %v4842_v13 = vsub.s32 7, %v9113_v23 }
0x2177   : > { %5303 = vmatprep.subr.bf16.mxu0 %v7457_v14  ;;  %5344 = vmatprep.subr.bf16.mxu1 %v7459_v15 }
0x2178   : > { %5333 = vmatprep.mubr.bf16.mxu0 %v8738_v26  ;;  %5374 = vmatprep.mubr.bf16.mxu1 %v8738_v26  ;;  %v8446_v26 = vld [vmem:[%s9063_s10 + $0x88] sm:$0xff]  }
0x217a   : > { %5304 = vmatpush1.bf16.msra.mxu0 %v7456_v16  ;;  %5345 = vmatpush1.bf16.msra.mxu1 %v7458_v17 }
0x217b   : > { %7745 = vmatprep.subr.bf16.mxu0 %v8439_v18  ;;  %7767 = vmatprep.subr.bf16.mxu1 %v8440_v19 }
0x217d   : > { %7466 = vmatmul.mubr.msk.bf16.vlgmr.msra.gmra.mrb[92].mxu0 %vm1552_vm2, %v9512_v46  ;;  %7467 = vmatmul.mubr.msk.bf16.vlgmr.msra.gmra.mrb[92].mxu1 %vm1552_vm2, %v9512_v46  ;;  %v8464_v46 = vld [vmem:[%s9063_s10 + $0xf0] sm:$0xff]  }
0x217e   : > { %7746 = vmatpush3.bf16.msra.mxu0 %v8441_v20  ;;  %7768 = vmatpush3.bf16.msra.mxu1 %v8442_v21 }
0x217f   : > { %7747 = vmatprep.subr.bf16.mxu0 %v8443_v22  ;;  %7769 = vmatprep.subr.bf16.mxu1 %v8444_v24  ;;  %v4835_v22 = vrot.slane %v9598_v60, %v4834_v12  ;;  %v4843_v24 = vrot.slane %v9598_v60, %v4842_v13 }
0x2182   : > { %7748 = vmatpush3.bf16.msra.mxu0 %v8445_v25  ;;  %7770 = vmatpush3.bf16.msra.mxu1 %v8446_v26  ;;  %v8473_v25 = vld [vmem:[%s9063_s10 + $0x100] sm:$0xff]  }
0x2183   : > { %7749 = vmatprep.subr.bf16.mxu0 %v8447_v30  ;;  %7771 = vmatprep.subr.bf16.mxu1 %v8448_v28  ;;  %v8474_v26 = vld [vmem:[%s9063_s10 + $0x180] sm:$0xff]  }
0x2186   : > { %7750 = vmatpush3.bf16.msra.mxu0 %v8449_v31  ;;  %7772 = vmatpush3.bf16.msra.mxu1 %v8450_v33  ;;  %v8475_v31 = vld [vmem:[%s9063_s10 + $0x148] sm:$0xff]  }
0x2187   : > { %7751 = vmatprep.subr.bf16.mxu0 %v8451_v32  ;;  %7773 = vmatprep.subr.bf16.mxu1 %v8452_v54  ;;  %v8476_v33 = vld [vmem:[%s9063_s10 + $0x1c8] sm:$0xff]  }
0x218a   : > { %7752 = vmatpush3.bf16.msra.mxu0 %v8453_v34  ;;  %7774 = vmatpush3.bf16.msra.mxu1 %v8454_v35 }
0x218b   : > { %7753 = vmatprep.subr.bf16.mxu0 %v8455_v36  ;;  %7775 = vmatprep.subr.bf16.mxu1 %v8456_v37 }
0x218e   : > { %7754 = vmatpush3.bf16.msra.mxu0 %v8457_v38  ;;  %7776 = vmatpush3.bf16.msra.mxu1 %v8458_v39 }
0x218f   : > { %7755 = vmatprep.subr.bf16.mxu0 %v8459_v40  ;;  %7777 = vmatprep.subr.bf16.mxu1 %v8460_v29  ;;  %v8477_v40 = vld [vmem:[%s9063_s10 + $0x108] sm:$0xff]  }
0x2190   : > { %v8478_v29 = vld [vmem:[%s9063_s10 + $0x188] sm:$0xff]  }
0x2192   : > { %7756 = vmatpush3.bf16.msra.mxu0 %v8461_v42  ;;  %7778 = vmatpush3.bf16.msra.mxu1 %v8462_v44 }
0x2193   : > { %7757 = vmatprep.subr.bf16.mxu0 %v8463_v2  ;;  %7779 = vmatprep.subr.bf16.mxu1 %v8464_v46  ;;  %v8479_v2 = vld [vmem:[%s9063_s10 + $0x150] sm:$0xff]  }
0x2194   : > { %v8480_v46 = vld [vmem:[%s9063_s10 + $0x1d0] sm:$0xff]  }
0x2196   : > { %7758 = vmatpush3.bf16.msra.mxu0 %v8465_v47  ;;  %7780 = vmatpush3.bf16.msra.mxu1 %v8466_v48 }
0x2197   : > { %7759 = vmatprep.subr.bf16.mxu0 %v8467_v49  ;;  %7781 = vmatprep.subr.bf16.mxu1 %v8468_v50  ;;  %v4847_v49 = vrot.slane %v9588_v57, %v4814_v58  ;;  %v4855_v50 = vrot.slane %v9588_v57, %v4822_v59 }
0x219a   : > { %7760 = vmatpush3.bf16.msra.mxu0 %v8469_v51  ;;  %7782 = vmatpush3.bf16.msra.mxu1 %v8470_v52 }
0x219b   : > { %7789 = vmatprep.subr.bf16.mxu0 %v8471_v53  ;;  %7811 = vmatprep.subr.bf16.mxu1 %v8472_v55  ;;  %v8481_v53 = vld [vmem:[%s9063_s10 + $0x110] sm:$0xff]  }
0x219c   : > { %v8482_v55 = vld [vmem:[%s9063_s10 + $0x190] sm:$0xff]  }
0x2238   : > { %v5089_v3 = vpop.f32.mrb[80].mxu0  ;;  %v5130_v4 = vpop.f32.mrb[80].mxu1 }
0x2239   : > { %v5090_v5 = vadd.f32 %v5089_v3, %v4815_v27  ;;  %v5131_v6 = vadd.f32 %v5130_v4, %v4823_v63  ;;  %v5091_v8 = vpop.f32.mrb[81].mxu0  ;;  %v5132_v9 = vpop.f32.mrb[81].mxu1  ;;  %v8483_v27 = vld [vmem:[%s9063_s10 + $0x158] sm:$0xff]  }
0x223a   : > { %v5092_v43 = vadd.f32 %v5091_v8, %v4819_v0  ;;  %v5133_v10 = vadd.f32 %v5132_v9, %v4827_v1  ;;  %v5093_v11 = vpop.f32.mrb[82].mxu0  ;;  %v5134_v41 = vpop.f32.mrb[82].mxu1  ;;  %v8484_v63 = vld [vmem:[%s9063_s10 + $0x1d8] sm:$0xff]  }
0x223b   : > { %v5383_v14 = vmax.f32 %v5090_v5, 0.0  ;;  %v5385_v15 = vmax.f32 %v5131_v6, 0.0  ;;  %v5094_v16 = vpop.f32.mrb[83].mxu0  ;;  %v5135_v17 = vpop.f32.mrb[83].mxu1  ;;  %v8485_v8 = vld [vmem:[%s9063_s10 + $0x118] sm:$0xff]   ;;  %v8487_v41 = vld [vmem:[%s9063_s10 + $0x160] sm:$0xff]  }
0x223c   : > { %v5384_v18 = vmax.f32 %v5092_v43, 0.0  ;;  %v5386_v19 = vmax.f32 %v5133_v10, 0.0  ;;  %v8486_v9 = vld [vmem:[%s9063_s10 + $0x198] sm:$0xff]   ;;  %v4830_v43 = vsub.s32 4, %v9113_v23  ;;  %v8489_v16 = vld [vmem:[%s9063_s10 + $0x120] sm:$0xff]  }
0x223d   : > { %v5655_v30 = vpack.c.bf16 %v5383_v14, %v5383_v14  ;;  %v5657_v28 = vpack.c.bf16 %v5385_v15, %v5385_v15  ;;  %v8488_v14 = vld [vmem:[%s9063_s10 + $0x1e0] sm:$0xff]   ;;  %v8533_v23 = vld [vmem:[%s9063_s10 + $0x238] sm:$0xff]  }
0x223e   : > { %v5656_v20 = vpack.c.bf16 %v5384_v18, %v5384_v18  ;;  %v5658_v21 = vpack.c.bf16 %v5386_v19, %v5386_v19  ;;  %v4863_v15 = vrot.slane %v9588_v57, %v4830_v43  ;;  %v8490_v17 = vld [vmem:[%s9063_s10 + $0x1a0] sm:$0xff]   ;;  %v8491_v18 = vld [vmem:[%s9063_s10 + $0x168] sm:$0xff]  }
0x223f   : > { %v8492_v19 = vld [vmem:[%s9063_s10 + $0x1e8] sm:$0xff]  }
0x2240   : > { %v9622_v32 = vpop.f32.mrb[84].mxu0  ;;  %v9624_v54 = vpop.f32.mrb[84].mxu1  ;;  %6478 = vmatprep.mubr.bf16.mxu0 %v5656_v20  ;;  %6518 = vmatprep.mubr.bf16.mxu1 %v5658_v21 }
0x2241   : > { %v5173_v34 = vpop.f32.mrb[85].mxu0  ;;  %v5214_v35 = vpop.f32.mrb[85].mxu1  ;;  %6479 = vmatmul.mubr.bf16.vlgmr.msra.gmra.mrb[96].mxu0 %v5655_v30  ;;  %6519 = vmatmul.mubr.bf16.vlgmr.msra.gmra.mrb[96].mxu1 %v5657_v28 }
0x2242   : > { %v5174_v36 = vadd.f32 %v5173_v34, %v4835_v22  ;;  %v5215_v37 = vadd.f32 %v5214_v35, %v4843_v24  ;;  %7790 = vmatpush3.bf16.msra.mxu0 %v8473_v25  ;;  %7812 = vmatpush3.bf16.msra.mxu1 %v8474_v26  ;;  %v5175_v38 = vpop.f32.mrb[86].mxu0  ;;  %v5216_v39 = vpop.f32.mrb[86].mxu1  ;;  %v4831_v34 = vrot.slane %v9598_v60, %v4830_v43  ;;  %v8514_v43 = vld [vmem:[%s9063_s10 + $0x290] sm:$0xff]  }
0x2243   : > { %v5176_v42 = vpop.f32.mrb[87].mxu0  ;;  %v5217_v44 = vpop.f32.mrb[87].mxu1  ;;  %7791 = vmatprep.subr.bf16.mxu0 %v8475_v31  ;;  %7813 = vmatprep.subr.bf16.mxu1 %v8476_v33  ;;  %v8493_v31 = vld [vmem:[%s9063_s10 + $0x128] sm:$0xff]   ;;  %v8496_v38 = vld [vmem:[%s9063_s10 + $0x1f0] sm:$0xff]   ;;  %v4851_v39 = vrot.slane %v9588_v57, %v4818_v61  ;;  %v8500_v61 = vld [vmem:[%s9063_s10 + $0x1f8] sm:$0xff]  }
0x2244   : > { %v5388_v47 = vmax.f32 %v5174_v36, 0.0  ;;  %v5390_v48 = vmax.f32 %v5215_v37, 0.0  ;;  %v8494_v33 = vld [vmem:[%s9063_s10 + $0x1a8] sm:$0xff]   ;;  %v8495_v37 = vld [vmem:[%s9063_s10 + $0x170] sm:$0xff]   ;;  %v8499_v44 = vld [vmem:[%s9063_s10 + $0x178] sm:$0xff]  }
0x2246   : > { %v5660_v51 = vpack.c.bf16 %v5388_v47, %v5388_v47  ;;  %v5662_v52 = vpack.c.bf16 %v5390_v48, %v5390_v48  ;;  %7792 = vmatpush3.bf16.msra.mxu0 %v8477_v40  ;;  %7814 = vmatpush3.bf16.msra.mxu1 %v8478_v29  ;;  %v4859_v40 = vrot.slane %v9588_v57, %v4826_v62  ;;  %v8501_v62 = vld [vmem:[%s9063_s10 + $0x138] sm:$0xff]  }
0x2247   : > { %7793 = vmatprep.subr.bf16.mxu0 %v8479_v2  ;;  %7815 = vmatprep.subr.bf16.mxu1 %v8480_v46  ;;  %v5172_v29 = vadd.f32 %v9622_v32, %v4831_v34  ;;  %v8502_v47 = vld [vmem:[%s9063_s10 + $0x1b8] sm:$0xff]   ;;  %v8503_v32 = vld [vmem:[%s9063_s10 + $0x240] sm:$0xff]   ;;  %v4875_v34 = vrot.slane %v9588_v57, %v4842_v13 }
0x2248   : > { %v5253_v0 = vpop.f32.mrb[88].mxu0  ;;  %v5294_v1 = vpop.f32.mrb[88].mxu1  ;;  %6558 = vmatprep.mubr.bf16.mxu0 %v5660_v51  ;;  %6598 = vmatprep.mubr.bf16.mxu1 %v5662_v52  ;;  %v8505_v52 = vld [vmem:[%s9063_s10 + $0x200] sm:$0xff]   ;;  %v8534_v13 = vld [vmem:[%s9063_s10 + $0x2b8] sm:$0xff]  }
0x2249   : > { %v9636_v58 = vadd.f32 %v5253_v0, %v4847_v49  ;;  %v9638_v59 = vadd.f32 %v5294_v1, %v4855_v50  ;;  %v5255_v3 = vpop.f32.mrb[89].mxu0  ;;  %v5296_v4 = vpop.f32.mrb[89].mxu1  ;;  %v5387_v48 = vmax.f32 %v5172_v29, 0.0  ;;  %v8507_v0 = vld [vmem:[%s9063_s10 + $0x248] sm:$0xff]  }
0x224a   : > { %7794 = vmatpush3.bf16.msra.mxu0 %v8481_v53  ;;  %7816 = vmatpush3.bf16.msra.mxu1 %v8482_v55  ;;  %v5257_v5 = vpop.f32.mrb[90].mxu0  ;;  %v5298_v6 = vpop.f32.mrb[90].mxu1  ;;  %v5256_v2 = vadd.f32 %v5255_v3, %v4851_v39  ;;  %v5297_v46 = vadd.f32 %v5296_v4, %v4859_v40  ;;  %v8508_v1 = vld [vmem:[%s9063_s10 + $0x2c8] sm:$0xff]   ;;  %v8535_v39 = vld [vmem:[%s9063_s10 + $0x340] sm:$0xff]  }
0x224b   : > { %v5258_v10 = vpop.f32.mrb[91].mxu0  ;;  %v5299_v11 = vpop.f32.mrb[91].mxu1  ;;  %7795 = vmatprep.subr.bf16.mxu0 %v8483_v27  ;;  %7817 = vmatprep.subr.bf16.mxu1 %v8484_v63  ;;  %v5659_v53 = vpack.c.bf16 %v5387_v48, %v5387_v48  ;;  %v8506_v27 = vld [vmem:[%s9063_s10 + $0x280] sm:$0xff]   ;;  %v8509_v4 = vld [vmem:[%s9063_s10 + $0x208] sm:$0xff]   ;;  %v8511_v6 = vld [vmem:[%s9063_s10 + $0x250] sm:$0xff]   ;;  %v5393_v40 = vmax.f32 %v9638_v59, 0.0 }
0x224c   : > { %v5392_v50 = vmax.f32 %v5256_v2, 0.0  ;;  %v5394_v51 = vmax.f32 %v5297_v46, 0.0  ;;  %v8510_v5 = vld [vmem:[%s9063_s10 + $0x288] sm:$0xff]   ;;  %v8515_v10 = vld [vmem:[%s9063_s10 + $0x258] sm:$0xff]   ;;  %v8544_v48 = vld [vmem:[%s9063_s10 + $0x3d0] sm:$0xff]  }
0x224d   : > { %v8516_v11 = vld [vmem:[%s9063_s10 + $0x2d8] sm:$0xff]   ;;  %v8540_v59 = vld [vmem:[%s9063_s10 + $0x3c8] sm:$0xff]  }
0x224e   : > { %7796 = vmatpush3.bf16.msra.mxu0 %v8485_v8  ;;  %7818 = vmatpush3.bf16.msra.mxu1 %v8486_v9  ;;  %v5664_v63 = vpack.c.bf16 %v5392_v50, %v5392_v50  ;;  %v5666_v3 = vpack.c.bf16 %v5394_v51, %v5394_v51  ;;  %v8512_v8 = vld [vmem:[%s9063_s10 + $0x2d0] sm:$0xff]   ;;  %v8541_v46 = vld [vmem:[%s9063_s10 + $0x308] sm:$0xff]   ;;  %v8548_v50 = vld [vmem:[%s9063_s10 + $0x3d8] sm:$0xff]  }
0x224f   : > { %7797 = vmatprep.subr.bf16.mxu0 %v8487_v41  ;;  %7819 = vmatprep.subr.bf16.mxu1 %v8488_v14  ;;  %v8513_v9 = vld [vmem:[%s9063_s10 + $0x210] sm:$0xff]   ;;  %v8517_v41 = vld [vmem:[%s9063_s10 + $0x218] sm:$0xff]  }
0x2250   : > { %v5335_v20 = vpop.f32.mrb[92].mxu0  ;;  %v5376_v21 = vpop.f32.mrb[92].mxu1  ;;  %v8518_v14 = vld [vmem:[%s9063_s10 + $0x298] sm:$0xff]  }
0x2251   : > { %v9650_v22 = vadd.f32 %v5335_v20, %v4863_v15  ;;  %v9653_v24 = vadd.f32 %v5376_v21, %v9593_v7  ;;  %v9655_v25 = vpop.f32.mrb[93].mxu0  ;;  %v9657_v26 = vpop.f32.mrb[93].mxu1  ;;  %v4839_v7 = vrot.slane %v9598_v60, %v4838_v56  ;;  %v8497_v56 = vld [vmem:[%s9063_s10 + $0x130] sm:$0xff]   ;;  %v8519_v15 = vld [vmem:[%s9063_s10 + $0x260] sm:$0xff]   ;;  %v8524_v20 = vld [vmem:[%s9063_s10 + $0x2e8] sm:$0xff]  }
0x2252   : > { %7798 = vmatpush3.bf16.msra.mxu0 %v8489_v16  ;;  %7820 = vmatpush3.bf16.msra.mxu1 %v8490_v17  ;;  %v5339_v30 = vpop.f32.mrb[94].mxu0  ;;  %v5380_v28 = vpop.f32.mrb[94].mxu1  ;;  %v8498_v60 = vld [vmem:[%s9063_s10 + $0x1b0] sm:$0xff]   ;;  %v8520_v16 = vld [vmem:[%s9063_s10 + $0x2e0] sm:$0xff]   ;;  %v8525_v21 = vld [vmem:[%s9063_s10 + $0x228] sm:$0xff]  }
0x2253   : > { %v5340_v35 = vpop.f32.mrb[95].mxu0  ;;  %v5381_v36 = vpop.f32.mrb[95].mxu1  ;;  %7799 = vmatprep.subr.bf16.mxu0 %v8491_v18  ;;  %7821 = vmatprep.subr.bf16.mxu1 %v8492_v19  ;;  %v5213_v42 = vadd.f32 %v9624_v54, %v4839_v7  ;;  %v8504_v54 = vld [vmem:[%s9063_s10 + $0x2c0] sm:$0xff]   ;;  %v8523_v19 = vld [vmem:[%s9063_s10 + $0x268] sm:$0xff]   ;;  %v8527_v28 = vld [vmem:[%s9063_s10 + $0x270] sm:$0xff]  }
0x2254   : > { %v8521_v17 = vld [vmem:[%s9063_s10 + $0x220] sm:$0xff]   ;;  %v8526_v30 = vld [vmem:[%s9063_s10 + $0x2a8] sm:$0xff]   ;;  %v8529_v7 = vld [vmem:[%s9063_s10 + $0x230] sm:$0xff]  }
0x2255   : > { %v5389_v49 = vmax.f32 %v5213_v42, 0.0  ;;  %v8522_v18 = vld [vmem:[%s9063_s10 + $0x2a0] sm:$0xff]   ;;  %v8530_v35 = vld [vmem:[%s9063_s10 + $0x2b0] sm:$0xff]   ;;  %v8531_v36 = vld [vmem:[%s9063_s10 + $0x278] sm:$0xff]   ;;  %v5665_v42 = vpack.c.bf16 %v5393_v40, %v5393_v40 }
0x2256   : > { %7800 = vmatpush3.bf16.msra.mxu0 %v8493_v31  ;;  %7822 = vmatpush3.bf16.msra.mxu1 %v8494_v33  ;;  %v8528_v31 = vld [vmem:[%s9063_s10 + $0x2f0] sm:$0xff]   ;;  %v4867_v33 = vrot.slane %v9588_v57, %v4834_v12  ;;  %v5379_v12 = vadd.f32 %v9657_v26, %v4875_v34  ;;  %v5391_v57 = vmax.f32 %v9636_v58, 0.0  ;;  %v8538_v58 = vld [vmem:[%s9063_s10 + $0x380] sm:$0xff]   ;;  %v8549_v51 = vld [vmem:[%s9063_s10 + $0x318] sm:$0xff]  }
0x2257   : > { %7801 = vmatprep.subr.bf16.mxu0 %v8495_v37  ;;  %7823 = vmatprep.subr.bf16.mxu1 %v8496_v38  ;;  %v5661_v55 = vpack.c.bf16 %v5389_v49, %v5389_v49  ;;  %v8532_v37 = vld [vmem:[%s9063_s10 + $0x2f8] sm:$0xff]   ;;  %v8545_v49 = vld [vmem:[%s9063_s10 + $0x310] sm:$0xff]  }
0x2258   : > { %v5338_v38 = vadd.f32 %v9655_v25, %v4867_v33  ;;  %v5398_v29 = vmax.f32 %v5379_v12, 0.0  ;;  %v8537_v25 = vld [vmem:[%s9063_s10 + $0x300] sm:$0xff]   ;;  %v5663_v26 = vpack.c.bf16 %v5391_v57, %v5391_v57 }
0x225a   : > { %7802 = vmatpush3.bf16.msra.mxu0 %v8497_v56  ;;  %7824 = vmatpush3.bf16.msra.mxu1 %v8498_v60  ;;  %v8536_v56 = vld [vmem:[%s9063_s10 + $0x3c0] sm:$0xff]   ;;  %v5396_v60 = vmax.f32 %v5338_v38, 0.0  ;;  %v5670_v2 = vpack.c.bf16 %v5398_v29, %v5398_v29 }
0x225b   : > { %7803 = vmatprep.subr.bf16.mxu0 %v8499_v44  ;;  %7825 = vmatprep.subr.bf16.mxu1 %v8500_v61  ;;  %v8539_v44 = vld [vmem:[%s9063_s10 + $0x348] sm:$0xff]  }
0x225c   : > { %v5668_v61 = vpack.c.bf16 %v5396_v60, %v5396_v60 }
0x225e   : > { %7804 = vmatpush3.bf16.msra.mxu0 %v8501_v62  ;;  %7826 = vmatpush3.bf16.msra.mxu1 %v8502_v47  ;;  %v8542_v62 = vld [vmem:[%s9063_s10 + $0x388] sm:$0xff]   ;;  %v8543_v47 = vld [vmem:[%s9063_s10 + $0x350] sm:$0xff]  }
0x225f   : > { %7833 = vmatprep.subr.bf16.mxu0 %v8503_v32  ;;  %7855 = vmatprep.subr.bf16.mxu1 %v8504_v54  ;;  %v8546_v32 = vld [vmem:[%s9063_s10 + $0x390] sm:$0xff]   ;;  %v8547_v54 = vld [vmem:[%s9063_s10 + $0x358] sm:$0xff]  }
0x2261   : > { %6559 = vmatmul.mubr.bf16.vlgmr.msra.gmra.mrb[100].mxu0 %v5659_v53  ;;  %6599 = vmatmul.mubr.bf16.vlgmr.msra.gmra.mrb[100].mxu1 %v5661_v55  ;;  %v8551_v53 = vld [vmem:[%s9063_s10 + $0x360] sm:$0xff]  }
0x2262   : > { %7834 = vmatpush3.bf16.msra.mxu0 %v8505_v52  ;;  %6638 = vmatprep.mubr.bf16.mxu0 %v5664_v63  ;;  %v8550_v52 = vld [vmem:[%s9063_s10 + $0x398] sm:$0xff]   ;;  %v8552_v55 = vld [vmem:[%s9063_s10 + $0x3e0] sm:$0xff]  }
0x2263   : > { %7856 = vmatpush3.bf16.msra.mxu1 %v8506_v27  ;;  %6678 = vmatprep.mubr.bf16.mxu1 %v5666_v3  ;;  %v8553_v27 = vld [vmem:[%s9063_s10 + $0x320] sm:$0xff]   ;;  %v8557_v3 = vld [vmem:[%s9063_s10 + $0x328] sm:$0xff]  }
0x2264   : > { %7835 = vmatprep.subr.bf16.mxu0 %v8507_v0  ;;  %7857 = vmatprep.subr.bf16.mxu1 %v8508_v1  ;;  %v8554_v63 = vld [vmem:[%s9063_s10 + $0x3a0] sm:$0xff]   ;;  %v8555_v0 = vld [vmem:[%s9063_s10 + $0x368] sm:$0xff]  }
0x2265   : > { %v8556_v1 = vld [vmem:[%s9063_s10 + $0x3e8] sm:$0xff]  }
0x2266   : > { %7836 = vmatpush3.bf16.msra.mxu0 %v8509_v4  ;;  %v8558_v4 = vld [vmem:[%s9063_s10 + $0x3a8] sm:$0xff]  }
0x2267   : > { %7858 = vmatpush3.bf16.msra.mxu1 %v8510_v5  ;;  %7837 = vmatprep.subr.bf16.mxu0 %v8511_v6  ;;  %v8559_v5 = vld [vmem:[%s9063_s10 + $0x370] sm:$0xff]  }
0x2268   : > { %7859 = vmatprep.subr.bf16.mxu1 %v8512_v8  ;;  %v8560_v6 = vld [vmem:[%s9063_s10 + $0x3f0] sm:$0xff]  }
0x2269   : > { %v8561_v8 = vld [vmem:[%s9063_s10 + $0x330] sm:$0xff]  }
0x226a   : > { %7838 = vmatpush3.bf16.msra.mxu0 %v8513_v9  ;;  %v8562_v9 = vld [vmem:[%s9063_s10 + $0x3b0] sm:$0xff]  }
0x226b   : > { %7860 = vmatpush3.bf16.msra.mxu1 %v8514_v43  ;;  %7839 = vmatprep.subr.bf16.mxu0 %v8515_v10  ;;  %v8563_v43 = vld [vmem:[%s9063_s10 + $0x378] sm:$0xff]  }
0x226c   : > { %7861 = vmatprep.subr.bf16.mxu1 %v8516_v11  ;;  %v8564_v10 = vld [vmem:[%s9063_s10 + $0x3f8] sm:$0xff]  }
0x226d   : > { %v8565_v11 = vld [vmem:[%s9063_s10 + $0x338] sm:$0xff]  }
0x226e   : > { %7840 = vmatpush3.bf16.msra.mxu0 %v8517_v41  ;;  %v5395_v41 = vmax.f32 %v9650_v22, 0.0 }
0x226f   : > { %7862 = vmatpush3.bf16.msra.mxu1 %v8518_v14  ;;  %7841 = vmatprep.subr.bf16.mxu0 %v8519_v15  ;;  %v8566_v14 = vld [vmem:[%s9063_s10 + $0x3b8] sm:$0xff]   ;;  %v5397_v15 = vmax.f32 %v9653_v24, 0.0 }
0x2270   : > { %7863 = vmatprep.subr.bf16.mxu1 %v8520_v16  ;;  %v5667_v16 = vpack.c.bf16 %v5395_v41, %v5395_v41 }
0x2272   : > { %7842 = vmatpush3.bf16.msra.mxu0 %v8521_v17  ;;  %v5669_v17 = vpack.c.bf16 %v5397_v15, %v5397_v15  ;;  %v7597_v15 = vld [vmem:[%s1441_s23] ss:$0 sm:$0xff] }
0x2273   : > { %7864 = vmatpush3.bf16.msra.mxu1 %v8522_v18  ;;  %7843 = vmatprep.subr.bf16.mxu0 %v8523_v19 }
0x2274   : > { %7865 = vmatprep.subr.bf16.mxu1 %v8524_v20  ;;  %v7468_v20 = vld [vmem:[%s1438_s17] ss:$0 sm:$0xff] }
0x2276   : > { %7844 = vmatpush3.bf16.msra.mxu0 %v8525_v21 }
0x2277   : > { %7866 = vmatpush3.bf16.msra.mxu1 %v8526_v30  ;;  %7845 = vmatprep.subr.bf16.mxu0 %v8527_v28 }
0x2278   : > { %7867 = vmatprep.subr.bf16.mxu1 %v8528_v31 }
0x227a   : > { %7846 = vmatpush3.bf16.msra.mxu0 %v8529_v7 }
0x227b   : > { %7868 = vmatpush3.bf16.msra.mxu1 %v8530_v35  ;;  %7847 = vmatprep.subr.bf16.mxu0 %v8531_v36 }
0x227c   : > { %7869 = vmatprep.subr.bf16.mxu1 %v8532_v37 }
0x227e   : > { %7848 = vmatpush3.bf16.msra.mxu0 %v8533_v23 }
0x227f   : > { %7870 = vmatpush3.bf16.msra.mxu1 %v8534_v13  ;;  %7877 = vmatprep.subr.bf16.mxu0 %v8535_v39 }
0x2280   : > { %7899 = vmatprep.subr.bf16.mxu1 %v8536_v56 }
0x2281   : > { %6639 = vmatmul.mubr.bf16.vlgmr.msra.gmra.mrb[104].mxu0 %v5663_v26 }
0x2282   : > { %6679 = vmatmul.mubr.bf16.vlgmr.msra.gmra.mrb[104].mxu1 %v5665_v42  ;;  %7878 = vmatpush3.bf16.msra.mxu0 %v8537_v25 }
0x2283   : > { %6718 = vmatprep.mubr.bf16.mxu0 %v5668_v61  ;;  %7900 = vmatpush3.bf16.msra.mxu1 %v8538_v58 }
0x2284   : > { %6758 = vmatprep.mubr.bf16.mxu1 %v5670_v2  ;;  %7879 = vmatprep.subr.bf16.mxu0 %v8539_v44 }
0x2285   : > { %7901 = vmatprep.subr.bf16.mxu1 %v8540_v59 }
0x2286   : > { %7880 = vmatpush3.bf16.msra.mxu0 %v8541_v46 }
0x2287   : > { %7902 = vmatpush3.bf16.msra.mxu1 %v8542_v62  ;;  %7881 = vmatprep.subr.bf16.mxu0 %v8543_v47 }
0x2288   : > { %7903 = vmatprep.subr.bf16.mxu1 %v8544_v48 }
0x228a   : > { %7882 = vmatpush3.bf16.msra.mxu0 %v8545_v49 }
0x228b   : > { %7904 = vmatpush3.bf16.msra.mxu1 %v8546_v32  ;;  %7883 = vmatprep.subr.bf16.mxu0 %v8547_v54 }
0x228c   : > { %7905 = vmatprep.subr.bf16.mxu1 %v8548_v50 }
0x228e   : > { %7884 = vmatpush3.bf16.msra.mxu0 %v8549_v51 }
0x228f   : > { %7906 = vmatpush3.bf16.msra.mxu1 %v8550_v52  ;;  %7885 = vmatprep.subr.bf16.mxu0 %v8551_v53 }
0x2290   : > { %7907 = vmatprep.subr.bf16.mxu1 %v8552_v55 }
0x2292   : > { %7886 = vmatpush3.bf16.msra.mxu0 %v8553_v27 }
0x2293   : > { %7908 = vmatpush3.bf16.msra.mxu1 %v8554_v63  ;;  %7887 = vmatprep.subr.bf16.mxu0 %v8555_v0 }
0x2294   : > { %7909 = vmatprep.subr.bf16.mxu1 %v8556_v1 }
0x2296   : > { %7888 = vmatpush3.bf16.msra.mxu0 %v8557_v3 }
0x2297   : > { %7910 = vmatpush3.bf16.msra.mxu1 %v8558_v4  ;;  %7889 = vmatprep.subr.bf16.mxu0 %v8559_v5 }
0x2298   : > { %7911 = vmatprep.subr.bf16.mxu1 %v8560_v6 }
0x229a   : > { %7890 = vmatpush3.bf16.msra.mxu0 %v8561_v8 }
0x229b   : > { %7912 = vmatpush3.bf16.msra.mxu1 %v8562_v9  ;;  %7891 = vmatprep.subr.bf16.mxu0 %v8563_v43 }
0x229c   : > { %7913 = vmatprep.subr.bf16.mxu1 %v8564_v10 }
0x229e   : > { %7892 = vmatpush3.bf16.msra.mxu0 %v8565_v11 }
0x229f   : > { %7914 = vmatpush3.bf16.msra.mxu1 %v8566_v14 }
0x22a1   : > { %6719 = vmatmul.mubr.bf16.vlgmr.msra.gmra.mrb[108].mxu0 %v5667_v16  ;;  %v7598_v16 = vld [vmem:[%s1444_s21] ss:$0 sm:$0xff] }
0x22a2   : > { %6759 = vmatmul.mubr.bf16.vlgmr.msra.gmra.mrb[108].mxu1 %v5669_v17 }
0x2314   : > { %v7761_v18 = vpop.f32.mrb[96].mxu0  ;;  %v7783_v19 = vpop.f32.mrb[96].mxu1 }
0x2315   : > { %v7762_v21 = vpop.f32.mrb[97].mxu0  ;;  %v7784_v30 = vpop.f32.mrb[97].mxu1 }
0x2316   : > { %v7763_v28 = vadd.f32 %v7762_v21, %v7761_v18  ;;  %v7785_v22 = vadd.f32 %v7784_v30, %v7783_v19  ;;  %v7764_v31 = vpop.f32.mrb[98].mxu0  ;;  %v7786_v33 = vpop.f32.mrb[98].mxu1 }
0x2317   : > { %v7765_v34 = vpop.f32.mrb[99].mxu0  ;;  %v7787_v7 = vpop.f32.mrb[99].mxu1 }
0x2318   : > { %v6481_v24 = vadd.f32 %v7763_v28, %v7468_v20 }
0x231a   : > { %v6521_v35 = vadd.f32 %v7785_v22, %v6481_v24  ;;  %v7600_v24 = vld [vmem:[%s9980_s15] ss:$0 sm:$0xff] (!%p7599_p1) }
0x2334   : > { %v7805_v36 = vpop.f32.mrb[100].mxu0  ;;  %v7827_v37 = vpop.f32.mrb[100].mxu1 }
0x2335   : > { %v7806_v38 = vpop.f32.mrb[101].mxu0  ;;  %v7828_v12 = vpop.f32.mrb[101].mxu1 }
0x2336   : > { %v7807_v23 = vadd.f32 %v7806_v38, %v7805_v36  ;;  %v7829_v57 = vadd.f32 %v7828_v12, %v7827_v37  ;;  %v7808_v13 = vpop.f32.mrb[102].mxu0  ;;  %v7830_v39 = vpop.f32.mrb[102].mxu1  ;;  %v7601_v36 = vld [vmem:[%s9981_s2] ss:$0 sm:$0xff] (!%p7599_p1) }
0x2337   : > { %v7809_v40 = vpop.f32.mrb[103].mxu0  ;;  %v7831_v56 = vpop.f32.mrb[103].mxu1 }
0x2338   : > { %v6561_v60 = vadd.f32 %v7807_v23, %v6521_v35 }
0x233a   : > { %v6601_v29 = vadd.f32 %v7829_v57, %v6561_v60 }
0x2354   : > { %v7849_v25 = vpop.f32.mrb[104].mxu0 }
0x2355   : > { %v7871_v26 = vpop.f32.mrb[104].mxu1  ;;  %v7850_v58 = vpop.f32.mrb[105].mxu0 }
0x2356   : > { %v7851_v42 = vadd.f32 %v7850_v58, %v7849_v25  ;;  %v7872_v44 = vpop.f32.mrb[105].mxu1  ;;  %v7852_v61 = vpop.f32.mrb[106].mxu0 }
0x2357   : > { %v7873_v59 = vadd.f32 %v7872_v44, %v7871_v26  ;;  %v7874_v2 = vpop.f32.mrb[106].mxu1  ;;  %v7853_v46 = vpop.f32.mrb[107].mxu0 }
0x2358   : > { %v6641_v62 = vadd.f32 %v7851_v42, %v6601_v29  ;;  %v7875_v47 = vpop.f32.mrb[107].mxu1 }
0x235a   : > { %v6681_v48 = vadd.f32 %v7873_v59, %v6641_v62 }
0x2374   : > { %v7893_v49 = vpop.f32.mrb[108].mxu0 }
0x2375   : > { %v7915_v32 = vpop.f32.mrb[108].mxu1  ;;  %v7894_v54 = vpop.f32.mrb[109].mxu0 }
0x2376   : > { %v7895_v50 = vadd.f32 %v7894_v54, %v7893_v49  ;;  %v7916_v51 = vpop.f32.mrb[109].mxu1  ;;  %v7896_v52 = vpop.f32.mrb[110].mxu0 }
0x2377   : > { %v7917_v53 = vadd.f32 %v7916_v51, %v7915_v32  ;;  %v7918_v55 = vpop.f32.mrb[110].mxu1  ;;  %v7897_v27 = vpop.f32.mrb[111].mxu0 }
0x2378   : > { %v6721_v63 = vadd.f32 %v7895_v50, %v6681_v48  ;;  %v7919_v0 = vpop.f32.mrb[111].mxu1 }
0x237a   : > { %v6761_v1 = vadd.f32 %v7917_v53, %v6721_v63 }
0x237c   : > { %v6766_v3 = vadd.f32 %v6761_v1, %v9508_v45 }
0x237e   : > { %v6769_v4 = vsel %vm1552_vm2, %v6766_v3, 0.0 }
0x237f   : > { %6770 = vadd.xlane.f32.xlu0 %v6769_v4 }
0x240c   : > { %v6771_v5 = vpop.xlane.xlu0 %6770 }
0x240d   : > { %v6772_v6 = vmul.f32 0.03125, %v6771_v5 }
0x240f   : > { %v6773_v8 = vsub.f32 %v6766_v3, %v6772_v6 }
0x2411   : > { %v6774_v9 = vmul.f32 %v6773_v8, %v6773_v8 }
0x2413   : > { %v6775_v43 = vsel %vm1552_vm2, %v6774_v9, 0.0 }
0x2414   : > { %6776 = vadd.xlane.f32.xlu1 %v6775_v43 }
0x24a1   : > { %v6777_v10 = vpop.xlane.xlu1 %6776 }
0x24a2   : > { %v6778_v11 = vmul.f32 0.03125, %v6777_v10 }
0x24a4   : > { %v6779_v41 = vadd.f32 1e-05, %v6778_v11 }
0x24a6   : > { %8603 = vrsqrt.f32 %v6779_v41 }
0x24b0   : > { %v8604_v14 = vpop.eup %8603 }
0x24b1   : > { %v6781_v45 = vmul.f32 %v8604_v14, %v6773_v8  ;;  %6800 = sbr.rel (%p7599_p1) target bundleno = 9713 (0x25f1), region = 152 }
0x24b3   : > { %v6788_v17 = vmul.f32 %v7597_v15, %v6781_v45 }
0x24b5   : > { %v6795_v18 = vadd.f32 %v7598_v16, %v6788_v17 }
0x24b7   : > { %6796 = vst.msk [vmem:[#allocation2] sm:$0xff] %vm1552_vm2, %v6795_v18  ;;  %v6803_v19 = vsel (!%p7599_p1), %vm1552_vm2, %v6795_v18, 0.0 }
0x24b8   : > { %6804 = vadd.xlane.f32.xlu0 %v6803_v19 }
0x2545   : > { %v6805_v20 = vpop.xlane.xlu0 %6804 }
0x2546   : > { %v6806_v21 = vmul.f32 0.03125, %v6805_v20 }
0x2548   : > { %v6807_v30 = vsub.f32 %v6795_v18, %v6806_v21 }
0x254a   : > { %v6808_v28 = vmul.f32 %v6807_v30, %v6807_v30 }
0x254c   : > { %v6809_v22 = vsel %vm1552_vm2, %v6808_v28, 0.0 }
0x254d   : > { %6810 = vadd.xlane.f32.xlu0 %v6809_v22 }
0x25da   : > { %v6811_v31 = vpop.xlane.xlu0 %6810 }
0x25db   : > { %v6812_v33 = vmul.f32 0.03125, %v6811_v31 }
0x25dd   : > { %v6813_v34 = vadd.f32 1e-05, %v6812_v33 }
0x25df   : > { %8606 = vrsqrt.f32 %v6813_v34 }
0x25e9   : > { %v8607_v7 = vpop.eup %8606 }
0x25ea   : > { %v6815_v35 = vmul.f32 %v8607_v7, %v6807_v30 }
0x25ec   : > { %v6822_v37 = vmul.f32 %v7600_v24, %v6815_v35 }
0x25ee   : > { %v6829_v38 = vadd.f32 %v7601_v36, %v6822_v37 }
0x25f0   : > { %6830 = vst.msk [vmem:[%s1327_s12] sm:$0xff] %vm1552_vm2, %v6829_v38 }
0x25f1 PF: > { %s9983_s21 = sld [smem:[#allocation42_spill]]  ;;  %s9984_s16 = sld [smem:[#allocation37_spill]] }
0x25f2   : > { %s9986_s3 = sld [smem:[#allocation39_spill]]  ;;  %s6845_s22 = sshll.u32 %s1327_s12, 4  ;;  %s6846_s22 = int_to_ptr.vmem [resolvable:$true] %s6845_s22 }
0x25f3   : > { %s8608_s1 = scalar_lea.vmem %s6846_s22, 128  ;;  %s8739_s0 = smov [#allocation3]  }
0x25f4   : > { %p8609_p2 = scmp.ne.s32.totalorder %s6846_s22, %s8608_s1  ;;  %s8612_s7 = sshll.u32 %s8739_s0, 4  ;;  %s8613_s7 = int_to_ptr.vmem [resolvable:$false] %s8612_s7 }
0x25f5   : > { %s8614_s11 = scalar_lea.vmem %s8613_s7, 256  ;;  %p8615_p6 = scmp.lt.s32.totalorder %s6846_s22, %s8613_s7 }
0x25f6   : > { %p8610_p4 = pnand %p8609_p2, %p8954_p3  ;;  %p8616_p7 = scmp.lt.s32.totalorder %s8614_s11, %s8608_s1 }
0x25f7   : > { %s7603_s14 = sshll.u32 %s9983_s21, 7 }
0x25f8   : > { %s9780_s20 = scalar_lea.hbm %s9984_s16, %s7603_s14  ;;  %s9988_s26 = sand.u32 1, %s9986_s3  }
0x25f9   : > { %s6832_s28 = scalar_lea.sflag [#allocation4], %s9988_s26  ;;  %p8611_p5 = pneg %p8610_p4 }
0x25fa   : > { %p8617_p8 = por %p8616_p7, %p8615_p6 }
0x25fc   : > { %p8618_p10 = pnand %p8617_p8, %p8611_p5 }
0x25fe   : > { %8621 = shalt.err (!%p8618_p10)
}
0x25ff   : > { %s8622_s12 = scalar_lea.hbm %s9780_s20, 128  ;;  %s8626_s18 = scalar_lea.hbm %s9984_s16, 256 }
0x2600   : > { %p8623_p11 = scmp.ne.s32.totalorder %s9780_s20, %s8622_s12  ;;  %p8627_p0 = scmp.lt.u32.totalorder %s9780_s20, %s9984_s16 }
0x2601   : > { %p8628_p1 = scmp.lt.u32.totalorder %s8626_s18, %s8622_s12  ;;  %p8630_p4 = scmp.lt.u32.totalorder %s8622_s12, %s9780_s20 }
0x2602   : > { %p8624_p12 = pnand %p8623_p11, %p8954_p3 }
0x2603   : > { %p8629_p2 = por %p8628_p1, %p8627_p0 }
0x2604   : > { %p8625_p13 = pneg %p8624_p12 }
0x2605   : > { %p8631_p6 = por %p8630_p4, %p8629_p2 }
0x2607   : > { %p8632_p5 = pnand %p8631_p6, %p8625_p13 }
0x2609   : > { %8635 = shalt.err (!%p8632_p5)
}
0x260a   : > { %8285 = dma.vmem_to_hbm [thread:$0]  (%p8954_p3), %s6846_s22, 128, %s9780_s20, %s6832_s28  }
0x260b PF: > { %s9989_s27 = sld [smem:[#allocation45_spill]]  ;;  %s9990_s9 = sld [smem:[#allocation38_spill]] }
0x2611   : > { %p8291_p7 = scmp.ge.s32.totalorder %s9989_s27, 2  ;;  %s6857_s5 = sand.u32 1, %s9990_s9  }
0x2612   : > { %s6858_s13 = scalar_lea.sflag [#allocation4], %s6857_s5 }
0x2613   : > { %p8288_p8 = pnand %p8291_p7, %p8964_p9 }
0x2615   : > { %8669 = dma.done.wait (!%p8288_p8), %s6858_s13, 128  }
0x2616   : > { %8671 = vsyncadd (!%p8288_p8), %s6858_s13, 4294967168  ;;  %s76_s10 = sadd.s32 1, %s9989_s27   ;;  %s9992_s22 = sld [smem:[#allocation39_spill]] }
0x2617   : > { %p73_p10 = scmp.ge.s32.totalorder %s76_s10, 6   ;;  %s9993_s23 = sld [smem:[#allocation40_spill]] }
0x2618   : > { %s9994_s26 = sld [smem:[#allocation50_spill]]  ;;  %s9995_s28 = sld [smem:[#allocation43_spill]] }
0x2619   : > { %s9996_s1 = sld [smem:[#allocation44_spill]]  ;;  %s9997_s2 = sld [smem:[#allocation46_spill]] }
0x261a   : > { %s9998_s7 = sld [smem:[#allocation48_spill]]  ;;  %75 = sbr.rel (!%p73_p10) target bundleno = 80 (0x50), region = 302 }
0x2621   :  { %6863 = vsyncpa [#allocation4], 1 }
0x2622   :  { %6865 = vsyncpa [#allocation4 + $0x1], 1 }

</bundles_post_ra>
